<compile_context>
chip_gen: v7x
topology: tpu7x:2x2x1
jax: 0.10.0
libtpu: 0.0.40
codegen_flags: <defaults>
</compile_context>

<pallas_src>
import functools

import jax
import jax.numpy as jnp
from jax import lax
from jax.experimental import pallas as pl
from jax.experimental.pallas import tpu as pltpu


# ----------------------------------------------------------------------------
# Generation-aware VMEM budgeting
# ----------------------------------------------------------------------------
@functools.lru_cache(maxsize=None)
def _vmem_limit_bytes():
    cap = None
    try:
        cap = getattr(pltpu.get_tpu_info(), "vmem_capacity_bytes", None)
    except Exception:
        cap = None
    if not cap:
        return 48 * 1024 * 1024            # conservative fallback, safe on v5e/v6e/v7x
    return int(cap) * 3 // 4               # ~75%: headroom for compiler scratch/pipeline


def _silu(x):
    # exp and the approximate reciprocal both issue on the EUP slot.
    return x * pl.reciprocal(1.0 + jnp.exp(-x), approx=True)


# ----------------------------------------------------------------------------
# Fused pointwise (1x1 conv) + folded BN + SiLU over a LIST of inputs:
#     out = silu( (sum_i x_i @ w_i) * scale + bias )
# Multiple inputs implement the final C2f cv2 applied to the channel concat of
# the branches without ever materializing the concat.
# ----------------------------------------------------------------------------
def _make_pointwise_kernel(n_in):
    def kernel(*refs):
        xs = refs[:n_in]
        ws = refs[n_in:2 * n_in]
        scale_ref, bias_ref, o_ref = refs[2 * n_in:2 * n_in + 3]
        acc = jnp.dot(xs[0][...].astype(jnp.bfloat16), ws[0][...],
                      preferred_element_type=jnp.float32)
        for i in range(1, n_in):
            acc = acc + jnp.dot(xs[i][...].astype(jnp.bfloat16), ws[i][...],
                                preferred_element_type=jnp.float32)
        y = acc * scale_ref[...] + bias_ref[...]          # f32 epilogue
        o_ref[...] = _silu(y).astype(o_ref.dtype)
    return kernel


def _pick_tm(M, cin_total, cout, in_bytes, budget, tm_cap=4096):
    """Row-tile size for pointwise kernels, sized against the VMEM budget."""
    per_row = (2 * cin_total * in_bytes      # double-buffered input blocks
               + 2 * cout * in_bytes         # double-buffered output block
               + cout * 4                    # f32 accumulator
               + cin_total * 2)              # bf16 casts of the activations
    tm = min(tm_cap, max(8, budget // max(per_row, 1)))
    if tm >= M:
        return M
    return max(8, (tm // 8) * 8)


def pointwise_bn_silu(xs2d, ws, scale, bias):
    """xs2d: list of (M, Cin_i) arrays; ws: list of (Cin_i, Cout) weights."""
    M = xs2d[0].shape[0]
    Cout = ws[0].shape[1]
    ws = [w.astype(jnp.bfloat16) for w in ws]
    vmem = _vmem_limit_bytes()
    cin_total = sum(x.shape[1] for x in xs2d)
    TM = _pick_tm(M, cin_total, Cout, xs2d[0].dtype.itemsize,
                  min(vmem // 2, 32 << 20))
    grid = (pl.cdiv(M, TM),)
    in_specs = [pl.BlockSpec((TM, x.shape[1]), lambda i: (i, 0)) for x in xs2d]
    in_specs += [pl.BlockSpec((w.shape[0], Cout), lambda i: (0, 0)) for w in ws]
    in_specs += [pl.BlockSpec((1, Cout), lambda i: (0, 0)),
                 pl.BlockSpec((1, Cout), lambda i: (0, 0))]
    return pl.pallas_call(
        _make_pointwise_kernel(len(xs2d)),
        out_shape=jax.ShapeDtypeStruct((M, Cout), xs2d[0].dtype),
        grid_spec=pltpu.PrefetchScalarGridSpec(
            num_scalar_prefetch=0,
            grid=grid,
            in_specs=in_specs,
            out_specs=pl.BlockSpec((TM, Cout), lambda i: (i, 0))),
        compiler_params=pltpu.CompilerParams(
            dimension_semantics=("parallel",),
            vmem_limit_bytes=vmem),
    )(*xs2d, *ws, scale, bias)


# ----------------------------------------------------------------------------
# C2f cv1: 1x1 conv + BN + SiLU, emitting the two chunk halves as two separate
# contiguous outputs (avoids the lane-offset channel slice y[..., c_:]).
# ----------------------------------------------------------------------------
def _cv1_split_kernel(x_ref, wa_ref, wb_ref, sa_ref, ba_ref, sb_ref, bb_ref,
                      oa_ref, ob_ref):
    xb = x_ref[...].astype(jnp.bfloat16)
    ya = jnp.dot(xb, wa_ref[...], preferred_element_type=jnp.float32)
    oa_ref[...] = _silu(ya * sa_ref[...] + ba_ref[...]).astype(oa_ref.dtype)
    yb = jnp.dot(xb, wb_ref[...], preferred_element_type=jnp.float32)
    ob_ref[...] = _silu(yb * sb_ref[...] + bb_ref[...]).astype(ob_ref.dtype)


def conv1x1_bn_silu_split(x_nhwc, w, scale, bias):
    N, H, W, Cin = x_nhwc.shape
    C2 = w.shape[1]
    c_ = C2 // 2
    M = N * H * W
    x2d = x_nhwc.reshape(M, Cin)
    wa = w[:, :c_].astype(jnp.bfloat16)
    wb = w[:, c_:].astype(jnp.bfloat16)
    sa, sb = scale[:, :c_], scale[:, c_:]
    ba, bb = bias[:, :c_], bias[:, c_:]
    vmem = _vmem_limit_bytes()
    TM = _pick_tm(M, Cin, C2, x_nhwc.dtype.itemsize, min(vmem // 2, 32 << 20))
    grid = (pl.cdiv(M, TM),)
    ya, yb = pl.pallas_call(
        _cv1_split_kernel,
        out_shape=(jax.ShapeDtypeStruct((M, c_), x_nhwc.dtype),
                   jax.ShapeDtypeStruct((M, c_), x_nhwc.dtype)),
        grid_spec=pltpu.PrefetchScalarGridSpec(
            num_scalar_prefetch=0,
            grid=grid,
            in_specs=[pl.BlockSpec((TM, Cin), lambda i: (i, 0)),
                      pl.BlockSpec((Cin, c_), lambda i: (0, 0)),
                      pl.BlockSpec((Cin, c_), lambda i: (0, 0)),
                      pl.BlockSpec((1, c_), lambda i: (0, 0)),
                      pl.BlockSpec((1, c_), lambda i: (0, 0)),
                      pl.BlockSpec((1, c_), lambda i: (0, 0)),
                      pl.BlockSpec((1, c_), lambda i: (0, 0))],
            out_specs=[pl.BlockSpec((TM, c_), lambda i: (i, 0)),
                       pl.BlockSpec((TM, c_), lambda i: (i, 0))]),
        compiler_params=pltpu.CompilerParams(
            dimension_semantics=("parallel",),
            vmem_limit_bytes=vmem),
    )(x2d, wa, wb, sa, ba, sb, bb)
    return ya.reshape(N, H, W, c_), yb.reshape(N, H, W, c_)


# ----------------------------------------------------------------------------
# Fused Bottleneck kernel:
#     t   = silu(bn1(conv1x1(x)))
#     y   = silu(bn2(conv3x3(t)))   (pad=1)
#     out = y + x
# Grid = (N, H // TH) row strips.  The strip plus its two 1-row halos are
# fetched through regular BlockSpecs (clamped index maps), so the HBM reads
# are auto double-buffered; the zero padding of the 3x3 input is rebuilt in
# VMEM (scalar row masks + structural zero columns).
# ----------------------------------------------------------------------------
def _make_bottleneck_kernel(TH, W, c_, use_taps):
    Hp, Wp = TH + 2, W + 2

    def kernel(xm_ref, xt_ref, xb_ref, w1_ref, s1_ref, b1_ref,
               w2_ref, s2_ref, b2_ref, o_ref):
        t = pl.program_id(1)
        bf16 = jnp.bfloat16

        def cv1(x2d):
            h = jnp.dot(x2d.astype(bf16), w1_ref[...],
                        preferred_element_type=jnp.float32)
            return _silu(h * s1_ref[...] + b1_ref[...])

        x_mid = xm_ref[0]                                           # (TH, W, c_)
        t_mid = cv1(x_mid.reshape(TH * W, c_)).reshape(TH, W, c_)

        # Halo rows: cv1 of the neighbouring image rows.  Rows that fall in
        # the 3x3 conv's zero padding must be zeroed (silu(bn1(0)) != 0, and
        # the clamped index map re-reads a real row there instead).
        t_top = cv1(xt_ref[0].reshape(W, c_)).reshape(1, W, c_)
        t_top = t_top * (t > 0).astype(jnp.float32)
        t_bot = cv1(xb_ref[0].reshape(W, c_)).reshape(1, W, c_)
        t_bot = t_bot * (t < pl.num_programs(1) - 1).astype(jnp.float32)

        # Assemble the zero-padded cv1 strip: (TH+2, W+2, c_) in bf16.
        zcol = jnp.zeros((Hp, 1, c_), jnp.float32)
        t1 = jnp.concatenate([t_top, t_mid, t_bot], axis=0)
        t1p = jnp.concatenate([zcol, t1, zcol], axis=1).astype(bf16)

        # cv2: 3x3 conv.
        if use_taps:
            # 9 accumulated per-tap matmuls (small VMEM working set).
            acc = None
            for ky in range(3):
                for kx in range(3):
                    patch = t1p[ky:ky + TH, kx:kx + W, :].reshape(TH * W, c_)
                    part = jnp.dot(patch, w2_ref[ky * 3 + kx],
                                   preferred_element_type=jnp.float32)
                    acc = part if acc is None else acc + part
            y = acc
        else:
            # Single im2col matmul with K = 9*c_ (fills the MXU depth for
            # small channel counts).
            cols = jnp.concatenate(
                [t1p[ky:ky + TH, kx:kx + W, :].reshape(TH * W, c_)
                 for ky in range(3) for kx in range(3)], axis=-1)
            y = jnp.dot(cols, w2_ref[...], preferred_element_type=jnp.float32)
        y = _silu(y * s2_ref[...] + b2_ref[...]).reshape(TH, W, c_)

        # Shortcut add: the residual strip is already resident in VMEM.
        o_ref[0] = (y + x_mid.astype(jnp.float32)).astype(o_ref.dtype)

    return kernel


def _pick_th(H, W, c, in_bytes, budget, use_taps):
    """Largest divisor of H whose per-strip working set fits the budget."""
    # TODO(synk): support non-divisor TH via a cdiv grid + in-kernel row mask.
    best = 1
    for th in range(1, H + 1):
        if H % th:
            continue
        hp, wp = th + 2, W + 2
        io = 2 * (th + 2) * W * c * in_bytes + 2 * th * W * c * in_bytes
        t1 = hp * wp * c * (4 + 2)                      # f32 strip + bf16 copy
        if use_taps:
            conv = th * W * c * (4 + 2 + 4)             # acc + bf16 patch + partial
        else:
            conv = th * W * 9 * c * 2 + th * W * c * 4  # bf16 im2col + f32 result
        misc = 2 * th * W * c * 4 + 10 * c * c * 2      # residual/silu temps + weights
        if int(1.5 * (io + t1 + conv + misc)) <= budget:
            best = th
    return best


def bottleneck_fused(prev_nhwc, m_params):
    N, H, W, c_ = prev_nhwc.shape
    w1 = m_params["cv1"]["w"].astype(jnp.bfloat16)
    s1, b1 = m_params["cv1"]["scale"], m_params["cv1"]["bias"]
    w2 = m_params["cv2"]["w"]                      # (3, 3, c_, c_) HWIO
    assert w2.shape == (3, 3, c_, c_), "shortcut add requires cin == cout"
    s2, b2 = m_params["cv2"]["scale"], m_params["cv2"]["bias"]

    use_taps = c_ >= 128
    if use_taps:
        w2k = w2.reshape(9, c_, c_).astype(jnp.bfloat16)
        w2_spec = pl.BlockSpec((9, c_, c_), lambda nn, tt: (0, 0, 0))
    else:
        w2k = w2.reshape(9 * c_, c_).astype(jnp.bfloat16)   # tap-major im2col layout
        w2_spec = pl.BlockSpec((9 * c_, c_), lambda nn, tt: (0, 0))

    vmem = _vmem_limit_bytes()
    TH = _pick_th(H, W, c_, prev_nhwc.dtype.itemsize,
                  min(vmem // 3, 24 << 20), use_taps)
    nt = H // TH

    kernel = _make_bottleneck_kernel(TH, W, c_, use_taps)
    return pl.pallas_call(
        kernel,
        out_shape=jax.ShapeDtypeStruct((N, H, W, c_), prev_nhwc.dtype),
        grid_spec=pltpu.PrefetchScalarGridSpec(
            num_scalar_prefetch=0,
            grid=(N, nt),
            in_specs=[
                # main TH-row strip
                pl.BlockSpec((1, TH, W, c_), lambda nn, tt: (nn, tt, 0, 0)),
                # 1-row top / bottom halos (clamped; zeroed in-kernel at edges)
                pl.BlockSpec((1, 1, W, c_),
                             lambda nn, tt: (nn, jnp.maximum(tt * TH - 1, 0), 0, 0)),
                pl.BlockSpec((1, 1, W, c_),
                             lambda nn, tt: (nn, jnp.minimum(tt * TH + TH, H - 1), 0, 0)),
                pl.BlockSpec((c_, c_), lambda nn, tt: (0, 0)),      # w1
                pl.BlockSpec((1, c_), lambda nn, tt: (0, 0)),       # scale1
                pl.BlockSpec((1, c_), lambda nn, tt: (0, 0)),       # bias1
                w2_spec,                                            # w2
                pl.BlockSpec((1, c_), lambda nn, tt: (0, 0)),       # scale2
                pl.BlockSpec((1, c_), lambda nn, tt: (0, 0)),       # bias2
            ],
            out_specs=pl.BlockSpec((1, TH, W, c_), lambda nn, tt: (nn, tt, 0, 0))),
        compiler_params=pltpu.CompilerParams(
            dimension_semantics=("parallel", "parallel"),
            vmem_limit_bytes=vmem),
    )(prev_nhwc, prev_nhwc, prev_nhwc, w1, s1, b1, w2k, s2, b2)


# ----------------------------------------------------------------------------
# Parameter construction (deterministic, synthetic) and C2f wiring
# ----------------------------------------------------------------------------
def _fold_bn(gamma, beta, mean, var, eps=1e-5):
    scale = gamma / jnp.sqrt(var + eps)
    bias = beta - mean * scale
    return scale.reshape(1, -1), bias.reshape(1, -1)


def make_conv_params(key, cin, cout, k):
    k1, k2, k3, k4, k5 = jax.random.split(key, 5)
    if k == 1:
        w = 0.1 * jax.random.normal(k1, (cin, cout), jnp.float32)        # (Cin, Cout)
    else:
        w = 0.1 * jax.random.normal(k1, (k, k, cin, cout), jnp.float32)  # HWIO
    gamma = 1.0 + 0.1 * jax.random.normal(k2, (cout,), jnp.float32)
    beta = 0.1 * jax.random.normal(k3, (cout,), jnp.float32)
    mean = 0.1 * jax.random.normal(k4, (cout,), jnp.float32)
    var = 1.0 + 0.1 * jnp.abs(jax.random.normal(k5, (cout,), jnp.float32))
    scale, bias = _fold_bn(gamma, beta, mean, var)
    return {"w": w, "scale": scale, "bias": bias}


def make_c2f_params(key, c1, c2, n=1, e=0.5):
    c_ = int(c2 * e)
    keys = jax.random.split(key, 4)
    return {
        "cv1": make_conv_params(keys[0], c1, 2 * c_, 1),
        "cv2": make_conv_params(keys[1], (2 + n) * c_, c2, 1),
        "m": [
            {
                "cv1": make_conv_params(jax.random.fold_in(keys[2], i), c_, c_, 1),
                "cv2": make_conv_params(jax.random.fold_in(keys[3], i), c_, c_, 3),
            }
            for i in range(n)
        ],
    }


def c2f_forward(x_nchw, params, n=1):
    # NCHW (PyTorch) -> NHWC once at the block boundary; all kernels stay
    # channels-last.  TODO(synk): in a full model keep NHWC end-to-end so this
    # transpose happens once at model ingress/egress, not per block.
    x = jnp.transpose(x_nchw, (0, 2, 3, 1))
    N, H, W, _ = x.shape
    M = N * H * W

    p1 = params["cv1"]
    y0, y1 = conv1x1_bn_silu_split(x, p1["w"], p1["scale"], p1["bias"])
    c_ = y0.shape[-1]

    branches = [y0, y1]
    prev = y1                      # input to the bottleneck chain
    for i in range(n):
        prev = bottleneck_fused(prev, params["m"][i])
        branches.append(prev)

    # cv2(cat(y, dim=channels)) == sum of per-branch matmuls; the concat
    # buffer is never materialized.
    p2 = params["cv2"]
    w_full = p2["w"]
    ws = [w_full[i * c_:(i + 1) * c_] for i in range(len(branches))]
    xs2d = [b.reshape(M, c_) for b in branches]
    out = pointwise_bn_silu(xs2d, ws, p2["scale"], p2["bias"])
    out = out.reshape(N, H, W, -1)
    return jnp.transpose(out, (0, 3, 1, 2))       # back to NCHW


# ----------------------------------------------------------------------------
# Pure-JAX reference (for correctness check)
# ----------------------------------------------------------------------------
def _ref_conv_bn_silu(x, w, scale, bias, k):
    if k == 1:
        y = jnp.einsum("nhwc,co->nhwo", x, w)
    else:
        y = lax.conv_general_dilated(
            x, w, window_strides=(1, 1), padding=((1, 1), (1, 1)),
            dimension_numbers=("NHWC", "HWIO", "NHWC"))
    y = y * scale.reshape(1, 1, 1, -1) + bias.reshape(1, 1, 1, -1)
    return y * (1.0 / (1.0 + jnp.exp(-y)))


def c2f_reference(x_nchw, params, n=1):
    x = jnp.transpose(x_nchw, (0, 2, 3, 1))
    p1 = params["cv1"]
    y_all = _ref_conv_bn_silu(x, p1["w"], p1["scale"], p1["bias"], 1)
    c_ = y_all.shape[-1] // 2
    ys = [y_all[..., :c_], y_all[..., c_:]]
    for i in range(n):
        bp = params["m"][i]
        t = _ref_conv_bn_silu(ys[-1], bp["cv1"]["w"], bp["cv1"]["scale"],
                              bp["cv1"]["bias"], 1)
        t = _ref_conv_bn_silu(t, bp["cv2"]["w"], bp["cv2"]["scale"],
                              bp["cv2"]["bias"], 3)
        ys.append(t + ys[-1])
    cat = jnp.concatenate(ys, axis=-1)
    p2 = params["cv2"]
    out = _ref_conv_bn_silu(cat, p2["w"], p2["scale"], p2["bias"], 1)
    return jnp.transpose(out, (0, 3, 1, 2))


if __name__ == "__main__":
    N, C1, C2, H, W, n_bottleneck = 2, 8, 8, 16, 16, 1

    params = make_c2f_params(jax.random.PRNGKey(42), C1, C2, n=n_bottleneck)
    x = jax.random.normal(jax.random.PRNGKey(0), (N, C1, H, W), jnp.float32)

    fwd = jax.jit(lambda t: c2f_forward(t, params, n=n_bottleneck))
    out = jax.block_until_ready(fwd(x))

    ref = c2f_reference(x, params, n=n_bottleneck)
    assert out.shape == (N, C2, H, W), out.shape
    max_err = float(jnp.max(jnp.abs(out - ref)))
    # bf16 MXU path + approx-reciprocal SiLU vs. a pure-f32 reference:
    # compare with a correspondingly looser absolute tolerance.
    assert max_err < 2.5e-2, max_err

    print("KERNEL_OK")
</pallas_src>

<mosaic_0001>
module attributes {stable_mosaic.version = 11 : i64} {
  func.func @kernel(%arg0: i32, %arg1: memref<512x4xf32, #tpu.memory_space<vmem>>, %arg2: memref<512x4xf32, #tpu.memory_space<vmem>>, %arg3: memref<512x4xf32, #tpu.memory_space<vmem>>, %arg4: memref<4x8xbf16, #tpu.memory_space<vmem>>, %arg5: memref<4x8xbf16, #tpu.memory_space<vmem>>, %arg6: memref<4x8xbf16, #tpu.memory_space<vmem>>, %arg7: memref<1x8xf32, #tpu.memory_space<vmem>>, %arg8: memref<1x8xf32, #tpu.memory_space<vmem>>, %arg9: memref<512x8xf32, #tpu.memory_space<vmem>>) attributes {dimension_semantics = [#tpu.dimension_semantics<parallel>], iteration_bounds = array<i64: 1>, scalar_prefetch = 0 : i64, scratch_operands = 0 : i64, tpu.core_type = #tpu.core_type<tc>, window_params = [{transform_indices = @transform_0, window_bounds = array<i64: 512, 4>}, {transform_indices = @transform_1, window_bounds = array<i64: 512, 4>}, {transform_indices = @transform_2, window_bounds = array<i64: 512, 4>}, {pipeline_mode = #tpu.pipeline_mode<synchronous>, transform_indices = @transform_3, window_bounds = array<i64: 4, 8>}, {pipeline_mode = #tpu.pipeline_mode<synchronous>, transform_indices = @transform_4, window_bounds = array<i64: 4, 8>}, {pipeline_mode = #tpu.pipeline_mode<synchronous>, transform_indices = @transform_5, window_bounds = array<i64: 4, 8>}, {pipeline_mode = #tpu.pipeline_mode<synchronous>, transform_indices = @transform_6, window_bounds = array<i64: 1, 8>}, {pipeline_mode = #tpu.pipeline_mode<synchronous>, transform_indices = @transform_7, window_bounds = array<i64: 1, 8>}, {transform_indices = @transform_8, window_bounds = array<i64: 512, 8>}]} {
    %c0 = arith.constant 0 : index
    %c0_0 = arith.constant 0 : index
    %0 = vector.load %arg1[%c0, %c0_0] : memref<512x4xf32, #tpu.memory_space<vmem>>, vector<512x4xf32>
    %1 = arith.truncf %0 : vector<512x4xf32> to vector<512x4xbf16>
    %c0_1 = arith.constant 0 : index
    %c0_2 = arith.constant 0 : index
    %2 = vector.load %arg4[%c0_1, %c0_2] : memref<4x8xbf16, #tpu.memory_space<vmem>>, vector<4x8xbf16>
    %cst = arith.constant dense<0.000000e+00> : vector<512x8xf32>
    %3 = tpu.matmul %1, %2, %cst {dimension_numbers = #tpu.dot_dimension_numbers<[1], [0], [0], [1], [0, 0, 1, 1], [], []>} : vector<512x4xbf16>, vector<4x8xbf16>, vector<512x8xf32> -> vector<512x8xf32>
    %c0_3 = arith.constant 0 : index
    %c0_4 = arith.constant 0 : index
    %4 = vector.load %arg2[%c0_3, %c0_4] : memref<512x4xf32, #tpu.memory_space<vmem>>, vector<512x4xf32>
    %5 = arith.truncf %4 : vector<512x4xf32> to vector<512x4xbf16>
    %c0_5 = arith.constant 0 : index
    %c0_6 = arith.constant 0 : index
    %6 = vector.load %arg5[%c0_5, %c0_6] : memref<4x8xbf16, #tpu.memory_space<vmem>>, vector<4x8xbf16>
    %cst_7 = arith.constant dense<0.000000e+00> : vector<512x8xf32>
    %7 = tpu.matmul %5, %6, %cst_7 {dimension_numbers = #tpu.dot_dimension_numbers<[1], [0], [0], [1], [0, 0, 1, 1], [], []>} : vector<512x4xbf16>, vector<4x8xbf16>, vector<512x8xf32> -> vector<512x8xf32>
    %8 = arith.addf %3, %7 : vector<512x8xf32>
    %c0_8 = arith.constant 0 : index
    %c0_9 = arith.constant 0 : index
    %9 = vector.load %arg3[%c0_8, %c0_9] : memref<512x4xf32, #tpu.memory_space<vmem>>, vector<512x4xf32>
    %10 = arith.truncf %9 : vector<512x4xf32> to vector<512x4xbf16>
    %c0_10 = arith.constant 0 : index
    %c0_11 = arith.constant 0 : index
    %11 = vector.load %arg6[%c0_10, %c0_11] : memref<4x8xbf16, #tpu.memory_space<vmem>>, vector<4x8xbf16>
    %cst_12 = arith.constant dense<0.000000e+00> : vector<512x8xf32>
    %12 = tpu.matmul %10, %11, %cst_12 {dimension_numbers = #tpu.dot_dimension_numbers<[1], [0], [0], [1], [0, 0, 1, 1], [], []>} : vector<512x4xbf16>, vector<4x8xbf16>, vector<512x8xf32> -> vector<512x8xf32>
    %13 = arith.addf %8, %12 : vector<512x8xf32>
    %c0_13 = arith.constant 0 : index
    %c0_14 = arith.constant 0 : index
    %14 = vector.load %arg7[%c0_13, %c0_14] : memref<1x8xf32, #tpu.memory_space<vmem>>, vector<1x8xf32>
    %15 = vector.broadcast %14 : vector<1x8xf32> to vector<512x8xf32>
    %16 = arith.mulf %13, %15 : vector<512x8xf32>
    %c0_15 = arith.constant 0 : index
    %c0_16 = arith.constant 0 : index
    %17 = vector.load %arg8[%c0_15, %c0_16] : memref<1x8xf32, #tpu.memory_space<vmem>>, vector<1x8xf32>
    %18 = vector.broadcast %17 : vector<1x8xf32> to vector<512x8xf32>
    %19 = arith.addf %16, %18 : vector<512x8xf32>
    %cst_17 = arith.constant 0.000000e+00 : f32
    %20 = vector.broadcast %cst_17 : f32 to vector<512x8xf32>
    %21 = arith.subf %20, %19 : vector<512x8xf32>
    %22 = math.exp %21 : vector<512x8xf32>
    %cst_18 = arith.constant 1.000000e+00 : f32
    %23 = vector.broadcast %cst_18 : f32 to vector<512x8xf32>
    %24 = arith.addf %23, %22 : vector<512x8xf32>
    %25 = tpu.reciprocal %24 {approx = true} : vector<512x8xf32> -> vector<512x8xf32>
    %26 = arith.mulf %19, %25 : vector<512x8xf32>
    %c0_19 = arith.constant 0 : index
    %c0_20 = arith.constant 0 : index
    %27 = vector.load %arg9[%c0_19, %c0_20] : memref<512x8xf32, #tpu.memory_space<vmem>>, vector<512x8xf32>
    tpu.vector_store %arg9[%c0_19, %c0_20], %26 {strides = array<i32>} : memref<512x8xf32, #tpu.memory_space<vmem>>, vector<512x8xf32>,
    return
  }
  func.func @transform_0(%arg0: i32) -> (i32, i32) {
    %c0_i32 = arith.constant 0 : i32
    %c0_i32_0 = arith.constant 0 : i32
    return %arg0, %c0_i32 : i32, i32
  }
  func.func @transform_1(%arg0: i32) -> (i32, i32) {
    %c0_i32 = arith.constant 0 : i32
    %c0_i32_0 = arith.constant 0 : i32
    return %arg0, %c0_i32 : i32, i32
  }
  func.func @transform_2(%arg0: i32) -> (i32, i32) {
    %c0_i32 = arith.constant 0 : i32
    %c0_i32_0 = arith.constant 0 : i32
    return %arg0, %c0_i32 : i32, i32
  }
  func.func @transform_3(%arg0: i32) -> (i32, i32) {
    %c0_i32 = arith.constant 0 : i32
    %c0_i32_0 = arith.constant 0 : i32
    %c0_i32_1 = arith.constant 0 : i32
    return %c0_i32, %c0_i32_0 : i32, i32
  }
  func.func @transform_4(%arg0: i32) -> (i32, i32) {
    %c0_i32 = arith.constant 0 : i32
    %c0_i32_0 = arith.constant 0 : i32
    %c0_i32_1 = arith.constant 0 : i32
    return %c0_i32, %c0_i32_0 : i32, i32
  }
  func.func @transform_5(%arg0: i32) -> (i32, i32) {
    %c0_i32 = arith.constant 0 : i32
    %c0_i32_0 = arith.constant 0 : i32
    %c0_i32_1 = arith.constant 0 : i32
    return %c0_i32, %c0_i32_0 : i32, i32
  }
  func.func @transform_6(%arg0: i32) -> (i32, i32) {
    %c0_i32 = arith.constant 0 : i32
    %c0_i32_0 = arith.constant 0 : i32
    %c0_i32_1 = arith.constant 0 : i32
    return %c0_i32, %c0_i32_0 : i32, i32
  }
  func.func @transform_7(%arg0: i32) -> (i32, i32) {
    %c0_i32 = arith.constant 0 : i32
    %c0_i32_0 = arith.constant 0 : i32
    %c0_i32_1 = arith.constant 0 : i32
    return %c0_i32, %c0_i32_0 : i32, i32
  }
  func.func @transform_8(%arg0: i32) -> (i32, i32) {
    %c0_i32 = arith.constant 0 : i32
    %c0_i32_0 = arith.constant 0 : i32
    return %arg0, %c0_i32 : i32, i32
  }
}

module attributes {stable_mosaic.version = 11 : i64} {
  func.func @_cv1_split_kernel(%arg0: i32, %arg1: memref<512x8xf32, #tpu.memory_space<vmem>>, %arg2: memref<8x4xbf16, #tpu.memory_space<vmem>>, %arg3: memref<8x4xbf16, #tpu.memory_space<vmem>>, %arg4: memref<1x4xf32, #tpu.memory_space<vmem>>, %arg5: memref<1x4xf32, #tpu.memory_space<vmem>>, %arg6: memref<1x4xf32, #tpu.memory_space<vmem>>, %arg7: memref<1x4xf32, #tpu.memory_space<vmem>>, %arg8: memref<512x4xf32, #tpu.memory_space<vmem>>, %arg9: memref<512x4xf32, #tpu.memory_space<vmem>>) attributes {dimension_semantics = [#tpu.dimension_semantics<parallel>], iteration_bounds = array<i64: 1>, scalar_prefetch = 0 : i64, scratch_operands = 0 : i64, tpu.core_type = #tpu.core_type<tc>, window_params = [{transform_indices = @transform_0, window_bounds = array<i64: 512, 8>}, {pipeline_mode = #tpu.pipeline_mode<synchronous>, transform_indices = @transform_1, window_bounds = array<i64: 8, 4>}, {pipeline_mode = #tpu.pipeline_mode<synchronous>, transform_indices = @transform_2, window_bounds = array<i64: 8, 4>}, {pipeline_mode = #tpu.pipeline_mode<synchronous>, transform_indices = @transform_3, window_bounds = array<i64: 1, 4>}, {pipeline_mode = #tpu.pipeline_mode<synchronous>, transform_indices = @transform_4, window_bounds = array<i64: 1, 4>}, {pipeline_mode = #tpu.pipeline_mode<synchronous>, transform_indices = @transform_5, window_bounds = array<i64: 1, 4>}, {pipeline_mode = #tpu.pipeline_mode<synchronous>, transform_indices = @transform_6, window_bounds = array<i64: 1, 4>}, {transform_indices = @transform_7, window_bounds = array<i64: 512, 4>}, {transform_indices = @transform_8, window_bounds = array<i64: 512, 4>}]} {
    %c0 = arith.constant 0 : index
    %c0_0 = arith.constant 0 : index
    %0 = vector.load %arg1[%c0, %c0_0] : memref<512x8xf32, #tpu.memory_space<vmem>>, vector<512x8xf32>
    %1 = arith.truncf %0 : vector<512x8xf32> to vector<512x8xbf16>
    %c0_1 = arith.constant 0 : index
    %c0_2 = arith.constant 0 : index
    %2 = vector.load %arg2[%c0_1, %c0_2] : memref<8x4xbf16, #tpu.memory_space<vmem>>, vector<8x4xbf16>
    %cst = arith.constant dense<0.000000e+00> : vector<512x4xf32>
    %3 = tpu.matmul %1, %2, %cst {dimension_numbers = #tpu.dot_dimension_numbers<[1], [0], [0], [1], [0, 0, 1, 1], [], []>} : vector<512x8xbf16>, vector<8x4xbf16>, vector<512x4xf32> -> vector<512x4xf32>
    %c0_3 = arith.constant 0 : index
    %c0_4 = arith.constant 0 : index
    %4 = vector.load %arg4[%c0_3, %c0_4] : memref<1x4xf32, #tpu.memory_space<vmem>>, vector<1x4xf32>
    %5 = vector.broadcast %4 : vector<1x4xf32> to vector<512x4xf32>
    %6 = arith.mulf %3, %5 : vector<512x4xf32>
    %c0_5 = arith.constant 0 : index
    %c0_6 = arith.constant 0 : index
    %7 = vector.load %arg5[%c0_5, %c0_6] : memref<1x4xf32, #tpu.memory_space<vmem>>, vector<1x4xf32>
    %8 = vector.broadcast %7 : vector<1x4xf32> to vector<512x4xf32>
    %9 = arith.addf %6, %8 : vector<512x4xf32>
    %cst_7 = arith.constant 0.000000e+00 : f32
    %10 = vector.broadcast %cst_7 : f32 to vector<512x4xf32>
    %11 = arith.subf %10, %9 : vector<512x4xf32>
    %12 = math.exp %11 : vector<512x4xf32>
    %cst_8 = arith.constant 1.000000e+00 : f32
    %13 = vector.broadcast %cst_8 : f32 to vector<512x4xf32>
    %14 = arith.addf %13, %12 : vector<512x4xf32>
    %15 = tpu.reciprocal %14 {approx = true} : vector<512x4xf32> -> vector<512x4xf32>
    %16 = arith.mulf %9, %15 : vector<512x4xf32>
    %c0_9 = arith.constant 0 : index
    %c0_10 = arith.constant 0 : index
    %17 = vector.load %arg8[%c0_9, %c0_10] : memref<512x4xf32, #tpu.memory_space<vmem>>, vector<512x4xf32>
    tpu.vector_store %arg8[%c0_9, %c0_10], %16 {strides = array<i32>} : memref<512x4xf32, #tpu.memory_space<vmem>>, vector<512x4xf32>,
    %c0_11 = arith.constant 0 : index
    %c0_12 = arith.constant 0 : index
    %18 = vector.load %arg3[%c0_11, %c0_12] : memref<8x4xbf16, #tpu.memory_space<vmem>>, vector<8x4xbf16>
    %cst_13 = arith.constant dense<0.000000e+00> : vector<512x4xf32>
    %19 = tpu.matmul %1, %18, %cst_13 {dimension_numbers = #tpu.dot_dimension_numbers<[1], [0], [0], [1], [0, 0, 1, 1], [], []>} : vector<512x8xbf16>, vector<8x4xbf16>, vector<512x4xf32> -> vector<512x4xf32>
    %c0_14 = arith.constant 0 : index
    %c0_15 = arith.constant 0 : index
    %20 = vector.load %arg6[%c0_14, %c0_15] : memref<1x4xf32, #tpu.memory_space<vmem>>, vector<1x4xf32>
    %21 = vector.broadcast %20 : vector<1x4xf32> to vector<512x4xf32>
    %22 = arith.mulf %19, %21 : vector<512x4xf32>
    %c0_16 = arith.constant 0 : index
    %c0_17 = arith.constant 0 : index
    %23 = vector.load %arg7[%c0_16, %c0_17] : memref<1x4xf32, #tpu.memory_space<vmem>>, vector<1x4xf32>
    %24 = vector.broadcast %23 : vector<1x4xf32> to vector<512x4xf32>
    %25 = arith.addf %22, %24 : vector<512x4xf32>
    %cst_18 = arith.constant 0.000000e+00 : f32
    %26 = vector.broadcast %cst_18 : f32 to vector<512x4xf32>
    %27 = arith.subf %26, %25 : vector<512x4xf32>
    %28 = math.exp %27 : vector<512x4xf32>
    %cst_19 = arith.constant 1.000000e+00 : f32
    %29 = vector.broadcast %cst_19 : f32 to vector<512x4xf32>
    %30 = arith.addf %29, %28 : vector<512x4xf32>
    %31 = tpu.reciprocal %30 {approx = true} : vector<512x4xf32> -> vector<512x4xf32>
    %32 = arith.mulf %25, %31 : vector<512x4xf32>
    %c0_20 = arith.constant 0 : index
    %c0_21 = arith.constant 0 : index
    %33 = vector.load %arg9[%c0_20, %c0_21] : memref<512x4xf32, #tpu.memory_space<vmem>>, vector<512x4xf32>
    tpu.vector_store %arg9[%c0_20, %c0_21], %32 {strides = array<i32>} : memref<512x4xf32, #tpu.memory_space<vmem>>, vector<512x4xf32>,
    return
  }
  func.func @transform_0(%arg0: i32) -> (i32, i32) {
    %c0_i32 = arith.constant 0 : i32
    %c0_i32_0 = arith.constant 0 : i32
    return %arg0, %c0_i32 : i32, i32
  }
  func.func @transform_1(%arg0: i32) -> (i32, i32) {
    %c0_i32 = arith.constant 0 : i32
    %c0_i32_0 = arith.constant 0 : i32
    %c0_i32_1 = arith.constant 0 : i32
    return %c0_i32, %c0_i32_0 : i32, i32
  }
  func.func @transform_2(%arg0: i32) -> (i32, i32) {
    %c0_i32 = arith.constant 0 : i32
    %c0_i32_0 = arith.constant 0 : i32
    %c0_i32_1 = arith.constant 0 : i32
    return %c0_i32, %c0_i32_0 : i32, i32
  }
  func.func @transform_3(%arg0: i32) -> (i32, i32) {
    %c0_i32 = arith.constant 0 : i32
    %c0_i32_0 = arith.constant 0 : i32
    %c0_i32_1 = arith.constant 0 : i32
    return %c0_i32, %c0_i32_0 : i32, i32
  }
  func.func @transform_4(%arg0: i32) -> (i32, i32) {
    %c0_i32 = arith.constant 0 : i32
    %c0_i32_0 = arith.constant 0 : i32
    %c0_i32_1 = arith.constant 0 : i32
    return %c0_i32, %c0_i32_0 : i32, i32
  }
  func.func @transform_5(%arg0: i32) -> (i32, i32) {
    %c0_i32 = arith.constant 0 : i32
    %c0_i32_0 = arith.constant 0 : i32
    %c0_i32_1 = arith.constant 0 : i32
    return %c0_i32, %c0_i32_0 : i32, i32
  }
  func.func @transform_6(%arg0: i32) -> (i32, i32) {
    %c0_i32 = arith.constant 0 : i32
    %c0_i32_0 = arith.constant 0 : i32
    %c0_i32_1 = arith.constant 0 : i32
    return %c0_i32, %c0_i32_0 : i32, i32
  }
  func.func @transform_7(%arg0: i32) -> (i32, i32) {
    %c0_i32 = arith.constant 0 : i32
    %c0_i32_0 = arith.constant 0 : i32
    return %arg0, %c0_i32 : i32, i32
  }
  func.func @transform_8(%arg0: i32) -> (i32, i32) {
    %c0_i32 = arith.constant 0 : i32
    %c0_i32_0 = arith.constant 0 : i32
    return %arg0, %c0_i32 : i32, i32
  }
}

module attributes {stable_mosaic.version = 11 : i64} {
  func.func @kernel(%arg0: i32, %arg1: i32, %arg2: memref<1x16x16x4xf32, #tpu.memory_space<vmem>>, %arg3: memref<1x1x16x4xf32, #tpu.memory_space<vmem>>, %arg4: memref<1x1x16x4xf32, #tpu.memory_space<vmem>>, %arg5: memref<4x4xbf16, #tpu.memory_space<vmem>>, %arg6: memref<1x4xf32, #tpu.memory_space<vmem>>, %arg7: memref<1x4xf32, #tpu.memory_space<vmem>>, %arg8: memref<36x4xbf16, #tpu.memory_space<vmem>>, %arg9: memref<1x4xf32, #tpu.memory_space<vmem>>, %arg10: memref<1x4xf32, #tpu.memory_space<vmem>>, %arg11: memref<1x16x16x4xf32, #tpu.memory_space<vmem>>) attributes {dimension_semantics = [#tpu.dimension_semantics<parallel>, #tpu.dimension_semantics<parallel>], iteration_bounds = array<i64: 2, 1>, scalar_prefetch = 0 : i64, scratch_operands = 0 : i64, tpu.core_type = #tpu.core_type<tc>, window_params = [{transform_indices = @transform_0, window_bounds = array<i64: 1, 16, 16, 4>}, {transform_indices = @transform_1, window_bounds = array<i64: 1, 1, 16, 4>}, {transform_indices = @transform_2, window_bounds = array<i64: 1, 1, 16, 4>}, {pipeline_mode = #tpu.pipeline_mode<synchronous>, transform_indices = @transform_3, window_bounds = array<i64: 4, 4>}, {pipeline_mode = #tpu.pipeline_mode<synchronous>, transform_indices = @transform_4, window_bounds = array<i64: 1, 4>}, {pipeline_mode = #tpu.pipeline_mode<synchronous>, transform_indices = @transform_5, window_bounds = array<i64: 1, 4>}, {pipeline_mode = #tpu.pipeline_mode<synchronous>, transform_indices = @transform_6, window_bounds = array<i64: 36, 4>}, {pipeline_mode = #tpu.pipeline_mode<synchronous>, transform_indices = @transform_7, window_bounds = array<i64: 1, 4>}, {pipeline_mode = #tpu.pipeline_mode<synchronous>, transform_indices = @transform_8, window_bounds = array<i64: 1, 4>}, {transform_indices = @transform_9, window_bounds = array<i64: 1, 16, 16, 4>}]} {
    %c0 = arith.constant 0 : index
    %c0_0 = arith.constant 0 : index
    %c0_1 = arith.constant 0 : index
    %c0_2 = arith.constant 0 : index
    %0 = vector.load %arg2[%c0, %c0_0, %c0_1, %c0_2] : memref<1x16x16x4xf32, #tpu.memory_space<vmem>>, vector<1x16x16x4xf32>
    %1 = vector.shape_cast %0 : vector<1x16x16x4xf32> to vector<16x16x4xf32>
    %2 = vector.shape_cast %1 : vector<16x16x4xf32> to vector<256x4xf32>
    %3 = arith.truncf %2 : vector<256x4xf32> to vector<256x4xbf16>
    %c0_3 = arith.constant 0 : index
    %c0_4 = arith.constant 0 : index
    %4 = vector.load %arg5[%c0_3, %c0_4] : memref<4x4xbf16, #tpu.memory_space<vmem>>, vector<4x4xbf16>
    %cst = arith.constant dense<0.000000e+00> : vector<256x4xf32>
    %5 = tpu.matmul %3, %4, %cst {dimension_numbers = #tpu.dot_dimension_numbers<[1], [0], [0], [1], [0, 0, 1, 1], [], []>} : vector<256x4xbf16>, vector<4x4xbf16>, vector<256x4xf32> -> vector<256x4xf32>
    %c0_5 = arith.constant 0 : index
    %c0_6 = arith.constant 0 : index
    %6 = vector.load %arg6[%c0_5, %c0_6] : memref<1x4xf32, #tpu.memory_space<vmem>>, vector<1x4xf32>
    %7 = vector.broadcast %6 : vector<1x4xf32> to vector<256x4xf32>
    %8 = arith.mulf %5, %7 : vector<256x4xf32>
    %c0_7 = arith.constant 0 : index
    %c0_8 = arith.constant 0 : index
    %9 = vector.load %arg7[%c0_7, %c0_8] : memref<1x4xf32, #tpu.memory_space<vmem>>, vector<1x4xf32>
    %10 = vector.broadcast %9 : vector<1x4xf32> to vector<256x4xf32>
    %11 = arith.addf %8, %10 : vector<256x4xf32>
    %cst_9 = arith.constant 0.000000e+00 : f32
    %12 = vector.broadcast %cst_9 : f32 to vector<256x4xf32>
    %13 = arith.subf %12, %11 : vector<256x4xf32>
    %14 = math.exp %13 : vector<256x4xf32>
    %cst_10 = arith.constant 1.000000e+00 : f32
    %15 = vector.broadcast %cst_10 : f32 to vector<256x4xf32>
    %16 = arith.addf %15, %14 : vector<256x4xf32>
    %17 = tpu.reciprocal %16 {approx = true} : vector<256x4xf32> -> vector<256x4xf32>
    %18 = arith.mulf %11, %17 : vector<256x4xf32>
    %19 = vector.shape_cast %18 : vector<256x4xf32> to vector<16x16x4xf32>
    %c0_11 = arith.constant 0 : index
    %c0_12 = arith.constant 0 : index
    %c0_13 = arith.constant 0 : index
    %c0_14 = arith.constant 0 : index
    %20 = vector.load %arg3[%c0_11, %c0_12, %c0_13, %c0_14] : memref<1x1x16x4xf32, #tpu.memory_space<vmem>>, vector<1x1x16x4xf32>
    %21 = vector.shape_cast %20 : vector<1x1x16x4xf32> to vector<1x16x4xf32>
    %22 = vector.shape_cast %21 : vector<1x16x4xf32> to vector<16x4xf32>
    %23 = arith.truncf %22 : vector<16x4xf32> to vector<16x4xbf16>
    %c0_15 = arith.constant 0 : index
    %c0_16 = arith.constant 0 : index
    %24 = vector.load %arg5[%c0_15, %c0_16] : memref<4x4xbf16, #tpu.memory_space<vmem>>, vector<4x4xbf16>
    %cst_17 = arith.constant dense<0.000000e+00> : vector<16x4xf32>
    %25 = tpu.matmul %23, %24, %cst_17 {dimension_numbers = #tpu.dot_dimension_numbers<[1], [0], [0], [1], [0, 0, 1, 1], [], []>} : vector<16x4xbf16>, vector<4x4xbf16>, vector<16x4xf32> -> vector<16x4xf32>
    %c0_18 = arith.constant 0 : index
    %c0_19 = arith.constant 0 : index
    %26 = vector.load %arg6[%c0_18, %c0_19] : memref<1x4xf32, #tpu.memory_space<vmem>>, vector<1x4xf32>
    %27 = vector.broadcast %26 : vector<1x4xf32> to vector<16x4xf32>
    %28 = arith.mulf %25, %27 : vector<16x4xf32>
    %c0_20 = arith.constant 0 : index
    %c0_21 = arith.constant 0 : index
    %29 = vector.load %arg7[%c0_20, %c0_21] : memref<1x4xf32, #tpu.memory_space<vmem>>, vector<1x4xf32>
    %30 = vector.broadcast %29 : vector<1x4xf32> to vector<16x4xf32>
    %31 = arith.addf %28, %30 : vector<16x4xf32>
    %cst_22 = arith.constant 0.000000e+00 : f32
    %32 = vector.broadcast %cst_22 : f32 to vector<16x4xf32>
    %33 = arith.subf %32, %31 : vector<16x4xf32>
    %34 = math.exp %33 : vector<16x4xf32>
    %cst_23 = arith.constant 1.000000e+00 : f32
    %35 = vector.broadcast %cst_23 : f32 to vector<16x4xf32>
    %36 = arith.addf %35, %34 : vector<16x4xf32>
    %37 = tpu.reciprocal %36 {approx = true} : vector<16x4xf32> -> vector<16x4xf32>
    %38 = arith.mulf %31, %37 : vector<16x4xf32>
    %39 = vector.shape_cast %38 : vector<16x4xf32> to vector<1x16x4xf32>
    %c0_i32 = arith.constant 0 : i32
    %40 = arith.cmpi sgt, %arg1, %c0_i32 : i32
    %41 = arith.extui %40 : i1 to i32
    %42 = arith.sitofp %41 : i32 to f32
    %43 = vector.broadcast %42 : f32 to vector<1x16x4xf32>
    %44 = arith.mulf %39, %43 : vector<1x16x4xf32>
    %c0_24 = arith.constant 0 : index
    %c0_25 = arith.constant 0 : index
    %c0_26 = arith.constant 0 : index
    %c0_27 = arith.constant 0 : index
    %45 = vector.load %arg4[%c0_24, %c0_25, %c0_26, %c0_27] : memref<1x1x16x4xf32, #tpu.memory_space<vmem>>, vector<1x1x16x4xf32>
    %46 = vector.shape_cast %45 : vector<1x1x16x4xf32> to vector<1x16x4xf32>
    %47 = vector.shape_cast %46 : vector<1x16x4xf32> to vector<16x4xf32>
    %48 = arith.truncf %47 : vector<16x4xf32> to vector<16x4xbf16>
    %c0_28 = arith.constant 0 : index
    %c0_29 = arith.constant 0 : index
    %49 = vector.load %arg5[%c0_28, %c0_29] : memref<4x4xbf16, #tpu.memory_space<vmem>>, vector<4x4xbf16>
    %cst_30 = arith.constant dense<0.000000e+00> : vector<16x4xf32>
    %50 = tpu.matmul %48, %49, %cst_30 {dimension_numbers = #tpu.dot_dimension_numbers<[1], [0], [0], [1], [0, 0, 1, 1], [], []>} : vector<16x4xbf16>, vector<4x4xbf16>, vector<16x4xf32> -> vector<16x4xf32>
    %c0_31 = arith.constant 0 : index
    %c0_32 = arith.constant 0 : index
    %51 = vector.load %arg6[%c0_31, %c0_32] : memref<1x4xf32, #tpu.memory_space<vmem>>, vector<1x4xf32>
    %52 = vector.broadcast %51 : vector<1x4xf32> to vector<16x4xf32>
    %53 = arith.mulf %50, %52 : vector<16x4xf32>
    %c0_33 = arith.constant 0 : index
    %c0_34 = arith.constant 0 : index
    %54 = vector.load %arg7[%c0_33, %c0_34] : memref<1x4xf32, #tpu.memory_space<vmem>>, vector<1x4xf32>
    %55 = vector.broadcast %54 : vector<1x4xf32> to vector<16x4xf32>
    %56 = arith.addf %53, %55 : vector<16x4xf32>
    %cst_35 = arith.constant 0.000000e+00 : f32
    %57 = vector.broadcast %cst_35 : f32 to vector<16x4xf32>
    %58 = arith.subf %57, %56 : vector<16x4xf32>
    %59 = math.exp %58 : vector<16x4xf32>
    %cst_36 = arith.constant 1.000000e+00 : f32
    %60 = vector.broadcast %cst_36 : f32 to vector<16x4xf32>
    %61 = arith.addf %60, %59 : vector<16x4xf32>
    %62 = tpu.reciprocal %61 {approx = true} : vector<16x4xf32> -> vector<16x4xf32>
    %63 = arith.mulf %56, %62 : vector<16x4xf32>
    %64 = vector.shape_cast %63 : vector<16x4xf32> to vector<1x16x4xf32>
    %c0_i32_37 = arith.constant 0 : i32
    %65 = arith.cmpi slt, %arg1, %c0_i32_37 : i32
    %66 = arith.extui %65 : i1 to i32
    %67 = arith.sitofp %66 : i32 to f32
    %68 = vector.broadcast %67 : f32 to vector<1x16x4xf32>
    %69 = arith.mulf %64, %68 : vector<1x16x4xf32>
    %cst_38 = arith.constant 0.000000e+00 : f32
    %70 = vector.broadcast %cst_38 : f32 to vector<18x1x4xf32>
    %71 = tpu.concatenate %44, %19, %69 in 0 : vector<1x16x4xf32>, vector<16x16x4xf32>, vector<1x16x4xf32> -> vector<18x16x4xf32>
    %72 = tpu.concatenate %70, %71, %70 in 1 : vector<18x1x4xf32>, vector<18x16x4xf32>, vector<18x1x4xf32> -> vector<18x18x4xf32>
    %73 = arith.truncf %72 : vector<18x18x4xf32> to vector<18x18x4xbf16>
    %74 = vector.extract_strided_slice %73 {offsets = [0, 0, 0], sizes = [16, 16, 4], strides = [1, 1, 1]} : vector<18x18x4xbf16> to vector<16x16x4xbf16>
    %75 = vector.shape_cast %74 : vector<16x16x4xbf16> to vector<256x4xbf16>
    %76 = vector.extract_strided_slice %73 {offsets = [0, 1, 0], sizes = [16, 16, 4], strides = [1, 1, 1]} : vector<18x18x4xbf16> to vector<16x16x4xbf16>
    %77 = vector.shape_cast %76 : vector<16x16x4xbf16> to vector<256x4xbf16>
    %78 = vector.extract_strided_slice %73 {offsets = [0, 2, 0], sizes = [16, 16, 4], strides = [1, 1, 1]} : vector<18x18x4xbf16> to vector<16x16x4xbf16>
    %79 = vector.shape_cast %78 : vector<16x16x4xbf16> to vector<256x4xbf16>
    %80 = vector.extract_strided_slice %73 {offsets = [1, 0, 0], sizes = [16, 16, 4], strides = [1, 1, 1]} : vector<18x18x4xbf16> to vector<16x16x4xbf16>
    %81 = vector.shape_cast %80 : vector<16x16x4xbf16> to vector<256x4xbf16>
    %82 = vector.extract_strided_slice %73 {offsets = [1, 1, 0], sizes = [16, 16, 4], strides = [1, 1, 1]} : vector<18x18x4xbf16> to vector<16x16x4xbf16>
    %83 = vector.shape_cast %82 : vector<16x16x4xbf16> to vector<256x4xbf16>
    %84 = vector.extract_strided_slice %73 {offsets = [1, 2, 0], sizes = [16, 16, 4], strides = [1, 1, 1]} : vector<18x18x4xbf16> to vector<16x16x4xbf16>
    %85 = vector.shape_cast %84 : vector<16x16x4xbf16> to vector<256x4xbf16>
    %86 = vector.extract_strided_slice %73 {offsets = [2, 0, 0], sizes = [16, 16, 4], strides = [1, 1, 1]} : vector<18x18x4xbf16> to vector<16x16x4xbf16>
    %87 = vector.shape_cast %86 : vector<16x16x4xbf16> to vector<256x4xbf16>
    %88 = vector.extract_strided_slice %73 {offsets = [2, 1, 0], sizes = [16, 16, 4], strides = [1, 1, 1]} : vector<18x18x4xbf16> to vector<16x16x4xbf16>
    %89 = vector.shape_cast %88 : vector<16x16x4xbf16> to vector<256x4xbf16>
    %90 = vector.extract_strided_slice %73 {offsets = [2, 2, 0], sizes = [16, 16, 4], strides = [1, 1, 1]} : vector<18x18x4xbf16> to vector<16x16x4xbf16>
    %91 = vector.shape_cast %90 : vector<16x16x4xbf16> to vector<256x4xbf16>
    %92 = tpu.concatenate %75, %77, %79, %81, %83, %85, %87, %89, %91 in 1 : vector<256x4xbf16>, vector<256x4xbf16>, vector<256x4xbf16>, vector<256x4xbf16>, vector<256x4xbf16>, vector<256x4xbf16>, vector<256x4xbf16>, vector<256x4xbf16>, vector<256x4xbf16> -> vector<256x36xbf16>
    %c0_39 = arith.constant 0 : index
    %c0_40 = arith.constant 0 : index
    %93 = vector.load %arg8[%c0_39, %c0_40] : memref<36x4xbf16, #tpu.memory_space<vmem>>, vector<36x4xbf16>
    %cst_41 = arith.constant dense<0.000000e+00> : vector<256x4xf32>
    %94 = tpu.matmul %92, %93, %cst_41 {dimension_numbers = #tpu.dot_dimension_numbers<[1], [0], [0], [1], [0, 0, 1, 1], [], []>} : vector<256x36xbf16>, vector<36x4xbf16>, vector<256x4xf32> -> vector<256x4xf32>
    %c0_42 = arith.constant 0 : index
    %c0_43 = arith.constant 0 : index
    %95 = vector.load %arg9[%c0_42, %c0_43] : memref<1x4xf32, #tpu.memory_space<vmem>>, vector<1x4xf32>
    %96 = vector.broadcast %95 : vector<1x4xf32> to vector<256x4xf32>
    %97 = arith.mulf %94, %96 : vector<256x4xf32>
    %c0_44 = arith.constant 0 : index
    %c0_45 = arith.constant 0 : index
    %98 = vector.load %arg10[%c0_44, %c0_45] : memref<1x4xf32, #tpu.memory_space<vmem>>, vector<1x4xf32>
    %99 = vector.broadcast %98 : vector<1x4xf32> to vector<256x4xf32>
    %100 = arith.addf %97, %99 : vector<256x4xf32>
    %cst_46 = arith.constant 0.000000e+00 : f32
    %101 = vector.broadcast %cst_46 : f32 to vector<256x4xf32>
    %102 = arith.subf %101, %100 : vector<256x4xf32>
    %103 = math.exp %102 : vector<256x4xf32>
    %cst_47 = arith.constant 1.000000e+00 : f32
    %104 = vector.broadcast %cst_47 : f32 to vector<256x4xf32>
    %105 = arith.addf %104, %103 : vector<256x4xf32>
    %106 = tpu.reciprocal %105 {approx = true} : vector<256x4xf32> -> vector<256x4xf32>
    %107 = arith.mulf %100, %106 : vector<256x4xf32>
    %108 = vector.shape_cast %107 : vector<256x4xf32> to vector<16x16x4xf32>
    %109 = arith.addf %108, %1 : vector<16x16x4xf32>
    %c0_48 = arith.constant 0 : index
    %c0_49 = arith.constant 0 : index
    %c0_50 = arith.constant 0 : index
    %c0_51 = arith.constant 0 : index
    %110 = vector.load %arg11[%c0_48, %c0_49, %c0_50, %c0_51] : memref<1x16x16x4xf32, #tpu.memory_space<vmem>>, vector<1x16x16x4xf32>
    %111 = vector.shape_cast %110 : vector<1x16x16x4xf32> to vector<16x16x4xf32>
    %112 = vector.shape_cast %109 : vector<16x16x4xf32> to vector<1x16x16x4xf32>
    tpu.vector_store %arg11[%c0_48, %c0_49, %c0_50, %c0_51], %112 {strides = array<i32>} : memref<1x16x16x4xf32, #tpu.memory_space<vmem>>, vector<1x16x16x4xf32>,
    return
  }
  func.func @transform_0(%arg0: i32, %arg1: i32) -> (i32, i32, i32, i32) {
    %c0_i32 = arith.constant 0 : i32
    %c0_i32_0 = arith.constant 0 : i32
    %c0_i32_1 = arith.constant 0 : i32
    return %arg0, %arg1, %c0_i32, %c0_i32_0 : i32, i32, i32, i32
  }
  func.func @transform_1(%arg0: i32, %arg1: i32) -> (i32, i32, i32, i32) {
    %c16_i32 = arith.constant 16 : i32
    %0 = arith.muli %arg1, %c16_i32 : i32
    %c1_i32 = arith.constant 1 : i32
    %1 = arith.subi %0, %c1_i32 : i32
    %c0_i32 = arith.constant 0 : i32
    %2 = arith.maxsi %1, %c0_i32 : i32
    %c0_i32_0 = arith.constant 0 : i32
    %c0_i32_1 = arith.constant 0 : i32
    %c0_i32_2 = arith.constant 0 : i32
    return %arg0, %2, %c0_i32_0, %c0_i32_1 : i32, i32, i32, i32
  }
  func.func @transform_2(%arg0: i32, %arg1: i32) -> (i32, i32, i32, i32) {
    %c16_i32 = arith.constant 16 : i32
    %0 = arith.muli %arg1, %c16_i32 : i32
    %c16_i32_0 = arith.constant 16 : i32
    %1 = arith.addi %0, %c16_i32_0 : i32
    %c15_i32 = arith.constant 15 : i32
    %2 = arith.minsi %1, %c15_i32 : i32
    %c0_i32 = arith.constant 0 : i32
    %c0_i32_1 = arith.constant 0 : i32
    %c0_i32_2 = arith.constant 0 : i32
    return %arg0, %2, %c0_i32, %c0_i32_1 : i32, i32, i32, i32
  }
  func.func @transform_3(%arg0: i32, %arg1: i32) -> (i32, i32) {
    %c0_i32 = arith.constant 0 : i32
    %c0_i32_0 = arith.constant 0 : i32
    %c0_i32_1 = arith.constant 0 : i32
    return %c0_i32, %c0_i32_0 : i32, i32
  }
  func.func @transform_4(%arg0: i32, %arg1: i32) -> (i32, i32) {
    %c0_i32 = arith.constant 0 : i32
    %c0_i32_0 = arith.constant 0 : i32
    %c0_i32_1 = arith.constant 0 : i32
    return %c0_i32, %c0_i32_0 : i32, i32
  }
  func.func @transform_5(%arg0: i32, %arg1: i32) -> (i32, i32) {
    %c0_i32 = arith.constant 0 : i32
    %c0_i32_0 = arith.constant 0 : i32
    %c0_i32_1 = arith.constant 0 : i32
    return %c0_i32, %c0_i32_0 : i32, i32
  }
  func.func @transform_6(%arg0: i32, %arg1: i32) -> (i32, i32) {
    %c0_i32 = arith.constant 0 : i32
    %c0_i32_0 = arith.constant 0 : i32
    %c0_i32_1 = arith.constant 0 : i32
    return %c0_i32, %c0_i32_0 : i32, i32
  }
  func.func @transform_7(%arg0: i32, %arg1: i32) -> (i32, i32) {
    %c0_i32 = arith.constant 0 : i32
    %c0_i32_0 = arith.constant 0 : i32
    %c0_i32_1 = arith.constant 0 : i32
    return %c0_i32, %c0_i32_0 : i32, i32
  }
  func.func @transform_8(%arg0: i32, %arg1: i32) -> (i32, i32) {
    %c0_i32 = arith.constant 0 : i32
    %c0_i32_0 = arith.constant 0 : i32
    %c0_i32_1 = arith.constant 0 : i32
    return %c0_i32, %c0_i32_0 : i32, i32
  }
  func.func @transform_9(%arg0: i32, %arg1: i32) -> (i32, i32, i32, i32) {
    %c0_i32 = arith.constant 0 : i32
    %c0_i32_0 = arith.constant 0 : i32
    %c0_i32_1 = arith.constant 0 : i32
    return %arg0, %arg1, %c0_i32, %c0_i32_0 : i32, i32, i32, i32
  }
}

</mosaic_0001>

<bundles_post_ra>
// kernel: _lambda_.3
= control target key start
LH: loop header
LB: loop body
LE: loop exit
PB: predicated region body
PF: predicated region fallthrough
CT: control target
= control target key end

     0   :  { %vm223_vm0 = vcmask 1043456   ;;  %vm126_vm1 = vcmask 64512   ;;  %vm1042_vm2 = vcmask 31744   ;;  %s4892_s1 = inlined_call_operand.vmem [shape: bf16[8,4], index: 1, kind: input, shape index: {}]   ;;  %s4893_s2 = inlined_call_operand.vmem [shape: bf16[8,4], index: 2, kind: input, shape index: {}]   ;;  %s4894_s0 = inlined_call_operand.vmem [shape: f32[512,8], index: 0, kind: input, shape index: {}]   ;;  %s4895_s3 = inlined_call_operand.vmem [shape: f32[1,4], index: 3, kind: input, shape index: {}]   ;;  %s4896_s5 = inlined_call_operand.vmem [shape: f32[1,4], index: 5, kind: input, shape index: {}]   ;;  %s4897_s4 = inlined_call_operand.vmem [shape: f32[1,4], index: 4, kind: input, shape index: {}]   ;;  %s4898_s6 = inlined_call_operand.vmem [shape: f32[1,4], index: 6, kind: input, shape index: {}]   ;;  %s4899_s7 = inlined_call_operand.vmem [shape: f32[512,4], index: 7, kind: output, shape index: {0}]   ;;  %s4900_s8 = inlined_call_operand.vmem [shape: f32[512,4], index: 8, kind: output, shape index: {1}]  }
   0x1   :  { %v125_v0 = vld [vmem:[%s4892_s1] sm:$0xf]  ;;  %v30_v5 = vld [vmem:[%s4894_s0 + $0x8] sm:$0xff]  ;;  %v31_v6 = vld [vmem:[%s4894_s0 + $0x10] sm:$0xff] }
   0x2   :  { %v1107_v1 = vld [vmem:[%s4893_s2] sm:$0xf]  ;;  %2264 = vmatprep.subr.msk.bf16.mxu0 %vm223_vm0, %v125_v0  ;;  %v225_v3 = vsel %vm223_vm0, %v125_v0, 0  ;;  %v32_v7 = vld [vmem:[%s4894_s0 + $0x18] sm:$0xff]  ;;  %v34_v11 = vld [vmem:[%s4894_s0 + $0x28] sm:$0xff] }
   0x3   :  { %v29_v2 = vld [vmem:[%s4894_s0] sm:$0xff]  ;;  %2265 = vmatprep.subr.msk.bf16.mxu1 %vm223_vm0, %v1107_v1  ;;  %v1109_v4 = vsel %vm223_vm0, %v1107_v1, 0  ;;  %2133 = vmatpush3.bf16.msra.mxu0 %v225_v3  ;;  %v94_v9 = vpack.c.bf16 %v32_v7, %v31_v6  ;;  %v35_v13 = vld [vmem:[%s4894_s0 + $0x30] sm:$0xff]  ;;  %v36_v14 = vld [vmem:[%s4894_s0 + $0x38] sm:$0xff] }
   0x4   :  { %2199 = vmatpush3.bf16.msra.mxu1 %v1109_v4  ;;  %v93_v8 = vpack.c.bf16 %v30_v5, %v29_v2  ;;  %v33_v10 = vld [vmem:[%s4894_s0 + $0x20] sm:$0xff]  ;;  %v38_v16 = vld [vmem:[%s4894_s0 + $0x48] sm:$0xff]  ;;  %v96_v17 = vpack.c.bf16 %v36_v14, %v35_v13  ;;  %v39_v19 = vld [vmem:[%s4894_s0 + $0x50] sm:$0xff] }
   0x5   :  { %v95_v12 = vpack.c.bf16 %v34_v11, %v33_v10  ;;  %v37_v15 = vld [vmem:[%s4894_s0 + $0x40] sm:$0xff]  ;;  %v40_v20 = vld [vmem:[%s4894_s0 + $0x58] sm:$0xff]  ;;  %v42_v22 = vld [vmem:[%s4894_s0 + $0x68] sm:$0xff] }
   0x6   :  { %2134 = vmatprep.mubr.msk.bf16.mxu0 %vm126_vm1, %v93_v8  ;;  %2200 = vmatprep.mubr.msk.bf16.mxu1 %vm126_vm1, %v93_v8  ;;  %v97_v18 = vpack.c.bf16 %v38_v16, %v37_v15  ;;  %v41_v21 = vld [vmem:[%s4894_s0 + $0x60] sm:$0xff]  ;;  %v98_v23 = vpack.c.bf16 %v40_v20, %v39_v19  ;;  %v43_v25 = vld [vmem:[%s4894_s0 + $0x70] sm:$0xff]  ;;  %v44_v26 = vld [vmem:[%s4894_s0 + $0x78] sm:$0xff] }
   0x7   :  { %2135 = vmatmul.mubr.msk.bf16.vlgmr.msra.gmra.mrb[0].mxu0 %vm126_vm1, %v94_v9  ;;  %2201 = vmatmul.mubr.msk.bf16.vlgmr.msra.gmra.mrb[0].mxu1 %vm126_vm1, %v94_v9  ;;  %v99_v24 = vpack.c.bf16 %v42_v22, %v41_v21  ;;  %v45_v27 = vld [vmem:[%s4894_s0 + $0x80] sm:$0xff]  ;;  %v46_v28 = vld [vmem:[%s4894_s0 + $0x88] sm:$0xff]  ;;  %v100_v29 = vpack.c.bf16 %v44_v26, %v43_v25  ;;  %v47_v31 = vld [vmem:[%s4894_s0 + $0x90] sm:$0xff] }
   0x8   :  { %2138 = vmatprep.mubr.msk.bf16.mxu0 %vm126_vm1, %v95_v12  ;;  %2204 = vmatprep.mubr.msk.bf16.mxu1 %vm126_vm1, %v95_v12  ;;  %v101_v30 = vpack.c.bf16 %v46_v28, %v45_v27  ;;  %v48_v32 = vld [vmem:[%s4894_s0 + $0x98] sm:$0xff]  ;;  %v49_v33 = vld [vmem:[%s4894_s0 + $0xa0] sm:$0xff]  ;;  %v50_v34 = vld [vmem:[%s4894_s0 + $0xa8] sm:$0xff] }
   0x9   :  { %v102_v35 = vpack.c.bf16 %v48_v32, %v47_v31  ;;  %v103_v36 = vpack.c.bf16 %v50_v34, %v49_v33  ;;  %v51_v37 = vld [vmem:[%s4894_s0 + $0xb0] sm:$0xff]  ;;  %v52_v38 = vld [vmem:[%s4894_s0 + $0xb8] sm:$0xff]  ;;  %v53_v39 = vld [vmem:[%s4894_s0 + $0xc0] sm:$0xff] }
   0xa   :  { %v54_v40 = vld [vmem:[%s4894_s0 + $0xc8] sm:$0xff]  ;;  %v104_v41 = vpack.c.bf16 %v52_v38, %v51_v37  ;;  %v55_v43 = vld [vmem:[%s4894_s0 + $0xd0] sm:$0xff]  ;;  %v56_v44 = vld [vmem:[%s4894_s0 + $0xd8] sm:$0xff] }
   0xb   :  { %v105_v42 = vpack.c.bf16 %v54_v40, %v53_v39  ;;  %v57_v45 = vld [vmem:[%s4894_s0 + $0xe0] sm:$0xff]  ;;  %v58_v46 = vld [vmem:[%s4894_s0 + $0xe8] sm:$0xff]  ;;  %v106_v47 = vpack.c.bf16 %v56_v44, %v55_v43  ;;  %v59_v49 = vld [vmem:[%s4894_s0 + $0xf0] sm:$0xff] }
   0xc   :  { %v107_v48 = vpack.c.bf16 %v58_v46, %v57_v45  ;;  %v60_v50 = vld [vmem:[%s4894_s0 + $0xf8] sm:$0xff]  ;;  %v61_v51 = vld [vmem:[%s4894_s0 + $0x100] sm:$0xff]  ;;  %v62_v52 = vld [vmem:[%s4894_s0 + $0x108] sm:$0xff] }
   0xd   :  { %v108_v53 = vpack.c.bf16 %v60_v50, %v59_v49  ;;  %v109_v54 = vpack.c.bf16 %v62_v52, %v61_v51  ;;  %v63_v55 = vld [vmem:[%s4894_s0 + $0x110] sm:$0xff]  ;;  %v64_v56 = vld [vmem:[%s4894_s0 + $0x118] sm:$0xff]  ;;  %v65_v57 = vld [vmem:[%s4894_s0 + $0x120] sm:$0xff] }
   0xe   :  { %v66_v58 = vld [vmem:[%s4894_s0 + $0x128] sm:$0xff]  ;;  %v110_v59 = vpack.c.bf16 %v64_v56, %v63_v55  ;;  %v67_v61 = vld [vmem:[%s4894_s0 + $0x130] sm:$0xff]  ;;  %v68_v62 = vld [vmem:[%s4894_s0 + $0x138] sm:$0xff] }
   0xf   :  { %2139 = vmatmul.mubr.msk.bf16.gmra.mrb[4].mxu0 %vm126_vm1, %v96_v17  ;;  %2205 = vmatmul.mubr.msk.bf16.gmra.mrb[4].mxu1 %vm126_vm1, %v96_v17  ;;  %v111_v60 = vpack.c.bf16 %v66_v58, %v65_v57  ;;  %v69_v63 = vld [vmem:[%s4894_s0 + $0x140] sm:$0xff]  ;;  %v70_v0 = vld [vmem:[%s4894_s0 + $0x148] sm:$0xff]  ;;  %v112_v1 = vpack.c.bf16 %v68_v62, %v67_v61  ;;  %v71_v3 = vld [vmem:[%s4894_s0 + $0x150] sm:$0xff] }
  0x10   :  { %2142 = vmatprep.mubr.msk.bf16.mxu0 %vm126_vm1, %v97_v18  ;;  %2208 = vmatprep.mubr.msk.bf16.mxu1 %vm126_vm1, %v97_v18  ;;  %v113_v2 = vpack.c.bf16 %v70_v0, %v69_v63  ;;  %v72_v4 = vld [vmem:[%s4894_s0 + $0x158] sm:$0xff]  ;;  %v73_v5 = vld [vmem:[%s4894_s0 + $0x160] sm:$0xff]  ;;  %v74_v6 = vld [vmem:[%s4894_s0 + $0x168] sm:$0xff] }
  0x11   :  { %v114_v7 = vpack.c.bf16 %v72_v4, %v71_v3  ;;  %v115_v8 = vpack.c.bf16 %v74_v6, %v73_v5  ;;  %v75_v9 = vld [vmem:[%s4894_s0 + $0x170] sm:$0xff]  ;;  %v76_v10 = vld [vmem:[%s4894_s0 + $0x178] sm:$0xff]  ;;  %v77_v11 = vld [vmem:[%s4894_s0 + $0x180] sm:$0xff] }
  0x12   :  { %v78_v12 = vld [vmem:[%s4894_s0 + $0x188] sm:$0xff]  ;;  %v116_v13 = vpack.c.bf16 %v76_v10, %v75_v9  ;;  %v79_v15 = vld [vmem:[%s4894_s0 + $0x190] sm:$0xff]  ;;  %v80_v16 = vld [vmem:[%s4894_s0 + $0x198] sm:$0xff] }
  0x13   :  { %v117_v14 = vpack.c.bf16 %v78_v12, %v77_v11  ;;  %v81_v17 = vld [vmem:[%s4894_s0 + $0x1a0] sm:$0xff]  ;;  %v82_v18 = vld [vmem:[%s4894_s0 + $0x1a8] sm:$0xff]  ;;  %v118_v19 = vpack.c.bf16 %v80_v16, %v79_v15  ;;  %v83_v21 = vld [vmem:[%s4894_s0 + $0x1b0] sm:$0xff] }
  0x14   :  { %v119_v20 = vpack.c.bf16 %v82_v18, %v81_v17  ;;  %v84_v22 = vld [vmem:[%s4894_s0 + $0x1b8] sm:$0xff]  ;;  %v87_v27 = vld [vmem:[%s4894_s0 + $0x1d0] sm:$0xff]  ;;  %v3101_v37 = vld [vmem:[%s4896_s5] ss:$0 sm:$0xff] }
  0x15   :  { %v120_v25 = vpack.c.bf16 %v84_v22, %v83_v21  ;;  %v88_v28 = vld [vmem:[%s4894_s0 + $0x1d8] sm:$0xff]  ;;  %v91_v33 = vld [vmem:[%s4894_s0 + $0x1f0] sm:$0xff]  ;;  %v3106_v39 = vld [vmem:[%s4897_s4] ss:$0 sm:$0xff] }
  0x16   :  { %v122_v31 = vpack.c.bf16 %v88_v28, %v87_v27  ;;  %v92_v34 = vld [vmem:[%s4894_s0 + $0x1f8] sm:$0xff] }
  0x17   :  { %2143 = vmatmul.mubr.msk.bf16.gmra.mrb[8].mxu0 %vm126_vm1, %v98_v23  ;;  %2209 = vmatmul.mubr.msk.bf16.gmra.mrb[8].mxu1 %vm126_vm1, %v98_v23  ;;  %v85_v23 = vld [vmem:[%s4894_s0 + $0x1c0] sm:$0xff] }
  0x18   :  { %2146 = vmatprep.mubr.msk.bf16.mxu0 %vm126_vm1, %v99_v24  ;;  %2212 = vmatprep.mubr.msk.bf16.mxu1 %vm126_vm1, %v99_v24  ;;  %v86_v24 = vld [vmem:[%s4894_s0 + $0x1c8] sm:$0xff] }
  0x19   :  { %v121_v26 = vpack.c.bf16 %v86_v24, %v85_v23 }
  0x1f   :  { %2147 = vmatmul.mubr.msk.bf16.gmra.mrb[12].mxu0 %vm126_vm1, %v100_v29  ;;  %2213 = vmatmul.mubr.msk.bf16.gmra.mrb[12].mxu1 %vm126_vm1, %v100_v29  ;;  %v89_v29 = vld [vmem:[%s4894_s0 + $0x1e0] sm:$0xff] }
  0x20   :  { %2150 = vmatprep.mubr.msk.bf16.mxu0 %vm126_vm1, %v101_v30  ;;  %2216 = vmatprep.mubr.msk.bf16.mxu1 %vm126_vm1, %v101_v30  ;;  %v90_v30 = vld [vmem:[%s4894_s0 + $0x1e8] sm:$0xff] }
  0x21   :  { %v123_v32 = vpack.c.bf16 %v90_v30, %v89_v29 }
  0x27   :  { %2151 = vmatmul.mubr.msk.bf16.gmra.mrb[16].mxu0 %vm126_vm1, %v102_v35  ;;  %2217 = vmatmul.mubr.msk.bf16.gmra.mrb[16].mxu1 %vm126_vm1, %v102_v35  ;;  %v124_v35 = vpack.c.bf16 %v92_v34, %v91_v33 }
  0x28   :  { %2154 = vmatprep.mubr.msk.bf16.mxu0 %vm126_vm1, %v103_v36  ;;  %2220 = vmatprep.mubr.msk.bf16.mxu1 %vm126_vm1, %v103_v36  ;;  %v3096_v36 = vld [vmem:[%s4895_s3] ss:$0 sm:$0xff] }
  0x2f   :  { %2155 = vmatmul.mubr.msk.bf16.gmra.mrb[20].mxu0 %vm126_vm1, %v104_v41  ;;  %2221 = vmatmul.mubr.msk.bf16.gmra.mrb[20].mxu1 %vm126_vm1, %v104_v41  ;;  %v3111_v41 = vld [vmem:[%s4898_s6] ss:$0 sm:$0xff] }
  0x30   :  { %2158 = vmatprep.mubr.msk.bf16.mxu0 %vm126_vm1, %v105_v42  ;;  %2224 = vmatprep.mubr.msk.bf16.mxu1 %vm126_vm1, %v105_v42 }
  0x37   :  { %2159 = vmatmul.mubr.msk.bf16.gmra.mrb[24].mxu0 %vm126_vm1, %v106_v47  ;;  %2225 = vmatmul.mubr.msk.bf16.gmra.mrb[24].mxu1 %vm126_vm1, %v106_v47 }
  0x38   :  { %2162 = vmatprep.mubr.msk.bf16.mxu0 %vm126_vm1, %v107_v48  ;;  %2228 = vmatprep.mubr.msk.bf16.mxu1 %vm126_vm1, %v107_v48 }
  0x3f   :  { %2163 = vmatmul.mubr.msk.bf16.gmra.mrb[28].mxu0 %vm126_vm1, %v108_v53  ;;  %2229 = vmatmul.mubr.msk.bf16.gmra.mrb[28].mxu1 %vm126_vm1, %v108_v53 }
  0x40   :  { %2166 = vmatprep.mubr.msk.bf16.mxu0 %vm126_vm1, %v109_v54  ;;  %2232 = vmatprep.mubr.msk.bf16.mxu1 %vm126_vm1, %v109_v54 }
  0x47   :  { %2167 = vmatmul.mubr.msk.bf16.gmra.mrb[32].mxu0 %vm126_vm1, %v110_v59  ;;  %2233 = vmatmul.mubr.msk.bf16.gmra.mrb[32].mxu1 %vm126_vm1, %v110_v59 }
  0x48   :  { %2170 = vmatprep.mubr.msk.bf16.mxu0 %vm126_vm1, %v111_v60  ;;  %2236 = vmatprep.mubr.msk.bf16.mxu1 %vm126_vm1, %v111_v60 }
  0x4f   :  { %2171 = vmatmul.mubr.msk.bf16.gmra.mrb[36].mxu0 %vm126_vm1, %v112_v1  ;;  %2237 = vmatmul.mubr.msk.bf16.gmra.mrb[36].mxu1 %vm126_vm1, %v112_v1 }
  0x50   :  { %2174 = vmatprep.mubr.msk.bf16.mxu0 %vm126_vm1, %v113_v2  ;;  %2240 = vmatprep.mubr.msk.bf16.mxu1 %vm126_vm1, %v113_v2 }
  0x57   :  { %2175 = vmatmul.mubr.msk.bf16.gmra.mrb[40].mxu0 %vm126_vm1, %v114_v7  ;;  %2241 = vmatmul.mubr.msk.bf16.gmra.mrb[40].mxu1 %vm126_vm1, %v114_v7 }
  0x58   :  { %2178 = vmatprep.mubr.msk.bf16.mxu0 %vm126_vm1, %v115_v8  ;;  %2244 = vmatprep.mubr.msk.bf16.mxu1 %vm126_vm1, %v115_v8 }
  0x5f   :  { %2179 = vmatmul.mubr.msk.bf16.gmra.mrb[44].mxu0 %vm126_vm1, %v116_v13  ;;  %2245 = vmatmul.mubr.msk.bf16.gmra.mrb[44].mxu1 %vm126_vm1, %v116_v13 }
  0x60   :  { %2182 = vmatprep.mubr.msk.bf16.mxu0 %vm126_vm1, %v117_v14  ;;  %2248 = vmatprep.mubr.msk.bf16.mxu1 %vm126_vm1, %v117_v14 }
  0x67   :  { %2183 = vmatmul.mubr.msk.bf16.gmra.mrb[48].mxu0 %vm126_vm1, %v118_v19  ;;  %2249 = vmatmul.mubr.msk.bf16.gmra.mrb[48].mxu1 %vm126_vm1, %v118_v19 }
  0x68   :  { %2186 = vmatprep.mubr.msk.bf16.mxu0 %vm126_vm1, %v119_v20  ;;  %2252 = vmatprep.mubr.msk.bf16.mxu1 %vm126_vm1, %v119_v20 }
  0x6f   :  { %2187 = vmatmul.mubr.msk.bf16.gmra.mrb[52].mxu0 %vm126_vm1, %v120_v25  ;;  %2253 = vmatmul.mubr.msk.bf16.gmra.mrb[52].mxu1 %vm126_vm1, %v120_v25 }
  0x70   :  { %2190 = vmatprep.mubr.msk.bf16.mxu0 %vm126_vm1, %v121_v26  ;;  %2256 = vmatprep.mubr.msk.bf16.mxu1 %vm126_vm1, %v121_v26 }
  0x77   :  { %2191 = vmatmul.mubr.msk.bf16.gmra.mrb[56].mxu0 %vm126_vm1, %v122_v31  ;;  %2257 = vmatmul.mubr.msk.bf16.gmra.mrb[56].mxu1 %vm126_vm1, %v122_v31 }
  0x78   :  { %2194 = vmatprep.mubr.msk.bf16.mxu0 %vm126_vm1, %v123_v32  ;;  %2260 = vmatprep.mubr.msk.bf16.mxu1 %vm126_vm1, %v123_v32 }
  0x7f   :  { %2195 = vmatmul.mubr.msk.bf16.gmra.mrb[60].mxu0 %vm126_vm1, %v124_v35  ;;  %2261 = vmatmul.mubr.msk.bf16.gmra.mrb[60].mxu1 %vm126_vm1, %v124_v35 }
  0xda   :  { %v2136_v38 = vpop.f32.mrb[0].mxu0  ;;  %v2202_v40 = vpop.f32.mrb[0].mxu1 }
  0xdb   :  { %v525_v42 = vmul.f32 %v2136_v38, %v3096_v36  ;;  %v1409_v43 = vmul.f32 %v2202_v40, %v3101_v37  ;;  %v261_v44 = vpop.f32.mrb[1].mxu0  ;;  %v1145_v45 = vpop.f32.mrb[1].mxu1 }
  0xdc   :  { %v523_v46 = vmul.f32 %v3096_v36, %v261_v44  ;;  %v1407_v47 = vmul.f32 %v3101_v37, %v1145_v45  ;;  %v2137_v48 = vpop.f32.mrb[2].mxu0  ;;  %v2203_v49 = vpop.f32.mrb[2].mxu1 }
  0xdd   :  { %v3118_v50 = vadd.f32 %v3106_v39, %v525_v42  ;;  %v3121_v51 = vadd.f32 %v3111_v41, %v1409_v43  ;;  %v526_v52 = vmul.f32 %v2137_v48, %v3096_v36  ;;  %v1410_v53 = vmul.f32 %v2203_v49, %v3101_v37  ;;  %v264_v54 = vpop.f32.mrb[3].mxu0  ;;  %v1148_v55 = vpop.f32.mrb[3].mxu1 }
  0xde   :  { %v3126_v56 = vadd.f32 %v3106_v39, %v523_v46  ;;  %v3129_v57 = vadd.f32 %v3111_v41, %v1407_v47  ;;  %v524_v58 = vmul.f32 %v3096_v36, %v264_v54  ;;  %v1408_v59 = vmul.f32 %v3101_v37, %v1148_v55 }
  0xdf   :  { %v660_v60 = vsub.f32 0.0, %v3118_v50  ;;  %v1544_v61 = vsub.f32 0.0, %v3121_v51  ;;  %v3136_v62 = vadd.f32 %v3106_v39, %v526_v52  ;;  %v3139_v63 = vadd.f32 %v3111_v41, %v1410_v53 }
  0xe0   :  { %v658_v0 = vsub.f32 0.0, %v3126_v56  ;;  %v1542_v1 = vsub.f32 0.0, %v3129_v57  ;;  %v3144_v2 = vadd.f32 %v3106_v39, %v524_v58  ;;  %v3147_v3 = vadd.f32 %v3111_v41, %v1408_v59 }
  0xe1   :  { %v726_v4 = vmul.f32 1.442695, %v660_v60  ;;  %v1610_v5 = vmul.f32 1.442695, %v1544_v61  ;;  %v661_v6 = vsub.f32 0.0, %v3136_v62  ;;  %v1545_v7 = vsub.f32 0.0, %v3139_v63 }
  0xe2   :  { %v722_v8 = vmul.f32 1.442695, %v658_v0  ;;  %v1606_v9 = vmul.f32 1.442695, %v1542_v1  ;;  %v659_v10 = vsub.f32 0.0, %v3144_v2  ;;  %v1543_v11 = vsub.f32 0.0, %v3147_v3 }
  0xe3   :  { %2266 = vpow2.f32 %v726_v4  ;;  %v728_v12 = vmul.f32 1.442695, %v661_v6  ;;  %v1612_v13 = vmul.f32 1.442695, %v1545_v7  ;;  %v2140_v14 = vpop.f32.mrb[4].mxu0  ;;  %v2206_v15 = vpop.f32.mrb[4].mxu1 }
  0xe4   :  { %2268 = vpow2.f32 %v1610_v5  ;;  %v724_v16 = vmul.f32 1.442695, %v659_v10  ;;  %v1608_v17 = vmul.f32 1.442695, %v1543_v11  ;;  %v529_v18 = vmul.f32 %v2140_v14, %v3096_v36  ;;  %v277_v19 = vpop.f32.mrb[5].mxu0  ;;  %v1161_v20 = vpop.f32.mrb[5].mxu1 }
  0xe5   :  { %2270 = vpow2.f32 %v722_v8  ;;  %v1413_v21 = vmul.f32 %v2206_v15, %v3101_v37  ;;  %v527_v22 = vmul.f32 %v3096_v36, %v277_v19  ;;  %v1411_v23 = vmul.f32 %v3101_v37, %v1161_v20  ;;  %v2141_v24 = vpop.f32.mrb[6].mxu0  ;;  %v2207_v25 = vpop.f32.mrb[6].mxu1 }
  0xe6   :  { %2272 = vpow2.f32 %v1606_v9  ;;  %v3158_v26 = vadd.f32 %v3106_v39, %v529_v18  ;;  %v530_v27 = vmul.f32 %v2141_v24, %v3096_v36  ;;  %v1414_v28 = vmul.f32 %v2207_v25, %v3101_v37  ;;  %v280_v29 = vpop.f32.mrb[7].mxu0  ;;  %v1164_v30 = vpop.f32.mrb[7].mxu1 }
  0xe7   :  { %2274 = vpow2.f32 %v728_v12  ;;  %v3163_v31 = vadd.f32 %v3111_v41, %v1413_v21  ;;  %v3166_v32 = vadd.f32 %v3106_v39, %v527_v22  ;;  %v3169_v33 = vadd.f32 %v3111_v41, %v1411_v23 }
  0xe8   :  { %2276 = vpow2.f32 %v1612_v13  ;;  %v664_v34 = vsub.f32 0.0, %v3158_v26  ;;  %v3173_v35 = vadd.f32 %v3106_v39, %v530_v27  ;;  %v3176_v38 = vadd.f32 %v3111_v41, %v1414_v28 }
  0xe9   :  { %2278 = vpow2.f32 %v724_v16  ;;  %v1548_v40 = vsub.f32 0.0, %v3163_v31  ;;  %v662_v42 = vsub.f32 0.0, %v3166_v32  ;;  %v1546_v43 = vsub.f32 0.0, %v3169_v33 }
  0xea   :  { %2280 = vpow2.f32 %v1608_v17  ;;  %v734_v44 = vmul.f32 1.442695, %v664_v34  ;;  %v665_v45 = vsub.f32 0.0, %v3173_v35  ;;  %v1549_v46 = vsub.f32 0.0, %v3176_v38  ;;  %v2144_v47 = vpop.f32.mrb[8].mxu0  ;;  %v2210_v48 = vpop.f32.mrb[8].mxu1 }
  0xeb   :  { %v1618_v49 = vmul.f32 1.442695, %v1548_v40  ;;  %v730_v52 = vmul.f32 1.442695, %v662_v42  ;;  %v1614_v53 = vmul.f32 1.442695, %v1546_v43  ;;  %v528_v54 = vmul.f32 %v3096_v36, %v280_v29 }
  0xec   :  { %2282 = vpow2.f32 %v734_v44  ;;  %v3184_v55 = vmul.f32 1.442695, %v665_v45  ;;  %v3186_v58 = vmul.f32 1.442695, %v1549_v46  ;;  %v1412_v59 = vmul.f32 %v3101_v37, %v1164_v30  ;;  %v293_v60 = vpop.f32.mrb[9].mxu0  ;;  %v1177_v61 = vpop.f32.mrb[9].mxu1 }
  0xed   :  { %v2267_v0 = vpop.eup %2266  ;;  %2284 = vpow2.f32 %v1618_v49  ;;  %v3190_v1 = vadd.f32 %v3106_v39, %v528_v54  ;;  %v533_v4 = vmul.f32 %v2144_v47, %v3096_v36  ;;  %v1417_v5 = vmul.f32 %v2210_v48, %v3101_v37  ;;  %v2145_v6 = vpop.f32.mrb[10].mxu0 }
  0xee   :  { %v2211_v7 = vpop.f32.mrb[10].mxu1  ;;  %v2269_v8 = vpop.eup %2268  ;;  %v852_v9 = vadd.f32 1.0, %v2267_v0  ;;  %2286 = vpow2.f32 %v730_v52  ;;  %v3195_v10 = vadd.f32 %v3111_v41, %v1412_v59  ;;  %v531_v11 = vmul.f32 %v3096_v36, %v293_v60 }
  0xef   :  { %v296_v12 = vpop.f32.mrb[11].mxu0  ;;  %v3198_v13 = vpop.f32.mrb[11].mxu1  ;;  %v1736_v15 = vadd.f32 1.0, %v2269_v8  ;;  %2288 = vpow2.f32 %v1614_v53  ;;  %v663_v16 = vsub.f32 0.0, %v3190_v1  ;;  %v3202_v17 = vadd.f32 %v3106_v39, %v533_v4 }
  0xf0   :  { %v2271_v14 = vpop.eup %2270  ;;  %2290 = vrcp.f32 %v852_v9  ;;  %v1547_v20 = vsub.f32 0.0, %v3195_v10  ;;  %v3206_v21 = vadd.f32 %v3111_v41, %v1417_v5  ;;  %v3221_v45 = vadd.f32 %v3106_v39, %v531_v11 }
  0xf1   :  { %v2273_v18 = vpop.eup %2272  ;;  %v850_v19 = vadd.f32 1.0, %v2271_v14  ;;  %2292 = vrcp.f32 %v1736_v15  ;;  %v3208_v24 = vmul.f32 1.442695, %v663_v16  ;;  %v668_v25 = vsub.f32 0.0, %v3202_v17 }
  0xf2   :  { %v2275_v22 = vpop.eup %2274  ;;  %v1734_v23 = vadd.f32 1.0, %v2273_v18  ;;  %v3211_v29 = vmul.f32 1.442695, %v1547_v20  ;;  %v1552_v30 = vsub.f32 0.0, %v3206_v21  ;;  %v3214_v34 = vpop.f32.mrb[12].mxu0  ;;  %v1415_v53 = vmul.f32 %v3101_v37, %v1177_v61 }
  0xf3   :  { %v2277_v27 = vpop.eup %2276  ;;  %2294 = vrcp.f32 %v850_v19  ;;  %v853_v28 = vadd.f32 1.0, %v2275_v22  ;;  %v3216_v40 = vpop.f32.mrb[12].mxu1  ;;  %v3218_v44 = vmul.f32 1.442695, %v668_v25  ;;  %v666_v0 = vsub.f32 0.0, %v3221_v45 }
  0xf4   :  { %v2279_v42 = vpop.eup %2278  ;;  %2296 = vrcp.f32 %v1734_v23  ;;  %v1737_v43 = vadd.f32 1.0, %v2277_v27  ;;  %v3223_v46 = vpop.f32.mrb[13].mxu0  ;;  %v3227_v52 = vmul.f32 1.442695, %v1552_v30  ;;  %v534_v4 = vmul.f32 %v2145_v6, %v3096_v36 }
  0xf5   :  { %v3225_v47 = vpop.f32.mrb[13].mxu1  ;;  %v2281_v48 = vpop.eup %2280  ;;  %2298 = vrcp.f32 %v853_v28  ;;  %v851_v49 = vadd.f32 1.0, %v2279_v42  ;;  %v3241_v11 = vadd.f32 %v3111_v41, %v1415_v53  ;;  %v1418_v61 = vmul.f32 %v2211_v7, %v3101_v37 }
  0xf6   :  { %v3230_v54 = vpop.f32.mrb[14].mxu0  ;;  %v3232_v59 = vpop.f32.mrb[14].mxu1  ;;  %2300 = vrcp.f32 %v1737_v43  ;;  %v1735_v60 = vadd.f32 1.0, %v2281_v48  ;;  %v532_v14 = vmul.f32 %v3096_v36, %v296_v12  ;;  %v3245_v18 = vmul.f32 1.442695, %v666_v0 }
  0xf7   :  { %v3236_v5 = vpop.f32.mrb[15].mxu0  ;;  %v3238_v8 = vpop.f32.mrb[15].mxu1  ;;  %2302 = vrcp.f32 %v851_v49  ;;  %v3248_v6 = vadd.f32 %v3106_v39, %v534_v4  ;;  %v1550_v22 = vsub.f32 0.0, %v3241_v11  ;;  %v3253_v23 = vadd.f32 %v3111_v41, %v1418_v61 }
  0xf8   :  { %v2283_v9 = vpop.eup %2282  ;;  %2304 = vrcp.f32 %v1735_v60  ;;  %v3257_v27 = vadd.f32 %v3106_v39, %v532_v14 }
  0xf9   :  { %v2285_v15 = vpop.eup %2284  ;;  %v856_v16 = vadd.f32 1.0, %v2283_v9  ;;  %2306 = vpow2.f32 %v3184_v55  ;;  %v669_v25 = vsub.f32 0.0, %v3248_v6  ;;  %v1622_v42 = vmul.f32 1.442695, %v1550_v22 }
  0xfa   :  { %v2287_v19 = vpop.eup %2286  ;;  %v1740_v20 = vadd.f32 1.0, %v2285_v15  ;;  %v1553_v43 = vsub.f32 0.0, %v3253_v23  ;;  %v3260_v55 = vpop.f32.mrb[16].mxu0  ;;  %v667_v0 = vsub.f32 0.0, %v3257_v27 }
  0xfb   :  { %v2289_v7 = vpop.eup %2288  ;;  %2308 = vrcp.f32 %v856_v16  ;;  %v854_v12 = vadd.f32 1.0, %v2287_v19  ;;  %v3262_v48 = vpop.f32.mrb[16].mxu1  ;;  %v744_v60 = vmul.f32 1.442695, %v669_v25  ;;  %v1416_v16 = vmul.f32 %v3101_v37, %v3198_v13 }
  0xfc   :  { %v2291_v28 = vpop.eup %2290  ;;  %2310 = vrcp.f32 %v1740_v20  ;;  %v1738_v30 = vadd.f32 1.0, %v2289_v7  ;;  %v3266_v4 = vpop.f32.mrb[17].mxu0  ;;  %v3271_v15 = vmul.f32 1.442695, %v1553_v43  ;;  %v537_v7 = vmul.f32 %v3214_v34, %v3096_v36 }
  0xfd   :  { %v2293_v49 = vpop.eup %2292  ;;  %v980_v53 = vmul.f32 %v2291_v28, %v3118_v50  ;;  %2312 = vrcp.f32 %v854_v12  ;;  %v3268_v9 = vpop.f32.mrb[17].mxu1 }
  0xfe   :  { %v2295_v61 = vpop.eup %2294  ;;  %v1864_v14 = vmul.f32 %v2293_v49, %v3121_v51  ;;  %2314 = vrcp.f32 %v1738_v30  ;;  %v3275_v19 = vpop.f32.mrb[18].mxu0  ;;  %v3285_v51 = vmul.f32 1.442695, %v667_v0 }
  0xff   :  { %v3277_v50 = vpop.f32.mrb[18].mxu1  ;;  %v2297_v20 = vpop.eup %2296  ;;  %1045 = vst.msk [vmem:[%s4899_s7 + $0x10] sm:$0xff] %vm1042_vm2, %v980_v53  ;;  %v978_v22 = vmul.f32 %v2295_v61, %v3126_v56  ;;  %2316 = vpow2.f32 %v3186_v58  ;;  %v3300_v56 = vadd.f32 %v3111_v41, %v1416_v16  ;;  %v1421_v58 = vmul.f32 %v3216_v40, %v3101_v37 }
 0x100   :  { %v3289_v13 = vpop.f32.mrb[19].mxu0  ;;  %v3291_v12 = vpop.f32.mrb[19].mxu1  ;;  %1928 = vst.msk [vmem:[%s4900_s8 + $0x10] sm:$0xff] %vm1042_vm2, %v1864_v14  ;;  %v1862_v28 = vmul.f32 %v2297_v20, %v3129_v57  ;;  %2318 = vpow2.f32 %v3208_v24  ;;  %v3311_v57 = vadd.f32 %v3106_v39, %v537_v7  ;;  %v535_v24 = vmul.f32 %v3096_v36, %v3223_v46 }
 0x101   :  { %v2299_v25 = vpop.eup %2298  ;;  %1043 = vst.msk [vmem:[%s4899_s7] sm:$0xff] %vm1042_vm2, %v978_v22  ;;  %2320 = vpow2.f32 %v3211_v29  ;;  %v3323_v29 = vadd.f32 %v3111_v41, %v1421_v58 }
 0x102   :  { %v2301_v34 = vpop.eup %2300  ;;  %v981_v30 = vmul.f32 %v2299_v25, %v3136_v62  ;;  %1926 = vst.msk [vmem:[%s4900_s8] sm:$0xff] %vm1042_vm2, %v1862_v28  ;;  %2322 = vpow2.f32 %v3218_v44  ;;  %v1551_v62 = vsub.f32 0.0, %v3300_v56  ;;  %v672_v53 = vsub.f32 0.0, %v3311_v57  ;;  %v3342_v14 = vpop.f32.mrb[20].mxu0 }
 0x103   :  { %v2303_v43 = vpop.eup %2302  ;;  %v1865_v40 = vmul.f32 %v2301_v34, %v3139_v63  ;;  %2324 = vpow2.f32 %v3227_v52  ;;  %v3333_v63 = vadd.f32 %v3106_v39, %v535_v24  ;;  %v3344_v52 = vpop.f32.mrb[20].mxu1 }
 0x104   :  { %v2305_v49 = vpop.eup %2304  ;;  %1046 = vst.msk [vmem:[%s4899_s7 + $0x18] sm:$0xff] %vm1042_vm2, %v981_v30  ;;  %v979_v46 = vmul.f32 %v2303_v43, %v3144_v2  ;;  %2326 = vpow2.f32 %v3245_v18  ;;  %v1624_v61 = vmul.f32 1.442695, %v1551_v62  ;;  %v1556_v2 = vsub.f32 0.0, %v3323_v29  ;;  %v3351_v7 = vpop.f32.mrb[21].mxu0 }
 0x105   :  { %v2307_v44 = vpop.eup %2306  ;;  %1929 = vst.msk [vmem:[%s4900_s8 + $0x18] sm:$0xff] %vm1042_vm2, %v1865_v40  ;;  %v1863_v0 = vmul.f32 %v2305_v49, %v3147_v3  ;;  %2328 = vpow2.f32 %v1622_v42  ;;  %v750_v22 = vmul.f32 1.442695, %v672_v53  ;;  %v670_v3 = vsub.f32 0.0, %v3333_v63  ;;  %v3353_v18 = vpop.f32.mrb[21].mxu1 }
 0x106   :  { %v2309_v16 = vpop.eup %2308  ;;  %1044 = vst.msk [vmem:[%s4899_s7 + $0x8] sm:$0xff] %vm1042_vm2, %v979_v46  ;;  %v857_v20 = vadd.f32 1.0, %v2307_v44  ;;  %2330 = vpow2.f32 %v744_v60  ;;  %v3360_v58 = vmul.f32 1.442695, %v1556_v2  ;;  %v1419_v42 = vmul.f32 %v3101_v37, %v3225_v47  ;;  %v3364_v34 = vpop.f32.mrb[22].mxu0 }
 0x107   :  { %v2311_v25 = vpop.eup %2310  ;;  %1927 = vst.msk [vmem:[%s4900_s8 + $0x8] sm:$0xff] %vm1042_vm2, %v1863_v0  ;;  %v984_v28 = vmul.f32 %v2309_v16, %v3158_v26  ;;  %v3366_v30 = vpop.f32.mrb[22].mxu1  ;;  %v3369_v40 = vmul.f32 1.442695, %v670_v3  ;;  %v538_v62 = vmul.f32 %v3230_v54, %v3096_v36  ;;  %v1422_v54 = vmul.f32 %v3232_v59, %v3101_v37 }
 0x108   :  { %v2313_v24 = vpop.eup %2312  ;;  %v1868_v43 = vmul.f32 %v2311_v25, %v3163_v31  ;;  %2332 = vrcp.f32 %v857_v20  ;;  %v3373_v26 = vpop.f32.mrb[23].mxu0  ;;  %v3384_v31 = vadd.f32 %v3111_v41, %v1419_v42 }
 0x109   :  { %v3375_v60 = vpop.f32.mrb[23].mxu1  ;;  %v2315_v49 = vpop.eup %2314  ;;  %1049 = vst.msk [vmem:[%s4899_s7 + $0x30] sm:$0xff] %vm1042_vm2, %v984_v28  ;;  %v982_v47 = vmul.f32 %v2313_v24, %v3166_v32  ;;  %2334 = vpow2.f32 %v3271_v15  ;;  %v3395_v32 = vadd.f32 %v3106_v39, %v538_v62  ;;  %v536_v15 = vmul.f32 %v3096_v36, %v3236_v5 }
 0x10a   :  { %v2317_v46 = vpop.eup %2316  ;;  %1932 = vst.msk [vmem:[%s4900_s8 + $0x30] sm:$0xff] %vm1042_vm2, %v1868_v43  ;;  %v1866_v53 = vmul.f32 %v2315_v49, %v3169_v33  ;;  %2336 = vpow2.f32 %v3285_v51  ;;  %v1554_v0 = vsub.f32 0.0, %v3384_v31  ;;  %v3405_v33 = vadd.f32 %v3111_v41, %v1422_v54  ;;  %v3418_v28 = vpop.f32.mrb[24].mxu0 }
 0x10b   :  { %v2319_v44 = vpop.eup %2318  ;;  %1047 = vst.msk [vmem:[%s4899_s7 + $0x20] sm:$0xff] %vm1042_vm2, %v982_v47  ;;  %v1741_v59 = vadd.f32 1.0, %v2317_v46  ;;  %2338 = vpow2.f32 %v1624_v61  ;;  %v673_v2 = vsub.f32 0.0, %v3395_v32  ;;  %v3413_v16 = vadd.f32 %v3106_v39, %v536_v15  ;;  %v3420_v42 = vpop.f32.mrb[24].mxu1 }
 0x10c   :  { %v2321_v51 = vpop.eup %2320  ;;  %1930 = vst.msk [vmem:[%s4900_s8 + $0x20] sm:$0xff] %vm1042_vm2, %v1866_v53  ;;  %v855_v5 = vadd.f32 1.0, %v2319_v44  ;;  %2340 = vpow2.f32 %v750_v22  ;;  %v3415_v3 = vmul.f32 1.442695, %v1554_v0  ;;  %v1557_v25 = vsub.f32 0.0, %v3405_v33  ;;  %v3425_v49 = vpop.f32.mrb[25].mxu0 }
 0x10d   :  { %v2323_v20 = vpop.eup %2322  ;;  %2342 = vrcp.f32 %v1741_v59  ;;  %v1739_v61 = vadd.f32 1.0, %v2321_v51  ;;  %v3422_v22 = vmul.f32 1.442695, %v673_v2  ;;  %v671_v62 = vsub.f32 0.0, %v3413_v16  ;;  %v3427_v47 = vpop.f32.mrb[25].mxu1 }
 0x10e   :  { %v2325_v24 = vpop.eup %2324  ;;  %2344 = vrcp.f32 %v855_v5  ;;  %v860_v43 = vadd.f32 1.0, %v2323_v20  ;;  %v3429_v53 = vmul.f32 1.442695, %v1557_v25  ;;  %v1420_v15 = vmul.f32 %v3101_v37, %v3238_v8  ;;  %v3433_v44 = vpop.f32.mrb[26].mxu0 }
 0x10f   :  { %v2327_v54 = vpop.eup %2326  ;;  %2346 = vrcp.f32 %v1739_v61  ;;  %v1744_v46 = vadd.f32 1.0, %v2325_v24  ;;  %4903 = vst [vmem:[#allocation2_spill] sm:$0xff] %v3433_v44  ;;  %v3435_v59 = vpop.f32.mrb[26].mxu1  ;;  %v3437_v5 = vmul.f32 1.442695, %v671_v62  ;;  %v541_v2 = vmul.f32 %v3260_v55, %v3096_v36 }
 0x110   :  { %4904 = vst [vmem:[#allocation3_spill] sm:$0xff] %v3435_v59  ;;  %v2329_v0 = vpop.eup %2328  ;;  %2348 = vrcp.f32 %v860_v43  ;;  %v858_v51 = vadd.f32 1.0, %v2327_v54  ;;  %v3441_v20 = vpop.f32.mrb[27].mxu0  ;;  %v3446_v8 = vadd.f32 %v3111_v41, %v1420_v15  ;;  %v1425_v59 = vmul.f32 %v3262_v48, %v3101_v37 }
 0x111   :  { %4905 = vst [vmem:[#allocation4_spill] sm:$0xff] %v3441_v20  ;;  %v3443_v61 = vpop.f32.mrb[27].mxu1  ;;  %v2331_v25 = vpop.eup %2330  ;;  %2350 = vrcp.f32 %v1744_v46  ;;  %v1742_v24 = vadd.f32 1.0, %v2329_v0  ;;  %v3451_v54 = vadd.f32 %v3106_v39, %v541_v2  ;;  %v539_v55 = vmul.f32 %v3096_v36, %v3266_v4 }
 0x112   :  { %4906 = vst [vmem:[#allocation5_spill] sm:$0xff] %v3443_v61  ;;  %v2333_v43 = vpop.eup %2332  ;;  %2352 = vrcp.f32 %v858_v51  ;;  %v861_v62 = vadd.f32 1.0, %v2331_v25  ;;  %v1555_v46 = vsub.f32 0.0, %v3446_v8  ;;  %v3458_v15 = vadd.f32 %v3111_v41, %v1425_v59 }
 0x113   :  { %4907 = vst [vmem:[#allocation6_spill] sm:$0xff] %v3451_v54  ;;  %v2335_v20 = vpop.eup %2334  ;;  %v985_v61 = vmul.f32 %v2333_v43, %v3173_v35  ;;  %2354 = vrcp.f32 %v1742_v24  ;;  %v676_v51 = vsub.f32 0.0, %v3451_v54  ;;  %v3462_v2 = vadd.f32 %v3106_v39, %v539_v55  ;;  %v3472_v24 = vpop.f32.mrb[28].mxu0 }
 0x114   :  { %v2337_v0 = vpop.eup %2336  ;;  %2356 = vrcp.f32 %v861_v62  ;;  %v1745_v48 = vadd.f32 1.0, %v2335_v20  ;;  %v3469_v4 = vmul.f32 1.442695, %v1555_v46  ;;  %v1560_v59 = vsub.f32 0.0, %v3458_v15  ;;  %4909 = vst [vmem:[#allocation8_spill] sm:$0xff] %v3472_v24  ;;  %v3474_v20 = vpop.f32.mrb[28].mxu1 }
 0x115   :  { %4908 = vst [vmem:[#allocation7_spill] sm:$0xff] %v3462_v2  ;;  %v2339_v25 = vpop.eup %2338  ;;  %1050 = vst.msk [vmem:[%s4899_s7 + $0x38] sm:$0xff] %vm1042_vm2, %v985_v61  ;;  %v859_v35 = vadd.f32 1.0, %v2337_v0  ;;  %2358 = vpow2.f32 %v3360_v58  ;;  %v3476_v55 = vmul.f32 1.442695, %v676_v51  ;;  %v674_v44 = vsub.f32 0.0, %v3462_v2 }
 0x116   :  { %4910 = vst [vmem:[#allocation9_spill] sm:$0xff] %v3474_v20  ;;  %v2341_v43 = vpop.eup %2340  ;;  %2360 = vrcp.f32 %v1745_v48  ;;  %v1743_v62 = vadd.f32 1.0, %v2339_v25  ;;  %v3479_v54 = vpop.f32.mrb[29].mxu0  ;;  %v3483_v0 = vmul.f32 1.442695, %v1560_v59  ;;  %v1423_v24 = vmul.f32 %v3101_v37, %v3268_v9 }
 0x117   :  { %v3481_v61 = vpop.f32.mrb[29].mxu1  ;;  %v2343_v58 = vpop.eup %2342  ;;  %2362 = vrcp.f32 %v859_v35  ;;  %v864_v46 = vadd.f32 1.0, %v2341_v43  ;;  %v3492_v2 = vmul.f32 1.442695, %v674_v44 }
 0x118   :  { %4911 = vst [vmem:[#allocation10_spill] sm:$0xff] %v3481_v61  ;;  %v3487_v20 = vpop.f32.mrb[30].mxu0  ;;  %v3489_v48 = vpop.f32.mrb[30].mxu1  ;;  %v1869_v25 = vmul.f32 %v2343_v58, %v3176_v38  ;;  %2364 = vrcp.f32 %v1743_v62  ;;  %v542_v61 = vmul.f32 %v3275_v19, %v3096_v36  ;;  %v1426_v38 = vmul.f32 %v3277_v50, %v3101_v37 }
 0x119   :  { %4912 = vst [vmem:[#allocation11_spill] sm:$0xff] %v3487_v20  ;;  %v2345_v51 = vpop.eup %2344  ;;  %v3496_v35 = vpop.f32.mrb[31].mxu0  ;;  %2366 = vrcp.f32 %v864_v46  ;;  %v3502_v20 = vadd.f32 %v3111_v41, %v1423_v24 }
 0x11a   :  { %v3498_v59 = vpop.f32.mrb[31].mxu1  ;;  %v2347_v43 = vpop.eup %2346  ;;  %v983_v9 = vmul.f32 %v2345_v51, %v3190_v1  ;;  %1933 = vst.msk [vmem:[%s4900_s8 + $0x38] sm:$0xff] %vm1042_vm2, %v1869_v25  ;;  %2368 = vpow2.f32 %v3369_v40  ;;  %v3513_v44 = vadd.f32 %v3106_v39, %v542_v61  ;;  %v540_v1 = vmul.f32 %v3096_v36, %v3289_v13 }
 0x11b   :  { %v2349_v62 = vpop.eup %2348  ;;  %v1867_v19 = vmul.f32 %v2347_v43, %v3195_v10  ;;  %2370 = vpow2.f32 %v3415_v3  ;;  %v1558_v10 = vsub.f32 0.0, %v3502_v20  ;;  %v3525_v40 = vadd.f32 %v3111_v41, %v1426_v38  ;;  %v3544_v25 = vpop.f32.mrb[32].mxu0 }
 0x11c   :  { %v2351_v24 = vpop.eup %2350  ;;  %1048 = vst.msk [vmem:[%s4899_s7 + $0x28] sm:$0xff] %vm1042_vm2, %v983_v9  ;;  %v988_v50 = vmul.f32 %v2349_v62, %v3202_v17  ;;  %2372 = vpow2.f32 %v3422_v22  ;;  %v677_v58 = vsub.f32 0.0, %v3513_v44  ;;  %v3535_v17 = vadd.f32 %v3106_v39, %v540_v1  ;;  %v3546_v22 = vpop.f32.mrb[32].mxu1 }
 0x11d   :  { %v2353_v61 = vpop.eup %2352  ;;  %1931 = vst.msk [vmem:[%s4900_s8 + $0x28] sm:$0xff] %vm1042_vm2, %v1867_v19  ;;  %v1872_v13 = vmul.f32 %v2351_v24, %v3206_v21  ;;  %2374 = vpow2.f32 %v3429_v53  ;;  %v1638_v51 = vmul.f32 1.442695, %v1558_v10  ;;  %v1561_v21 = vsub.f32 0.0, %v3525_v40  ;;  %v3555_v38 = vpop.f32.mrb[33].mxu0 }
 0x11e   :  { %v2355_v3 = vpop.eup %2354  ;;  %1053 = vst.msk [vmem:[%s4899_s7 + $0x50] sm:$0xff] %vm1042_vm2, %v988_v50  ;;  %v986_v46 = vmul.f32 %v2353_v61, %v3221_v45  ;;  %2376 = vpow2.f32 %v3437_v5  ;;  %v760_v45 = vmul.f32 1.442695, %v677_v58  ;;  %v675_v53 = vsub.f32 0.0, %v3535_v17  ;;  %v3557_v62 = vpop.f32.mrb[33].mxu1 }
 0x11f   :  { %v2357_v43 = vpop.eup %2356  ;;  %1936 = vst.msk [vmem:[%s4900_s8 + $0x50] sm:$0xff] %vm1042_vm2, %v1872_v13  ;;  %v1870_v9 = vmul.f32 %v2355_v3, %v3241_v11  ;;  %2378 = vpow2.f32 %v3469_v4  ;;  %v1644_v11 = vmul.f32 1.442695, %v1561_v21  ;;  %v1424_v5 = vmul.f32 %v3101_v37, %v3291_v12  ;;  %v3567_v24 = vpop.f32.mrb[34].mxu0 }
 0x120   :  { %v2359_v19 = vpop.eup %2358  ;;  %1051 = vst.msk [vmem:[%s4899_s7 + $0x40] sm:$0xff] %vm1042_vm2, %v986_v46  ;;  %v989_v1 = vmul.f32 %v2357_v43, %v3248_v6  ;;  %v3569_v50 = vpop.f32.mrb[34].mxu1  ;;  %2380 = vpow2.f32 %v3476_v55  ;;  %v3576_v6 = vmul.f32 1.442695, %v675_v53  ;;  %v545_v4 = vmul.f32 %v3342_v14, %v3096_v36 }
 0x121   :  { %v2361_v10 = vpop.eup %2360  ;;  %1934 = vst.msk [vmem:[%s4900_s8 + $0x40] sm:$0xff] %vm1042_vm2, %v1870_v9  ;;  %v1748_v61 = vadd.f32 1.0, %v2359_v19  ;;  %v3580_v13 = vpop.f32.mrb[35].mxu0  ;;  %2382 = vpow2.f32 %v3483_v0  ;;  %v3591_v55 = vadd.f32 %v3111_v41, %v1424_v5  ;;  %v1429_v14 = vmul.f32 %v3344_v52, %v3101_v37 }
 0x122   :  { %v3582_v12 = vpop.f32.mrb[35].mxu1  ;;  %v2363_v58 = vpop.eup %2362  ;;  %1054 = vst.msk [vmem:[%s4899_s7 + $0x58] sm:$0xff] %vm1042_vm2, %v989_v1  ;;  %v1873_v3 = vmul.f32 %v2361_v10, %v3253_v23  ;;  %v3597_v43 = vadd.f32 %v3106_v39, %v545_v4  ;;  %v543_v9 = vmul.f32 %v3096_v36, %v3351_v7 }
 0x123   :  { %v2365_v46 = vpop.eup %2364  ;;  %v987_v21 = vmul.f32 %v2363_v58, %v3257_v27  ;;  %2384 = vrcp.f32 %v1748_v61  ;;  %v1559_v52 = vsub.f32 0.0, %v3591_v55  ;;  %v3609_v27 = vadd.f32 %v3111_v41, %v1429_v14  ;;  %v3627_v61 = vpop.f32.mrb[36].mxu0 }
 0x124   :  { %v2367_v53 = vpop.eup %2366  ;;  %1937 = vst.msk [vmem:[%s4900_s8 + $0x58] sm:$0xff] %vm1042_vm2, %v1873_v3  ;;  %v1871_v23 = vmul.f32 %v2365_v46, %v3300_v56  ;;  %2386 = vpow2.f32 %v3492_v2  ;;  %v680_v19 = vsub.f32 0.0, %v3597_v43  ;;  %v3618_v56 = vadd.f32 %v3106_v39, %v543_v9  ;;  %v3638_v3 = vpop.f32.mrb[37].mxu0 }
 0x125   :  { %v2369_v0 = vpop.eup %2368  ;;  %1052 = vst.msk [vmem:[%s4899_s7 + $0x48] sm:$0xff] %vm1042_vm2, %v987_v21  ;;  %v992_v7 = vmul.f32 %v2367_v53, %v3311_v57  ;;  %2388 = vpow2.f32 %v1638_v51  ;;  %v3624_v5 = vmul.f32 1.442695, %v1559_v52  ;;  %v1564_v10 = vsub.f32 0.0, %v3609_v27  ;;  %v3629_v57 = vpop.f32.mrb[36].mxu1  ;;  %4913 = vst [vmem:[#allocation12_spill] sm:$0xff] %v3638_v3 }
 0x126   :  { %v2371_v2 = vpop.eup %2370  ;;  %1935 = vst.msk [vmem:[%s4900_s8 + $0x48] sm:$0xff] %vm1042_vm2, %v1871_v23  ;;  %v862_v1 = vadd.f32 1.0, %v2369_v0  ;;  %2390 = vpow2.f32 %v760_v45  ;;  %v3635_v58 = vmul.f32 1.442695, %v680_v19  ;;  %v678_v45 = vsub.f32 0.0, %v3618_v56  ;;  %v3640_v14 = vpop.f32.mrb[37].mxu1 }
 0x127   :  { %v2373_v51 = vpop.eup %2372  ;;  %1057 = vst.msk [vmem:[%s4899_s7 + $0x70] sm:$0xff] %vm1042_vm2, %v992_v7  ;;  %v1746_v4 = vadd.f32 1.0, %v2371_v2  ;;  %2392 = vpow2.f32 %v1644_v11  ;;  %4914 = vst [vmem:[#allocation13_spill] sm:$0xff] %v3640_v14  ;;  %v3642_v9 = vmul.f32 1.442695, %v1564_v10  ;;  %v1427_v53 = vmul.f32 %v3101_v37, %v3353_v18  ;;  %v3646_v23 = vpop.f32.mrb[38].mxu0 }
 0x128   :  { %v2375_v46 = vpop.eup %2374  ;;  %2394 = vrcp.f32 %v862_v1  ;;  %v865_v21 = vadd.f32 1.0, %v2373_v51  ;;  %4915 = vst [vmem:[#allocation14_spill] sm:$0xff] %v3646_v23  ;;  %v3648_v52 = vpop.f32.mrb[38].mxu1  ;;  %v3650_v7 = vmul.f32 1.442695, %v678_v45  ;;  %v546_v19 = vmul.f32 %v3364_v34, %v3096_v36 }
 0x129   :  { %4916 = vst [vmem:[#allocation15_spill] sm:$0xff] %v3648_v52  ;;  %v2377_v11 = vpop.eup %2376  ;;  %2396 = vrcp.f32 %v1746_v4  ;;  %v1749_v0 = vadd.f32 1.0, %v2375_v46  ;;  %v3654_v2 = vpop.f32.mrb[39].mxu0  ;;  %v3659_v18 = vadd.f32 %v3111_v41, %v1427_v53  ;;  %v1430_v52 = vmul.f32 %v3366_v30, %v3101_v37 }
 0x12a   :  { %4917 = vst [vmem:[#allocation16_spill] sm:$0xff] %v3654_v2  ;;  %v3656_v1 = vpop.f32.mrb[39].mxu1  ;;  %v2379_v10 = vpop.eup %2378  ;;  %2398 = vrcp.f32 %v865_v21  ;;  %v863_v51 = vadd.f32 1.0, %v2377_v11  ;;  %v3664_v46 = vadd.f32 %v3106_v39, %v546_v19  ;;  %v544_v34 = vmul.f32 %v3096_v36, %v3373_v26 }
 0x12b   :  { %4918 = vst [vmem:[#allocation17_spill] sm:$0xff] %v3656_v1  ;;  %v2381_v4 = vpop.eup %2380  ;;  %2400 = vrcp.f32 %v1749_v0  ;;  %v1747_v45 = vadd.f32 1.0, %v2379_v10  ;;  %v1562_v21 = vsub.f32 0.0, %v3659_v18  ;;  %v3670_v53 = vadd.f32 %v3111_v41, %v1430_v52  ;;  %v3682_v52 = vpop.f32.mrb[40].mxu1 }
 0x12c   :  { %v2383_v2 = vpop.eup %2382  ;;  %2402 = vrcp.f32 %v863_v51  ;;  %v868_v1 = vadd.f32 1.0, %v2381_v4  ;;  %v681_v0 = vsub.f32 0.0, %v3664_v46  ;;  %v3674_v10 = vadd.f32 %v3106_v39, %v544_v34  ;;  %v3680_v4 = vpop.f32.mrb[40].mxu0  ;;  %4919 = vst [vmem:[#allocation18_spill] sm:$0xff] %v3682_v52 }
 0x12d   :  { %v2385_v11 = vpop.eup %2384  ;;  %2404 = vrcp.f32 %v1747_v45  ;;  %v1752_v30 = vadd.f32 1.0, %v2383_v2  ;;  %v3677_v26 = vmul.f32 1.442695, %v1562_v21  ;;  %v1565_v51 = vsub.f32 0.0, %v3670_v53  ;;  %v3687_v34 = vpop.f32.mrb[41].mxu0 }
 0x12e   :  { %v2387_v19 = vpop.eup %2386  ;;  %v1876_v23 = vmul.f32 %v2385_v11, %v3323_v29  ;;  %2406 = vrcp.f32 %v868_v1  ;;  %v3684_v45 = vmul.f32 1.442695, %v681_v0  ;;  %v679_v39 = vsub.f32 0.0, %v3674_v10  ;;  %4920 = vst [vmem:[#allocation19_spill] sm:$0xff] %v3687_v34  ;;  %v3689_v3 = vpop.f32.mrb[41].mxu1 }
 0x12f   :  { %v2389_v14 = vpop.eup %2388  ;;  %2408 = vrcp.f32 %v1752_v30  ;;  %v866_v2 = vadd.f32 1.0, %v2387_v19  ;;  %4921 = vst [vmem:[#allocation20_spill] sm:$0xff] %v3689_v3  ;;  %v3696_v21 = vmul.f32 1.442695, %v1565_v51  ;;  %v1428_v11 = vmul.f32 %v3101_v37, %v3375_v60  ;;  %v3700_v30 = vpop.f32.mrb[42].mxu0 }
 0x130   :  { %v2391_v29 = vpop.eup %2390  ;;  %1940 = vst.msk [vmem:[%s4900_s8 + $0x70] sm:$0xff] %vm1042_vm2, %v1876_v23  ;;  %v1750_v1 = vadd.f32 1.0, %v2389_v14  ;;  %2410 = vpow2.f32 %v3576_v6  ;;  %v3702_v0 = vpop.f32.mrb[42].mxu1  ;;  %v3704_v34 = vmul.f32 1.442695, %v679_v39  ;;  %v549_v23 = vmul.f32 %v3418_v28, %v3096_v36 }
 0x131   :  { %v2393_v19 = vpop.eup %2392  ;;  %2412 = vrcp.f32 %v866_v2  ;;  %v869_v3 = vadd.f32 1.0, %v2391_v29  ;;  %v3708_v14 = vpop.f32.mrb[43].mxu0  ;;  %v3713_v37 = vadd.f32 %v3111_v41, %v1428_v11  ;;  %v3718_v60 = vld [vmem:[%s4896_s5] ss:$0 sm:$0xff] }
 0x132   :  { %4922 = vst [vmem:[#allocation21_spill] sm:$0xff] %v3708_v14  ;;  %v3710_v6 = vpop.f32.mrb[43].mxu1  ;;  %v2395_v51 = vpop.eup %2394  ;;  %2414 = vrcp.f32 %v1750_v1  ;;  %v1753_v52 = vadd.f32 1.0, %v2393_v19  ;;  %v1433_v2 = vmul.f32 %v3718_v60, %v3420_v42  ;;  %v3726_v28 = vld [vmem:[%s4897_s4] ss:$0 sm:$0xff] }
 0x133   :  { %4923 = vst [vmem:[#allocation22_spill] sm:$0xff] %v3710_v6  ;;  %v2397_v39 = vpop.eup %2396  ;;  %v990_v36 = vmul.f32 %v2395_v51, %v3333_v63  ;;  %2416 = vrcp.f32 %v869_v3  ;;  %v3729_v41 = vadd.f32 %v3726_v28, %v549_v23  ;;  %v3734_v29 = vld [vmem:[%s4895_s3] ss:$0 sm:$0xff]  ;;  %v1563_v3 = vsub.f32 0.0, %v3713_v37 }
 0x134   :  { %v547_v42 = vmul.f32 %v3734_v29, %v3425_v49  ;;  %v2399_v1 = vpop.eup %2398  ;;  %v1874_v63 = vmul.f32 %v2397_v39, %v3384_v31  ;;  %2418 = vrcp.f32 %v1753_v52  ;;  %v3743_v11 = vld [vmem:[%s4898_s6] ss:$0 sm:$0xff] }
 0x135   :  { %v3746_v19 = vadd.f32 %v3743_v11, %v1433_v2  ;;  %v2401_v23 = vpop.eup %2400  ;;  %1055 = vst.msk [vmem:[%s4899_s7 + $0x60] sm:$0xff] %vm1042_vm2, %v990_v36  ;;  %v993_v49 = vmul.f32 %v2399_v1, %v3395_v32  ;;  %2420 = vpow2.f32 %v3624_v5  ;;  %v684_v31 = vsub.f32 0.0, %v3729_v41  ;;  %v3765_v36 = vpop.f32.mrb[44].mxu0 }
 0x136   :  { %v3756_v52 = vadd.f32 %v3726_v28, %v547_v42  ;;  %v2403_v51 = vpop.eup %2402  ;;  %1938 = vst.msk [vmem:[%s4900_s8 + $0x60] sm:$0xff] %vm1042_vm2, %v1874_v63  ;;  %v1877_v2 = vmul.f32 %v2401_v23, %v3405_v33  ;;  %2422 = vpow2.f32 %v3635_v58  ;;  %v1648_v39 = vmul.f32 1.442695, %v1563_v3  ;;  %4924 = vst [vmem:[#allocation23_spill] sm:$0xff] %v3765_v36  ;;  %v3767_v5 = vpop.f32.mrb[44].mxu1 }
 0x137   :  { %v1568_v32 = vsub.f32 0.0, %v3746_v19  ;;  %4925 = vst [vmem:[#allocation24_spill] sm:$0xff] %v3767_v5  ;;  %v2405_v1 = vpop.eup %2404  ;;  %1058 = vst.msk [vmem:[%s4899_s7 + $0x78] sm:$0xff] %vm1042_vm2, %v993_v49  ;;  %v991_v42 = vmul.f32 %v2403_v51, %v3413_v16  ;;  %2424 = vpow2.f32 %v3642_v9  ;;  %v774_v33 = vmul.f32 1.442695, %v684_v31  ;;  %v3776_v63 = vpop.f32.mrb[45].mxu0 }
 0x138   :  { %v682_v58 = vsub.f32 0.0, %v3756_v52  ;;  %4926 = vst [vmem:[#allocation25_spill] sm:$0xff] %v3776_v63  ;;  %v3778_v3 = vpop.f32.mrb[45].mxu1  ;;  %v2407_v23 = vpop.eup %2406  ;;  %1941 = vst.msk [vmem:[%s4900_s8 + $0x78] sm:$0xff] %vm1042_vm2, %v1877_v2  ;;  %v1875_v5 = vmul.f32 %v2405_v1, %v3446_v8  ;;  %2426 = vpow2.f32 %v3650_v7  ;;  %v1431_v9 = vmul.f32 %v3718_v60, %v3427_v47  ;;  %v4931_v7 = vld [vmem:[#allocation2_spill] sm:$0xff] }
 0x139   :  { %4927 = vst [vmem:[#allocation26_spill] sm:$0xff] %v3778_v3  ;;  %v1658_v16 = vmul.f32 1.442695, %v1568_v32  ;;  %v3788_v49 = vpop.f32.mrb[46].mxu0  ;;  %v3790_v31 = vpop.f32.mrb[46].mxu1  ;;  %1056 = vst.msk [vmem:[%s4899_s7 + $0x68] sm:$0xff] %vm1042_vm2, %v991_v42  ;;  %2428 = vpow2.f32 %v3677_v26  ;;  %v550_v32 = vmul.f32 %v3734_v29, %v4931_v7 }
 0x13a   :  { %4928 = vst [vmem:[#allocation27_spill] sm:$0xff] %v3788_v49  ;;  %4929 = vst [vmem:[#allocation28_spill] sm:$0xff] %v3790_v31  ;;  %v2409_v51 = vpop.eup %2408  ;;  %v4930_v3 = vld [vmem:[#allocation6_spill] sm:$0xff]  ;;  %v770_v8 = vmul.f32 1.442695, %v682_v58  ;;  %v3800_v1 = vpop.f32.mrb[47].mxu0  ;;  %2430 = vpow2.f32 %v3684_v45  ;;  %v3811_v26 = vadd.f32 %v3743_v11, %v1431_v9 }
 0x13b   :  { %v996_v2 = vmul.f32 %v2407_v23, %v4930_v3  ;;  %4932 = vst [vmem:[#allocation6_spill] sm:$0xff] %v3800_v1  ;;  %v3802_v47 = vpop.f32.mrb[47].mxu1  ;;  %v2411_v49 = vpop.eup %2410  ;;  %1939 = vst.msk [vmem:[%s4900_s8 + $0x68] sm:$0xff] %vm1042_vm2, %v1875_v5  ;;  %v1880_v42 = vmul.f32 %v2409_v51, %v3458_v15  ;;  %v4934_v58 = vld [vmem:[#allocation3_spill] sm:$0xff]  ;;  %2432 = vpow2.f32 %v3696_v21  ;;  %v3821_v5 = vadd.f32 %v3726_v28, %v550_v32  ;;  %v4935_v15 = vld [vmem:[#allocation4_spill] sm:$0xff] }
 0x13c   :  { %4933 = vst [vmem:[#allocation2_spill] sm:$0xff] %v3802_v47  ;;  %v1434_v3 = vmul.f32 %v3718_v60, %v4934_v58  ;;  %v2413_v23 = vpop.eup %2412  ;;  %v867_v7 = vadd.f32 1.0, %v2411_v49  ;;  %v548_v45 = vmul.f32 %v3734_v29, %v4935_v15  ;;  %v4936_v51 = vld [vmem:[#allocation7_spill] sm:$0xff]  ;;  %2434 = vpow2.f32 %v3704_v34 }
 0x13d   :  { %1061 = vst.msk [vmem:[%s4899_s7 + $0x90] sm:$0xff] %vm1042_vm2, %v996_v2  ;;  %v2415_v9 = vpop.eup %2414  ;;  %1944 = vst.msk [vmem:[%s4900_s8 + $0x90] sm:$0xff] %vm1042_vm2, %v1880_v42  ;;  %v994_v58 = vmul.f32 %v2413_v23, %v4936_v51  ;;  %v1566_v49 = vsub.f32 0.0, %v3811_v26  ;;  %v685_v15 = vsub.f32 0.0, %v3821_v5  ;;  %v3850_v23 = vpop.f32.mrb[48].mxu1 }
 0x13e   :  { %v3833_v21 = vadd.f32 %v3743_v11, %v1434_v3  ;;  %v2417_v2 = vpop.eup %2416  ;;  %v1878_v32 = vmul.f32 %v2415_v9, %v3502_v20  ;;  %2436 = vrcp.f32 %v867_v7  ;;  %v3838_v47 = vadd.f32 %v3726_v28, %v548_v45  ;;  %v3848_v20 = vpop.f32.mrb[48].mxu0  ;;  %4938 = vst [vmem:[#allocation4_spill] sm:$0xff] %v3850_v23  ;;  %v4947_v23 = vld [vmem:[#allocation9_spill] sm:$0xff] }
 0x13f   :  { %v2419_v1 = vpop.eup %2418  ;;  %1059 = vst.msk [vmem:[%s4899_s7 + $0x80] sm:$0xff] %vm1042_vm2, %v994_v58  ;;  %v997_v34 = vmul.f32 %v2417_v2, %v3513_v44  ;;  %2438 = vpow2.f32 %v1648_v39  ;;  %v3845_v42 = vmul.f32 1.442695, %v1566_v49  ;;  %4937 = vst [vmem:[#allocation3_spill] sm:$0xff] %v3848_v20  ;;  %v3857_v9 = vmul.f32 1.442695, %v685_v15 }
 0x140   :  { %v1569_v3 = vsub.f32 0.0, %v3833_v21  ;;  %v2421_v7 = vpop.eup %2420  ;;  %1942 = vst.msk [vmem:[%s4900_s8 + $0x80] sm:$0xff] %vm1042_vm2, %v1878_v32  ;;  %v1881_v45 = vmul.f32 %v2419_v1, %v3525_v40  ;;  %2440 = vpow2.f32 %v774_v33  ;;  %v683_v44 = vsub.f32 0.0, %v3838_v47  ;;  %v3860_v39 = vpop.f32.mrb[49].mxu0  ;;  %v4941_v40 = vld [vmem:[#allocation5_spill] sm:$0xff] }
 0x141   :  { %4939 = vst [vmem:[#allocation7_spill] sm:$0xff] %v3860_v39  ;;  %v3862_v51 = vpop.f32.mrb[49].mxu1  ;;  %v2423_v58 = vpop.eup %2422  ;;  %1062 = vst.msk [vmem:[%s4899_s7 + $0x98] sm:$0xff] %vm1042_vm2, %v997_v34  ;;  %v1751_v49 = vadd.f32 1.0, %v2421_v7  ;;  %2442 = vpow2.f32 %v1658_v16  ;;  %v1432_v33 = vmul.f32 %v3718_v60, %v4941_v40  ;;  %v4944_v16 = vld [vmem:[#allocation8_spill] sm:$0xff] }
 0x142   :  { %4940 = vst [vmem:[#allocation29_spill] sm:$0xff] %v3862_v51  ;;  %v3868_v2 = vmul.f32 1.442695, %v1569_v3  ;;  %v3872_v1 = vpop.f32.mrb[50].mxu0  ;;  %v3874_v32 = vpop.f32.mrb[50].mxu1  ;;  %1945 = vst.msk [vmem:[%s4900_s8 + $0x98] sm:$0xff] %vm1042_vm2, %v1881_v45  ;;  %2444 = vpow2.f32 %v770_v8  ;;  %v553_v3 = vmul.f32 %v3734_v29, %v4944_v16  ;;  %v1437_v45 = vmul.f32 %v3718_v60, %v4947_v23 }
 0x143   :  { %4942 = vst [vmem:[#allocation5_spill] sm:$0xff] %v3872_v1  ;;  %4943 = vst [vmem:[#allocation30_spill] sm:$0xff] %v3874_v32  ;;  %v2425_v15 = vpop.eup %2424  ;;  %v872_v51 = vadd.f32 1.0, %v2423_v58  ;;  %v3880_v34 = vmul.f32 1.442695, %v683_v44  ;;  %v3884_v7 = vpop.f32.mrb[51].mxu0  ;;  %2446 = vrcp.f32 %v1751_v49  ;;  %v3889_v39 = vadd.f32 %v3743_v11, %v1432_v33 }
 0x144   :  { %4945 = vst [vmem:[#allocation8_spill] sm:$0xff] %v3884_v7  ;;  %v3886_v40 = vpop.f32.mrb[51].mxu1  ;;  %v2427_v1 = vpop.eup %2426  ;;  %v1756_v32 = vadd.f32 1.0, %v2425_v15  ;;  %v3894_v44 = vadd.f32 %v3726_v28, %v553_v3  ;;  %v551_v16 = vmul.f32 %v3734_v29, %v3479_v54  ;;  %v3900_v33 = vadd.f32 %v3743_v11, %v1437_v45 }
 0x145   :  { %4946 = vst [vmem:[#allocation31_spill] sm:$0xff] %v3886_v40  ;;  %v2429_v58 = vpop.eup %2428  ;;  %2448 = vrcp.f32 %v872_v51  ;;  %v870_v8 = vadd.f32 1.0, %v2427_v1  ;;  %v1567_v49 = vsub.f32 0.0, %v3889_v39  ;;  %v3911_v31 = vpop.f32.mrb[52].mxu1 }
 0x146   :  { %v2431_v7 = vpop.eup %2430  ;;  %2450 = vrcp.f32 %v1756_v32  ;;  %v1754_v40 = vadd.f32 1.0, %v2429_v58  ;;  %v688_v51 = vsub.f32 0.0, %v3894_v44  ;;  %v3904_v1 = vadd.f32 %v3726_v28, %v551_v16  ;;  %v3909_v58 = vpop.f32.mrb[52].mxu0  ;;  %4949 = vst [vmem:[#allocation32_spill] sm:$0xff] %v3911_v31 }
 0x147   :  { %v2433_v15 = vpop.eup %2432  ;;  %2452 = vrcp.f32 %v870_v8  ;;  %v873_v23 = vadd.f32 1.0, %v2431_v7  ;;  %v3906_v54 = vmul.f32 1.442695, %v1567_v49  ;;  %v1572_v32 = vsub.f32 0.0, %v3900_v33  ;;  %4948 = vst [vmem:[#allocation9_spill] sm:$0xff] %v3909_v58  ;;  %v3915_v63 = vpop.f32.mrb[53].mxu0 }
 0x148   :  { %v2435_v3 = vpop.eup %2434  ;;  %2454 = vrcp.f32 %v1754_v40  ;;  %v1757_v20 = vadd.f32 1.0, %v2433_v15  ;;  %v3913_v7 = vmul.f32 1.442695, %v688_v51  ;;  %4950 = vst [vmem:[#allocation33_spill] sm:$0xff] %v3915_v63  ;;  %v3917_v16 = vpop.f32.mrb[53].mxu1  ;;  %v686_v49 = vsub.f32 0.0, %v3904_v1 }
 0x149   :  { %v2437_v45 = vpop.eup %2436  ;;  %2456 = vrcp.f32 %v873_v23  ;;  %v871_v8 = vadd.f32 1.0, %v2435_v3  ;;  %4951 = vst [vmem:[#allocation34_spill] sm:$0xff] %v3917_v16  ;;  %v4952_v15 = vld [vmem:[#allocation10_spill] sm:$0xff]  ;;  %v3923_v6 = vpop.f32.mrb[54].mxu0  ;;  %v3927_v3 = vmul.f32 1.442695, %v1572_v32  ;;  %v1438_v32 = vmul.f32 %v3718_v60, %v3489_v48 }
 0x14a   :  { %v2439_v36 = vpop.eup %2438  ;;  %v995_v40 = vmul.f32 %v2437_v45, %v3535_v17  ;;  %2458 = vrcp.f32 %v1757_v20  ;;  %v1435_v58 = vmul.f32 %v3718_v60, %v4952_v15  ;;  %4953 = vst [vmem:[#allocation10_spill] sm:$0xff] %v3923_v6  ;;  %v3925_v31 = vpop.f32.mrb[54].mxu1  ;;  %v4955_v63 = vld [vmem:[#allocation11_spill] sm:$0xff] }
 0x14b   :  { %4954 = vst [vmem:[#allocation35_spill] sm:$0xff] %v3925_v31  ;;  %v2441_v23 = vpop.eup %2440  ;;  %2460 = vrcp.f32 %v871_v8  ;;  %v1755_v51 = vadd.f32 1.0, %v2439_v36  ;;  %v554_v16 = vmul.f32 %v3734_v29, %v4955_v63  ;;  %v3931_v14 = vpop.f32.mrb[55].mxu0 }
 0x14c   :  { %4956 = vst [vmem:[#allocation11_spill] sm:$0xff] %v3931_v14  ;;  %v3933_v17 = vpop.f32.mrb[55].mxu1  ;;  %v2443_v20 = vpop.eup %2442  ;;  %1060 = vst.msk [vmem:[%s4899_s7 + $0x88] sm:$0xff] %vm1042_vm2, %v995_v40  ;;  %v876_v45 = vadd.f32 1.0, %v2441_v23  ;;  %2462 = vpow2.f32 %v3845_v42  ;;  %v3941_v36 = vadd.f32 %v3743_v11, %v1435_v58  ;;  %v3952_v58 = vadd.f32 %v3743_v11, %v1438_v32 }
 0x14d   :  { %4957 = vst [vmem:[#allocation36_spill] sm:$0xff] %v3933_v17  ;;  %v2445_v63 = vpop.eup %2444  ;;  %2464 = vrcp.f32 %v1755_v51  ;;  %v1760_v8 = vadd.f32 1.0, %v2443_v20  ;;  %v3946_v15 = vadd.f32 %v3726_v28, %v554_v16  ;;  %v552_v17 = vmul.f32 %v3734_v29, %v3496_v35  ;;  %v3961_v31 = vpop.f32.mrb[56].mxu0 }
 0x14e   :  { %v2447_v14 = vpop.eup %2446  ;;  %2466 = vrcp.f32 %v876_v45  ;;  %v874_v40 = vadd.f32 1.0, %v2445_v63  ;;  %v1570_v42 = vsub.f32 0.0, %v3941_v36  ;;  %v778_v45 = vmul.f32 1.442695, %v686_v49  ;;  %v3963_v32 = vpop.f32.mrb[56].mxu1 }
 0x14f   :  { %v2449_v23 = vpop.eup %2448  ;;  %v1879_v48 = vmul.f32 %v2447_v14, %v3591_v55  ;;  %2468 = vrcp.f32 %v1760_v8  ;;  %v689_v51 = vsub.f32 0.0, %v3946_v15  ;;  %v3957_v16 = vadd.f32 %v3726_v28, %v552_v17  ;;  %v3971_v17 = vpop.f32.mrb[57].mxu0 }
 0x150   :  { %v2451_v20 = vpop.eup %2450  ;;  %v1000_v35 = vmul.f32 %v2449_v23, %v3597_v43  ;;  %2470 = vrcp.f32 %v874_v40  ;;  %v1573_v63 = vsub.f32 0.0, %v3952_v58  ;;  %v1662_v14 = vmul.f32 1.442695, %v1570_v42  ;;  %v3973_v49 = vpop.f32.mrb[57].mxu1 }
 0x151   :  { %v2453_v6 = vpop.eup %2452  ;;  %1943 = vst.msk [vmem:[%s4900_s8 + $0x88] sm:$0xff] %vm1042_vm2, %v1879_v48  ;;  %v1884_v55 = vmul.f32 %v2451_v20, %v3609_v27  ;;  %2472 = vpow2.f32 %v3857_v9  ;;  %v784_v43 = vmul.f32 1.442695, %v689_v51  ;;  %v687_v27 = vsub.f32 0.0, %v3957_v16  ;;  %v3984_v42 = vpop.f32.mrb[58].mxu0 }
 0x152   :  { %v2455_v8 = vpop.eup %2454  ;;  %1065 = vst.msk [vmem:[%s4899_s7 + $0xb0] sm:$0xff] %vm1042_vm2, %v1000_v35  ;;  %v998_v40 = vmul.f32 %v2453_v6, %v3618_v56  ;;  %2474 = vpow2.f32 %v3868_v2  ;;  %v1436_v9 = vmul.f32 %v3718_v60, %v3498_v59  ;;  %v3986_v23 = vpop.f32.mrb[58].mxu1  ;;  %v1668_v56 = vmul.f32 1.442695, %v1573_v63 }
 0x153   :  { %v2457_v48 = vpop.eup %2456  ;;  %1948 = vst.msk [vmem:[%s4900_s8 + $0xb0] sm:$0xff] %vm1042_vm2, %v1884_v55  ;;  %v1882_v51 = vmul.f32 %v2455_v8, %v3659_v18  ;;  %2476 = vpow2.f32 %v3880_v34  ;;  %v557_v6 = vmul.f32 %v3734_v29, %v3544_v25  ;;  %v3996_v2 = vpop.f32.mrb[59].mxu0  ;;  %v1441_v25 = vmul.f32 %v3718_v60, %v3546_v22 }
 0x154   :  { %v3998_v59 = vpop.f32.mrb[59].mxu1  ;;  %v2459_v20 = vpop.eup %2458  ;;  %1063 = vst.msk [vmem:[%s4899_s7 + $0xa0] sm:$0xff] %vm1042_vm2, %v998_v40  ;;  %v1001_v35 = vmul.f32 %v2457_v48, %v3664_v46  ;;  %2478 = vpow2.f32 %v3906_v54  ;;  %v4007_v18 = vadd.f32 %v3743_v11, %v1436_v9  ;;  %v555_v54 = vmul.f32 %v3734_v29, %v3555_v38 }
 0x155   :  { %v2461_v34 = vpop.eup %2460  ;;  %1946 = vst.msk [vmem:[%s4900_s8 + $0xa0] sm:$0xff] %vm1042_vm2, %v1882_v51  ;;  %v1885_v63 = vmul.f32 %v2459_v20, %v3670_v53  ;;  %2480 = vpow2.f32 %v3913_v7  ;;  %v4018_v46 = vadd.f32 %v3726_v28, %v557_v6  ;;  %v4030_v7 = vadd.f32 %v3743_v11, %v1441_v25  ;;  %v4046_v6 = vpop.f32.mrb[60].mxu0 }
 0x156   :  { %v2463_v55 = vpop.eup %2462  ;;  %1066 = vst.msk [vmem:[%s4899_s7 + $0xb8] sm:$0xff] %vm1042_vm2, %v1001_v35  ;;  %v999_v22 = vmul.f32 %v2461_v34, %v3674_v10  ;;  %2482 = vpow2.f32 %v3927_v3  ;;  %v1571_v53 = vsub.f32 0.0, %v4007_v18  ;;  %v4038_v9 = vadd.f32 %v3726_v28, %v555_v54 }
 0x157   :  { %v2465_v8 = vpop.eup %2464  ;;  %1949 = vst.msk [vmem:[%s4900_s8 + $0xb8] sm:$0xff] %vm1042_vm2, %v1885_v63  ;;  %v1758_v38 = vadd.f32 1.0, %v2463_v55  ;;  %2484 = vpow2.f32 %v778_v45  ;;  %v692_v40 = vsub.f32 0.0, %v4018_v46  ;;  %v780_v48 = vmul.f32 1.442695, %v687_v27  ;;  %v4048_v45 = vpop.f32.mrb[60].mxu1 }
 0x158   :  { %v2467_v10 = vpop.eup %2466  ;;  %1064 = vst.msk [vmem:[%s4899_s7 + $0xa8] sm:$0xff] %vm1042_vm2, %v999_v22  ;;  %v1883_v3 = vmul.f32 %v2465_v8, %v3713_v37  ;;  %2486 = vpow2.f32 %v1662_v14  ;;  %v1576_v51 = vsub.f32 0.0, %v4030_v7  ;;  %v1664_v25 = vmul.f32 1.442695, %v1571_v53  ;;  %v4053_v63 = vpop.f32.mrb[61].mxu0 }
 0x159   :  { %v2469_v20 = vpop.eup %2468  ;;  %v1004_v35 = vmul.f32 %v2467_v10, %v3729_v41  ;;  %2488 = vrcp.f32 %v1758_v38  ;;  %v4051_v34 = vmul.f32 1.442695, %v692_v40  ;;  %4958 = vst [vmem:[#allocation37_spill] sm:$0xff] %v4053_v63  ;;  %v4055_v54 = vpop.f32.mrb[61].mxu1  ;;  %v690_v27 = vsub.f32 0.0, %v4038_v9 }
 0x15a   :  { %4959 = vst [vmem:[#allocation38_spill] sm:$0xff] %v4055_v54  ;;  %v2471_v37 = vpop.eup %2470  ;;  %1947 = vst.msk [vmem:[%s4900_s8 + $0xa8] sm:$0xff] %vm1042_vm2, %v1883_v3  ;;  %v1888_v14 = vmul.f32 %v2469_v20, %v3746_v19  ;;  %2490 = vpow2.f32 %v784_v43  ;;  %v1439_v41 = vmul.f32 %v3718_v60, %v3557_v62  ;;  %v4065_v55 = vpop.f32.mrb[62].mxu0  ;;  %v4074_v19 = vmul.f32 1.442695, %v1576_v51 }
 0x15b   :  { %4960 = vst [vmem:[#allocation39_spill] sm:$0xff] %v4065_v55  ;;  %v4067_v22 = vpop.f32.mrb[62].mxu1  ;;  %v2473_v53 = vpop.eup %2472  ;;  %1069 = vst.msk [vmem:[%s4899_s7 + $0xd0] sm:$0xff] %vm1042_vm2, %v1004_v35  ;;  %v1002_v8 = vmul.f32 %v2471_v37, %v3756_v52  ;;  %2492 = vpow2.f32 %v1668_v56  ;;  %v558_v43 = vmul.f32 %v3734_v29, %v3567_v24  ;;  %v1442_v56 = vmul.f32 %v3718_v60, %v3569_v50 }
 0x15c   :  { %4961 = vst [vmem:[#allocation40_spill] sm:$0xff] %v4067_v22  ;;  %v4078_v38 = vpop.f32.mrb[63].mxu0  ;;  %v4080_v62 = vpop.f32.mrb[63].mxu1  ;;  %1952 = vst.msk [vmem:[%s4900_s8 + $0xd0] sm:$0xff] %vm1042_vm2, %v1888_v14  ;;  %v877_v10 = vadd.f32 1.0, %v2473_v53  ;;  %2494 = vpow2.f32 %v780_v48  ;;  %v4087_v52 = vadd.f32 %v3743_v11, %v1439_v41  ;;  %v556_v48 = vmul.f32 %v3734_v29, %v3580_v13 }
 0x15d   :  { %4962 = vst [vmem:[#allocation41_spill] sm:$0xff] %v4078_v38  ;;  %4963 = vst [vmem:[#allocation42_spill] sm:$0xff] %v4080_v62  ;;  %v2475_v40 = vpop.eup %2474  ;;  %2496 = vpow2.f32 %v1664_v25  ;;  %v4096_v51 = vadd.f32 %v3726_v28, %v558_v43  ;;  %v4102_v50 = vadd.f32 %v3743_v11, %v1442_v56  ;;  %v786_v13 = vmul.f32 1.442695, %v690_v27 }
 0x15e   :  { %v2477_v3 = vpop.eup %2476  ;;  %1067 = vst.msk [vmem:[%s4899_s7 + $0xc0] sm:$0xff] %vm1042_vm2, %v1002_v8  ;;  %v1761_v24 = vadd.f32 1.0, %v2475_v40  ;;  %2498 = vrcp.f32 %v877_v10  ;;  %v1574_v37 = vsub.f32 0.0, %v4087_v52  ;;  %v4106_v25 = vadd.f32 %v3726_v28, %v556_v48 }
 0x15f   :  { %v2479_v20 = vpop.eup %2478  ;;  %v875_v35 = vadd.f32 1.0, %v2477_v3  ;;  %v693_v53 = vsub.f32 0.0, %v4096_v51  ;;  %v1577_v40 = vsub.f32 0.0, %v4102_v50  ;;  %v1440_v48 = vmul.f32 %v3718_v60, %v3582_v12 }
 0x160   :  { %v2481_v14 = vpop.eup %2480  ;;  %2500 = vrcp.f32 %v1761_v24  ;;  %v1759_v41 = vadd.f32 1.0, %v2479_v20  ;;  %v4109_v62 = vmul.f32 1.442695, %v1574_v37  ;;  %v691_v38 = vsub.f32 0.0, %v4106_v25 }
 0x161   :  { %v2483_v8 = vpop.eup %2482  ;;  %2502 = vrcp.f32 %v875_v35  ;;  %v880_v43 = vadd.f32 1.0, %v2481_v14  ;;  %v4111_v56 = vmul.f32 1.442695, %v693_v53  ;;  %v4116_v14 = vmul.f32 1.442695, %v1577_v40  ;;  %v4964_v40 = vld [vmem:[#allocation12_spill] sm:$0xff] }
 0x162   :  { %v2485_v10 = vpop.eup %2484  ;;  %2504 = vrcp.f32 %v1759_v41  ;;  %v1764_v3 = vadd.f32 1.0, %v2483_v8  ;;  %v561_v41 = vmul.f32 %v3734_v29, %v3627_v61  ;;  %v4122_v8 = vadd.f32 %v3743_v11, %v1440_v48 }
 0x163   :  { %v2487_v24 = vpop.eup %2486  ;;  %2506 = vrcp.f32 %v880_v43  ;;  %v878_v20 = vadd.f32 1.0, %v2485_v10  ;;  %v1445_v43 = vmul.f32 %v3718_v60, %v3629_v57 }
 0x164   :  { %v2489_v35 = vpop.eup %2488  ;;  %2508 = vrcp.f32 %v1764_v3  ;;  %v1762_v27 = vadd.f32 1.0, %v2487_v24  ;;  %v4127_v3 = vadd.f32 %v3726_v28, %v561_v41  ;;  %v559_v24 = vmul.f32 %v3734_v29, %v4964_v40 }
 0x165   :  { %v2491_v37 = vpop.eup %2490  ;;  %v1886_v53 = vmul.f32 %v2489_v35, %v3811_v26  ;;  %2510 = vrcp.f32 %v878_v20  ;;  %v1575_v57 = vsub.f32 0.0, %v4122_v8  ;;  %v4138_v20 = vadd.f32 %v3743_v11, %v1445_v43 }
 0x166   :  { %v2493_v10 = vpop.eup %2492  ;;  %2512 = vrcp.f32 %v1762_v27  ;;  %v881_v12 = vadd.f32 1.0, %v2491_v37  ;;  %v696_v27 = vsub.f32 0.0, %v4127_v3  ;;  %v4142_v41 = vadd.f32 %v3726_v28, %v559_v24  ;;  %v4965_v24 = vld [vmem:[#allocation13_spill] sm:$0xff] }
 0x167   :  { %v2495_v61 = vpop.eup %2494  ;;  %1950 = vst.msk [vmem:[%s4900_s8 + $0xc0] sm:$0xff] %vm1042_vm2, %v1886_v53  ;;  %v1765_v26 = vadd.f32 1.0, %v2493_v10  ;;  %2514 = vpow2.f32 %v4051_v34  ;;  %v788_v53 = vmul.f32 1.442695, %v691_v38  ;;  %v1580_v10 = vsub.f32 0.0, %v4138_v20 }
 0x168   :  { %v2497_v48 = vpop.eup %2496  ;;  %2516 = vrcp.f32 %v881_v12  ;;  %v879_v35 = vadd.f32 1.0, %v2495_v61  ;;  %v1672_v43 = vmul.f32 1.442695, %v1575_v57  ;;  %v798_v55 = vmul.f32 1.442695, %v696_v27  ;;  %v4966_v57 = vld [vmem:[#allocation14_spill] sm:$0xff] }
 0x169   :  { %v2499_v37 = vpop.eup %2498  ;;  %2518 = vrcp.f32 %v1765_v26  ;;  %v1763_v40 = vadd.f32 1.0, %v2497_v48  ;;  %v694_v61 = vsub.f32 0.0, %v4142_v41  ;;  %v1443_v63 = vmul.f32 %v3718_v60, %v4965_v24 }
 0x16a   :  { %v2501_v34 = vpop.eup %2500  ;;  %v1005_v22 = vmul.f32 %v2499_v37, %v3821_v5  ;;  %2520 = vrcp.f32 %v879_v35  ;;  %v1682_v38 = vmul.f32 1.442695, %v1580_v10 }
 0x16b   :  { %v2503_v54 = vpop.eup %2502  ;;  %v1889_v12 = vmul.f32 %v2501_v34, %v3833_v21  ;;  %2522 = vrcp.f32 %v1763_v40  ;;  %v562_v21 = vmul.f32 %v3734_v29, %v4966_v57  ;;  %v4164_v27 = vadd.f32 %v3743_v11, %v1443_v63 }
 0x16c   :  { %v2505_v26 = vpop.eup %2504  ;;  %1070 = vst.msk [vmem:[%s4899_s7 + $0xd8] sm:$0xff] %vm1042_vm2, %v1005_v22  ;;  %v1003_v5 = vmul.f32 %v2503_v54, %v3838_v47  ;;  %2524 = vpow2.f32 %v4074_v19  ;;  %v4967_v22 = vld [vmem:[#allocation15_spill] sm:$0xff] }
 0x16d   :  { %v2507_v48 = vpop.eup %2506  ;;  %1953 = vst.msk [vmem:[%s4900_s8 + $0xd8] sm:$0xff] %vm1042_vm2, %v1889_v12  ;;  %v1887_v35 = vmul.f32 %v2505_v26, %v3889_v39  ;;  %2526 = vpow2.f32 %v786_v13  ;;  %v1446_v47 = vmul.f32 %v3718_v60, %v4967_v22  ;;  %v4175_v37 = vadd.f32 %v3726_v28, %v562_v21  ;;  %v4968_v39 = vld [vmem:[#allocation16_spill] sm:$0xff] }
 0x16e   :  { %v2509_v54 = vpop.eup %2508  ;;  %1068 = vst.msk [vmem:[%s4899_s7 + $0xc8] sm:$0xff] %vm1042_vm2, %v1003_v5  ;;  %v1008_v19 = vmul.f32 %v2507_v48, %v3894_v44  ;;  %2528 = vpow2.f32 %v4109_v62  ;;  %v560_v63 = vmul.f32 %v3734_v29, %v4968_v39  ;;  %v1578_v44 = vsub.f32 0.0, %v4164_v27  ;;  %v4970_v39 = vld [vmem:[#allocation18_spill] sm:$0xff] }
 0x16f   :  { %v2511_v13 = vpop.eup %2510  ;;  %1951 = vst.msk [vmem:[%s4900_s8 + $0xc8] sm:$0xff] %vm1042_vm2, %v1887_v35  ;;  %v1892_v40 = vmul.f32 %v2509_v54, %v3900_v33  ;;  %2530 = vpow2.f32 %v4111_v56  ;;  %v4187_v62 = vadd.f32 %v3743_v11, %v1446_v47  ;;  %v697_v12 = vsub.f32 0.0, %v4175_v37 }
 0x170   :  { %v2513_v10 = vpop.eup %2512  ;;  %1073 = vst.msk [vmem:[%s4899_s7 + $0xf0] sm:$0xff] %vm1042_vm2, %v1008_v19  ;;  %v1006_v34 = vmul.f32 %v2511_v13, %v3904_v1  ;;  %2532 = vpow2.f32 %v4116_v14  ;;  %v4197_v33 = vadd.f32 %v3726_v28, %v560_v63  ;;  %v794_v26 = vmul.f32 1.442695, %v694_v61  ;;  %v4969_v61 = vld [vmem:[#allocation17_spill] sm:$0xff] }
 0x171   :  { %v2515_v56 = vpop.eup %2514  ;;  %1956 = vst.msk [vmem:[%s4900_s8 + $0xf0] sm:$0xff] %vm1042_vm2, %v1892_v40  ;;  %v1890_v24 = vmul.f32 %v2513_v10, %v3941_v36  ;;  %2534 = vpow2.f32 %v788_v53  ;;  %v1581_v5 = vsub.f32 0.0, %v4187_v62  ;;  %v1678_v57 = vmul.f32 1.442695, %v1578_v44 }
 0x172   :  { %v2517_v1 = vpop.eup %2516  ;;  %1071 = vst.msk [vmem:[%s4899_s7 + $0xe0] sm:$0xff] %vm1042_vm2, %v1006_v34  ;;  %v884_v14 = vadd.f32 1.0, %v2515_v56  ;;  %2536 = vpow2.f32 %v1672_v43  ;;  %v800_v21 = vmul.f32 1.442695, %v697_v12  ;;  %v695_v53 = vsub.f32 0.0, %v4197_v33 }
 0x173   :  { %v2519_v48 = vpop.eup %2518  ;;  %1954 = vst.msk [vmem:[%s4900_s8 + $0xe0] sm:$0xff] %vm1042_vm2, %v1890_v24  ;;  %v1009_v36 = vmul.f32 %v2517_v1, %v3946_v15  ;;  %2538 = vpow2.f32 %v798_v55  ;;  %v1444_v35 = vmul.f32 %v3718_v60, %v4969_v61  ;;  %v4218_v43 = vmul.f32 1.442695, %v1581_v5 }
 0x174   :  { %v2521_v22 = vpop.eup %2520  ;;  %v1893_v47 = vmul.f32 %v2519_v48, %v3952_v58  ;;  %2540 = vrcp.f32 %v884_v14  ;;  %v565_v54 = vmul.f32 %v3734_v29, %v3680_v4  ;;  %v1449_v58 = vmul.f32 %v3718_v60, %v4970_v39 }
 0x175   :  { %v2523_v19 = vpop.eup %2522  ;;  %1074 = vst.msk [vmem:[%s4899_s7 + $0xf8] sm:$0xff] %vm1042_vm2, %v1009_v36  ;;  %v1007_v15 = vmul.f32 %v2521_v22, %v3957_v16  ;;  %2542 = vpow2.f32 %v1682_v38  ;;  %v4228_v55 = vadd.f32 %v3743_v11, %v1444_v35  ;;  %v4971_v16 = vld [vmem:[#allocation19_spill] sm:$0xff]  ;;  %v4258_v1 = vmul.f32 1.442695, %v695_v53 }
 0x176   :  { %v2525_v63 = vpop.eup %2524  ;;  %1957 = vst.msk [vmem:[%s4900_s8 + $0xf8] sm:$0xff] %vm1042_vm2, %v1893_v47  ;;  %v1891_v4 = vmul.f32 %v2523_v19, %v4007_v18  ;;  %2544 = vpow2.f32 %v794_v26  ;;  %v4238_v13 = vadd.f32 %v3726_v28, %v565_v54  ;;  %v563_v38 = vmul.f32 %v3734_v29, %v4971_v16  ;;  %v4972_v47 = vld [vmem:[#allocation20_spill] sm:$0xff] }
 0x177   :  { %v2527_v40 = vpop.eup %2526  ;;  %1072 = vst.msk [vmem:[%s4899_s7 + $0xe8] sm:$0xff] %vm1042_vm2, %v1007_v15  ;;  %v1768_v44 = vadd.f32 1.0, %v2525_v63  ;;  %2546 = vpow2.f32 %v1678_v57  ;;  %v1579_v10 = vsub.f32 0.0, %v4228_v55  ;;  %v4248_v34 = vadd.f32 %v3743_v11, %v1449_v58 }
 0x178   :  { %v2529_v18 = vpop.eup %2528  ;;  %1955 = vst.msk [vmem:[%s4900_s8 + $0xe8] sm:$0xff] %vm1042_vm2, %v1891_v4  ;;  %v882_v12 = vadd.f32 1.0, %v2527_v40  ;;  %2548 = vpow2.f32 %v800_v21  ;;  %v700_v56 = vsub.f32 0.0, %v4238_v13  ;;  %v4256_v24 = vadd.f32 %v3726_v28, %v563_v38 }
 0x179   :  { %v2531_v26 = vpop.eup %2530  ;;  %2550 = vrcp.f32 %v1768_v44  ;;  %v1766_v5 = vadd.f32 1.0, %v2529_v18  ;;  %v1584_v14 = vsub.f32 0.0, %v4248_v34  ;;  %v4261_v36 = vmul.f32 1.442695, %v1579_v10  ;;  %v4973_v10 = vld [vmem:[#allocation21_spill] sm:$0xff] }
 0x17a   :  { %v2533_v57 = vpop.eup %2532  ;;  %2552 = vrcp.f32 %v882_v12  ;;  %v885_v48 = vadd.f32 1.0, %v2531_v26  ;;  %v4263_v61 = vmul.f32 1.442695, %v700_v56  ;;  %v698_v22 = vsub.f32 0.0, %v4256_v24 }
 0x17b   :  { %v2535_v21 = vpop.eup %2534  ;;  %2554 = vrcp.f32 %v1766_v5  ;;  %v1769_v35 = vadd.f32 1.0, %v2533_v57  ;;  %v1447_v54 = vmul.f32 %v3718_v60, %v4972_v47  ;;  %v4268_v15 = vmul.f32 1.442695, %v1584_v14 }
 0x17c   :  { %v2537_v19 = vpop.eup %2536  ;;  %2556 = vrcp.f32 %v885_v48  ;;  %v883_v53 = vadd.f32 1.0, %v2535_v21  ;;  %v566_v39 = vmul.f32 %v3734_v29, %v3700_v30  ;;  %v1450_v16 = vmul.f32 %v3718_v60, %v3702_v0 }
 0x17d   :  { %v2539_v58 = vpop.eup %2538  ;;  %2558 = vrcp.f32 %v1769_v35  ;;  %v1767_v63 = vadd.f32 1.0, %v2537_v19  ;;  %v4273_v4 = vadd.f32 %v3743_v11, %v1447_v54  ;;  %v564_v18 = vmul.f32 %v3734_v29, %v4973_v10 }
 0x17e   :  { %v2541_v38 = vpop.eup %2540  ;;  %2560 = vrcp.f32 %v883_v53  ;;  %v888_v40 = vadd.f32 1.0, %v2539_v58  ;;  %v4278_v44 = vadd.f32 %v3726_v28, %v566_v39  ;;  %v4285_v26 = vadd.f32 %v3743_v11, %v1450_v16  ;;  %v4974_v16 = vld [vmem:[#allocation22_spill] sm:$0xff] }
 0x17f   :  { %v2543_v12 = vpop.eup %2542  ;;  %v1012_v30 = vmul.f32 %v2541_v38, %v4018_v46  ;;  %2562 = vrcp.f32 %v1767_v63  ;;  %v1582_v56 = vsub.f32 0.0, %v4273_v4  ;;  %v4289_v57 = vadd.f32 %v3726_v28, %v564_v18 }
 0x180   :  { %v2545_v5 = vpop.eup %2544  ;;  %2564 = vrcp.f32 %v888_v40  ;;  %v1772_v0 = vadd.f32 1.0, %v2543_v12  ;;  %v701_v14 = vsub.f32 0.0, %v4278_v44  ;;  %v802_v21 = vmul.f32 1.442695, %v698_v22  ;;  %v4975_v22 = vld [vmem:[#allocation23_spill] sm:$0xff] }
 0x181   :  { %v2547_v48 = vpop.eup %2546  ;;  %1077 = vst.msk [vmem:[%s4899_s7 + $0x110] sm:$0xff] %vm1042_vm2, %v1012_v30  ;;  %v886_v46 = vadd.f32 1.0, %v2545_v5  ;;  %2566 = vpow2.f32 %v4218_v43  ;;  %v1585_v35 = vsub.f32 0.0, %v4285_v26  ;;  %v1686_v19 = vmul.f32 1.442695, %v1582_v56  ;;  %v4976_v5 = vld [vmem:[#allocation24_spill] sm:$0xff] }
 0x182   :  { %v2549_v47 = vpop.eup %2548  ;;  %2568 = vrcp.f32 %v1772_v0  ;;  %v1770_v54 = vadd.f32 1.0, %v2547_v48  ;;  %v808_v53 = vmul.f32 1.442695, %v701_v14  ;;  %v699_v63 = vsub.f32 0.0, %v4289_v57 }
 0x183   :  { %v2551_v39 = vpop.eup %2550  ;;  %2570 = vrcp.f32 %v886_v46  ;;  %v889_v58 = vadd.f32 1.0, %v2549_v47  ;;  %v1448_v38 = vmul.f32 %v3718_v60, %v4974_v16  ;;  %v1692_v43 = vmul.f32 1.442695, %v1585_v35 }
 0x184   :  { %v2553_v40 = vpop.eup %2552  ;;  %v1896_v10 = vmul.f32 %v2551_v39, %v4030_v7  ;;  %2572 = vrcp.f32 %v1770_v54  ;;  %v569_v18 = vmul.f32 %v3734_v29, %v4975_v22  ;;  %v1453_v0 = vmul.f32 %v3718_v60, %v4976_v5  ;;  %v4979_v22 = vld [vmem:[#allocation27_spill] sm:$0xff] }
 0x185   :  { %v2555_v12 = vpop.eup %2554  ;;  %v1010_v30 = vmul.f32 %v2553_v40, %v4038_v9  ;;  %2574 = vrcp.f32 %v889_v58  ;;  %v4305_v56 = vadd.f32 %v3743_v11, %v1448_v38  ;;  %v4977_v9 = vld [vmem:[#allocation25_spill] sm:$0xff]  ;;  %v804_v39 = vmul.f32 1.442695, %v699_v63  ;;  %v4361_v63 = vld [vmem:[%s4896_s5] ss:$0 sm:$0xff] }
 0x186   :  { %v2557_v14 = vpop.eup %2556  ;;  %1960 = vst.msk [vmem:[%s4900_s8 + $0x110] sm:$0xff] %vm1042_vm2, %v1896_v10  ;;  %v1894_v7 = vmul.f32 %v2555_v12, %v4087_v52  ;;  %2576 = vpow2.f32 %v4258_v1  ;;  %v4316_v48 = vadd.f32 %v3726_v28, %v569_v18  ;;  %v567_v46 = vmul.f32 %v3734_v29, %v4977_v9 }
 0x187   :  { %v2559_v35 = vpop.eup %2558  ;;  %1075 = vst.msk [vmem:[%s4899_s7 + $0x100] sm:$0xff] %vm1042_vm2, %v1010_v30  ;;  %v1013_v60 = vmul.f32 %v2557_v14, %v4096_v51  ;;  %2578 = vpow2.f32 %v4261_v36  ;;  %v1583_v52 = vsub.f32 0.0, %v4305_v56  ;;  %v4328_v1 = vadd.f32 %v3743_v11, %v1453_v0  ;;  %v4980_v0 = vld [vmem:[#allocation28_spill] sm:$0xff] }
 0x188   :  { %v2561_v47 = vpop.eup %2560  ;;  %1958 = vst.msk [vmem:[%s4900_s8 + $0x100] sm:$0xff] %vm1042_vm2, %v1894_v7  ;;  %v1897_v29 = vmul.f32 %v2559_v35, %v4102_v50  ;;  %2580 = vpow2.f32 %v4263_v61  ;;  %v704_v54 = vsub.f32 0.0, %v4316_v48  ;;  %v4338_v51 = vadd.f32 %v3726_v28, %v567_v46  ;;  %v4981_v46 = vld [vmem:[#allocation6_spill] sm:$0xff] }
 0x189   :  { %v2563_v36 = vpop.eup %2562  ;;  %1078 = vst.msk [vmem:[%s4899_s7 + $0x118] sm:$0xff] %vm1042_vm2, %v1013_v60  ;;  %v1011_v11 = vmul.f32 %v2561_v47, %v4106_v25  ;;  %2582 = vpow2.f32 %v4268_v15  ;;  %v1588_v50 = vsub.f32 0.0, %v4328_v1  ;;  %v1688_v61 = vmul.f32 1.442695, %v1583_v52 }
 0x18a   :  { %v2565_v58 = vpop.eup %2564  ;;  %1961 = vst.msk [vmem:[%s4900_s8 + $0x118] sm:$0xff] %vm1042_vm2, %v1897_v29  ;;  %v1895_v28 = vmul.f32 %v2563_v36, %v4122_v8  ;;  %2584 = vpow2.f32 %v802_v21  ;;  %v814_v16 = vmul.f32 1.442695, %v704_v54  ;;  %v702_v15 = vsub.f32 0.0, %v4338_v51  ;;  %v4978_v8 = vld [vmem:[#allocation26_spill] sm:$0xff] }
 0x18b   :  { %v2567_v38 = vpop.eup %2566  ;;  %1076 = vst.msk [vmem:[%s4899_s7 + $0x108] sm:$0xff] %vm1042_vm2, %v1011_v11  ;;  %v1016_v25 = vmul.f32 %v2565_v58, %v4127_v3  ;;  %2586 = vpow2.f32 %v1686_v19  ;;  %v1451_v21 = vmul.f32 %v4361_v63, %v4978_v8  ;;  %v1698_v3 = vmul.f32 1.442695, %v1588_v50  ;;  %v4372_v19 = vld [vmem:[%s4895_s3] ss:$0 sm:$0xff] }
 0x18c   :  { %v2569_v40 = vpop.eup %2568  ;;  %1959 = vst.msk [vmem:[%s4900_s8 + $0x108] sm:$0xff] %vm1042_vm2, %v1895_v28  ;;  %v1773_v10 = vadd.f32 1.0, %v2567_v38  ;;  %2588 = vpow2.f32 %v808_v53  ;;  %v570_v18 = vmul.f32 %v4372_v19, %v4979_v22  ;;  %v4384_v53 = vld [vmem:[%s4898_s6] ss:$0 sm:$0xff]  ;;  %v1454_v14 = vmul.f32 %v4361_v63, %v4980_v0 }
 0x18d   :  { %v2571_v12 = vpop.eup %2570  ;;  %1081 = vst.msk [vmem:[%s4899_s7 + $0x130] sm:$0xff] %vm1042_vm2, %v1016_v25  ;;  %v1900_v30 = vmul.f32 %v2569_v40, %v4138_v20  ;;  %2590 = vpow2.f32 %v1692_v43  ;;  %v4387_v5 = vadd.f32 %v4384_v53, %v1451_v21  ;;  %v4395_v20 = vld [vmem:[%s4897_s4] ss:$0 sm:$0xff]  ;;  %v568_v35 = vmul.f32 %v4372_v19, %v4981_v46 }
 0x18e   :  { %v2573_v7 = vpop.eup %2572  ;;  %v1014_v9 = vmul.f32 %v2571_v12, %v4142_v41  ;;  %2592 = vrcp.f32 %v1773_v10  ;;  %v4398_v43 = vadd.f32 %v4395_v20, %v570_v18  ;;  %v4409_v47 = vadd.f32 %v4384_v53, %v1454_v14  ;;  %v4983_v18 = vld [vmem:[#allocation3_spill] sm:$0xff]  ;;  %v4984_v14 = vld [vmem:[#allocation4_spill] sm:$0xff] }
 0x18f   :  { %v2575_v60 = vpop.eup %2574  ;;  %1964 = vst.msk [vmem:[%s4900_s8 + $0x130] sm:$0xff] %vm1042_vm2, %v1900_v30  ;;  %v1898_v41 = vmul.f32 %v2573_v7, %v4164_v27  ;;  %2594 = vpow2.f32 %v804_v39  ;;  %v1586_v52 = vsub.f32 0.0, %v4387_v5  ;;  %v4418_v11 = vadd.f32 %v4395_v20, %v568_v35 }
 0x190   :  { %v2577_v29 = vpop.eup %2576  ;;  %1079 = vst.msk [vmem:[%s4899_s7 + $0x120] sm:$0xff] %vm1042_vm2, %v1014_v9  ;;  %v1017_v54 = vmul.f32 %v2575_v60, %v4175_v37  ;;  %2596 = vpow2.f32 %v1688_v61  ;;  %v705_v36 = vsub.f32 0.0, %v4398_v43  ;;  %v810_v50 = vmul.f32 1.442695, %v702_v15  ;;  %v4982_v15 = vld [vmem:[#allocation2_spill] sm:$0xff]  ;;  %v4985_v60 = vld [vmem:[#allocation7_spill] sm:$0xff] }
 0x191   :  { %v2579_v27 = vpop.eup %2578  ;;  %1962 = vst.msk [vmem:[%s4900_s8 + $0x120] sm:$0xff] %vm1042_vm2, %v1898_v41  ;;  %v887_v39 = vadd.f32 1.0, %v2577_v29  ;;  %2598 = vpow2.f32 %v814_v16  ;;  %v1589_v58 = vsub.f32 0.0, %v4409_v47  ;;  %v4429_v61 = vmul.f32 1.442695, %v1586_v52 }
 0x192   :  { %v2581_v28 = vpop.eup %2580  ;;  %1082 = vst.msk [vmem:[%s4899_s7 + $0x138] sm:$0xff] %vm1042_vm2, %v1017_v54  ;;  %v1771_v37 = vadd.f32 1.0, %v2579_v27  ;;  %2600 = vpow2.f32 %v1698_v3  ;;  %v4431_v38 = vmul.f32 1.442695, %v705_v36  ;;  %v703_v16 = vsub.f32 0.0, %v4418_v11 }
 0x193   :  { %v2583_v25 = vpop.eup %2582  ;;  %2602 = vrcp.f32 %v887_v39  ;;  %v892_v8 = vadd.f32 1.0, %v2581_v28  ;;  %v1452_v21 = vmul.f32 %v4361_v63, %v4982_v15  ;;  %v4436_v22 = vmul.f32 1.442695, %v1589_v58 }
 0x194   :  { %v2585_v40 = vpop.eup %2584  ;;  %2604 = vrcp.f32 %v1771_v37  ;;  %v1776_v10 = vadd.f32 1.0, %v2583_v25  ;;  %v573_v3 = vmul.f32 %v4372_v19, %v4983_v18  ;;  %v1457_v7 = vmul.f32 %v4361_v63, %v4984_v14 }
 0x195   :  { %v2587_v12 = vpop.eup %2586  ;;  %2606 = vrcp.f32 %v892_v8  ;;  %v890_v30 = vadd.f32 1.0, %v2585_v40  ;;  %v4441_v0 = vadd.f32 %v4384_v53, %v1452_v21  ;;  %v571_v41 = vmul.f32 %v4372_v19, %v4985_v60 }
 0x196   :  { %v2589_v9 = vpop.eup %2588  ;;  %2608 = vrcp.f32 %v1776_v10  ;;  %v1774_v46 = vadd.f32 1.0, %v2587_v12  ;;  %v4446_v35 = vadd.f32 %v4395_v20, %v573_v3  ;;  %v4452_v36 = vadd.f32 %v4384_v53, %v1457_v7 }
 0x197   :  { %v2591_v52 = vpop.eup %2590  ;;  %2610 = vrcp.f32 %v890_v30  ;;  %v893_v29 = vadd.f32 1.0, %v2589_v9  ;;  %v1587_v54 = vsub.f32 0.0, %v4441_v0  ;;  %v4456_v28 = vadd.f32 %v4395_v20, %v571_v41 }
 0x198   :  { %v2593_v27 = vpop.eup %2592  ;;  %2612 = vrcp.f32 %v1774_v46  ;;  %v1777_v39 = vadd.f32 1.0, %v2591_v52  ;;  %v708_v58 = vsub.f32 0.0, %v4446_v35  ;;  %v812_v8 = vmul.f32 1.442695, %v703_v16  ;;  %v4987_v46 = vld [vmem:[#allocation5_spill] sm:$0xff] }
 0x199   :  { %v2595_v37 = vpop.eup %2594  ;;  %v1901_v25 = vmul.f32 %v2593_v27, %v4187_v62  ;;  %2614 = vrcp.f32 %v893_v29  ;;  %v1592_v15 = vsub.f32 0.0, %v4452_v36  ;;  %v1696_v10 = vmul.f32 1.442695, %v1587_v54  ;;  %v4986_v62 = vld [vmem:[#allocation29_spill] sm:$0xff]  ;;  %v4988_v54 = vld [vmem:[#allocation30_spill] sm:$0xff] }
 0x19a   :  { %v2597_v21 = vpop.eup %2596  ;;  %2616 = vrcp.f32 %v1777_v39  ;;  %v891_v40 = vadd.f32 1.0, %v2595_v37  ;;  %v822_v18 = vmul.f32 1.442695, %v708_v58  ;;  %v706_v30 = vsub.f32 0.0, %v4456_v28  ;;  %v4989_v37 = vld [vmem:[#allocation8_spill] sm:$0xff] }
 0x19b   :  { %v2599_v3 = vpop.eup %2598  ;;  %1965 = vst.msk [vmem:[%s4900_s8 + $0x138] sm:$0xff] %vm1042_vm2, %v1901_v25  ;;  %v1775_v12 = vadd.f32 1.0, %v2597_v21  ;;  %2618 = vpow2.f32 %v810_v50  ;;  %v1455_v16 = vmul.f32 %v4361_v63, %v4986_v62  ;;  %v1706_v9 = vmul.f32 1.442695, %v1592_v15 }
 0x19c   :  { %v2601_v14 = vpop.eup %2600  ;;  %2620 = vrcp.f32 %v891_v40  ;;  %v896_v7 = vadd.f32 1.0, %v2599_v3  ;;  %v574_v60 = vmul.f32 %v4372_v19, %v4987_v46  ;;  %v1458_v50 = vmul.f32 %v4361_v63, %v4988_v54 }
 0x19d   :  { %v2603_v41 = vpop.eup %2602  ;;  %2622 = vrcp.f32 %v1775_v12  ;;  %v1780_v52 = vadd.f32 1.0, %v2601_v14  ;;  %v4470_v29 = vadd.f32 %v4384_v53, %v1455_v16  ;;  %v572_v25 = vmul.f32 %v4372_v19, %v4989_v37 }
 0x19e   :  { %v2605_v27 = vpop.eup %2604  ;;  %v1015_v39 = vmul.f32 %v2603_v41, %v4197_v33  ;;  %2624 = vrcp.f32 %v896_v7  ;;  %v4476_v58 = vadd.f32 %v4395_v20, %v574_v60  ;;  %v4483_v3 = vadd.f32 %v4384_v53, %v1458_v50 }
 0x19f   :  { %v2607_v15 = vpop.eup %2606  ;;  %v1899_v21 = vmul.f32 %v2605_v27, %v4228_v55  ;;  %2626 = vrcp.f32 %v1780_v52  ;;  %v1590_v40 = vsub.f32 0.0, %v4470_v29  ;;  %v4493_v55 = vadd.f32 %v4395_v20, %v572_v25  ;;  %v4991_v27 = vld [vmem:[#allocation9_spill] sm:$0xff]  ;;  %v4992_v25 = vld [vmem:[#allocation32_spill] sm:$0xff] }
 0x1a0   :  { %v2609_v12 = vpop.eup %2608  ;;  %1080 = vst.msk [vmem:[%s4899_s7 + $0x128] sm:$0xff] %vm1042_vm2, %v1015_v39  ;;  %v1020_v33 = vmul.f32 %v2607_v15, %v4238_v13  ;;  %2628 = vpow2.f32 %v4429_v61  ;;  %v709_v62 = vsub.f32 0.0, %v4476_v58  ;;  %v818_v7 = vmul.f32 1.442695, %v706_v30  ;;  %v4990_v30 = vld [vmem:[#allocation31_spill] sm:$0xff] }
 0x1a1   :  { %v2611_v16 = vpop.eup %2610  ;;  %1963 = vst.msk [vmem:[%s4900_s8 + $0x128] sm:$0xff] %vm1042_vm2, %v1899_v21  ;;  %v1904_v14 = vmul.f32 %v2609_v12, %v4248_v34  ;;  %2630 = vpow2.f32 %v4431_v38  ;;  %v1593_v13 = vsub.f32 0.0, %v4483_v3  ;;  %v1702_v60 = vmul.f32 1.442695, %v1590_v40  ;;  %v4993_v40 = vld [vmem:[#allocation33_spill] sm:$0xff] }
 0x1a2   :  { %v2613_v46 = vpop.eup %2612  ;;  %1085 = vst.msk [vmem:[%s4899_s7 + $0x150] sm:$0xff] %vm1042_vm2, %v1020_v33  ;;  %v1018_v61 = vmul.f32 %v2611_v16, %v4256_v24  ;;  %2632 = vpow2.f32 %v4436_v22  ;;  %v824_v41 = vmul.f32 1.442695, %v709_v62  ;;  %v707_v38 = vsub.f32 0.0, %v4493_v55 }
 0x1a3   :  { %v2615_v52 = vpop.eup %2614  ;;  %1968 = vst.msk [vmem:[%s4900_s8 + $0x150] sm:$0xff] %vm1042_vm2, %v1904_v14  ;;  %v1902_v34 = vmul.f32 %v2613_v46, %v4273_v4  ;;  %2634 = vpow2.f32 %v812_v8  ;;  %v1456_v54 = vmul.f32 %v4361_v63, %v4990_v30  ;;  %v1708_v22 = vmul.f32 1.442695, %v1593_v13 }
 0x1a4   :  { %v2617_v50 = vpop.eup %2616  ;;  %1083 = vst.msk [vmem:[%s4899_s7 + $0x140] sm:$0xff] %vm1042_vm2, %v1018_v61  ;;  %v1021_v24 = vmul.f32 %v2615_v52, %v4278_v44  ;;  %2636 = vpow2.f32 %v1696_v10  ;;  %v577_v39 = vmul.f32 %v4372_v19, %v4991_v27  ;;  %v1461_v44 = vmul.f32 %v4361_v63, %v4992_v25 }
 0x1a5   :  { %v2619_v4 = vpop.eup %2618  ;;  %1966 = vst.msk [vmem:[%s4900_s8 + $0x140] sm:$0xff] %vm1042_vm2, %v1902_v34  ;;  %v1905_v8 = vmul.f32 %v2617_v50, %v4285_v26  ;;  %2638 = vpow2.f32 %v822_v18  ;;  %v4529_v37 = vadd.f32 %v4384_v53, %v1456_v54  ;;  %v575_v26 = vmul.f32 %v4372_v19, %v4993_v40  ;;  %v4995_v50 = vld [vmem:[#allocation10_spill] sm:$0xff] }
 0x1a6   :  { %v2621_v10 = vpop.eup %2620  ;;  %1086 = vst.msk [vmem:[%s4899_s7 + $0x158] sm:$0xff] %vm1042_vm2, %v1021_v24  ;;  %v894_v15 = vadd.f32 1.0, %v2619_v4  ;;  %2640 = vpow2.f32 %v1706_v9  ;;  %v4538_v21 = vadd.f32 %v4395_v20, %v577_v39  ;;  %v4549_v62 = vadd.f32 %v4384_v53, %v1461_v44  ;;  %v4996_v4 = vld [vmem:[#allocation35_spill] sm:$0xff] }
 0x1a7   :  { %v2623_v18 = vpop.eup %2622  ;;  %1969 = vst.msk [vmem:[%s4900_s8 + $0x158] sm:$0xff] %vm1042_vm2, %v1905_v8  ;;  %v1019_v12 = vmul.f32 %v2621_v10, %v4289_v57  ;;  %2642 = vpow2.f32 %v818_v7  ;;  %v1591_v33 = vsub.f32 0.0, %v4529_v37  ;;  %v820_v14 = vmul.f32 1.442695, %v707_v38  ;;  %v4994_v38 = vld [vmem:[#allocation34_spill] sm:$0xff] }
 0x1a8   :  { %v2625_v9 = vpop.eup %2624  ;;  %v1903_v16 = vmul.f32 %v2623_v18, %v4305_v56  ;;  %2644 = vrcp.f32 %v894_v15  ;;  %v4553_v13 = vadd.f32 %v4395_v20, %v575_v26  ;;  %v712_v52 = vsub.f32 0.0, %v4538_v21  ;;  %v4997_v15 = vld [vmem:[#allocation11_spill] sm:$0xff] }
 0x1a9   :  { %v2627_v46 = vpop.eup %2626  ;;  %1084 = vst.msk [vmem:[%s4899_s7 + $0x148] sm:$0xff] %vm1042_vm2, %v1019_v12  ;;  %v1024_v57 = vmul.f32 %v2625_v9, %v4316_v48  ;;  %2646 = vpow2.f32 %v1702_v60  ;;  %v1704_v61 = vmul.f32 1.442695, %v1591_v33  ;;  %v1596_v60 = vsub.f32 0.0, %v4549_v62 }
 0x1aa   :  { %v2629_v7 = vpop.eup %2628  ;;  %1967 = vst.msk [vmem:[%s4900_s8 + $0x148] sm:$0xff] %vm1042_vm2, %v1903_v16  ;;  %v1908_v56 = vmul.f32 %v2627_v46, %v4328_v1  ;;  %2648 = vpow2.f32 %v824_v41  ;;  %v1459_v30 = vmul.f32 %v4361_v63, %v4994_v38  ;;  %v710_v41 = vsub.f32 0.0, %v4553_v13 }
 0x1ab   :  { %v2631_v34 = vpop.eup %2630  ;;  %1089 = vst.msk [vmem:[%s4899_s7 + $0x170] sm:$0xff] %vm1042_vm2, %v1024_v57  ;;  %v1778_v48 = vadd.f32 1.0, %v2629_v7  ;;  %2650 = vpow2.f32 %v1708_v22  ;;  %v578_v24 = vmul.f32 %v4372_v19, %v4995_v50  ;;  %v1462_v8 = vmul.f32 %v4361_v63, %v4996_v4 }
 0x1ac   :  { %v2633_v54 = vpop.eup %2632  ;;  %1972 = vst.msk [vmem:[%s4900_s8 + $0x170] sm:$0xff] %vm1042_vm2, %v1908_v56  ;;  %v897_v1 = vadd.f32 1.0, %v2631_v34  ;;  %2652 = vpow2.f32 %v820_v14  ;;  %v4581_v39 = vadd.f32 %v4384_v53, %v1459_v30  ;;  %v576_v40 = vmul.f32 %v4372_v19, %v4997_v15 }
 0x1ad   :  { %v2635_v27 = vpop.eup %2634  ;;  %2654 = vrcp.f32 %v1778_v48  ;;  %v1781_v22 = vadd.f32 1.0, %v2633_v54  ;;  %v4586_v10 = vadd.f32 %v4395_v20, %v578_v24  ;;  %v4592_v33 = vadd.f32 %v4384_v53, %v1462_v8  ;;  %v4998_v24 = vld [vmem:[#allocation36_spill] sm:$0xff] }
 0x1ae   :  { %v2637_v25 = vpop.eup %2636  ;;  %2656 = vrcp.f32 %v897_v1  ;;  %v895_v44 = vadd.f32 1.0, %v2635_v27  ;;  %v1594_v12 = vsub.f32 0.0, %v4581_v39  ;;  %v830_v14 = vmul.f32 1.442695, %v712_v52 }
 0x1af   :  { %v2639_v26 = vpop.eup %2638  ;;  %2658 = vrcp.f32 %v1781_v22  ;;  %v1779_v18 = vadd.f32 1.0, %v2637_v25  ;;  %v4595_v46 = vadd.f32 %v4395_v20, %v576_v40  ;;  %v1714_v56 = vmul.f32 1.442695, %v1596_v60 }
 0x1b0   :  { %v2641_v9 = vpop.eup %2640  ;;  %2660 = vrcp.f32 %v895_v44  ;;  %v900_v16 = vadd.f32 1.0, %v2639_v26  ;;  %v826_v34 = vmul.f32 1.442695, %v710_v41  ;;  %v1710_v30 = vmul.f32 1.442695, %v1594_v12 }
 0x1b1   :  { %v2643_v57 = vpop.eup %2642  ;;  %2662 = vrcp.f32 %v1779_v18  ;;  %v1784_v7 = vadd.f32 1.0, %v2641_v9  ;;  %v713_v54 = vsub.f32 0.0, %v4586_v10  ;;  %v1597_v52 = vsub.f32 0.0, %v4592_v33 }
 0x1b2   :  { %v2645_v48 = vpop.eup %2644  ;;  %2664 = vrcp.f32 %v900_v16  ;;  %v898_v38 = vadd.f32 1.0, %v2643_v57  ;;  %v1460_v27 = vmul.f32 %v4361_v63, %v4998_v24  ;;  %v711_v60 = vsub.f32 0.0, %v4595_v46 }
 0x1b3   :  { %v2647_v1 = vpop.eup %2646  ;;  %v1022_v50 = vmul.f32 %v2645_v48, %v4338_v51  ;;  %2666 = vrcp.f32 %v1784_v7  ;;  %v581_v41 = vmul.f32 %v4372_v19, %v3961_v31  ;;  %v1465_v44 = vmul.f32 %v4361_v63, %v3963_v32 }
 0x1b4   :  { %v2649_v22 = vpop.eup %2648  ;;  %2668 = vrcp.f32 %v898_v38  ;;  %v1782_v4 = vadd.f32 1.0, %v2647_v1  ;;  %v4610_v25 = vadd.f32 %v4384_v53, %v1460_v27  ;;  %v579_v31 = vmul.f32 %v4372_v19, %v3971_v17 }
 0x1b5   :  { %v2651_v8 = vpop.eup %2650  ;;  %1087 = vst.msk [vmem:[%s4899_s7 + $0x160] sm:$0xff] %vm1042_vm2, %v1022_v50  ;;  %v901_v51 = vadd.f32 1.0, %v2649_v22  ;;  %2670 = vpow2.f32 %v1704_v61  ;;  %v4615_v26 = vadd.f32 %v4395_v20, %v581_v41  ;;  %v4621_v9 = vadd.f32 %v4384_v53, %v1465_v44 }
 0x1b6   :  { %v2653_v15 = vpop.eup %2652  ;;  %2672 = vrcp.f32 %v1782_v4  ;;  %v1785_v40 = vadd.f32 1.0, %v2651_v8  ;;  %v1595_v61 = vsub.f32 0.0, %v4610_v25  ;;  %v832_v57 = vmul.f32 1.442695, %v713_v54 }
 0x1b7   :  { %v2655_v18 = vpop.eup %2654  ;;  %2674 = vrcp.f32 %v901_v51  ;;  %v899_v12 = vadd.f32 1.0, %v2653_v15  ;;  %v4625_v7 = vadd.f32 %v4395_v20, %v579_v31  ;;  %v1716_v17 = vmul.f32 1.442695, %v1597_v52 }
 0x1b8   :  { %v2657_v16 = vpop.eup %2656  ;;  %v1906_v32 = vmul.f32 %v2655_v18, %v4387_v5  ;;  %2676 = vrcp.f32 %v1785_v40  ;;  %v828_v1 = vmul.f32 1.442695, %v711_v60  ;;  %v1712_v5 = vmul.f32 1.442695, %v1595_v61 }
 0x1b9   :  { %v2659_v48 = vpop.eup %2658  ;;  %v1025_v38 = vmul.f32 %v2657_v16, %v4398_v43  ;;  %2678 = vrcp.f32 %v899_v12  ;;  %v716_v54 = vsub.f32 0.0, %v4615_v26  ;;  %v1600_v52 = vsub.f32 0.0, %v4621_v9 }
 0x1ba   :  { %v2661_v50 = vpop.eup %2660  ;;  %1970 = vst.msk [vmem:[%s4900_s8 + $0x160] sm:$0xff] %vm1042_vm2, %v1906_v32  ;;  %v1909_v24 = vmul.f32 %v2659_v48, %v4409_v47  ;;  %2680 = vpow2.f32 %v830_v14  ;;  %v1463_v22 = vmul.f32 %v4361_v63, %v3973_v49  ;;  %v714_v14 = vsub.f32 0.0, %v4625_v7 }
 0x1bb   :  { %v2663_v27 = vpop.eup %2662  ;;  %1090 = vst.msk [vmem:[%s4899_s7 + $0x178] sm:$0xff] %vm1042_vm2, %v1025_v38  ;;  %v1023_v43 = vmul.f32 %v2661_v50, %v4418_v11  ;;  %2682 = vpow2.f32 %v1714_v56  ;;  %v582_v11 = vmul.f32 %v4372_v19, %v3984_v42  ;;  %v580_v41 = vmul.f32 %v4372_v19, %v3996_v2 }
 0x1bc   :  { %v2665_v4 = vpop.eup %2664  ;;  %1973 = vst.msk [vmem:[%s4900_s8 + $0x178] sm:$0xff] %vm1042_vm2, %v1909_v24  ;;  %v1907_v47 = vmul.f32 %v2663_v27, %v4441_v0  ;;  %2684 = vpow2.f32 %v826_v34  ;;  %v4656_v60 = vadd.f32 %v4384_v53, %v1463_v22  ;;  %v1466_v0 = vmul.f32 %v4361_v63, %v3986_v23 }
 0x1bd   :  { %v2667_v56 = vpop.eup %2666  ;;  %1088 = vst.msk [vmem:[%s4899_s7 + $0x168] sm:$0xff] %vm1042_vm2, %v1023_v43  ;;  %v1028_v49 = vmul.f32 %v2665_v4, %v4446_v35  ;;  %2686 = vpow2.f32 %v1710_v30  ;;  %v838_v30 = vmul.f32 1.442695, %v716_v54  ;;  %v1722_v2 = vmul.f32 1.442695, %v1600_v52  ;;  %v4999_v4 = vld [vmem:[#allocation37_spill] sm:$0xff] }
 0x1be   :  { %v2669_v34 = vpop.eup %2668  ;;  %1971 = vst.msk [vmem:[%s4900_s8 + $0x168] sm:$0xff] %vm1042_vm2, %v1907_v47  ;;  %v1912_v42 = vmul.f32 %v2667_v56, %v4452_v36  ;;  %2688 = vpow2.f32 %v832_v57  ;;  %v1598_v8 = vsub.f32 0.0, %v4656_v60  ;;  %v4678_v44 = vadd.f32 %v4395_v20, %v582_v11 }
 0x1bf   :  { %v2671_v35 = vpop.eup %2670  ;;  %1093 = vst.msk [vmem:[%s4899_s7 + $0x190] sm:$0xff] %vm1042_vm2, %v1028_v49  ;;  %v1026_v23 = vmul.f32 %v2669_v34, %v4456_v28  ;;  %2690 = vpow2.f32 %v1716_v17  ;;  %v834_v40 = vmul.f32 1.442695, %v714_v14  ;;  %v4686_v31 = vadd.f32 %v4384_v53, %v1466_v0 }
 0x1c0   :  { %v2673_v51 = vpop.eup %2672  ;;  %1976 = vst.msk [vmem:[%s4900_s8 + $0x190] sm:$0xff] %vm1042_vm2, %v1912_v42  ;;  %v1783_v36 = vadd.f32 1.0, %v2671_v35  ;;  %2692 = vpow2.f32 %v828_v1  ;;  %v1718_v61 = vmul.f32 1.442695, %v1598_v8  ;;  %v4690_v16 = vadd.f32 %v4395_v20, %v580_v41 }
 0x1c1   :  { %v2675_v15 = vpop.eup %2674  ;;  %1091 = vst.msk [vmem:[%s4899_s7 + $0x180] sm:$0xff] %vm1042_vm2, %v1026_v23  ;;  %v1910_v28 = vmul.f32 %v2673_v51, %v4470_v29  ;;  %2694 = vpow2.f32 %v1712_v5  ;;  %v1464_v57 = vmul.f32 %v4361_v63, %v3998_v59  ;;  %v717_v38 = vsub.f32 0.0, %v4678_v44 }
 0x1c2   :  { %v2677_v18 = vpop.eup %2676  ;;  %v1029_v12 = vmul.f32 %v2675_v15, %v4476_v58  ;;  %2696 = vrcp.f32 %v1783_v36  ;;  %v1601_v59 = vsub.f32 0.0, %v4686_v31  ;;  %v585_v1 = vmul.f32 %v4372_v19, %v4046_v6  ;;  %v5001_v15 = vld [vmem:[#allocation39_spill] sm:$0xff] }
 0x1c3   :  { %v2679_v32 = vpop.eup %2678  ;;  %1974 = vst.msk [vmem:[%s4900_s8 + $0x180] sm:$0xff] %vm1042_vm2, %v1910_v28  ;;  %v1913_v29 = vmul.f32 %v2677_v18, %v4483_v3  ;;  %2698 = vpow2.f32 %v838_v30  ;;  %v715_v24 = vsub.f32 0.0, %v4690_v16  ;;  %v4718_v5 = vadd.f32 %v4384_v53, %v1464_v57  ;;  %v5000_v30 = vld [vmem:[#allocation38_spill] sm:$0xff] }
 0x1c4   :  { %v2681_v48 = vpop.eup %2680  ;;  %1094 = vst.msk [vmem:[%s4899_s7 + $0x198] sm:$0xff] %vm1042_vm2, %v1029_v12  ;;  %v1027_v58 = vmul.f32 %v2679_v32, %v4493_v55  ;;  %2700 = vpow2.f32 %v1722_v2  ;;  %v1469_v43 = vmul.f32 %v4361_v63, %v4048_v45  ;;  %v840_v22 = vmul.f32 1.442695, %v717_v38 }
 0x1c5   :  { %v2683_v17 = vpop.eup %2682  ;;  %1977 = vst.msk [vmem:[%s4900_s8 + $0x198] sm:$0xff] %vm1042_vm2, %v1913_v29  ;;  %v904_v3 = vadd.f32 1.0, %v2681_v48  ;;  %2702 = vpow2.f32 %v834_v40  ;;  %v583_v47 = vmul.f32 %v4372_v19, %v4999_v4  ;;  %v1724_v56 = vmul.f32 1.442695, %v1601_v59 }
 0x1c6   :  { %v2685_v50 = vpop.eup %2684  ;;  %1092 = vst.msk [vmem:[%s4899_s7 + $0x188] sm:$0xff] %vm1042_vm2, %v1027_v58  ;;  %v1788_v55 = vadd.f32 1.0, %v2683_v17  ;;  %2704 = vpow2.f32 %v1718_v61  ;;  %v4725_v49 = vadd.f32 %v4395_v20, %v585_v1  ;;  %v836_v42 = vmul.f32 1.442695, %v715_v24  ;;  %v5002_v61 = vld [vmem:[#allocation40_spill] sm:$0xff]  ;;  %v5003_v58 = vld [vmem:[#allocation41_spill] sm:$0xff] }
 0x1c7   :  { %v2687_v54 = vpop.eup %2686  ;;  %2706 = vrcp.f32 %v904_v3  ;;  %v902_v27 = vadd.f32 1.0, %v2685_v50  ;;  %v1599_v45 = vsub.f32 0.0, %v4718_v5  ;;  %v4729_v23 = vadd.f32 %v4384_v53, %v1469_v43 }
 0x1c8   :  { %v2689_v6 = vpop.eup %2688  ;;  %2708 = vrcp.f32 %v1788_v55  ;;  %v1786_v52 = vadd.f32 1.0, %v2687_v54  ;;  %v1467_v8 = vmul.f32 %v4361_v63, %v5000_v30  ;;  %v4734_v2 = vadd.f32 %v4395_v20, %v583_v47 }
 0x1c9   :  { %v2691_v14 = vpop.eup %2690  ;;  %2710 = vrcp.f32 %v902_v27  ;;  %v905_v11 = vadd.f32 1.0, %v2689_v6  ;;  %v586_v28 = vmul.f32 %v4372_v19, %v5001_v15  ;;  %v720_v12 = vsub.f32 0.0, %v4725_v49 }
 0x1ca   :  { %v2693_v0 = vpop.eup %2692  ;;  %2712 = vrcp.f32 %v1786_v52  ;;  %v1789_v34 = vadd.f32 1.0, %v2691_v14  ;;  %v1470_v32 = vmul.f32 %v4361_v63, %v5002_v61  ;;  %v4743_v48 = vadd.f32 %v4384_v53, %v1467_v8 }
 0x1cb   :  { %v2695_v41 = vpop.eup %2694  ;;  %2714 = vrcp.f32 %v905_v11  ;;  %v903_v35 = vadd.f32 1.0, %v2693_v0  ;;  %v584_v38 = vmul.f32 %v4372_v19, %v5003_v58  ;;  %v1720_v3 = vmul.f32 1.442695, %v1599_v45  ;;  %v5004_v0 = vld [vmem:[#allocation42_spill] sm:$0xff] }
 0x1cc   :  { %v2697_v51 = vpop.eup %2696  ;;  %2716 = vrcp.f32 %v1789_v34  ;;  %v1787_v36 = vadd.f32 1.0, %v2695_v41  ;;  %v4752_v59 = vadd.f32 %v4395_v20, %v586_v28  ;;  %v1604_v55 = vsub.f32 0.0, %v4729_v23 }
 0x1cd   :  { %v2699_v40 = vpop.eup %2698  ;;  %v1911_v18 = vmul.f32 %v2697_v51, %v4529_v37  ;;  %2718 = vrcp.f32 %v903_v35  ;;  %v718_v24 = vsub.f32 0.0, %v4734_v2  ;;  %v846_v27 = vmul.f32 1.442695, %v720_v12 }
 0x1ce   :  { %v2701_v29 = vpop.eup %2700  ;;  %2720 = vrcp.f32 %v1787_v36  ;;  %v908_v57 = vadd.f32 1.0, %v2699_v40  ;;  %v4757_v43 = vadd.f32 %v4384_v53, %v1470_v32  ;;  %v4762_v4 = vadd.f32 %v4395_v20, %v584_v38 }
 0x1cf   :  { %v2703_v17 = vpop.eup %2702  ;;  %1975 = vst.msk [vmem:[%s4900_s8 + $0x188] sm:$0xff] %vm1042_vm2, %v1911_v18  ;;  %v1792_v37 = vadd.f32 1.0, %v2701_v29  ;;  %2722 = vpow2.f32 %v840_v22  ;;  %v1602_v22 = vsub.f32 0.0, %v4743_v48  ;;  %v721_v11 = vsub.f32 0.0, %v4752_v59 }
 0x1d0   :  { %v2705_v1 = vpop.eup %2704  ;;  %2724 = vrcp.f32 %v908_v57  ;;  %v906_v50 = vadd.f32 1.0, %v2703_v17  ;;  %v1468_v34 = vmul.f32 %v4361_v63, %v5004_v0  ;;  %v1730_v20 = vmul.f32 1.442695, %v1604_v55 }
 0x1d1   :  { %v2707_v19 = vpop.eup %2706  ;;  %2726 = vrcp.f32 %v1792_v37  ;;  %v1790_v54 = vadd.f32 1.0, %v2705_v1  ;;  %v842_v41 = vmul.f32 1.442695, %v718_v24  ;;  %v1605_v63 = vsub.f32 0.0, %v4757_v43 }
 0x1d2   :  { %v2709_v6 = vpop.eup %2708  ;;  %v1032_v52 = vmul.f32 %v2707_v19, %v4538_v21  ;;  %2728 = vrcp.f32 %v906_v50  ;;  %v4780_v30 = vadd.f32 %v4384_v53, %v1468_v34  ;;  %v719_v51 = vsub.f32 0.0, %v4762_v4 }
 0x1d3   :  { %v2711_v47 = vpop.eup %2710  ;;  %v1916_v14 = vmul.f32 %v2709_v6, %v4549_v62  ;;  %2730 = vrcp.f32 %v1790_v54  ;;  %v1732_v40 = vmul.f32 1.442695, %v1605_v63 }
 0x1d4   :  { %v2713_v45 = vpop.eup %2712  ;;  %1097 = vst.msk [vmem:[%s4899_s7 + $0x1b0] sm:$0xff] %vm1042_vm2, %v1032_v52  ;;  %v1030_v21 = vmul.f32 %v2711_v47, %v4553_v13  ;;  %2732 = vpow2.f32 %v1724_v56  ;;  %v1726_v56 = vmul.f32 1.442695, %v1602_v22 }
 0x1d5   :  { %v2715_v35 = vpop.eup %2714  ;;  %1980 = vst.msk [vmem:[%s4900_s8 + $0x1b0] sm:$0xff] %vm1042_vm2, %v1916_v14  ;;  %v1914_v62 = vmul.f32 %v2713_v45, %v4581_v39  ;;  %2734 = vpow2.f32 %v836_v42  ;;  %v848_v39 = vmul.f32 1.442695, %v721_v11  ;;  %v1603_v42 = vsub.f32 0.0, %v4780_v30 }
 0x1d6   :  { %v2717_v8 = vpop.eup %2716  ;;  %1095 = vst.msk [vmem:[%s4899_s7 + $0x1a0] sm:$0xff] %vm1042_vm2, %v1030_v21  ;;  %v1033_v13 = vmul.f32 %v2715_v35, %v4586_v10  ;;  %2736 = vpow2.f32 %v1720_v3 }
 0x1d7   :  { %v2719_v36 = vpop.eup %2718  ;;  %1978 = vst.msk [vmem:[%s4900_s8 + $0x1a0] sm:$0xff] %vm1042_vm2, %v1914_v62  ;;  %v1917_v53 = vmul.f32 %v2717_v8, %v4592_v33  ;;  %2738 = vpow2.f32 %v846_v27 }
 0x1d8   :  { %v2721_v15 = vpop.eup %2720  ;;  %1098 = vst.msk [vmem:[%s4899_s7 + $0x1b8] sm:$0xff] %vm1042_vm2, %v1033_v13  ;;  %v1031_v10 = vmul.f32 %v2719_v36, %v4595_v46  ;;  %2740 = vpow2.f32 %v1730_v20  ;;  %v844_v46 = vmul.f32 1.442695, %v719_v51 }
 0x1d9   :  { %v2723_v28 = vpop.eup %2722  ;;  %1981 = vst.msk [vmem:[%s4900_s8 + $0x1b8] sm:$0xff] %vm1042_vm2, %v1917_v53  ;;  %v1915_v33 = vmul.f32 %v2721_v15, %v4610_v25  ;;  %2742 = vpow2.f32 %v842_v41  ;;  %v1728_v25 = vmul.f32 1.442695, %v1603_v42 }
 0x1da   :  { %v2725_v18 = vpop.eup %2724  ;;  %1096 = vst.msk [vmem:[%s4899_s7 + $0x1a8] sm:$0xff] %vm1042_vm2, %v1031_v10  ;;  %v909_v12 = vadd.f32 1.0, %v2723_v28  ;;  %2744 = vpow2.f32 %v1726_v56 }
 0x1db   :  { %v2727_v61 = vpop.eup %2726  ;;  %1979 = vst.msk [vmem:[%s4900_s8 + $0x1a8] sm:$0xff] %vm1042_vm2, %v1915_v33  ;;  %v1036_v32 = vmul.f32 %v2725_v18, %v4615_v26  ;;  %2746 = vpow2.f32 %v848_v39 }
 0x1dc   :  { %v2729_v29 = vpop.eup %2728  ;;  %v1920_v57 = vmul.f32 %v2727_v61, %v4621_v9  ;;  %2748 = vrcp.f32 %v909_v12 }
 0x1dd   :  { %v2731_v58 = vpop.eup %2730  ;;  %1101 = vst.msk [vmem:[%s4899_s7 + $0x1d0] sm:$0xff] %vm1042_vm2, %v1036_v32  ;;  %v1034_v38 = vmul.f32 %v2729_v29, %v4625_v7  ;;  %2750 = vpow2.f32 %v1732_v40 }
 0x1de   :  { %v2733_v17 = vpop.eup %2732  ;;  %1984 = vst.msk [vmem:[%s4900_s8 + $0x1d0] sm:$0xff] %vm1042_vm2, %v1920_v57  ;;  %v1918_v26 = vmul.f32 %v2731_v58, %v4656_v60  ;;  %2752 = vpow2.f32 %v844_v46 }
 0x1df   :  { %v2735_v9 = vpop.eup %2734  ;;  %1099 = vst.msk [vmem:[%s4899_s7 + $0x1c0] sm:$0xff] %vm1042_vm2, %v1034_v38  ;;  %v1793_v37 = vadd.f32 1.0, %v2733_v17  ;;  %2754 = vpow2.f32 %v1728_v25 }
 0x1e0   :  { %v2737_v3 = vpop.eup %2736  ;;  %1982 = vst.msk [vmem:[%s4900_s8 + $0x1c0] sm:$0xff] %vm1042_vm2, %v1918_v26  ;;  %v907_v7 = vadd.f32 1.0, %v2735_v9 }
 0x1e1   :  { %v2739_v1 = vpop.eup %2738  ;;  %2756 = vrcp.f32 %v1793_v37  ;;  %v1791_v50 = vadd.f32 1.0, %v2737_v3 }
 0x1e2   :  { %v2741_v60 = vpop.eup %2740  ;;  %2758 = vrcp.f32 %v907_v7  ;;  %v912_v55 = vadd.f32 1.0, %v2739_v1 }
 0x1e3   :  { %v2743_v24 = vpop.eup %2742  ;;  %2760 = vrcp.f32 %v1791_v50  ;;  %v1796_v19 = vadd.f32 1.0, %v2741_v60 }
 0x1e4   :  { %v2745_v54 = vpop.eup %2744  ;;  %2762 = vrcp.f32 %v912_v55  ;;  %v910_v27 = vadd.f32 1.0, %v2743_v24 }
 0x1e5   :  { %v2747_v6 = vpop.eup %2746  ;;  %2764 = vrcp.f32 %v1796_v19  ;;  %v1794_v52 = vadd.f32 1.0, %v2745_v54 }
 0x1e6   :  { %v2749_v22 = vpop.eup %2748  ;;  %2766 = vrcp.f32 %v910_v27  ;;  %v913_v47 = vadd.f32 1.0, %v2747_v6 }
 0x1e7   :  { %v2751_v14 = vpop.eup %2750  ;;  %v1037_v11 = vmul.f32 %v2749_v22, %v4678_v44  ;;  %2768 = vrcp.f32 %v1794_v52 }
 0x1e8   :  { %v2753_v0 = vpop.eup %2752  ;;  %2770 = vrcp.f32 %v913_v47  ;;  %v1797_v34 = vadd.f32 1.0, %v2751_v14 }
 0x1e9   :  { %v2755_v45 = vpop.eup %2754  ;;  %1102 = vst.msk [vmem:[%s4899_s7 + $0x1d8] sm:$0xff] %vm1042_vm2, %v1037_v11  ;;  %v911_v21 = vadd.f32 1.0, %v2753_v0 }
 0x1ea   :  { %2772 = vrcp.f32 %v1797_v34  ;;  %v1795_v20 = vadd.f32 1.0, %v2755_v45 }
 0x1eb   :  { %v2757_v41 = vpop.eup %2756  ;;  %2774 = vrcp.f32 %v911_v21 }
 0x1ec   :  { %v2759_v35 = vpop.eup %2758  ;;  %v1921_v62 = vmul.f32 %v2757_v41, %v4686_v31  ;;  %2776 = vrcp.f32 %v1795_v20 }
 0x1ed   :  { %v2761_v44 = vpop.eup %2760  ;;  %v1035_v63 = vmul.f32 %v2759_v35, %v4690_v16 }
 0x1ee   :  { %v2763_v8 = vpop.eup %2762  ;;  %1985 = vst.msk [vmem:[%s4900_s8 + $0x1d8] sm:$0xff] %vm1042_vm2, %v1921_v62  ;;  %v1919_v13 = vmul.f32 %v2761_v44, %v4718_v5 }
 0x1ef   :  { %v2765_v56 = vpop.eup %2764  ;;  %1100 = vst.msk [vmem:[%s4899_s7 + $0x1c8] sm:$0xff] %vm1042_vm2, %v1035_v63  ;;  %v1040_v31 = vmul.f32 %v2763_v8, %v4725_v49 }
 0x1f0   :  { %v2767_v51 = vpop.eup %2766  ;;  %1983 = vst.msk [vmem:[%s4900_s8 + $0x1c8] sm:$0xff] %vm1042_vm2, %v1919_v13  ;;  %v1924_v16 = vmul.f32 %v2765_v56, %v4729_v23 }
 0x1f1   :  { %v2769_v36 = vpop.eup %2768  ;;  %1105 = vst.msk [vmem:[%s4899_s7 + $0x1f0] sm:$0xff] %vm1042_vm2, %v1040_v31  ;;  %v1038_v5 = vmul.f32 %v2767_v51, %v4734_v2 }
 0x1f2   :  { %v2771_v53 = vpop.eup %2770  ;;  %1988 = vst.msk [vmem:[%s4900_s8 + $0x1f0] sm:$0xff] %vm1042_vm2, %v1924_v16  ;;  %v1922_v49 = vmul.f32 %v2769_v36, %v4743_v48 }
 0x1f3   :  { %1103 = vst.msk [vmem:[%s4899_s7 + $0x1e0] sm:$0xff] %vm1042_vm2, %v1038_v5  ;;  %v1041_v23 = vmul.f32 %v2771_v53, %v4752_v59 }
 0x1f4   :  { %v2773_v39 = vpop.eup %2772  ;;  %1986 = vst.msk [vmem:[%s4900_s8 + $0x1e0] sm:$0xff] %vm1042_vm2, %v1922_v49 }
 0x1f5   :  { %v2775_v2 = vpop.eup %2774  ;;  %1106 = vst.msk [vmem:[%s4899_s7 + $0x1f8] sm:$0xff] %vm1042_vm2, %v1041_v23  ;;  %v1925_v48 = vmul.f32 %v2773_v39, %v4757_v43 }
 0x1f6   :  { %v2777_v42 = vpop.eup %2776  ;;  %v1039_v15 = vmul.f32 %v2775_v2, %v4762_v4 }
 0x1f7   :  { %1989 = vst.msk [vmem:[%s4900_s8 + $0x1f8] sm:$0xff] %vm1042_vm2, %v1925_v48  ;;  %v1923_v59 = vmul.f32 %v2777_v42, %v4780_v30 }
 0x1f8   :  { %1104 = vst.msk [vmem:[%s4899_s7 + $0x1e8] sm:$0xff] %vm1042_vm2, %v1039_v15 }
 0x1f9   :  { %1987 = vst.msk [vmem:[%s4900_s8 + $0x1e8] sm:$0xff] %vm1042_vm2, %v1923_v59 }

// kernel: _lambda_.5
= control target key start
LH: loop header
LB: loop body
LE: loop exit
PB: predicated region body
PF: predicated region fallthrough
CT: control target
= control target key end

     0   :  { %vm321_vm0 = vcmask 1041408   ;;  %vm224_vm1 = vcmask 31744   ;;  %vm2077_vm2 = vcmask 64512   ;;  %s4524_s4 = inlined_call_operand.vmem [shape: bf16[4,8], index: 4, kind: input, shape index: {}]   ;;  %s4525_s3 = inlined_call_operand.vmem [shape: bf16[4,8], index: 3, kind: input, shape index: {}]   ;;  %s4526_s1 = inlined_call_operand.vmem [shape: f32[512,4], index: 1, kind: input, shape index: {}]   ;;  %s4527_s0 = inlined_call_operand.vmem [shape: f32[512,4], index: 0, kind: input, shape index: {}]   ;;  %s4528_s5 = inlined_call_operand.vmem [shape: bf16[4,8], index: 5, kind: input, shape index: {}]   ;;  %s4529_s2 = inlined_call_operand.vmem [shape: f32[512,4], index: 2, kind: input, shape index: {}]   ;;  %s4530_s6 = inlined_call_operand.vmem [shape: f32[1,8], index: 6, kind: input, shape index: {}]   ;;  %s4531_s7 = inlined_call_operand.vmem [shape: f32[1,8], index: 7, kind: input, shape index: {}]   ;;  %s4532_s8 = inlined_call_operand.vmem [shape: f32[512,8], index: 8, kind: output, shape index: {}]  }
   0x1   :  { %v223_v0 = vld [vmem:[%s4524_s4] sm:$0x3]  ;;  %v128_v5 = vld [vmem:[%s4526_s1 + $0x8] sm:$0xff]  ;;  %v129_v10 = vld [vmem:[%s4526_s1 + $0x10] sm:$0xff] }
   0x2   :  { %v126_v1 = vld [vmem:[%s4525_s3] sm:$0x3]  ;;  %2671 = vmatprep.subr.msk.bf16.mxu1 %vm321_vm0, %v223_v0  ;;  %v323_v3 = vsel %vm321_vm0, %v223_v0, 0  ;;  %v31_v7 = vld [vmem:[%s4527_s0 + $0x8] sm:$0xff]  ;;  %v130_v11 = vld [vmem:[%s4526_s1 + $0x18] sm:$0xff] }
   0x3   :  { %v127_v2 = vld [vmem:[%s4526_s1] sm:$0xff]  ;;  %2672 = vmatprep.subr.msk.bf16.mxu0 %vm321_vm0, %v126_v1  ;;  %v711_v4 = vsel %vm321_vm0, %v126_v1, 0  ;;  %2344 = vmatpush3.bf16.msra.mxu1 %v323_v3  ;;  %v32_v12 = vld [vmem:[%s4527_s0 + $0x10] sm:$0xff]  ;;  %v192_v13 = vpack.c.bf16 %v130_v11, %v129_v10  ;;  %v33_v14 = vld [vmem:[%s4527_s0 + $0x18] sm:$0xff] }
   0x4   :  { %v30_v6 = vld [vmem:[%s4527_s0] sm:$0xff]  ;;  %2410 = vmatpush3.bf16.msra.mxu0 %v711_v4  ;;  %v191_v8 = vpack.c.bf16 %v128_v5, %v127_v2  ;;  %2673 = vmatprep.subr.msk.bf16.mxu1 %vm321_vm0, %v126_v1  ;;  %v95_v17 = vpack.c.bf16 %v33_v14, %v32_v12  ;;  %v132_v19 = vld [vmem:[%s4526_s1 + $0x28] sm:$0xff]  ;;  %v133_v24 = vld [vmem:[%s4526_s1 + $0x30] sm:$0xff] }
   0x5   :  { %v94_v9 = vpack.c.bf16 %v31_v7, %v30_v6  ;;  %v1098_v15 = vld [vmem:[%s4528_s5] sm:$0x3]  ;;  %v35_v21 = vld [vmem:[%s4527_s0 + $0x28] sm:$0xff]  ;;  %v134_v25 = vld [vmem:[%s4526_s1 + $0x38] sm:$0xff] }
   0x6   :  { %v131_v16 = vld [vmem:[%s4526_s1 + $0x20] sm:$0xff]  ;;  %2345 = vmatprep.mubr.msk.bf16.mxu1 %vm224_vm1, %v191_v8  ;;  %v1196_v18 = vsel %vm321_vm0, %v1098_v15, 0  ;;  %2674 = vmatprep.subr.msk.bf16.mxu0 %vm321_vm0, %v1098_v15  ;;  %v36_v26 = vld [vmem:[%s4527_s0 + $0x30] sm:$0xff]  ;;  %v37_v27 = vld [vmem:[%s4527_s0 + $0x38] sm:$0xff]  ;;  %v194_v32 = vpack.c.bf16 %v134_v25, %v133_v24 }
   0x7   :  { %2411 = vmatprep.mubr.msk.bf16.mxu0 %vm224_vm1, %v94_v9  ;;  %v34_v20 = vld [vmem:[%s4527_s0 + $0x20] sm:$0xff]  ;;  %2346 = vmatmul.mubr.msk.bf16.vlgmr.msra.gmra.mrb[0].mxu1 %vm224_vm1, %v192_v13  ;;  %v193_v22 = vpack.c.bf16 %v132_v19, %v131_v16  ;;  %v136_v29 = vld [vmem:[%s4526_s1 + $0x48] sm:$0xff]  ;;  %v97_v33 = vpack.c.bf16 %v37_v27, %v36_v26  ;;  %v137_v36 = vld [vmem:[%s4526_s1 + $0x50] sm:$0xff] }
   0x8   :  { %v96_v23 = vpack.c.bf16 %v35_v21, %v34_v20  ;;  %2412 = vmatmul.mubr.msk.bf16.vlgmr.msra.gmra.mrb[0].mxu0 %vm224_vm1, %v95_v17  ;;  %2542 = vmatpush3.bf16.msra.mxu1 %v711_v4  ;;  %v135_v28 = vld [vmem:[%s4526_s1 + $0x40] sm:$0xff]  ;;  %v39_v31 = vld [vmem:[%s4527_s0 + $0x48] sm:$0xff]  ;;  %v138_v37 = vld [vmem:[%s4526_s1 + $0x58] sm:$0xff] }
   0x9   :  { %2476 = vmatpush3.bf16.msra.mxu0 %v1196_v18  ;;  %2349 = vmatprep.mubr.msk.bf16.mxu1 %vm224_vm1, %v193_v22  ;;  %v38_v30 = vld [vmem:[%s4527_s0 + $0x40] sm:$0xff]  ;;  %v195_v34 = vpack.c.bf16 %v136_v29, %v135_v28  ;;  %v40_v38 = vld [vmem:[%s4527_s0 + $0x50] sm:$0xff]  ;;  %v41_v39 = vld [vmem:[%s4527_s0 + $0x58] sm:$0xff]  ;;  %v196_v44 = vpack.c.bf16 %v138_v37, %v137_v36 }
   0xa   :  { %2415 = vmatprep.mubr.msk.bf16.mxu0 %vm224_vm1, %v96_v23  ;;  %v98_v35 = vpack.c.bf16 %v39_v31, %v38_v30  ;;  %v139_v40 = vld [vmem:[%s4526_s1 + $0x60] sm:$0xff]  ;;  %v140_v41 = vld [vmem:[%s4526_s1 + $0x68] sm:$0xff]  ;;  %v99_v45 = vpack.c.bf16 %v41_v39, %v40_v38  ;;  %v141_v48 = vld [vmem:[%s4526_s1 + $0x70] sm:$0xff] }
   0xb   :  { %v42_v42 = vld [vmem:[%s4527_s0 + $0x60] sm:$0xff]  ;;  %v43_v43 = vld [vmem:[%s4527_s0 + $0x68] sm:$0xff]  ;;  %v197_v46 = vpack.c.bf16 %v140_v41, %v139_v40  ;;  %v142_v49 = vld [vmem:[%s4526_s1 + $0x78] sm:$0xff] }
   0xc   :  { %v100_v47 = vpack.c.bf16 %v43_v43, %v42_v42  ;;  %v44_v50 = vld [vmem:[%s4527_s0 + $0x70] sm:$0xff]  ;;  %v45_v51 = vld [vmem:[%s4527_s0 + $0x78] sm:$0xff]  ;;  %v143_v52 = vld [vmem:[%s4526_s1 + $0x80] sm:$0xff]  ;;  %v198_v56 = vpack.c.bf16 %v142_v49, %v141_v48 }
   0xd   :  { %v144_v53 = vld [vmem:[%s4526_s1 + $0x88] sm:$0xff]  ;;  %v46_v54 = vld [vmem:[%s4527_s0 + $0x80] sm:$0xff]  ;;  %v101_v57 = vpack.c.bf16 %v45_v51, %v44_v50  ;;  %v145_v60 = vld [vmem:[%s4526_s1 + $0x90] sm:$0xff] }
   0xe   :  { %v47_v55 = vld [vmem:[%s4527_s0 + $0x88] sm:$0xff]  ;;  %v199_v58 = vpack.c.bf16 %v144_v53, %v143_v52  ;;  %v146_v61 = vld [vmem:[%s4526_s1 + $0x98] sm:$0xff]  ;;  %v48_v62 = vld [vmem:[%s4527_s0 + $0x90] sm:$0xff] }
   0xf   :  { %2350 = vmatmul.mubr.msk.bf16.gmra.mrb[4].mxu1 %vm224_vm1, %v194_v32  ;;  %v102_v59 = vpack.c.bf16 %v47_v55, %v46_v54  ;;  %v49_v63 = vld [vmem:[%s4527_s0 + $0x98] sm:$0xff]  ;;  %v147_v0 = vld [vmem:[%s4526_s1 + $0xa0] sm:$0xff]  ;;  %v148_v1 = vld [vmem:[%s4526_s1 + $0xa8] sm:$0xff]  ;;  %v200_v4 = vpack.c.bf16 %v146_v61, %v145_v60 }
  0x10   :  { %2416 = vmatmul.mubr.msk.bf16.gmra.mrb[4].mxu0 %vm224_vm1, %v97_v33  ;;  %2353 = vmatprep.mubr.msk.bf16.mxu1 %vm224_vm1, %v195_v34  ;;  %v50_v2 = vld [vmem:[%s4527_s0 + $0xa0] sm:$0xff]  ;;  %v51_v3 = vld [vmem:[%s4527_s0 + $0xa8] sm:$0xff]  ;;  %v103_v5 = vpack.c.bf16 %v49_v63, %v48_v62  ;;  %v201_v6 = vpack.c.bf16 %v148_v1, %v147_v0  ;;  %v149_v8 = vld [vmem:[%s4526_s1 + $0xb0] sm:$0xff] }
  0x11   :  { %2419 = vmatprep.mubr.msk.bf16.mxu0 %vm224_vm1, %v98_v35  ;;  %v104_v7 = vpack.c.bf16 %v51_v3, %v50_v2  ;;  %v150_v9 = vld [vmem:[%s4526_s1 + $0xb8] sm:$0xff]  ;;  %v52_v10 = vld [vmem:[%s4527_s0 + $0xb0] sm:$0xff]  ;;  %v151_v12 = vld [vmem:[%s4526_s1 + $0xc0] sm:$0xff] }
  0x12   :  { %v53_v11 = vld [vmem:[%s4527_s0 + $0xb8] sm:$0xff]  ;;  %v152_v13 = vld [vmem:[%s4526_s1 + $0xc8] sm:$0xff]  ;;  %v54_v14 = vld [vmem:[%s4527_s0 + $0xc0] sm:$0xff]  ;;  %v202_v16 = vpack.c.bf16 %v150_v9, %v149_v8 }
  0x13   :  { %v55_v15 = vld [vmem:[%s4527_s0 + $0xc8] sm:$0xff]  ;;  %v105_v17 = vpack.c.bf16 %v53_v11, %v52_v10  ;;  %v203_v18 = vpack.c.bf16 %v152_v13, %v151_v12  ;;  %v153_v20 = vld [vmem:[%s4526_s1 + $0xd0] sm:$0xff]  ;;  %v154_v21 = vld [vmem:[%s4526_s1 + $0xd8] sm:$0xff] }
  0x14   :  { %v106_v19 = vpack.c.bf16 %v55_v15, %v54_v14  ;;  %v56_v22 = vld [vmem:[%s4527_s0 + $0xd0] sm:$0xff]  ;;  %v57_v23 = vld [vmem:[%s4527_s0 + $0xd8] sm:$0xff]  ;;  %v155_v24 = vld [vmem:[%s4526_s1 + $0xe0] sm:$0xff]  ;;  %v204_v28 = vpack.c.bf16 %v154_v21, %v153_v20 }
  0x15   :  { %v156_v25 = vld [vmem:[%s4526_s1 + $0xe8] sm:$0xff]  ;;  %v58_v26 = vld [vmem:[%s4527_s0 + $0xe0] sm:$0xff]  ;;  %v107_v29 = vpack.c.bf16 %v57_v23, %v56_v22  ;;  %v157_v32 = vld [vmem:[%s4526_s1 + $0xf0] sm:$0xff] }
  0x16   :  { %v59_v27 = vld [vmem:[%s4527_s0 + $0xe8] sm:$0xff]  ;;  %v205_v30 = vpack.c.bf16 %v156_v25, %v155_v24  ;;  %v158_v33 = vld [vmem:[%s4526_s1 + $0xf8] sm:$0xff]  ;;  %v60_v34 = vld [vmem:[%s4527_s0 + $0xf0] sm:$0xff] }
  0x17   :  { %2354 = vmatmul.mubr.msk.bf16.gmra.mrb[8].mxu1 %vm224_vm1, %v196_v44  ;;  %v108_v31 = vpack.c.bf16 %v59_v27, %v58_v26  ;;  %v61_v35 = vld [vmem:[%s4527_s0 + $0xf8] sm:$0xff]  ;;  %v159_v36 = vld [vmem:[%s4526_s1 + $0x100] sm:$0xff]  ;;  %v160_v37 = vld [vmem:[%s4526_s1 + $0x108] sm:$0xff]  ;;  %v206_v40 = vpack.c.bf16 %v158_v33, %v157_v32 }
  0x18   :  { %2420 = vmatmul.mubr.msk.bf16.gmra.mrb[8].mxu0 %vm224_vm1, %v99_v45  ;;  %2357 = vmatprep.mubr.msk.bf16.mxu1 %vm224_vm1, %v197_v46  ;;  %v1002_v38 = vld [vmem:[%s4529_s2] sm:$0xff]  ;;  %v1003_v39 = vld [vmem:[%s4529_s2 + $0x8] sm:$0xff]  ;;  %v109_v41 = vpack.c.bf16 %v61_v35, %v60_v34  ;;  %v207_v42 = vpack.c.bf16 %v160_v37, %v159_v36  ;;  %v161_v44 = vld [vmem:[%s4526_s1 + $0x110] sm:$0xff] }
  0x19   :  { %2423 = vmatprep.mubr.msk.bf16.mxu0 %vm224_vm1, %v100_v47  ;;  %v1066_v43 = vpack.c.bf16 %v1003_v39, %v1002_v38  ;;  %v162_v45 = vld [vmem:[%s4526_s1 + $0x118] sm:$0xff]  ;;  %v1004_v46 = vld [vmem:[%s4529_s2 + $0x10] sm:$0xff]  ;;  %v163_v48 = vld [vmem:[%s4526_s1 + $0x120] sm:$0xff] }
  0x1a   :  { %v1005_v47 = vld [vmem:[%s4529_s2 + $0x18] sm:$0xff]  ;;  %v164_v49 = vld [vmem:[%s4526_s1 + $0x128] sm:$0xff]  ;;  %v1006_v50 = vld [vmem:[%s4529_s2 + $0x20] sm:$0xff]  ;;  %v208_v52 = vpack.c.bf16 %v162_v45, %v161_v44 }
  0x1b   :  { %v1007_v51 = vld [vmem:[%s4529_s2 + $0x28] sm:$0xff]  ;;  %v1067_v53 = vpack.c.bf16 %v1005_v47, %v1004_v46  ;;  %v209_v54 = vpack.c.bf16 %v164_v49, %v163_v48  ;;  %v167_v60 = vld [vmem:[%s4526_s1 + $0x140] sm:$0xff] }
  0x1c   :  { %v1068_v55 = vpack.c.bf16 %v1007_v51, %v1006_v50  ;;  %v168_v61 = vld [vmem:[%s4526_s1 + $0x148] sm:$0xff]  ;;  %v1010_v62 = vld [vmem:[%s4529_s2 + $0x40] sm:$0xff] }
  0x1d   :  { %v1011_v63 = vld [vmem:[%s4529_s2 + $0x48] sm:$0xff]  ;;  %v211_v2 = vpack.c.bf16 %v168_v61, %v167_v60  ;;  %v171_v8 = vld [vmem:[%s4526_s1 + $0x160] sm:$0xff] }
  0x1e   :  { %v1070_v3 = vpack.c.bf16 %v1011_v63, %v1010_v62  ;;  %v172_v9 = vld [vmem:[%s4526_s1 + $0x168] sm:$0xff]  ;;  %v1014_v10 = vld [vmem:[%s4529_s2 + $0x60] sm:$0xff] }
  0x1f   :  { %2358 = vmatmul.mubr.msk.bf16.gmra.mrb[12].mxu1 %vm224_vm1, %v198_v56  ;;  %v165_v56 = vld [vmem:[%s4526_s1 + $0x130] sm:$0xff]  ;;  %v1015_v11 = vld [vmem:[%s4529_s2 + $0x68] sm:$0xff]  ;;  %v213_v14 = vpack.c.bf16 %v172_v9, %v171_v8  ;;  %v175_v20 = vld [vmem:[%s4526_s1 + $0x180] sm:$0xff] }
  0x20   :  { %2424 = vmatmul.mubr.msk.bf16.gmra.mrb[12].mxu0 %vm224_vm1, %v101_v57  ;;  %2361 = vmatprep.mubr.msk.bf16.mxu1 %vm224_vm1, %v199_v58  ;;  %v166_v57 = vld [vmem:[%s4526_s1 + $0x138] sm:$0xff]  ;;  %v1008_v58 = vld [vmem:[%s4529_s2 + $0x30] sm:$0xff]  ;;  %v1072_v15 = vpack.c.bf16 %v1015_v11, %v1014_v10  ;;  %v176_v21 = vld [vmem:[%s4526_s1 + $0x188] sm:$0xff] }
  0x21   :  { %2427 = vmatprep.mubr.msk.bf16.mxu0 %vm224_vm1, %v102_v59  ;;  %v1009_v59 = vld [vmem:[%s4529_s2 + $0x38] sm:$0xff]  ;;  %v210_v0 = vpack.c.bf16 %v166_v57, %v165_v56  ;;  %v1018_v22 = vld [vmem:[%s4529_s2 + $0x80] sm:$0xff]  ;;  %v1019_v23 = vld [vmem:[%s4529_s2 + $0x88] sm:$0xff]  ;;  %v215_v26 = vpack.c.bf16 %v176_v21, %v175_v20 }
  0x22   :  { %v1069_v1 = vpack.c.bf16 %v1009_v59, %v1008_v58  ;;  %v1074_v27 = vpack.c.bf16 %v1019_v23, %v1018_v22  ;;  %v179_v32 = vld [vmem:[%s4526_s1 + $0x1a0] sm:$0xff]  ;;  %v180_v33 = vld [vmem:[%s4526_s1 + $0x1a8] sm:$0xff] }
  0x23   :  { %v1022_v34 = vld [vmem:[%s4529_s2 + $0xa0] sm:$0xff]  ;;  %v1023_v35 = vld [vmem:[%s4529_s2 + $0xa8] sm:$0xff]  ;;  %v217_v38 = vpack.c.bf16 %v180_v33, %v179_v32 }
  0x24   :  { %v1076_v39 = vpack.c.bf16 %v1023_v35, %v1022_v34  ;;  %v183_v44 = vld [vmem:[%s4526_s1 + $0x1c0] sm:$0xff]  ;;  %v184_v45 = vld [vmem:[%s4526_s1 + $0x1c8] sm:$0xff] }
  0x25   :  { %v1026_v46 = vld [vmem:[%s4529_s2 + $0xc0] sm:$0xff]  ;;  %v1027_v47 = vld [vmem:[%s4529_s2 + $0xc8] sm:$0xff]  ;;  %v219_v50 = vpack.c.bf16 %v184_v45, %v183_v44 }
  0x26   :  { %v1078_v51 = vpack.c.bf16 %v1027_v47, %v1026_v46  ;;  %v187_v56 = vld [vmem:[%s4526_s1 + $0x1e0] sm:$0xff]  ;;  %v188_v57 = vld [vmem:[%s4526_s1 + $0x1e8] sm:$0xff] }
  0x27   :  { %2362 = vmatmul.mubr.msk.bf16.gmra.mrb[16].mxu1 %vm224_vm1, %v200_v4  ;;  %v169_v4 = vld [vmem:[%s4526_s1 + $0x150] sm:$0xff]  ;;  %v1030_v58 = vld [vmem:[%s4529_s2 + $0xe0] sm:$0xff]  ;;  %v1031_v59 = vld [vmem:[%s4529_s2 + $0xe8] sm:$0xff]  ;;  %v221_v62 = vpack.c.bf16 %v188_v57, %v187_v56 }
  0x28   :  { %2428 = vmatmul.mubr.msk.bf16.gmra.mrb[16].mxu0 %vm224_vm1, %v103_v5  ;;  %2365 = vmatprep.mubr.msk.bf16.mxu1 %vm224_vm1, %v201_v6  ;;  %v170_v5 = vld [vmem:[%s4526_s1 + $0x158] sm:$0xff]  ;;  %v1012_v6 = vld [vmem:[%s4529_s2 + $0x50] sm:$0xff]  ;;  %v1080_v63 = vpack.c.bf16 %v1031_v59, %v1030_v58 }
  0x29   :  { %2431 = vmatprep.mubr.msk.bf16.mxu0 %vm224_vm1, %v104_v7  ;;  %v1013_v7 = vld [vmem:[%s4529_s2 + $0x58] sm:$0xff]  ;;  %v212_v12 = vpack.c.bf16 %v170_v5, %v169_v4  ;;  %v62_v4 = vld [vmem:[%s4527_s0 + $0x100] sm:$0xff]  ;;  %v63_v5 = vld [vmem:[%s4527_s0 + $0x108] sm:$0xff] }
  0x2a   :  { %v1071_v13 = vpack.c.bf16 %v1013_v7, %v1012_v6  ;;  %v1034_v6 = vld [vmem:[%s4529_s2 + $0x100] sm:$0xff]  ;;  %v1035_v7 = vld [vmem:[%s4529_s2 + $0x108] sm:$0xff]  ;;  %v110_v10 = vpack.c.bf16 %v63_v5, %v62_v4 }
  0x2b   :  { %v1082_v11 = vpack.c.bf16 %v1035_v7, %v1034_v6 }
  0x2f   :  { %2366 = vmatmul.mubr.msk.bf16.gmra.mrb[20].mxu1 %vm224_vm1, %v202_v16  ;;  %v173_v16 = vld [vmem:[%s4526_s1 + $0x170] sm:$0xff] }
  0x30   :  { %2432 = vmatmul.mubr.msk.bf16.gmra.mrb[20].mxu0 %vm224_vm1, %v105_v17  ;;  %2369 = vmatprep.mubr.msk.bf16.mxu1 %vm224_vm1, %v203_v18  ;;  %v174_v17 = vld [vmem:[%s4526_s1 + $0x178] sm:$0xff]  ;;  %v1016_v18 = vld [vmem:[%s4529_s2 + $0x70] sm:$0xff] }
  0x31   :  { %2435 = vmatprep.mubr.msk.bf16.mxu0 %vm224_vm1, %v106_v19  ;;  %v1017_v19 = vld [vmem:[%s4529_s2 + $0x78] sm:$0xff]  ;;  %v214_v24 = vpack.c.bf16 %v174_v17, %v173_v16  ;;  %v66_v16 = vld [vmem:[%s4527_s0 + $0x120] sm:$0xff]  ;;  %v67_v17 = vld [vmem:[%s4527_s0 + $0x128] sm:$0xff] }
  0x32   :  { %v1073_v25 = vpack.c.bf16 %v1017_v19, %v1016_v18  ;;  %v1038_v18 = vld [vmem:[%s4529_s2 + $0x120] sm:$0xff]  ;;  %v1039_v19 = vld [vmem:[%s4529_s2 + $0x128] sm:$0xff]  ;;  %v112_v22 = vpack.c.bf16 %v67_v17, %v66_v16 }
  0x33   :  { %v1084_v23 = vpack.c.bf16 %v1039_v19, %v1038_v18 }
  0x37   :  { %2370 = vmatmul.mubr.msk.bf16.gmra.mrb[24].mxu1 %vm224_vm1, %v204_v28  ;;  %v177_v28 = vld [vmem:[%s4526_s1 + $0x190] sm:$0xff] }
  0x38   :  { %2436 = vmatmul.mubr.msk.bf16.gmra.mrb[24].mxu0 %vm224_vm1, %v107_v29  ;;  %2373 = vmatprep.mubr.msk.bf16.mxu1 %vm224_vm1, %v205_v30  ;;  %v178_v29 = vld [vmem:[%s4526_s1 + $0x198] sm:$0xff]  ;;  %v1020_v30 = vld [vmem:[%s4529_s2 + $0x90] sm:$0xff] }
  0x39   :  { %2439 = vmatprep.mubr.msk.bf16.mxu0 %vm224_vm1, %v108_v31  ;;  %v1021_v31 = vld [vmem:[%s4529_s2 + $0x98] sm:$0xff]  ;;  %v216_v36 = vpack.c.bf16 %v178_v29, %v177_v28  ;;  %v70_v28 = vld [vmem:[%s4527_s0 + $0x140] sm:$0xff]  ;;  %v71_v29 = vld [vmem:[%s4527_s0 + $0x148] sm:$0xff] }
  0x3a   :  { %v1075_v37 = vpack.c.bf16 %v1021_v31, %v1020_v30  ;;  %v1042_v30 = vld [vmem:[%s4529_s2 + $0x140] sm:$0xff]  ;;  %v1043_v31 = vld [vmem:[%s4529_s2 + $0x148] sm:$0xff]  ;;  %v114_v34 = vpack.c.bf16 %v71_v29, %v70_v28 }
  0x3b   :  { %v1086_v35 = vpack.c.bf16 %v1043_v31, %v1042_v30 }
  0x3f   :  { %2374 = vmatmul.mubr.msk.bf16.gmra.mrb[28].mxu1 %vm224_vm1, %v206_v40  ;;  %v181_v40 = vld [vmem:[%s4526_s1 + $0x1b0] sm:$0xff] }
  0x40   :  { %2440 = vmatmul.mubr.msk.bf16.gmra.mrb[28].mxu0 %vm224_vm1, %v109_v41  ;;  %2377 = vmatprep.mubr.msk.bf16.mxu1 %vm224_vm1, %v207_v42  ;;  %v182_v41 = vld [vmem:[%s4526_s1 + $0x1b8] sm:$0xff]  ;;  %v1024_v42 = vld [vmem:[%s4529_s2 + $0xb0] sm:$0xff] }
  0x41   :  { %2477 = vmatprep.mubr.msk.bf16.mxu0 %vm224_vm1, %v1066_v43  ;;  %v1025_v43 = vld [vmem:[%s4529_s2 + $0xb8] sm:$0xff]  ;;  %v218_v48 = vpack.c.bf16 %v182_v41, %v181_v40  ;;  %v74_v40 = vld [vmem:[%s4527_s0 + $0x160] sm:$0xff]  ;;  %v75_v41 = vld [vmem:[%s4527_s0 + $0x168] sm:$0xff] }
  0x42   :  { %v1077_v49 = vpack.c.bf16 %v1025_v43, %v1024_v42  ;;  %v1046_v42 = vld [vmem:[%s4529_s2 + $0x160] sm:$0xff]  ;;  %v1047_v43 = vld [vmem:[%s4529_s2 + $0x168] sm:$0xff]  ;;  %v116_v46 = vpack.c.bf16 %v75_v41, %v74_v40 }
  0x43   :  { %v1088_v47 = vpack.c.bf16 %v1047_v43, %v1046_v42 }
  0x47   :  { %2378 = vmatmul.mubr.msk.bf16.gmra.mrb[32].mxu1 %vm224_vm1, %v208_v52  ;;  %v185_v52 = vld [vmem:[%s4526_s1 + $0x1d0] sm:$0xff] }
  0x48   :  { %2478 = vmatmul.mubr.msk.bf16.vlgmr.msra.gmra.mrb[0].mxu0 %vm224_vm1, %v1067_v53  ;;  %2381 = vmatprep.mubr.msk.bf16.mxu1 %vm224_vm1, %v209_v54  ;;  %v186_v53 = vld [vmem:[%s4526_s1 + $0x1d8] sm:$0xff]  ;;  %v1028_v54 = vld [vmem:[%s4529_s2 + $0xd0] sm:$0xff] }
  0x49   :  { %2481 = vmatprep.mubr.msk.bf16.mxu0 %vm224_vm1, %v1068_v55  ;;  %v1029_v55 = vld [vmem:[%s4529_s2 + $0xd8] sm:$0xff]  ;;  %v220_v60 = vpack.c.bf16 %v186_v53, %v185_v52  ;;  %v78_v52 = vld [vmem:[%s4527_s0 + $0x180] sm:$0xff]  ;;  %v79_v53 = vld [vmem:[%s4527_s0 + $0x188] sm:$0xff] }
  0x4a   :  { %v1079_v61 = vpack.c.bf16 %v1029_v55, %v1028_v54  ;;  %v1050_v54 = vld [vmem:[%s4529_s2 + $0x180] sm:$0xff]  ;;  %v1051_v55 = vld [vmem:[%s4529_s2 + $0x188] sm:$0xff]  ;;  %v118_v58 = vpack.c.bf16 %v79_v53, %v78_v52 }
  0x4b   :  { %v1090_v59 = vpack.c.bf16 %v1051_v55, %v1050_v54 }
  0x4f   :  { %2382 = vmatmul.mubr.msk.bf16.gmra.mrb[36].mxu1 %vm224_vm1, %v210_v0  ;;  %v189_v0 = vld [vmem:[%s4526_s1 + $0x1f0] sm:$0xff] }
  0x50   :  { %2482 = vmatmul.mubr.msk.bf16.gmra.mrb[4].mxu0 %vm224_vm1, %v1069_v1  ;;  %2385 = vmatprep.mubr.msk.bf16.mxu1 %vm224_vm1, %v211_v2  ;;  %v190_v1 = vld [vmem:[%s4526_s1 + $0x1f8] sm:$0xff]  ;;  %v1032_v2 = vld [vmem:[%s4529_s2 + $0xf0] sm:$0xff] }
  0x51   :  { %2485 = vmatprep.mubr.msk.bf16.mxu0 %vm224_vm1, %v1070_v3  ;;  %v1033_v3 = vld [vmem:[%s4529_s2 + $0xf8] sm:$0xff]  ;;  %v222_v8 = vpack.c.bf16 %v190_v1, %v189_v0  ;;  %v82_v0 = vld [vmem:[%s4527_s0 + $0x1a0] sm:$0xff]  ;;  %v83_v1 = vld [vmem:[%s4527_s0 + $0x1a8] sm:$0xff] }
  0x52   :  { %v1081_v9 = vpack.c.bf16 %v1033_v3, %v1032_v2  ;;  %v1054_v2 = vld [vmem:[%s4529_s2 + $0x1a0] sm:$0xff]  ;;  %v1055_v3 = vld [vmem:[%s4529_s2 + $0x1a8] sm:$0xff]  ;;  %v120_v6 = vpack.c.bf16 %v83_v1, %v82_v0 }
  0x53   :  { %v1092_v7 = vpack.c.bf16 %v1055_v3, %v1054_v2 }
  0x57   :  { %2386 = vmatmul.mubr.msk.bf16.gmra.mrb[40].mxu1 %vm224_vm1, %v212_v12  ;;  %v64_v12 = vld [vmem:[%s4527_s0 + $0x110] sm:$0xff] }
  0x58   :  { %2486 = vmatmul.mubr.msk.bf16.gmra.mrb[8].mxu0 %vm224_vm1, %v1071_v13  ;;  %2389 = vmatprep.mubr.msk.bf16.mxu1 %vm224_vm1, %v213_v14  ;;  %v65_v13 = vld [vmem:[%s4527_s0 + $0x118] sm:$0xff]  ;;  %v1036_v14 = vld [vmem:[%s4529_s2 + $0x110] sm:$0xff] }
  0x59   :  { %2489 = vmatprep.mubr.msk.bf16.mxu0 %vm224_vm1, %v1072_v15  ;;  %v1037_v15 = vld [vmem:[%s4529_s2 + $0x118] sm:$0xff]  ;;  %v111_v20 = vpack.c.bf16 %v65_v13, %v64_v12  ;;  %v86_v12 = vld [vmem:[%s4527_s0 + $0x1c0] sm:$0xff]  ;;  %v87_v13 = vld [vmem:[%s4527_s0 + $0x1c8] sm:$0xff] }
  0x5a   :  { %v1083_v21 = vpack.c.bf16 %v1037_v15, %v1036_v14  ;;  %v1058_v14 = vld [vmem:[%s4529_s2 + $0x1c0] sm:$0xff]  ;;  %v1059_v15 = vld [vmem:[%s4529_s2 + $0x1c8] sm:$0xff]  ;;  %v122_v18 = vpack.c.bf16 %v87_v13, %v86_v12 }
  0x5b   :  { %v1094_v19 = vpack.c.bf16 %v1059_v15, %v1058_v14 }
  0x5f   :  { %2390 = vmatmul.mubr.msk.bf16.gmra.mrb[44].mxu1 %vm224_vm1, %v214_v24  ;;  %v68_v24 = vld [vmem:[%s4527_s0 + $0x130] sm:$0xff] }
  0x60   :  { %2490 = vmatmul.mubr.msk.bf16.gmra.mrb[12].mxu0 %vm224_vm1, %v1073_v25  ;;  %2393 = vmatprep.mubr.msk.bf16.mxu1 %vm224_vm1, %v215_v26  ;;  %v69_v25 = vld [vmem:[%s4527_s0 + $0x138] sm:$0xff]  ;;  %v1040_v26 = vld [vmem:[%s4529_s2 + $0x130] sm:$0xff] }
  0x61   :  { %2493 = vmatprep.mubr.msk.bf16.mxu0 %vm224_vm1, %v1074_v27  ;;  %v1041_v27 = vld [vmem:[%s4529_s2 + $0x138] sm:$0xff]  ;;  %v113_v32 = vpack.c.bf16 %v69_v25, %v68_v24  ;;  %v90_v24 = vld [vmem:[%s4527_s0 + $0x1e0] sm:$0xff]  ;;  %v91_v25 = vld [vmem:[%s4527_s0 + $0x1e8] sm:$0xff] }
  0x62   :  { %v1085_v33 = vpack.c.bf16 %v1041_v27, %v1040_v26  ;;  %v1062_v26 = vld [vmem:[%s4529_s2 + $0x1e0] sm:$0xff]  ;;  %v1063_v27 = vld [vmem:[%s4529_s2 + $0x1e8] sm:$0xff]  ;;  %v124_v30 = vpack.c.bf16 %v91_v25, %v90_v24 }
  0x63   :  { %v1096_v31 = vpack.c.bf16 %v1063_v27, %v1062_v26 }
  0x67   :  { %2394 = vmatmul.mubr.msk.bf16.gmra.mrb[48].mxu1 %vm224_vm1, %v216_v36  ;;  %v72_v36 = vld [vmem:[%s4527_s0 + $0x150] sm:$0xff] }
  0x68   :  { %2494 = vmatmul.mubr.msk.bf16.gmra.mrb[16].mxu0 %vm224_vm1, %v1075_v37  ;;  %2397 = vmatprep.mubr.msk.bf16.mxu1 %vm224_vm1, %v217_v38  ;;  %v73_v37 = vld [vmem:[%s4527_s0 + $0x158] sm:$0xff]  ;;  %v1044_v38 = vld [vmem:[%s4529_s2 + $0x150] sm:$0xff] }
  0x69   :  { %2497 = vmatprep.mubr.msk.bf16.mxu0 %vm224_vm1, %v1076_v39  ;;  %v1045_v39 = vld [vmem:[%s4529_s2 + $0x158] sm:$0xff]  ;;  %v115_v44 = vpack.c.bf16 %v73_v37, %v72_v36 }
  0x6a   :  { %v1087_v45 = vpack.c.bf16 %v1045_v39, %v1044_v38 }
  0x6f   :  { %2398 = vmatmul.mubr.msk.bf16.gmra.mrb[52].mxu1 %vm224_vm1, %v218_v48  ;;  %v76_v48 = vld [vmem:[%s4527_s0 + $0x170] sm:$0xff] }
  0x70   :  { %2498 = vmatmul.mubr.msk.bf16.gmra.mrb[20].mxu0 %vm224_vm1, %v1077_v49  ;;  %2401 = vmatprep.mubr.msk.bf16.mxu1 %vm224_vm1, %v219_v50  ;;  %v77_v49 = vld [vmem:[%s4527_s0 + $0x178] sm:$0xff]  ;;  %v1048_v50 = vld [vmem:[%s4529_s2 + $0x170] sm:$0xff] }
  0x71   :  { %2501 = vmatprep.mubr.msk.bf16.mxu0 %vm224_vm1, %v1078_v51  ;;  %v1049_v51 = vld [vmem:[%s4529_s2 + $0x178] sm:$0xff]  ;;  %v117_v56 = vpack.c.bf16 %v77_v49, %v76_v48 }
  0x72   :  { %v1089_v57 = vpack.c.bf16 %v1049_v51, %v1048_v50 }
  0x77   :  { %2402 = vmatmul.mubr.msk.bf16.gmra.mrb[56].mxu1 %vm224_vm1, %v220_v60  ;;  %v80_v60 = vld [vmem:[%s4527_s0 + $0x190] sm:$0xff] }
  0x78   :  { %2502 = vmatmul.mubr.msk.bf16.gmra.mrb[24].mxu0 %vm224_vm1, %v1079_v61  ;;  %2405 = vmatprep.mubr.msk.bf16.mxu1 %vm224_vm1, %v221_v62  ;;  %v81_v61 = vld [vmem:[%s4527_s0 + $0x198] sm:$0xff]  ;;  %v1052_v62 = vld [vmem:[%s4529_s2 + $0x190] sm:$0xff] }
  0x79   :  { %2505 = vmatprep.mubr.msk.bf16.mxu0 %vm224_vm1, %v1080_v63  ;;  %v1053_v63 = vld [vmem:[%s4529_s2 + $0x198] sm:$0xff]  ;;  %v119_v4 = vpack.c.bf16 %v81_v61, %v80_v60 }
  0x7a   :  { %v1091_v5 = vpack.c.bf16 %v1053_v63, %v1052_v62 }
  0x7f   :  { %2406 = vmatmul.mubr.msk.bf16.gmra.mrb[60].mxu1 %vm224_vm1, %v222_v8  ;;  %v84_v8 = vld [vmem:[%s4527_s0 + $0x1b0] sm:$0xff] }
  0x80   :  { %2506 = vmatmul.mubr.msk.bf16.gmra.mrb[28].mxu0 %vm224_vm1, %v1081_v9  ;;  %2443 = vmatprep.mubr.msk.bf16.mxu1 %vm224_vm1, %v110_v10  ;;  %v85_v9 = vld [vmem:[%s4527_s0 + $0x1b8] sm:$0xff]  ;;  %v1056_v10 = vld [vmem:[%s4529_s2 + $0x1b0] sm:$0xff] }
  0x81   :  { %2509 = vmatprep.mubr.msk.bf16.mxu0 %vm224_vm1, %v1082_v11  ;;  %v1057_v11 = vld [vmem:[%s4529_s2 + $0x1b8] sm:$0xff]  ;;  %v121_v16 = vpack.c.bf16 %v85_v9, %v84_v8 }
  0x82   :  { %v1093_v17 = vpack.c.bf16 %v1057_v11, %v1056_v10  ;;  %v3724_v10 = vld [vmem:[%s4531_s7] ss:$0 sm:$0xff] }
  0x87   :  { %2444 = vmatmul.mubr.msk.bf16.vlgmr.msra.gmra.mrb[32].mxu1 %vm224_vm1, %v111_v20  ;;  %v88_v20 = vld [vmem:[%s4527_s0 + $0x1d0] sm:$0xff] }
  0x88   :  { %2510 = vmatmul.mubr.msk.bf16.gmra.mrb[32].mxu0 %vm224_vm1, %v1083_v21  ;;  %2447 = vmatprep.mubr.msk.bf16.mxu1 %vm224_vm1, %v112_v22  ;;  %v89_v21 = vld [vmem:[%s4527_s0 + $0x1d8] sm:$0xff]  ;;  %v1060_v22 = vld [vmem:[%s4529_s2 + $0x1d0] sm:$0xff] }
  0x89   :  { %2513 = vmatprep.mubr.msk.bf16.mxu0 %vm224_vm1, %v1084_v23  ;;  %v1061_v23 = vld [vmem:[%s4529_s2 + $0x1d8] sm:$0xff]  ;;  %v123_v28 = vpack.c.bf16 %v89_v21, %v88_v20 }
  0x8a   :  { %v1095_v29 = vpack.c.bf16 %v1061_v23, %v1060_v22 }
  0x8f   :  { %2448 = vmatmul.mubr.msk.bf16.gmra.mrb[36].mxu1 %vm224_vm1, %v113_v32  ;;  %v92_v32 = vld [vmem:[%s4527_s0 + $0x1f0] sm:$0xff] }
  0x90   :  { %2514 = vmatmul.mubr.msk.bf16.gmra.mrb[36].mxu0 %vm224_vm1, %v1085_v33  ;;  %2451 = vmatprep.mubr.msk.bf16.mxu1 %vm224_vm1, %v114_v34  ;;  %v93_v33 = vld [vmem:[%s4527_s0 + $0x1f8] sm:$0xff]  ;;  %v1064_v34 = vld [vmem:[%s4529_s2 + $0x1f0] sm:$0xff] }
  0x91   :  { %2517 = vmatprep.mubr.msk.bf16.mxu0 %vm224_vm1, %v1086_v35  ;;  %v1065_v35 = vld [vmem:[%s4529_s2 + $0x1f8] sm:$0xff]  ;;  %v125_v36 = vpack.c.bf16 %v93_v33, %v92_v32 }
  0x92   :  { %v1097_v37 = vpack.c.bf16 %v1065_v35, %v1064_v34 }
  0x97   :  { %2452 = vmatmul.mubr.msk.bf16.gmra.mrb[40].mxu1 %vm224_vm1, %v115_v44 }
  0x98   :  { %2518 = vmatmul.mubr.msk.bf16.gmra.mrb[40].mxu0 %vm224_vm1, %v1087_v45  ;;  %2455 = vmatprep.mubr.msk.bf16.mxu1 %vm224_vm1, %v116_v46 }
  0x99   :  { %2521 = vmatprep.mubr.msk.bf16.mxu0 %vm224_vm1, %v1088_v47 }
  0x9f   :  { %2456 = vmatmul.mubr.msk.bf16.gmra.mrb[44].mxu1 %vm224_vm1, %v117_v56 }
  0xa0   :  { %2522 = vmatmul.mubr.msk.bf16.gmra.mrb[44].mxu0 %vm224_vm1, %v1089_v57  ;;  %2459 = vmatprep.mubr.msk.bf16.mxu1 %vm224_vm1, %v118_v58 }
  0xa1   :  { %2525 = vmatprep.mubr.msk.bf16.mxu0 %vm224_vm1, %v1090_v59 }
  0xa7   :  { %2460 = vmatmul.mubr.msk.bf16.gmra.mrb[48].mxu1 %vm224_vm1, %v119_v4 }
  0xa8   :  { %2526 = vmatmul.mubr.msk.bf16.gmra.mrb[48].mxu0 %vm224_vm1, %v1091_v5  ;;  %2463 = vmatprep.mubr.msk.bf16.mxu1 %vm224_vm1, %v120_v6 }
  0xa9   :  { %2529 = vmatprep.mubr.msk.bf16.mxu0 %vm224_vm1, %v1092_v7  ;;  %v3719_v7 = vld [vmem:[%s4530_s6] ss:$0 sm:$0xff] }
  0xaf   :  { %2464 = vmatmul.mubr.msk.bf16.gmra.mrb[52].mxu1 %vm224_vm1, %v121_v16 }
  0xb0   :  { %2530 = vmatmul.mubr.msk.bf16.gmra.mrb[52].mxu0 %vm224_vm1, %v1093_v17  ;;  %2467 = vmatprep.mubr.msk.bf16.mxu1 %vm224_vm1, %v122_v18 }
  0xb1   :  { %2533 = vmatprep.mubr.msk.bf16.mxu0 %vm224_vm1, %v1094_v19 }
  0xb7   :  { %2468 = vmatmul.mubr.msk.bf16.gmra.mrb[56].mxu1 %vm224_vm1, %v123_v28 }
  0xb8   :  { %2534 = vmatmul.mubr.msk.bf16.gmra.mrb[56].mxu0 %vm224_vm1, %v1095_v29  ;;  %2471 = vmatprep.mubr.msk.bf16.mxu1 %vm224_vm1, %v124_v30 }
  0xb9   :  { %2537 = vmatprep.mubr.msk.bf16.mxu0 %vm224_vm1, %v1096_v31 }
  0xbf   :  { %2472 = vmatmul.mubr.msk.bf16.gmra.mrb[60].mxu1 %vm224_vm1, %v125_v36 }
  0xc0   :  { %2538 = vmatmul.mubr.msk.bf16.gmra.mrb[60].mxu0 %vm224_vm1, %v1097_v37 }
  0xda   :  { %v2347_v38 = vpop.f32.mrb[0].mxu1 }
  0xdb   :  { %v359_v39 = vpop.f32.mrb[1].mxu1 }
  0xdc   :  { %v2348_v40 = vpop.f32.mrb[2].mxu1 }
  0xdd   :  { %v362_v41 = vpop.f32.mrb[3].mxu1 }
  0xe2   :  { %v2351_v42 = vpop.f32.mrb[4].mxu1 }
  0xe3   :  { %v375_v43 = vpop.f32.mrb[5].mxu1 }
  0xe4   :  { %v2352_v44 = vpop.f32.mrb[6].mxu1 }
  0xe5   :  { %v3666_v45 = vpop.f32.mrb[7].mxu1 }
  0xea   :  { %v3668_v46 = vpop.f32.mrb[8].mxu1 }
  0xeb   :  { %v3670_v47 = vpop.f32.mrb[9].mxu1 }
  0xec   :  { %v3672_v48 = vpop.f32.mrb[10].mxu1 }
  0xed   :  { %v3674_v49 = vpop.f32.mrb[11].mxu1 }
  0xf2   :  { %v3676_v50 = vpop.f32.mrb[12].mxu1 }
  0xf3   :  { %v3678_v51 = vpop.f32.mrb[13].mxu1 }
  0xf4   :  { %v3680_v52 = vpop.f32.mrb[14].mxu1 }
  0xf5   :  { %v3682_v53 = vpop.f32.mrb[15].mxu1 }
  0xfa   :  { %v3684_v54 = vpop.f32.mrb[16].mxu1 }
  0xfb   :  { %v3686_v55 = vpop.f32.mrb[17].mxu1 }
  0xfc   :  { %v3688_v56 = vpop.f32.mrb[18].mxu1 }
  0xfd   :  { %v3690_v57 = vpop.f32.mrb[19].mxu1 }
 0x102   :  { %v3692_v58 = vpop.f32.mrb[20].mxu1 }
 0x103   :  { %v3694_v59 = vpop.f32.mrb[21].mxu1 }
 0x104   :  { %v3696_v60 = vpop.f32.mrb[22].mxu1 }
 0x105   :  { %v3698_v61 = vpop.f32.mrb[23].mxu1 }
 0x10a   :  { %v3700_v62 = vpop.f32.mrb[24].mxu1 }
 0x10b   :  { %v3702_v63 = vpop.f32.mrb[25].mxu1 }
 0x10c   :  { %v3704_v0 = vpop.f32.mrb[26].mxu1 }
 0x10d   :  { %v3706_v1 = vpop.f32.mrb[27].mxu1 }
 0x112   :  { %v3708_v2 = vpop.f32.mrb[28].mxu1 }
 0x113   :  { %v3710_v3 = vpop.f32.mrb[29].mxu1 }
 0x114   :  { %v3712_v4 = vpop.f32.mrb[30].mxu1 }
 0x115   :  { %v3714_v5 = vpop.f32.mrb[31].mxu1 }
 0x11b   :  { %v2479_v6 = vpop.f32.mrb[0].mxu0 }
 0x11c   :  { %v2543_v8 = vadd.f32 %v2479_v6, %v2347_v38  ;;  %v1232_v9 = vpop.f32.mrb[1].mxu0 }
 0x11d   :  { %v2544_v11 = vadd.f32 %v1232_v9, %v359_v39  ;;  %v2480_v12 = vpop.f32.mrb[2].mxu0 }
 0x11e   :  { %v1560_v13 = vmul.f32 %v2543_v8, %v3719_v7  ;;  %v2545_v14 = vadd.f32 %v2480_v12, %v2348_v40  ;;  %v1235_v15 = vpop.f32.mrb[3].mxu0 }
 0x11f   :  { %v1558_v16 = vmul.f32 %v2544_v11, %v3719_v7  ;;  %v2546_v17 = vadd.f32 %v1235_v15, %v362_v41 }
 0x120   :  { %v3729_v18 = vadd.f32 %v3724_v10, %v1560_v13  ;;  %v1561_v19 = vmul.f32 %v2545_v14, %v3719_v7 }
 0x121   :  { %v3733_v20 = vadd.f32 %v3724_v10, %v1558_v16  ;;  %v1559_v21 = vmul.f32 %v2546_v17, %v3719_v7 }
 0x122   :  { %v1695_v22 = vsub.f32 0.0, %v3729_v18  ;;  %v3738_v23 = vadd.f32 %v3724_v10, %v1561_v19 }
 0x123   :  { %v1693_v24 = vsub.f32 0.0, %v3733_v20  ;;  %v3742_v25 = vadd.f32 %v3724_v10, %v1559_v21  ;;  %v2483_v26 = vpop.f32.mrb[4].mxu0 }
 0x124   :  { %v1761_v27 = vmul.f32 1.442695, %v1695_v22  ;;  %v1696_v28 = vsub.f32 0.0, %v3738_v23  ;;  %v2547_v29 = vadd.f32 %v2483_v26, %v2351_v42  ;;  %v1248_v30 = vpop.f32.mrb[5].mxu0 }
 0x125   :  { %v1757_v31 = vmul.f32 1.442695, %v1693_v24  ;;  %v1694_v32 = vsub.f32 0.0, %v3742_v25  ;;  %v2548_v33 = vadd.f32 %v1248_v30, %v375_v43  ;;  %v2484_v34 = vpop.f32.mrb[6].mxu0 }
 0x126   :  { %2675 = vpow2.f32 %v1761_v27  ;;  %v1763_v35 = vmul.f32 1.442695, %v1696_v28  ;;  %v1564_v36 = vmul.f32 %v2547_v29, %v3719_v7  ;;  %v2549_v37 = vadd.f32 %v2484_v34, %v2352_v44  ;;  %v1251_v38 = vpop.f32.mrb[7].mxu0 }
 0x127   :  { %2677 = vpow2.f32 %v1757_v31  ;;  %v1759_v39 = vmul.f32 1.442695, %v1694_v32  ;;  %v1562_v40 = vmul.f32 %v2548_v33, %v3719_v7  ;;  %v2550_v41 = vadd.f32 %v1251_v38, %v3666_v45 }
 0x128   :  { %2679 = vpow2.f32 %v1763_v35  ;;  %v3750_v42 = vadd.f32 %v3724_v10, %v1564_v36  ;;  %v1565_v6 = vmul.f32 %v2549_v37, %v3719_v7 }
 0x129   :  { %2681 = vpow2.f32 %v1759_v39  ;;  %v3754_v43 = vadd.f32 %v3724_v10, %v1562_v40  ;;  %v1563_v8 = vmul.f32 %v2550_v41, %v3719_v7 }
 0x12a   :  { %v1699_v44 = vsub.f32 0.0, %v3750_v42  ;;  %v3759_v9 = vadd.f32 %v3724_v10, %v1565_v6 }
 0x12b   :  { %v1697_v11 = vsub.f32 0.0, %v3754_v43  ;;  %v3763_v45 = vadd.f32 %v3724_v10, %v1563_v8  ;;  %v2487_v12 = vpop.f32.mrb[8].mxu0 }
 0x12c   :  { %v1769_v13 = vmul.f32 1.442695, %v1699_v44  ;;  %v1700_v14 = vsub.f32 0.0, %v3759_v9  ;;  %v2551_v15 = vadd.f32 %v2487_v12, %v3668_v46  ;;  %v1264_v16 = vpop.f32.mrb[9].mxu0 }
 0x12d   :  { %v1765_v17 = vmul.f32 1.442695, %v1697_v11  ;;  %v1698_v19 = vsub.f32 0.0, %v3763_v45  ;;  %v2552_v21 = vadd.f32 %v1264_v16, %v3670_v47  ;;  %v2488_v22 = vpop.f32.mrb[10].mxu0 }
 0x12e   :  { %2683 = vpow2.f32 %v1769_v13  ;;  %v1771_v24 = vmul.f32 1.442695, %v1700_v14  ;;  %v1568_v26 = vmul.f32 %v2551_v15, %v3719_v7  ;;  %v2553_v27 = vadd.f32 %v2488_v22, %v3672_v48  ;;  %v1267_v28 = vpop.f32.mrb[11].mxu0 }
 0x12f   :  { %2685 = vpow2.f32 %v1765_v17  ;;  %v1767_v29 = vmul.f32 1.442695, %v1698_v19  ;;  %v1566_v30 = vmul.f32 %v2552_v21, %v3719_v7  ;;  %v2554_v46 = vadd.f32 %v1267_v28, %v3674_v49 }
 0x130   :  { %v2676_v31 = vpop.eup %2675  ;;  %2687 = vpow2.f32 %v1771_v24  ;;  %v3774_v32 = vadd.f32 %v3724_v10, %v1568_v26  ;;  %v1569_v47 = vmul.f32 %v2553_v27, %v3719_v7 }
 0x131   :  { %v2678_v33 = vpop.eup %2677  ;;  %v1887_v34 = vadd.f32 1.0, %v2676_v31  ;;  %2689 = vpow2.f32 %v1767_v29  ;;  %v3778_v35 = vadd.f32 %v3724_v10, %v1566_v30  ;;  %v1567_v48 = vmul.f32 %v2554_v46, %v3719_v7 }
 0x132   :  { %v2680_v36 = vpop.eup %2679  ;;  %v1885_v37 = vadd.f32 1.0, %v2678_v33  ;;  %v1703_v38 = vsub.f32 0.0, %v3774_v32  ;;  %v3783_v49 = vadd.f32 %v3724_v10, %v1569_v47 }
 0x133   :  { %v2682_v39 = vpop.eup %2681  ;;  %2691 = vrcp.f32 %v1887_v34  ;;  %v1888_v40 = vadd.f32 1.0, %v2680_v36  ;;  %v1701_v41 = vsub.f32 0.0, %v3778_v35  ;;  %v3787_v6 = vadd.f32 %v3724_v10, %v1567_v48  ;;  %v2491_v8 = vpop.f32.mrb[12].mxu0 }
 0x134   :  { %2693 = vrcp.f32 %v1885_v37  ;;  %v1886_v44 = vadd.f32 1.0, %v2682_v39  ;;  %v1777_v11 = vmul.f32 1.442695, %v1703_v38  ;;  %v1704_v12 = vsub.f32 0.0, %v3783_v49  ;;  %v1280_v13 = vpop.f32.mrb[13].mxu0 }
 0x135   :  { %2695 = vrcp.f32 %v1888_v40  ;;  %v1773_v14 = vmul.f32 1.442695, %v1701_v41  ;;  %v1702_v15 = vsub.f32 0.0, %v3787_v6  ;;  %v2555_v16 = vadd.f32 %v2491_v8, %v3676_v50  ;;  %v2492_v17 = vpop.f32.mrb[14].mxu0 }
 0x136   :  { %2697 = vrcp.f32 %v1886_v44  ;;  %v1779_v19 = vmul.f32 1.442695, %v1704_v12  ;;  %v2556_v21 = vadd.f32 %v1280_v13, %v3678_v51  ;;  %v2557_v22 = vadd.f32 %v2492_v17, %v3680_v52  ;;  %v1283_v24 = vpop.f32.mrb[15].mxu0 }
 0x137   :  { %2699 = vpow2.f32 %v1777_v11  ;;  %v1775_v26 = vmul.f32 1.442695, %v1702_v15  ;;  %v1572_v27 = vmul.f32 %v2555_v16, %v3719_v7  ;;  %v2558_v28 = vadd.f32 %v1283_v24, %v3682_v53 }
 0x138   :  { %v2684_v29 = vpop.eup %2683  ;;  %2701 = vpow2.f32 %v1773_v14  ;;  %v1570_v30 = vmul.f32 %v2556_v21, %v3719_v7  ;;  %v1573_v50 = vmul.f32 %v2557_v22, %v3719_v7 }
 0x139   :  { %v2686_v46 = vpop.eup %2685  ;;  %v1891_v31 = vadd.f32 1.0, %v2684_v29  ;;  %2703 = vpow2.f32 %v1779_v19  ;;  %v3799_v51 = vadd.f32 %v3724_v10, %v1572_v27  ;;  %v1571_v52 = vmul.f32 %v2558_v28, %v3719_v7 }
 0x13a   :  { %v2688_v47 = vpop.eup %2687  ;;  %v1889_v33 = vadd.f32 1.0, %v2686_v46  ;;  %2705 = vpow2.f32 %v1775_v26  ;;  %v3803_v53 = vadd.f32 %v3724_v10, %v1570_v30  ;;  %v3806_v34 = vadd.f32 %v3724_v10, %v1573_v50 }
 0x13b   :  { %v2690_v48 = vpop.eup %2689  ;;  %2707 = vrcp.f32 %v1891_v31  ;;  %v1892_v36 = vadd.f32 1.0, %v2688_v47  ;;  %v1707_v37 = vsub.f32 0.0, %v3799_v51  ;;  %v3810_v38 = vadd.f32 %v3724_v10, %v1571_v52  ;;  %v2495_v39 = vpop.f32.mrb[16].mxu0 }
 0x13c   :  { %2709 = vrcp.f32 %v1889_v33  ;;  %v1890_v40 = vadd.f32 1.0, %v2690_v48  ;;  %v1705_v41 = vsub.f32 0.0, %v3803_v53  ;;  %v1708_v8 = vsub.f32 0.0, %v3806_v34  ;;  %v1296_v44 = vpop.f32.mrb[17].mxu0 }
 0x13d   :  { %v2692_v11 = vpop.eup %2691  ;;  %2711 = vrcp.f32 %v1892_v36  ;;  %v1785_v12 = vmul.f32 1.442695, %v1707_v37  ;;  %v1706_v13 = vsub.f32 0.0, %v3810_v38  ;;  %v2559_v14 = vadd.f32 %v2495_v39, %v3684_v54  ;;  %v2496_v15 = vpop.f32.mrb[18].mxu0 }
 0x13e   :  { %v2694_v16 = vpop.eup %2693  ;;  %v2015_v17 = vmul.f32 %v2692_v11, %v3729_v18  ;;  %2713 = vrcp.f32 %v1890_v40  ;;  %v1781_v19 = vmul.f32 1.442695, %v1705_v41  ;;  %v1787_v21 = vmul.f32 1.442695, %v1708_v8  ;;  %v1299_v22 = vpop.f32.mrb[19].mxu0 }
 0x13f   :  { %v2696_v24 = vpop.eup %2695  ;;  %v2013_v26 = vmul.f32 %v2694_v16, %v3733_v20  ;;  %2715 = vpow2.f32 %v1785_v12  ;;  %v1783_v27 = vmul.f32 1.442695, %v1706_v13  ;;  %v1576_v28 = vmul.f32 %v2559_v14, %v3719_v7 }
 0x140   :  { %v2698_v29 = vpop.eup %2697  ;;  %2080 = vst.msk [vmem:[%s4532_s8 + $0x10] sm:$0xff] %vm2077_vm2, %v2015_v17  ;;  %v2016_v54 = vmul.f32 %v2696_v24, %v3738_v23  ;;  %2717 = vpow2.f32 %v1781_v19  ;;  %v2560_v18 = vadd.f32 %v1296_v44, %v3686_v55  ;;  %v2561_v30 = vadd.f32 %v2496_v15, %v3688_v56 }
 0x141   :  { %v2700_v50 = vpop.eup %2699  ;;  %2078 = vst.msk [vmem:[%s4532_s8] sm:$0xff] %vm2077_vm2, %v2013_v26  ;;  %v2014_v20 = vmul.f32 %v2698_v29, %v3742_v25  ;;  %2719 = vpow2.f32 %v1787_v21  ;;  %v3832_v46 = vadd.f32 %v3724_v10, %v1576_v28  ;;  %v2562_v31 = vadd.f32 %v1299_v22, %v3690_v57 }
 0x142   :  { %v2702_v23 = vpop.eup %2701  ;;  %2081 = vst.msk [vmem:[%s4532_s8 + $0x18] sm:$0xff] %vm2077_vm2, %v2016_v54  ;;  %v1895_v55 = vadd.f32 1.0, %v2700_v50  ;;  %2721 = vpow2.f32 %v1783_v27  ;;  %v1574_v56 = vmul.f32 %v2560_v18, %v3719_v7  ;;  %v1577_v52 = vmul.f32 %v2561_v30, %v3719_v7 }
 0x143   :  { %v2704_v47 = vpop.eup %2703  ;;  %2079 = vst.msk [vmem:[%s4532_s8 + $0x8] sm:$0xff] %vm2077_vm2, %v2014_v20  ;;  %v1893_v25 = vadd.f32 1.0, %v2702_v23  ;;  %v1711_v57 = vsub.f32 0.0, %v3832_v46  ;;  %v1575_v33 = vmul.f32 %v2562_v31, %v3719_v7  ;;  %v2499_v48 = vpop.f32.mrb[20].mxu0 }
 0x144   :  { %v2706_v36 = vpop.eup %2705  ;;  %2723 = vrcp.f32 %v1895_v55  ;;  %v1896_v37 = vadd.f32 1.0, %v2704_v47  ;;  %v3848_v39 = vadd.f32 %v3724_v10, %v1574_v56  ;;  %v3851_v40 = vadd.f32 %v3724_v10, %v1577_v52  ;;  %v1312_v41 = vpop.f32.mrb[21].mxu0 }
 0x145   :  { %v2708_v8 = vpop.eup %2707  ;;  %2725 = vrcp.f32 %v1893_v25  ;;  %v1894_v44 = vadd.f32 1.0, %v2706_v36  ;;  %v1793_v11 = vmul.f32 1.442695, %v1711_v57  ;;  %v3854_v12 = vadd.f32 %v3724_v10, %v1575_v33  ;;  %v2500_v13 = vpop.f32.mrb[22].mxu0 }
 0x146   :  { %v2710_v14 = vpop.eup %2709  ;;  %v2019_v15 = vmul.f32 %v2708_v8, %v3750_v42  ;;  %2727 = vrcp.f32 %v1896_v37  ;;  %v1709_v16 = vsub.f32 0.0, %v3848_v39  ;;  %v1712_v17 = vsub.f32 0.0, %v3851_v40  ;;  %v1315_v19 = vpop.f32.mrb[23].mxu0 }
 0x147   :  { %v2712_v21 = vpop.eup %2711  ;;  %v2017_v22 = vmul.f32 %v2710_v14, %v3754_v43  ;;  %2729 = vrcp.f32 %v1894_v44  ;;  %v1710_v24 = vsub.f32 0.0, %v3854_v12  ;;  %v2563_v26 = vadd.f32 %v2499_v48, %v3692_v58 }
 0x148   :  { %v2714_v27 = vpop.eup %2713  ;;  %2084 = vst.msk [vmem:[%s4532_s8 + $0x30] sm:$0xff] %vm2077_vm2, %v2019_v15  ;;  %v2020_v42 = vmul.f32 %v2712_v21, %v3759_v9  ;;  %2731 = vpow2.f32 %v1793_v11  ;;  %v1789_v28 = vmul.f32 1.442695, %v1709_v16  ;;  %v1795_v29 = vmul.f32 1.442695, %v1712_v17 }
 0x149   :  { %v2716_v54 = vpop.eup %2715  ;;  %2082 = vst.msk [vmem:[%s4532_s8 + $0x20] sm:$0xff] %vm2077_vm2, %v2017_v22  ;;  %v2018_v43 = vmul.f32 %v2714_v27, %v3763_v45  ;;  %v1791_v58 = vmul.f32 1.442695, %v1710_v24  ;;  %v1580_v18 = vmul.f32 %v2563_v26, %v3719_v7  ;;  %v2564_v30 = vadd.f32 %v1312_v41, %v3694_v59 }
 0x14a   :  { %v2718_v50 = vpop.eup %2717  ;;  %2085 = vst.msk [vmem:[%s4532_s8 + $0x38] sm:$0xff] %vm2077_vm2, %v2020_v42  ;;  %v1899_v9 = vadd.f32 1.0, %v2716_v54  ;;  %2733 = vpow2.f32 %v1789_v28  ;;  %v2565_v20 = vadd.f32 %v2500_v13, %v3696_v60  ;;  %v2566_v31 = vadd.f32 %v1315_v19, %v3698_v61 }
 0x14b   :  { %v2720_v23 = vpop.eup %2719  ;;  %2083 = vst.msk [vmem:[%s4532_s8 + $0x28] sm:$0xff] %vm2077_vm2, %v2018_v43  ;;  %v1897_v45 = vadd.f32 1.0, %v2718_v50  ;;  %2735 = vpow2.f32 %v1795_v29  ;;  %v3885_v59 = vadd.f32 %v3724_v10, %v1580_v18  ;;  %v1578_v55 = vmul.f32 %v2564_v30, %v3719_v7  ;;  %v2503_v56 = vpop.f32.mrb[24].mxu0 }
 0x14c   :  { %v2722_v52 = vpop.eup %2721  ;;  %2737 = vrcp.f32 %v1899_v9  ;;  %v1900_v47 = vadd.f32 1.0, %v2720_v23  ;;  %v1581_v60 = vmul.f32 %v2565_v20, %v3719_v7  ;;  %v1579_v61 = vmul.f32 %v2566_v31, %v3719_v7  ;;  %v1328_v25 = vpop.f32.mrb[25].mxu0 }
 0x14d   :  { %2739 = vrcp.f32 %v1897_v45  ;;  %v1898_v57 = vadd.f32 1.0, %v2722_v52  ;;  %v1715_v33 = vsub.f32 0.0, %v3885_v59  ;;  %v3892_v48 = vadd.f32 %v3724_v10, %v1578_v55  ;;  %v2504_v36 = vpop.f32.mrb[26].mxu0 }
 0x14e   :  { %v2724_v37 = vpop.eup %2723  ;;  %2741 = vrcp.f32 %v1900_v47  ;;  %v3895_v41 = vadd.f32 %v3724_v10, %v1581_v60  ;;  %v3898_v8 = vadd.f32 %v3724_v10, %v1579_v61  ;;  %v2567_v44 = vadd.f32 %v2503_v56, %v3700_v62  ;;  %v1331_v11 = vpop.f32.mrb[27].mxu0 }
 0x14f   :  { %v2726_v13 = vpop.eup %2725  ;;  %v2023_v14 = vmul.f32 %v2724_v37, %v3774_v32  ;;  %2743 = vrcp.f32 %v1898_v57  ;;  %v1801_v15 = vmul.f32 1.442695, %v1715_v33  ;;  %v1713_v16 = vsub.f32 0.0, %v3892_v48 }
 0x150   :  { %v2728_v17 = vpop.eup %2727  ;;  %v2021_v19 = vmul.f32 %v2726_v13, %v3778_v35  ;;  %2745 = vpow2.f32 %v1791_v58  ;;  %v1716_v21 = vsub.f32 0.0, %v3895_v41  ;;  %v1714_v22 = vsub.f32 0.0, %v3898_v8 }
 0x151   :  { %v2730_v24 = vpop.eup %2729  ;;  %2088 = vst.msk [vmem:[%s4532_s8 + $0x50] sm:$0xff] %vm2077_vm2, %v2023_v14  ;;  %v2024_v62 = vmul.f32 %v2728_v17, %v3783_v49  ;;  %2747 = vpow2.f32 %v1801_v15  ;;  %v1797_v32 = vmul.f32 1.442695, %v1713_v16  ;;  %v1584_v26 = vmul.f32 %v2567_v44, %v3719_v7 }
 0x152   :  { %v2732_v27 = vpop.eup %2731  ;;  %2086 = vst.msk [vmem:[%s4532_s8 + $0x40] sm:$0xff] %vm2077_vm2, %v2021_v19  ;;  %v2022_v35 = vmul.f32 %v2730_v24, %v3787_v6  ;;  %v1803_v42 = vmul.f32 1.442695, %v1716_v21  ;;  %v1799_v28 = vmul.f32 1.442695, %v1714_v22  ;;  %v2568_v29 = vadd.f32 %v1328_v25, %v3702_v63 }
 0x153   :  { %2089 = vst.msk [vmem:[%s4532_s8 + $0x58] sm:$0xff] %vm2077_vm2, %v2024_v62  ;;  %v1903_v49 = vadd.f32 1.0, %v2732_v27  ;;  %2749 = vpow2.f32 %v1797_v32  ;;  %v3923_v54 = vadd.f32 %v3724_v10, %v1584_v26  ;;  %v2569_v43 = vadd.f32 %v2504_v36, %v3704_v0  ;;  %v2507_v58 = vpop.f32.mrb[28].mxu0 }
 0x154   :  { %v2734_v18 = vpop.eup %2733  ;;  %2087 = vst.msk [vmem:[%s4532_s8 + $0x48] sm:$0xff] %vm2077_vm2, %v2022_v35  ;;  %2751 = vpow2.f32 %v1803_v42  ;;  %v1582_v63 = vmul.f32 %v2568_v29, %v3719_v7  ;;  %v2570_v6 = vadd.f32 %v1331_v11, %v3706_v1  ;;  %v2571_v30 = vadd.f32 %v2507_v58, %v3708_v2  ;;  %v1344_v50 = vpop.f32.mrb[29].mxu0 }
 0x155   :  { %v2736_v9 = vpop.eup %2735  ;;  %2753 = vrcp.f32 %v1903_v49  ;;  %v1901_v20 = vadd.f32 1.0, %v2734_v18  ;;  %v1719_v0 = vsub.f32 0.0, %v3923_v54  ;;  %v1585_v31 = vmul.f32 %v2569_v43, %v3719_v7  ;;  %v2508_v23 = vpop.f32.mrb[30].mxu0 }
 0x156   :  { %v2738_v45 = vpop.eup %2737  ;;  %v1904_v55 = vadd.f32 1.0, %v2736_v9  ;;  %2755 = vpow2.f32 %v1799_v28  ;;  %v3936_v56 = vadd.f32 %v3724_v10, %v1582_v63  ;;  %v1583_v52 = vmul.f32 %v2570_v6, %v3719_v7  ;;  %v1347_v1 = vpop.f32.mrb[31].mxu0 }
 0x157   :  { %v2740_v47 = vpop.eup %2739  ;;  %v2027_v2 = vmul.f32 %v2738_v45, %v3799_v51  ;;  %2757 = vrcp.f32 %v1901_v20  ;;  %v1809_v60 = vmul.f32 1.442695, %v1719_v0  ;;  %v3941_v61 = vadd.f32 %v3724_v10, %v1585_v31 }
 0x158   :  { %v2742_v25 = vpop.eup %2741  ;;  %v2025_v57 = vmul.f32 %v2740_v47, %v3803_v53  ;;  %2759 = vrcp.f32 %v1904_v55  ;;  %v1717_v33 = vsub.f32 0.0, %v3936_v56  ;;  %v3946_v36 = vadd.f32 %v3724_v10, %v1583_v52 }
 0x159   :  { %v2744_v37 = vpop.eup %2743  ;;  %2092 = vst.msk [vmem:[%s4532_s8 + $0x70] sm:$0xff] %vm2077_vm2, %v2027_v2  ;;  %v2028_v51 = vmul.f32 %v2742_v25, %v3806_v34  ;;  %2761 = vpow2.f32 %v1809_v60  ;;  %v1720_v44 = vsub.f32 0.0, %v3941_v61  ;;  %v1588_v11 = vmul.f32 %v2571_v30, %v3719_v7 }
 0x15a   :  { %v2746_v53 = vpop.eup %2745  ;;  %2090 = vst.msk [vmem:[%s4532_s8 + $0x60] sm:$0xff] %vm2077_vm2, %v2025_v57  ;;  %v2026_v13 = vmul.f32 %v2744_v37, %v3810_v38  ;;  %v1805_v14 = vmul.f32 1.442695, %v1717_v33  ;;  %v1718_v15 = vsub.f32 0.0, %v3946_v36  ;;  %v2572_v16 = vadd.f32 %v1344_v50, %v3710_v3  ;;  %v2445_v17 = vpop.f32.mrb[32].mxu1 }
 0x15b   :  { %v2748_v34 = vpop.eup %2747  ;;  %2093 = vst.msk [vmem:[%s4532_s8 + $0x78] sm:$0xff] %vm2077_vm2, %v2028_v51  ;;  %v1902_v19 = vadd.f32 1.0, %v2746_v53  ;;  %v1811_v21 = vmul.f32 1.442695, %v1720_v44  ;;  %v3967_v22 = vadd.f32 %v3724_v10, %v1588_v11  ;;  %v2573_v24 = vadd.f32 %v2508_v23, %v3712_v4  ;;  %v2511_v38 = vpop.f32.mrb[32].mxu0 }
 0x15c   :  { %v875_v62 = vpop.f32.mrb[33].mxu1  ;;  %2091 = vst.msk [vmem:[%s4532_s8 + $0x68] sm:$0xff] %vm2077_vm2, %v2026_v13  ;;  %v1907_v3 = vadd.f32 1.0, %v2748_v34  ;;  %2763 = vpow2.f32 %v1805_v14  ;;  %v1807_v32 = vmul.f32 1.442695, %v1718_v15  ;;  %v1586_v26 = vmul.f32 %v2572_v16, %v3719_v7  ;;  %v1360_v27 = vpop.f32.mrb[33].mxu0 }
 0x15d   :  { %v2446_v35 = vpop.f32.mrb[34].mxu1  ;;  %v2750_v42 = vpop.eup %2749  ;;  %2765 = vrcp.f32 %v1902_v19  ;;  %v1723_v28 = vsub.f32 0.0, %v3967_v22  ;;  %v1589_v4 = vmul.f32 %v2573_v24, %v3719_v7  ;;  %v2574_v29 = vadd.f32 %v1347_v1, %v3714_v5 }
 0x15e   :  { %v2512_v49 = vpop.f32.mrb[34].mxu0  ;;  %v878_v43 = vpop.f32.mrb[35].mxu1  ;;  %2767 = vrcp.f32 %v1907_v3  ;;  %v1905_v18 = vadd.f32 1.0, %v2750_v42  ;;  %v3979_v63 = vadd.f32 %v3724_v10, %v1586_v26  ;;  %v2575_v6 = vadd.f32 %v2511_v38, %v2445_v17 }
 0x15f   :  { %v2752_v58 = vpop.eup %2751  ;;  %v1363_v30 = vpop.f32.mrb[35].mxu0  ;;  %2769 = vpow2.f32 %v1811_v21  ;;  %v1817_v20 = vmul.f32 1.442695, %v1723_v28  ;;  %v3982_v0 = vadd.f32 %v3724_v10, %v1589_v4  ;;  %v1587_v45 = vmul.f32 %v2574_v29, %v3719_v7 }
 0x160   :  { %v2754_v50 = vpop.eup %2753  ;;  %v1908_v9 = vadd.f32 1.0, %v2752_v58  ;;  %2771 = vrcp.f32 %v1905_v18  ;;  %v1721_v23 = vsub.f32 0.0, %v3979_v63  ;;  %v1592_v47 = vmul.f32 %v2575_v6, %v3719_v7 }
 0x161   :  { %v2756_v31 = vpop.eup %2755  ;;  %v2031_v5 = vmul.f32 %v2754_v50, %v3832_v46  ;;  %v1724_v1 = vsub.f32 0.0, %v3982_v0  ;;  %v3995_v25 = vadd.f32 %v3724_v10, %v1587_v45  ;;  %v2576_v14 = vadd.f32 %v1360_v27, %v875_v62 }
 0x162   :  { %v2758_v55 = vpop.eup %2757  ;;  %2773 = vrcp.f32 %v1908_v9  ;;  %v1906_v52 = vadd.f32 1.0, %v2756_v31  ;;  %v1813_v60 = vmul.f32 1.442695, %v1721_v23  ;;  %v2449_v57 = vpop.f32.mrb[36].mxu1  ;;  %v3999_v44 = vadd.f32 %v3724_v10, %v1592_v47 }
 0x163   :  { %v2760_v2 = vpop.eup %2759  ;;  %2096 = vst.msk [vmem:[%s4532_s8 + $0x90] sm:$0xff] %vm2077_vm2, %v2031_v5  ;;  %v2029_v46 = vmul.f32 %v2758_v55, %v3848_v39  ;;  %2775 = vpow2.f32 %v1807_v32  ;;  %v1819_v51 = vmul.f32 1.442695, %v1724_v1  ;;  %v2515_v11 = vpop.f32.mrb[36].mxu0  ;;  %v1722_v13 = vsub.f32 0.0, %v3995_v25 }
 0x164   :  { %v2762_v33 = vpop.eup %2761  ;;  %v2032_v37 = vmul.f32 %v2760_v2, %v3851_v40  ;;  %2777 = vrcp.f32 %v1906_v52  ;;  %v891_v53 = vpop.f32.mrb[37].mxu1  ;;  %v1727_v40 = vsub.f32 0.0, %v3999_v44  ;;  %v2577_v17 = vadd.f32 %v2512_v49, %v2446_v35 }
 0x165   :  { %2094 = vst.msk [vmem:[%s4532_s8 + $0x80] sm:$0xff] %vm2077_vm2, %v2029_v46  ;;  %v1911_v39 = vadd.f32 1.0, %v2762_v33  ;;  %2779 = vpow2.f32 %v1817_v20  ;;  %v1376_v15 = vpop.f32.mrb[37].mxu0  ;;  %v4006_v16 = vpop.f32.mrb[38].mxu1  ;;  %v2578_v34 = vadd.f32 %v1363_v30, %v878_v43  ;;  %v1815_v38 = vmul.f32 1.442695, %v1722_v13 }
 0x166   :  { %2097 = vst.msk [vmem:[%s4532_s8 + $0x98] sm:$0xff] %vm2077_vm2, %v2032_v37  ;;  %2781 = vpow2.f32 %v1813_v60  ;;  %v2516_v19 = vpop.f32.mrb[38].mxu0  ;;  %v4013_v21 = vpop.f32.mrb[39].mxu1  ;;  %v1590_v62 = vmul.f32 %v2576_v14, %v3719_v7  ;;  %v2579_v3 = vadd.f32 %v2515_v11, %v2449_v57  ;;  %v1825_v42 = vmul.f32 1.442695, %v1727_v40 }
 0x167   :  { %v2764_v24 = vpop.eup %2763  ;;  %2783 = vrcp.f32 %v1911_v39  ;;  %v4016_v32 = vpop.f32.mrb[39].mxu0  ;;  %v1593_v28 = vmul.f32 %v2577_v17, %v3719_v7  ;;  %v1591_v49 = vmul.f32 %v2578_v34, %v3719_v7  ;;  %v2580_v45 = vadd.f32 %v1376_v15, %v891_v53 }
 0x168   :  { %v2766_v26 = vpop.eup %2765  ;;  %v1909_v27 = vadd.f32 1.0, %v2764_v24  ;;  %2785 = vpow2.f32 %v1819_v51  ;;  %v4021_v29 = vadd.f32 %v3724_v10, %v1590_v62  ;;  %v1596_v6 = vmul.f32 %v2579_v3, %v3719_v7 }
 0x169   :  { %v2768_v4 = vpop.eup %2767  ;;  %v2030_v35 = vmul.f32 %v2766_v26, %v3854_v12  ;;  %2787 = vpow2.f32 %v1815_v38  ;;  %v4026_v18 = vadd.f32 %v3724_v10, %v1593_v28  ;;  %v4035_v9 = vadd.f32 %v3724_v10, %v1591_v49 }
 0x16a   :  { %v2770_v43 = vpop.eup %2769  ;;  %v2035_v58 = vmul.f32 %v2768_v4, %v3885_v59  ;;  %2789 = vrcp.f32 %v1909_v27  ;;  %v1725_v50 = vsub.f32 0.0, %v4021_v29  ;;  %v2453_v59 = vpop.f32.mrb[40].mxu1  ;;  %v4044_v23 = vadd.f32 %v3724_v10, %v1596_v6 }
 0x16b   :  { %v2772_v30 = vpop.eup %2771  ;;  %2095 = vst.msk [vmem:[%s4532_s8 + $0x88] sm:$0xff] %vm2077_vm2, %v2030_v35  ;;  %v1912_v12 = vadd.f32 1.0, %v2770_v43  ;;  %2791 = vpow2.f32 %v1825_v42  ;;  %v1728_v5 = vsub.f32 0.0, %v4026_v18  ;;  %v2519_v55 = vpop.f32.mrb[40].mxu0  ;;  %v1726_v46 = vsub.f32 0.0, %v4035_v9 }
 0x16c   :  { %v2774_v20 = vpop.eup %2773  ;;  %2100 = vst.msk [vmem:[%s4532_s8 + $0xb0] sm:$0xff] %vm2077_vm2, %v2035_v58  ;;  %v2033_v31 = vmul.f32 %v2772_v30, %v3892_v48  ;;  %v4046_v52 = vpop.f32.mrb[41].mxu1  ;;  %v1821_v2 = vmul.f32 1.442695, %v1725_v50  ;;  %v1731_v51 = vsub.f32 0.0, %v4044_v23  ;;  %v1594_v11 = vmul.f32 %v2580_v45, %v3719_v7 }
 0x16d   :  { %v2776_v1 = vpop.eup %2775  ;;  %v2036_v47 = vmul.f32 %v2774_v20, %v3895_v41  ;;  %2793 = vrcp.f32 %v1912_v12  ;;  %v1392_v60 = vpop.f32.mrb[41].mxu0  ;;  %v1827_v37 = vmul.f32 1.442695, %v1728_v5  ;;  %v1823_v14 = vmul.f32 1.442695, %v1726_v46 }
 0x16e   :  { %v4050_v57 = vpop.f32.mrb[42].mxu1  ;;  %v2778_v48 = vpop.eup %2777  ;;  %2098 = vst.msk [vmem:[%s4532_s8 + $0xa0] sm:$0xff] %vm2077_vm2, %v2033_v31  ;;  %v1910_v33 = vadd.f32 1.0, %v2776_v1  ;;  %2795 = vpow2.f32 %v1821_v2  ;;  %v2581_v15 = vadd.f32 %v2516_v19, %v4006_v16  ;;  %v1833_v24 = vmul.f32 1.442695, %v1731_v51 }
 0x16f   :  { %v2520_v41 = vpop.f32.mrb[42].mxu0  ;;  %v4058_v53 = vpop.f32.mrb[43].mxu1  ;;  %2101 = vst.msk [vmem:[%s4532_s8 + $0xb8] sm:$0xff] %vm2077_vm2, %v2036_v47  ;;  %v2034_v13 = vmul.f32 %v2778_v48, %v3898_v8  ;;  %v4067_v38 = vadd.f32 %v3724_v10, %v1594_v11  ;;  %v2582_v16 = vadd.f32 %v4016_v32, %v4013_v21  ;;  %v2583_v42 = vadd.f32 %v2519_v55, %v2453_v59 }
 0x170   :  { %v2780_v39 = vpop.eup %2779  ;;  %v1395_v40 = vpop.f32.mrb[43].mxu0  ;;  %2797 = vrcp.f32 %v1910_v33  ;;  %v1597_v8 = vmul.f32 %v2581_v15, %v3719_v7  ;;  %v2584_v1 = vadd.f32 %v1392_v60, %v4046_v52  ;;  %v2585_v33 = vadd.f32 %v2520_v41, %v4050_v57 }
 0x171   :  { %v2782_v17 = vpop.eup %2781  ;;  %v1915_v34 = vadd.f32 1.0, %v2780_v39  ;;  %2099 = vst.msk [vmem:[%s4532_s8 + $0xa8] sm:$0xff] %vm2077_vm2, %v2034_v13  ;;  %2799 = vpow2.f32 %v1827_v37  ;;  %v1729_v27 = vsub.f32 0.0, %v4067_v38  ;;  %v1595_v49 = vmul.f32 %v2582_v16, %v3719_v7 }
 0x172   :  { %v2784_v62 = vpop.eup %2783  ;;  %v1913_v3 = vadd.f32 1.0, %v2782_v17  ;;  %v4079_v35 = vadd.f32 %v3724_v10, %v1597_v8  ;;  %v2457_v43 = vpop.f32.mrb[44].mxu1  ;;  %v1600_v32 = vmul.f32 %v2583_v42, %v3719_v7  ;;  %v1598_v51 = vmul.f32 %v2584_v1, %v3719_v7 }
 0x173   :  { %v2786_v19 = vpop.eup %2785  ;;  %v2039_v26 = vmul.f32 %v2784_v62, %v3923_v54  ;;  %2801 = vrcp.f32 %v1915_v34  ;;  %v1829_v21 = vmul.f32 1.442695, %v1729_v27  ;;  %v2523_v6 = vpop.f32.mrb[44].mxu0  ;;  %v4092_v20 = vadd.f32 %v3724_v10, %v1595_v49 }
 0x174   :  { %v2788_v28 = vpop.eup %2787  ;;  %2803 = vrcp.f32 %v1913_v3  ;;  %v1916_v4 = vadd.f32 1.0, %v2786_v19  ;;  %v4087_v30 = vpop.f32.mrb[45].mxu1  ;;  %v1732_v59 = vsub.f32 0.0, %v4079_v35  ;;  %v4099_v55 = vadd.f32 %v3724_v10, %v1600_v32 }
 0x175   :  { %v2790_v58 = vpop.eup %2789  ;;  %2104 = vst.msk [vmem:[%s4532_s8 + $0xd0] sm:$0xff] %vm2077_vm2, %v2039_v26  ;;  %v1914_v54 = vadd.f32 1.0, %v2788_v28  ;;  %2805 = vpow2.f32 %v1823_v14  ;;  %v4094_v31 = vpop.f32.mrb[45].mxu0  ;;  %v1730_v48 = vsub.f32 0.0, %v4092_v20  ;;  %v1601_v13 = vmul.f32 %v2585_v33, %v3719_v7 }
 0x176   :  { %v2792_v12 = vpop.eup %2791  ;;  %v2037_v50 = vmul.f32 %v2790_v58, %v3936_v56  ;;  %2807 = vrcp.f32 %v1916_v4  ;;  %v4096_v5 = vpop.f32.mrb[46].mxu1  ;;  %v1835_v46 = vmul.f32 1.442695, %v1732_v59  ;;  %v1735_v60 = vsub.f32 0.0, %v4099_v55 }
 0x177   :  { %2809 = vrcp.f32 %v1914_v54  ;;  %v1919_v45 = vadd.f32 1.0, %v2792_v12  ;;  %v4102_v47 = vpop.f32.mrb[46].mxu0  ;;  %v4104_v56 = vpop.f32.mrb[47].mxu1  ;;  %v1831_v39 = vmul.f32 1.442695, %v1730_v48  ;;  %v2586_v14 = vadd.f32 %v1395_v40, %v4058_v53 }
 0x178   :  { %v2794_v2 = vpop.eup %2793  ;;  %2102 = vst.msk [vmem:[%s4532_s8 + $0xc0] sm:$0xff] %vm2077_vm2, %v2037_v50  ;;  %2811 = vpow2.f32 %v1833_v24  ;;  %v4112_v37 = vpop.f32.mrb[47].mxu0  ;;  %v4124_v41 = vadd.f32 %v3724_v10, %v1598_v51  ;;  %v4128_v24 = vadd.f32 %v3724_v10, %v1601_v13  ;;  %v2587_v16 = vadd.f32 %v2523_v6, %v2457_v43 }
 0x179   :  { %v2040_v52 = vmul.f32 %v2794_v2, %v3941_v61  ;;  %2813 = vrcp.f32 %v1919_v45  ;;  %v2796_v11 = vpop.eup %2795  ;;  %v1841_v61 = vmul.f32 1.442695, %v1735_v60  ;;  %v1599_v53 = vmul.f32 %v2586_v14, %v3719_v7 }
 0x17a   :  { %2815 = vpow2.f32 %v1829_v21  ;;  %v2798_v15 = vpop.eup %2797  ;;  %v1917_v57 = vadd.f32 1.0, %v2796_v11  ;;  %v4131_v40 = vpop.f32.mrb[48].mxu1  ;;  %v1733_v8 = vsub.f32 0.0, %v4124_v41  ;;  %v1736_v7 = vsub.f32 0.0, %v4128_v24 }
 0x17b   :  { %2105 = vst.msk [vmem:[%s4532_s8 + $0xd8] sm:$0xff] %vm2077_vm2, %v2040_v52  ;;  %2817 = vpow2.f32 %v1835_v46  ;;  %v2800_v17 = vpop.eup %2799  ;;  %v2038_v34 = vmul.f32 %v2798_v15, %v3946_v36  ;;  %v2527_v19 = vpop.f32.mrb[48].mxu0  ;;  %v4145_v36 = vld [vmem:[%s4531_s7] ss:$0 sm:$0xff]  ;;  %v2588_v59 = vadd.f32 %v4094_v31, %v4087_v30  ;;  %v2589_v48 = vadd.f32 %v4102_v47, %v4096_v5 }
 0x17c   :  { %2819 = vpow2.f32 %v1831_v39  ;;  %v1920_v3 = vadd.f32 1.0, %v2800_v17  ;;  %v4134_v26 = vpop.f32.mrb[49].mxu1  ;;  %v4148_v42 = vadd.f32 %v4145_v36, %v1599_v53  ;;  %v1424_v28 = vpop.f32.mrb[49].mxu0  ;;  %v1837_v58 = vmul.f32 1.442695, %v1733_v8 }
 0x17d   :  { %v2802_v62 = vpop.eup %2801  ;;  %2821 = vrcp.f32 %v1917_v57  ;;  %2103 = vst.msk [vmem:[%s4532_s8 + $0xc8] sm:$0xff] %vm2077_vm2, %v2038_v34  ;;  %v4150_v4 = vpop.f32.mrb[50].mxu1  ;;  %v1843_v12 = vmul.f32 1.442695, %v1736_v7  ;;  %v2590_v39 = vadd.f32 %v4112_v37, %v4104_v56  ;;  %v2592_v7 = vadd.f32 %v1424_v28, %v4134_v26 }
 0x17e   :  { %v2804_v27 = vpop.eup %2803  ;;  %v2043_v10 = vmul.f32 %v2802_v62, %v3967_v22  ;;  %2823 = vpow2.f32 %v1841_v61  ;;  %v4156_v22 = vld [vmem:[%s4530_s6] ss:$0 sm:$0xff]  ;;  %v4159_v21 = vpop.f32.mrb[50].mxu0  ;;  %v1734_v50 = vsub.f32 0.0, %v4148_v42  ;;  %v2591_v62 = vadd.f32 %v2527_v19, %v4131_v40 }
 0x17f   :  { %v2806_v49 = vpop.eup %2805  ;;  %v2041_v43 = vmul.f32 %v2804_v27, %v3979_v63  ;;  %2825 = vrcp.f32 %v1920_v3  ;;  %v1604_v54 = vmul.f32 %v4156_v22, %v2587_v16  ;;  %v4161_v32 = vpop.f32.mrb[51].mxu1  ;;  %v1602_v52 = vmul.f32 %v4156_v22, %v2588_v59 }
 0x180   :  { %v2808_v6 = vpop.eup %2807  ;;  %2108 = vst.msk [vmem:[%s4532_s8 + $0xf0] sm:$0xff] %vm2077_vm2, %v2043_v10  ;;  %v1918_v63 = vadd.f32 1.0, %v2806_v49  ;;  %v4170_v45 = vpop.f32.mrb[51].mxu0  ;;  %2827 = vpow2.f32 %v1837_v58  ;;  %v1839_v31 = vmul.f32 1.442695, %v1734_v50  ;;  %v1605_v11 = vmul.f32 %v4156_v22, %v2589_v48 }
 0x181   :  { %v2810_v1 = vpop.eup %2809  ;;  %2106 = vst.msk [vmem:[%s4532_s8 + $0xe0] sm:$0xff] %vm2077_vm2, %v2041_v43  ;;  %v2044_v2 = vmul.f32 %v2808_v6, %v3982_v0  ;;  %v4178_v46 = vadd.f32 %v4145_v36, %v1604_v54  ;;  %v4196_v47 = vadd.f32 %v4145_v36, %v1602_v52  ;;  %v1603_v53 = vmul.f32 %v4156_v22, %v2590_v39 }
 0x182   :  { %v2812_v33 = vpop.eup %2811  ;;  %v2042_v30 = vmul.f32 %v2810_v1, %v3995_v25  ;;  %2829 = vrcp.f32 %v1918_v63  ;;  %v4200_v13 = vpop.f32.mrb[52].mxu1  ;;  %v4203_v61 = vadd.f32 %v4145_v36, %v1605_v11  ;;  %v1608_v26 = vmul.f32 %v4156_v22, %v2591_v62 }
 0x183   :  { %v2814_v60 = vpop.eup %2813  ;;  %2109 = vst.msk [vmem:[%s4532_s8 + $0xf8] sm:$0xff] %vm2077_vm2, %v2044_v2  ;;  %v1923_v0 = vadd.f32 1.0, %v2812_v33  ;;  %2831 = vpow2.f32 %v1843_v12  ;;  %v1739_v51 = vsub.f32 0.0, %v4178_v46  ;;  %v4205_v17 = vpop.f32.mrb[52].mxu0  ;;  %v1737_v37 = vsub.f32 0.0, %v4196_v47 }
 0x184   :  { %v2816_v5 = vpop.eup %2815  ;;  %2107 = vst.msk [vmem:[%s4532_s8 + $0xe8] sm:$0xff] %vm2077_vm2, %v2042_v30  ;;  %v2047_v25 = vmul.f32 %v2814_v60, %v3999_v44  ;;  %2833 = vpow2.f32 %v1839_v31  ;;  %v4207_v34 = vpop.f32.mrb[53].mxu1  ;;  %v1740_v10 = vsub.f32 0.0, %v4203_v61  ;;  %v4228_v19 = vadd.f32 %v4145_v36, %v1603_v53 }
 0x185   :  { %v2818_v14 = vpop.eup %2817  ;;  %2835 = vrcp.f32 %v1923_v0  ;;  %v1921_v15 = vadd.f32 1.0, %v2816_v5  ;;  %v1849_v57 = vmul.f32 1.442695, %v1739_v51  ;;  %v4216_v3 = vpop.f32.mrb[53].mxu0  ;;  %v1845_v40 = vmul.f32 1.442695, %v1737_v37 }
 0x186   :  { %v2820_v44 = vpop.eup %2819  ;;  %2112 = vst.msk [vmem:[%s4532_s8 + $0x110] sm:$0xff] %vm2077_vm2, %v2047_v25  ;;  %v1924_v56 = vadd.f32 1.0, %v2818_v14  ;;  %v4218_v8 = vpop.f32.mrb[54].mxu1  ;;  %v1851_v50 = vmul.f32 1.442695, %v1740_v10  ;;  %v1738_v28 = vsub.f32 0.0, %v4228_v19  ;;  %v1606_v59 = vmul.f32 %v4156_v22, %v2592_v7 }
 0x187   :  { %v2822_v16 = vpop.eup %2821  ;;  %2837 = vrcp.f32 %v1921_v15  ;;  %v1922_v27 = vadd.f32 1.0, %v2820_v44  ;;  %v4222_v49 = vpop.f32.mrb[54].mxu0  ;;  %v4241_v2 = vadd.f32 %v4145_v36, %v1608_v26  ;;  %v2593_v48 = vadd.f32 %v4159_v21, %v4150_v4 }
 0x188   :  { %v4224_v43 = vpop.f32.mrb[55].mxu1  ;;  %v2824_v58 = vpop.eup %2823  ;;  %v2045_v54 = vmul.f32 %v2822_v16, %v4021_v29  ;;  %2839 = vrcp.f32 %v1924_v56  ;;  %v2594_v33 = vadd.f32 %v4170_v45, %v4161_v32  ;;  %v1847_v31 = vmul.f32 1.442695, %v1738_v28 }
 0x189   :  { %v4230_v6 = vpop.f32.mrb[55].mxu0  ;;  %v2826_v63 = vpop.eup %2825  ;;  %2841 = vrcp.f32 %v1922_v27  ;;  %v1927_v12 = vadd.f32 1.0, %v2824_v58  ;;  %v4252_v52 = vadd.f32 %v4145_v36, %v1606_v59  ;;  %v1743_v21 = vsub.f32 0.0, %v4241_v2 }
 0x18a   :  { %2110 = vst.msk [vmem:[%s4532_s8 + $0x100] sm:$0xff] %vm2077_vm2, %v2045_v54  ;;  %v2048_v29 = vmul.f32 %v2826_v63, %v4026_v18  ;;  %2843 = vpow2.f32 %v1849_v57  ;;  %v2828_v1 = vpop.eup %2827  ;;  %v4254_v60 = vpop.f32.mrb[56].mxu1  ;;  %v1609_v32 = vmul.f32 %v4156_v22, %v2593_v48  ;;  %v1607_v39 = vmul.f32 %v4156_v22, %v2594_v33 }
 0x18b   :  { %2845 = vrcp.f32 %v1927_v12  ;;  %v1925_v18 = vadd.f32 1.0, %v2828_v1  ;;  %v4259_v45 = vpop.f32.mrb[56].mxu0  ;;  %v4261_v51 = vpop.f32.mrb[57].mxu1  ;;  %v1741_v25 = vsub.f32 0.0, %v4252_v52  ;;  %v1857_v44 = vmul.f32 1.442695, %v1743_v21 }
 0x18c   :  { %v2830_v30 = vpop.eup %2829  ;;  %2113 = vst.msk [vmem:[%s4532_s8 + $0x118] sm:$0xff] %vm2077_vm2, %v2048_v29  ;;  %2847 = vpow2.f32 %v1845_v40  ;;  %v4265_v14 = vpop.f32.mrb[57].mxu0  ;;  %v4274_v56 = vadd.f32 %v4145_v36, %v1609_v32  ;;  %v4282_v27 = vadd.f32 %v4145_v36, %v1607_v39  ;;  %v2595_v54 = vadd.f32 %v4205_v17, %v4200_v13 }
 0x18d   :  { %v2832_v0 = vpop.eup %2831  ;;  %v2046_v4 = vmul.f32 %v2830_v30, %v4035_v9  ;;  %2849 = vpow2.f32 %v1851_v50  ;;  %v4267_v15 = vpop.f32.mrb[58].mxu1  ;;  %v1853_v16 = vmul.f32 1.442695, %v1741_v25  ;;  %v2596_v40 = vadd.f32 %v4216_v3, %v4207_v34 }
 0x18e   :  { %v2834_v11 = vpop.eup %2833  ;;  %2851 = vrcp.f32 %v1925_v18  ;;  %v1928_v5 = vadd.f32 1.0, %v2832_v0  ;;  %v4276_v37 = vpop.f32.mrb[58].mxu0  ;;  %v1744_v58 = vsub.f32 0.0, %v4274_v56  ;;  %v1742_v12 = vsub.f32 0.0, %v4282_v27 }
 0x18f   :  { %v2836_v9 = vpop.eup %2835  ;;  %2111 = vst.msk [vmem:[%s4532_s8 + $0x108] sm:$0xff] %vm2077_vm2, %v2046_v4  ;;  %v1926_v57 = vadd.f32 1.0, %v2834_v11  ;;  %2853 = vpow2.f32 %v1847_v31  ;;  %v4278_v53 = vpop.f32.mrb[59].mxu1  ;;  %v2597_v50 = vadd.f32 %v4222_v49, %v4218_v8  ;;  %v1612_v34 = vmul.f32 %v4156_v22, %v2595_v54 }
 0x190   :  { %v2051_v62 = vmul.f32 %v2836_v9, %v4044_v23  ;;  %2855 = vrcp.f32 %v1928_v5  ;;  %v4284_v10 = vpop.f32.mrb[59].mxu0  ;;  %v1859_v17 = vmul.f32 1.442695, %v1744_v58  ;;  %v1855_v29 = vmul.f32 1.442695, %v1742_v12 }
 0x191   :  { %v2838_v7 = vpop.eup %2837  ;;  %2857 = vrcp.f32 %v1926_v57  ;;  %v1610_v28 = vmul.f32 %v4156_v22, %v2596_v40  ;;  %v1613_v8 = vmul.f32 %v4156_v22, %v2597_v50  ;;  %v4315_v1 = vadd.f32 %v4145_v36, %v1612_v34 }
 0x192   :  { %v2840_v63 = vpop.eup %2839  ;;  %2116 = vst.msk [vmem:[%s4532_s8 + $0x130] sm:$0xff] %vm2077_vm2, %v2051_v62  ;;  %v2049_v23 = vmul.f32 %v2838_v7, %v4067_v38  ;;  %2859 = vpow2.f32 %v1857_v44  ;;  %v4308_v49 = vpop.f32.mrb[60].mxu1  ;;  %v2599_v44 = vadd.f32 %v4259_v45, %v4254_v60  ;;  %v2601_v34 = vadd.f32 %v4276_v37, %v4267_v15 }
 0x193   :  { %v2842_v26 = vpop.eup %2841  ;;  %v2052_v13 = vmul.f32 %v2840_v63, %v4079_v35  ;;  %2861 = vpow2.f32 %v1853_v16  ;;  %v2539_v48 = vpop.f32.mrb[60].mxu0  ;;  %v4327_v31 = vadd.f32 %v4145_v36, %v1610_v28  ;;  %v4330_v0 = vadd.f32 %v4145_v36, %v1613_v8 }
 0x194   :  { %v2844_v3 = vpop.eup %2843  ;;  %2114 = vst.msk [vmem:[%s4532_s8 + $0x120] sm:$0xff] %vm2077_vm2, %v2049_v23  ;;  %v2050_v38 = vmul.f32 %v2842_v26, %v4092_v20  ;;  %2863 = vpow2.f32 %v1859_v17  ;;  %v2598_v20 = vadd.f32 %v4230_v6, %v4224_v43  ;;  %v4319_v33 = vpop.f32.mrb[61].mxu1  ;;  %v1747_v32 = vsub.f32 0.0, %v4315_v1 }
 0x195   :  { %v2846_v35 = vpop.eup %2845  ;;  %2117 = vst.msk [vmem:[%s4532_s8 + $0x138] sm:$0xff] %vm2077_vm2, %v2052_v13  ;;  %v1931_v59 = vadd.f32 1.0, %v2844_v3  ;;  %2865 = vpow2.f32 %v1855_v29  ;;  %v4332_v4 = vpop.f32.mrb[61].mxu0  ;;  %v1745_v9 = vsub.f32 0.0, %v4327_v31  ;;  %v1748_v57 = vsub.f32 0.0, %v4330_v0 }
 0x196   :  { %v2848_v30 = vpop.eup %2847  ;;  %2115 = vst.msk [vmem:[%s4532_s8 + $0x128] sm:$0xff] %vm2077_vm2, %v2050_v38  ;;  %v2055_v18 = vmul.f32 %v2846_v35, %v4099_v55  ;;  %v4334_v43 = vpop.f32.mrb[62].mxu1  ;;  %v1611_v11 = vmul.f32 %v4156_v22, %v2598_v20  ;;  %v1865_v58 = vmul.f32 1.442695, %v1747_v32  ;;  %v1616_v45 = vmul.f32 %v4156_v22, %v2599_v44 }
 0x197   :  { %v2850_v6 = vpop.eup %2849  ;;  %2867 = vrcp.f32 %v1931_v59  ;;  %v1929_v21 = vadd.f32 1.0, %v2848_v30  ;;  %v4338_v5 = vpop.f32.mrb[62].mxu0  ;;  %v1861_v23 = vmul.f32 1.442695, %v1745_v9  ;;  %v1867_v12 = vmul.f32 1.442695, %v1748_v57 }
 0x198   :  { %v4340_v55 = vpop.f32.mrb[63].mxu1  ;;  %v2852_v25 = vpop.eup %2851  ;;  %2120 = vst.msk [vmem:[%s4532_s8 + $0x150] sm:$0xff] %vm2077_vm2, %v2055_v18  ;;  %v1932_v39 = vadd.f32 1.0, %v2850_v6  ;;  %v4354_v54 = vadd.f32 %v4145_v36, %v1611_v11  ;;  %v2600_v17 = vadd.f32 %v4265_v14, %v4261_v51  ;;  %v4373_v29 = vadd.f32 %v4145_v36, %v1616_v45 }
 0x199   :  { %v4350_v62 = vpop.f32.mrb[63].mxu0  ;;  %v2854_v16 = vpop.eup %2853  ;;  %v2053_v7 = vmul.f32 %v2852_v25, %v4124_v41  ;;  %2869 = vrcp.f32 %v1929_v21  ;;  %v1617_v14 = vmul.f32 %v4156_v22, %v2601_v34  ;;  %v2602_v28 = vadd.f32 %v4284_v10, %v4278_v53 }
 0x19a   :  { %v2856_v40 = vpop.eup %2855  ;;  %2871 = vrcp.f32 %v1932_v39  ;;  %v1930_v63 = vadd.f32 1.0, %v2854_v16  ;;  %v1746_v41 = vsub.f32 0.0, %v4354_v54  ;;  %v1614_v51 = vmul.f32 %v4156_v22, %v2600_v17 }
 0x19b   :  { %v2858_v50 = vpop.eup %2857  ;;  %2118 = vst.msk [vmem:[%s4532_s8 + $0x140] sm:$0xff] %vm2077_vm2, %v2053_v7  ;;  %v2056_v60 = vmul.f32 %v2856_v40, %v4128_v24  ;;  %2873 = vpow2.f32 %v1865_v58  ;;  %v1751_v37 = vsub.f32 0.0, %v4373_v29  ;;  %v2603_v8 = vadd.f32 %v2539_v48, %v4308_v49 }
 0x19c   :  { %v2860_v26 = vpop.eup %2859  ;;  %v2054_v13 = vmul.f32 %v2858_v50, %v4148_v42  ;;  %2875 = vrcp.f32 %v1930_v63  ;;  %v1863_v38 = vmul.f32 1.442695, %v1746_v41  ;;  %v4386_v20 = vadd.f32 %v4145_v36, %v1614_v51 }
 0x19d   :  { %v2862_v3 = vpop.eup %2861  ;;  %2121 = vst.msk [vmem:[%s4532_s8 + $0x158] sm:$0xff] %vm2077_vm2, %v2056_v60  ;;  %v1935_v24 = vadd.f32 1.0, %v2860_v26  ;;  %2877 = vpow2.f32 %v1861_v23  ;;  %v4389_v30 = vadd.f32 %v4145_v36, %v1617_v14  ;;  %v1873_v21 = vmul.f32 1.442695, %v1751_v37 }
 0x19e   :  { %2119 = vst.msk [vmem:[%s4532_s8 + $0x148] sm:$0xff] %vm2077_vm2, %v2054_v13  ;;  %v1933_v42 = vadd.f32 1.0, %v2862_v3  ;;  %2879 = vpow2.f32 %v1867_v12  ;;  %v2864_v15 = vpop.eup %2863  ;;  %v1615_v32 = vmul.f32 %v4156_v22, %v2602_v28  ;;  %v1749_v53 = vsub.f32 0.0, %v4386_v20 }
 0x19f   :  { %2881 = vrcp.f32 %v1935_v24  ;;  %v2866_v35 = vpop.eup %2865  ;;  %v1936_v59 = vadd.f32 1.0, %v2864_v15  ;;  %v1752_v10 = vsub.f32 0.0, %v4389_v30  ;;  %v1620_v25 = vmul.f32 %v4156_v22, %v2603_v8 }
 0x1a0   :  { %2883 = vrcp.f32 %v1933_v42  ;;  %v1934_v6 = vadd.f32 1.0, %v2866_v35  ;;  %v4396_v48 = vadd.f32 %v4145_v36, %v1615_v32  ;;  %v2604_v39 = vadd.f32 %v4332_v4, %v4319_v33 }
 0x1a1   :  { %v2868_v18 = vpop.eup %2867  ;;  %2885 = vpow2.f32 %v1863_v38  ;;  %v1869_v57 = vmul.f32 1.442695, %v1749_v53  ;;  %v1875_v44 = vmul.f32 1.442695, %v1752_v10  ;;  %v4409_v40 = vadd.f32 %v4145_v36, %v1620_v25 }
 0x1a2   :  { %v2059_v11 = vmul.f32 %v2868_v18, %v4178_v46  ;;  %2887 = vrcp.f32 %v1936_v59  ;;  %v1750_v58 = vsub.f32 0.0, %v4396_v48  ;;  %v1618_v33 = vmul.f32 %v4156_v22, %v2604_v39 }
 0x1a3   :  { %v2870_v49 = vpop.eup %2869  ;;  %2889 = vrcp.f32 %v1934_v6  ;;  %v2605_v63 = vadd.f32 %v4338_v5, %v4334_v43  ;;  %v1755_v60 = vsub.f32 0.0, %v4409_v40 }
 0x1a4   :  { %v2872_v9 = vpop.eup %2871  ;;  %2124 = vst.msk [vmem:[%s4532_s8 + $0x170] sm:$0xff] %vm2077_vm2, %v2059_v11  ;;  %v2057_v46 = vmul.f32 %v2870_v49, %v4196_v47  ;;  %2891 = vpow2.f32 %v1873_v21  ;;  %v1871_v50 = vmul.f32 1.442695, %v1750_v58  ;;  %v4427_v43 = vadd.f32 %v4145_v36, %v1618_v33 }
 0x1a5   :  { %v2874_v16 = vpop.eup %2873  ;;  %v2060_v7 = vmul.f32 %v2872_v9, %v4203_v61  ;;  %2893 = vpow2.f32 %v1869_v57  ;;  %v2606_v61 = vadd.f32 %v4350_v62, %v4340_v55  ;;  %v1621_v5 = vmul.f32 %v4156_v22, %v2605_v63 }
 0x1a6   :  { %v2876_v4 = vpop.eup %2875  ;;  %2122 = vst.msk [vmem:[%s4532_s8 + $0x160] sm:$0xff] %vm2077_vm2, %v2057_v46  ;;  %v1939_v47 = vadd.f32 1.0, %v2874_v16  ;;  %2895 = vpow2.f32 %v1875_v44  ;;  %v1753_v34 = vsub.f32 0.0, %v4427_v43 }
 0x1a7   :  { %v2878_v23 = vpop.eup %2877  ;;  %2125 = vst.msk [vmem:[%s4532_s8 + $0x178] sm:$0xff] %vm2077_vm2, %v2060_v7  ;;  %v2058_v12 = vmul.f32 %v2876_v4, %v4228_v19  ;;  %v1881_v19 = vmul.f32 1.442695, %v1755_v60  ;;  %v1619_v26 = vmul.f32 %v4156_v22, %v2606_v61  ;;  %v4438_v3 = vadd.f32 %v4145_v36, %v1621_v5 }
 0x1a8   :  { %v2880_v41 = vpop.eup %2879  ;;  %2897 = vrcp.f32 %v1939_v47  ;;  %v1937_v45 = vadd.f32 1.0, %v2878_v23 }
 0x1a9   :  { %v2882_v55 = vpop.eup %2881  ;;  %2123 = vst.msk [vmem:[%s4532_s8 + $0x168] sm:$0xff] %vm2077_vm2, %v2058_v12  ;;  %v1940_v62 = vadd.f32 1.0, %v2880_v41  ;;  %2899 = vpow2.f32 %v1871_v50  ;;  %v4442_v42 = vadd.f32 %v4145_v36, %v1619_v26  ;;  %v1756_v14 = vsub.f32 0.0, %v4438_v3 }
 0x1aa   :  { %v2884_v13 = vpop.eup %2883  ;;  %v2063_v17 = vmul.f32 %v2882_v55, %v4241_v2  ;;  %2901 = vrcp.f32 %v1937_v45  ;;  %v1877_v2 = vmul.f32 1.442695, %v1753_v34 }
 0x1ab   :  { %v2886_v24 = vpop.eup %2885  ;;  %v2061_v38 = vmul.f32 %v2884_v13, %v4252_v52  ;;  %2903 = vrcp.f32 %v1940_v62  ;;  %v1754_v52 = vsub.f32 0.0, %v4442_v42  ;;  %v1883_v8 = vmul.f32 1.442695, %v1756_v14 }
 0x1ac   :  { %v2888_v51 = vpop.eup %2887  ;;  %2128 = vst.msk [vmem:[%s4532_s8 + $0x190] sm:$0xff] %vm2077_vm2, %v2063_v17  ;;  %v1938_v22 = vadd.f32 1.0, %v2886_v24  ;;  %2905 = vpow2.f32 %v1881_v19 }
 0x1ad   :  { %v2890_v15 = vpop.eup %2889  ;;  %2126 = vst.msk [vmem:[%s4532_s8 + $0x180] sm:$0xff] %vm2077_vm2, %v2061_v38  ;;  %v2064_v36 = vmul.f32 %v2888_v51, %v4274_v56  ;;  %v1879_v59 = vmul.f32 1.442695, %v1754_v52 }
 0x1ae   :  { %v2892_v37 = vpop.eup %2891  ;;  %v2062_v28 = vmul.f32 %v2890_v15, %v4282_v27  ;;  %2907 = vrcp.f32 %v1938_v22 }
 0x1af   :  { %2129 = vst.msk [vmem:[%s4532_s8 + $0x198] sm:$0xff] %vm2077_vm2, %v2064_v36  ;;  %v1943_v35 = vadd.f32 1.0, %v2892_v37  ;;  %2909 = vpow2.f32 %v1877_v2  ;;  %v2894_v18 = vpop.eup %2893 }
 0x1b0   :  { %2127 = vst.msk [vmem:[%s4532_s8 + $0x188] sm:$0xff] %vm2077_vm2, %v2062_v28  ;;  %2911 = vpow2.f32 %v1883_v8  ;;  %v2896_v56 = vpop.eup %2895  ;;  %v1941_v27 = vadd.f32 1.0, %v2894_v18 }
 0x1b1   :  { %2913 = vrcp.f32 %v1943_v35  ;;  %v1944_v21 = vadd.f32 1.0, %v2896_v56 }
 0x1b2   :  { %v2898_v6 = vpop.eup %2897  ;;  %2915 = vpow2.f32 %v1879_v59 }
 0x1b3   :  { %v2900_v32 = vpop.eup %2899  ;;  %v2067_v11 = vmul.f32 %v2898_v6, %v4315_v1  ;;  %2917 = vrcp.f32 %v1941_v27 }
 0x1b4   :  { %v2902_v53 = vpop.eup %2901  ;;  %2919 = vrcp.f32 %v1944_v21  ;;  %v1942_v10 = vadd.f32 1.0, %v2900_v32 }
 0x1b5   :  { %v2904_v49 = vpop.eup %2903  ;;  %2132 = vst.msk [vmem:[%s4532_s8 + $0x1b0] sm:$0xff] %vm2077_vm2, %v2067_v11  ;;  %v2065_v25 = vmul.f32 %v2902_v53, %v4327_v31 }
 0x1b6   :  { %v2906_v39 = vpop.eup %2905  ;;  %v2068_v9 = vmul.f32 %v2904_v49, %v4330_v0  ;;  %2921 = vrcp.f32 %v1942_v10 }
 0x1b7   :  { %2130 = vst.msk [vmem:[%s4532_s8 + $0x1a0] sm:$0xff] %vm2077_vm2, %v2065_v25  ;;  %v1947_v1 = vadd.f32 1.0, %v2906_v39 }
 0x1b8   :  { %v2908_v46 = vpop.eup %2907  ;;  %2133 = vst.msk [vmem:[%s4532_s8 + $0x1b8] sm:$0xff] %vm2077_vm2, %v2068_v9 }
 0x1b9   :  { %v2910_v57 = vpop.eup %2909  ;;  %v2066_v44 = vmul.f32 %v2908_v46, %v4354_v54  ;;  %2923 = vrcp.f32 %v1947_v1 }
 0x1ba   :  { %v2912_v31 = vpop.eup %2911  ;;  %v1945_v16 = vadd.f32 1.0, %v2910_v57 }
 0x1bb   :  { %v2914_v0 = vpop.eup %2913  ;;  %2131 = vst.msk [vmem:[%s4532_s8 + $0x1a8] sm:$0xff] %vm2077_vm2, %v2066_v44  ;;  %v1948_v7 = vadd.f32 1.0, %v2912_v31 }
 0x1bc   :  { %v2916_v58 = vpop.eup %2915  ;;  %v2071_v33 = vmul.f32 %v2914_v0, %v4373_v29  ;;  %2925 = vrcp.f32 %v1945_v16 }
 0x1bd   :  { %v2918_v4 = vpop.eup %2917  ;;  %2927 = vrcp.f32 %v1948_v7  ;;  %v1946_v47 = vadd.f32 1.0, %v2916_v58 }
 0x1be   :  { %v2920_v63 = vpop.eup %2919  ;;  %2136 = vst.msk [vmem:[%s4532_s8 + $0x1d0] sm:$0xff] %vm2077_vm2, %v2071_v33  ;;  %v2069_v54 = vmul.f32 %v2918_v4, %v4386_v20 }
 0x1bf   :  { %v2072_v61 = vmul.f32 %v2920_v63, %v4389_v30  ;;  %2929 = vrcp.f32 %v1946_v47 }
 0x1c0   :  { %v2922_v23 = vpop.eup %2921  ;;  %2134 = vst.msk [vmem:[%s4532_s8 + $0x1c0] sm:$0xff] %vm2077_vm2, %v2069_v54 }
 0x1c1   :  { %2137 = vst.msk [vmem:[%s4532_s8 + $0x1d8] sm:$0xff] %vm2077_vm2, %v2072_v61  ;;  %v2070_v29 = vmul.f32 %v2922_v23, %v4396_v48 }
 0x1c3   :  { %v2924_v12 = vpop.eup %2923  ;;  %2135 = vst.msk [vmem:[%s4532_s8 + $0x1c8] sm:$0xff] %vm2077_vm2, %v2070_v29 }
 0x1c4   :  { %v2075_v20 = vmul.f32 %v2924_v12, %v4409_v40 }
 0x1c6   :  { %v2926_v30 = vpop.eup %2925  ;;  %2140 = vst.msk [vmem:[%s4532_s8 + $0x1f0] sm:$0xff] %vm2077_vm2, %v2075_v20 }
 0x1c7   :  { %v2928_v50 = vpop.eup %2927  ;;  %v2073_v60 = vmul.f32 %v2926_v30, %v4427_v43 }
 0x1c8   :  { %v2076_v41 = vmul.f32 %v2928_v50, %v4438_v3 }
 0x1c9   :  { %v2930_v48 = vpop.eup %2929  ;;  %2138 = vst.msk [vmem:[%s4532_s8 + $0x1e0] sm:$0xff] %vm2077_vm2, %v2073_v60 }
 0x1ca   :  { %2141 = vst.msk [vmem:[%s4532_s8 + $0x1f8] sm:$0xff] %vm2077_vm2, %v2076_v41  ;;  %v2074_v40 = vmul.f32 %v2930_v48, %v4442_v42 }
 0x1cc   :  { %2139 = vst.msk [vmem:[%s4532_s8 + $0x1e8] sm:$0xff] %vm2077_vm2, %v2074_v40 }

// kernel: _lambda_.4
= control target key start
LH: loop header
LB: loop body
LE: loop exit
PB: predicated region body
PF: predicated region fallthrough
CT: control target
= control target key end

     0   :  { %s3521_s30 = smov 0   ;;  %s3523_s10 = smov 0   ;;  %s5072_s0 = inlined_call_operand.vmem [shape: f32[2,16,16,4], index: 0, kind: input, shape index: {}, may-alias: {0,1,2}]   ;;  %s5073_s1 = inlined_call_operand.vmem [shape: f32[2,16,16,4], index: 1, kind: input, shape index: {}, may-alias: {0,1,2}]   ;;  %s5074_s2 = inlined_call_operand.vmem [shape: f32[2,16,16,4], index: 2, kind: input, shape index: {}, may-alias: {0,1,2}]   ;;  %s5075_s3 = inlined_call_operand.vmem [shape: bf16[4,4], index: 3, kind: input, shape index: {}]   ;;  %s5076_s4 = inlined_call_operand.vmem [shape: f32[1,4], index: 4, kind: input, shape index: {}]   ;;  %s5077_s5 = inlined_call_operand.vmem [shape: f32[1,4], index: 5, kind: input, shape index: {}]   ;;  %s5078_s6 = inlined_call_operand.vmem [shape: bf16[36,4], index: 6, kind: input, shape index: {}]   ;;  %s5079_s7 = inlined_call_operand.vmem [shape: f32[1,4], index: 7, kind: input, shape index: {}]   ;;  %s5080_s8 = inlined_call_operand.vmem [shape: f32[1,4], index: 8, kind: input, shape index: {}]   ;;  %s5081_s9 = inlined_call_operand.vmem [shape: f32[2,16,16,4], index: 9, kind: output, shape index: {}]  }
   0x1   :  { %s3525_s11 = smov 0  }
   0x2 LB: > { %s31_s12 = sadd.s32 1, %s3455_s10  ;;  %p2910_p0 = scmp.ge.s32.totalorder %s3459_s11, 1  ;;  %s3459_s11 = sphi %s3525_s11, %s19_s11   ;;  %s3455_s10 = sphi %s3523_s10, %s5118_s10   ;;  %s3451_s30 = sphi %s3521_s30, %s5117_s30  }
   0x3   : > { %p33_p1 = scmp.ge.s32.totalorder %s31_s12, 2  ;;  %p373_p2 = scmp.lt.s32.totalorder %s3459_s11, 3 }
   0x5   : > { %s5120_s12 = smov (%p33_p1, %s31_s12), 0  ;;  %p374_p3 = pnand %p2910_p0, %p373_p2 }
   0x7   : > { %377 = sbr.rel (%p374_p3) target bundleno = 903 (0x387), region = 56 }
   0xe   : > { %v550_v0 = vld [vmem:[%s5075_s3] sm:$0x3]  ;;  %vm600_vm0 = vcmask 1041408   ;;  %p446_p4 = scmp.lt.s32.totalorder %s3451_s30, 1  ;;  %v3461_v2 = vmov 0.0   ;;  %vm3462_vm1 = vmmov 0  }
   0xf   : > { %v602_v1 = vsel %vm600_vm0, %v550_v0, 0  ;;  %3092 = vmatprep.subr.msk.bf16.mxu0 %vm600_vm0, %v550_v0  ;;  %3048 = vmatprep.subr.bf16.mxu1 %v3461_v2  ;;  %vm551_vm2 = vcmask 31744   ;;  %v3619_v57 = vld [vmem:[%s5076_s4] ss:$0 sm:$0xff]  ;;  %vm1209_vm3 = vcmask 1040384   ;;  %vm1615_vm4 = vcmask 1046528  }
  0x10   : > { %3009 = vmatpush3.bf16.msra.mxu0 %v602_v1  ;;  %s5122_s30 = smov (!%p446_p4, %s3451_s30), 1  ;;  %3049 = vmatpush3.bf16.msra.mxu1 %v602_v1  ;;  %v3624_v59 = vld [vmem:[%s5077_s5] ss:$0 sm:$0xff]  ;;  %s3464_s13 = smov 12   ;;  %vm1390_vm5 = vsmask.f32 7424 }
  0x11   : > { %3042 = vmatprep.subr.bf16.mxu0 %v3461_v2  ;;  %3050 = vmatprep.mubr.msk.bf16.mxu1 %vm3462_vm1, %v3461_v2  ;;  %s3548_s15 = sshll.u32 %s5122_s30, 8  ;;  %s3463_s30 = smov 24   ;;  %vm1986_vm6 = vcmask 64512   ;;  %vm2019_vm7 = vcmask 97280   ;;  %vm2052_vm8 = vcmask 130048   ;;  %vm2085_vm9 = vcmask 162816  }
  0x12   : > { %s3554_s18 = scalar_lea.vmem %s5072_s0, %s3548_s15  ;;  %s2965_s19 = sadd.s32 240, %s3548_s15  ;;  %vm2118_vm10 = vcmask 195584   ;;  %vm2151_vm11 = vcmask 228352   ;;  %vm2184_vm12 = vcmask 261120   ;;  %vm2237_vm13 = vcmask 293888  }
  0x13   : > { %v502_v3 = vld [vmem:[%s3554_s18] sm:$0xff]  ;;  %v503_v4 = vld [vmem:[%s3554_s18 + $0x8] sm:$0xff]  ;;  %v504_v5 = vld [vmem:[%s3554_s18 + $0x10] sm:$0xff]  ;;  %s485_s22 = scalar_lea.vmem %s5074_s2, %s2965_s19  ;;  %s468_s25 = scalar_lea.vmem %s5073_s1, %s3548_s15 }
  0x14   : > { %v534_v6 = vpack.c.bf16 %v503_v4, %v502_v3  ;;  %v505_v7 = vld [vmem:[%s3554_s18 + $0x18] sm:$0xff]  ;;  %v506_v8 = vld [vmem:[%s3554_s18 + $0x20] sm:$0xff]  ;;  %v507_v9 = vld [vmem:[%s3554_s18 + $0x28] sm:$0xff]  ;;  %s3465_s14 = smov 20   ;;  %s3466_s16 = smov 32  }
  0x15   : > { %v535_v10 = vpack.c.bf16 %v505_v7, %v504_v5  ;;  %v536_v11 = vpack.c.bf16 %v507_v9, %v506_v8  ;;  %v508_v12 = vld [vmem:[%s3554_s18 + $0x30] sm:$0xff]  ;;  %v509_v13 = vld [vmem:[%s3554_s18 + $0x38] sm:$0xff]  ;;  %v510_v14 = vld [vmem:[%s3554_s18 + $0x40] sm:$0xff]  ;;  %s3467_s17 = smov 8   ;;  %s3468_s19 = smov 16  }
  0x16   : > { %3010 = vmatprep.mubr.msk.bf16.mxu0 %vm551_vm2, %v534_v6  ;;  %v511_v15 = vld [vmem:[%s3554_s18 + $0x48] sm:$0xff]  ;;  %v537_v16 = vpack.c.bf16 %v509_v13, %v508_v12  ;;  %v1104_v18 = vld [vmem:[%s485_s22] sm:$0xff]  ;;  %v512_v21 = vld [vmem:[%s3554_s18 + $0x50] sm:$0xff]  ;;  %s3469_s20 = smov 4   ;;  %s3470_s21 = smov 28  }
  0x17   : > { %3011 = vmatmul.mubr.msk.bf16.vlgmr.msra.gmra.mrb[0].mxu0 %vm551_vm2, %v535_v10  ;;  %v538_v17 = vpack.c.bf16 %v511_v15, %v510_v14  ;;  %v1105_v19 = vld [vmem:[%s485_s22 + $0x8] sm:$0xff]  ;;  %v513_v22 = vld [vmem:[%s3554_s18 + $0x58] sm:$0xff]  ;;  %v514_v23 = vld [vmem:[%s3554_s18 + $0x60] sm:$0xff] }
  0x18   : > { %3014 = vmatprep.mubr.msk.bf16.mxu0 %vm551_vm2, %v536_v11  ;;  %3043 = vmatpush3.bf16.msra.mxu0 %v602_v1  ;;  %v1106_v20 = vpack.c.bf16 %v1105_v19, %v1104_v18  ;;  %v515_v24 = vld [vmem:[%s3554_s18 + $0x68] sm:$0xff]  ;;  %v539_v25 = vpack.c.bf16 %v513_v22, %v512_v21  ;;  %v516_v27 = vld [vmem:[%s3554_s18 + $0x70] sm:$0xff]  ;;  %v517_v28 = vld [vmem:[%s3554_s18 + $0x78] sm:$0xff] }
  0x19   : > { %v540_v26 = vpack.c.bf16 %v515_v24, %v514_v23  ;;  %v518_v29 = vld [vmem:[%s3554_s18 + $0x80] sm:$0xff]  ;;  %v519_v30 = vld [vmem:[%s3554_s18 + $0x88] sm:$0xff]  ;;  %v541_v31 = vpack.c.bf16 %v517_v28, %v516_v27  ;;  %v520_v33 = vld [vmem:[%s3554_s18 + $0x90] sm:$0xff] }
  0x1a   : > { %3051 = vmatmul.mubr.msk.bf16.vlgmr.msra.gmra.mrb[0].mxu1 %vm551_vm2, %v1106_v20  ;;  %v542_v32 = vpack.c.bf16 %v519_v30, %v518_v29  ;;  %v521_v34 = vld [vmem:[%s3554_s18 + $0x98] sm:$0xff]  ;;  %v522_v35 = vld [vmem:[%s3554_s18 + $0xa0] sm:$0xff]  ;;  %v523_v36 = vld [vmem:[%s3554_s18 + $0xa8] sm:$0xff] }
  0x1b   : > { %v543_v37 = vpack.c.bf16 %v521_v34, %v520_v33  ;;  %v544_v38 = vpack.c.bf16 %v523_v36, %v522_v35  ;;  %v524_v39 = vld [vmem:[%s3554_s18 + $0xb0] sm:$0xff]  ;;  %v525_v40 = vld [vmem:[%s3554_s18 + $0xb8] sm:$0xff]  ;;  %v526_v41 = vld [vmem:[%s3554_s18 + $0xc0] sm:$0xff] }
  0x1c   : > { %v527_v42 = vld [vmem:[%s3554_s18 + $0xc8] sm:$0xff]  ;;  %v545_v43 = vpack.c.bf16 %v525_v40, %v524_v39  ;;  %v528_v45 = vld [vmem:[%s3554_s18 + $0xd0] sm:$0xff]  ;;  %v529_v46 = vld [vmem:[%s3554_s18 + $0xd8] sm:$0xff] }
  0x1d   : > { %v546_v44 = vpack.c.bf16 %v527_v42, %v526_v41  ;;  %v530_v47 = vld [vmem:[%s3554_s18 + $0xe0] sm:$0xff]  ;;  %v531_v48 = vld [vmem:[%s3554_s18 + $0xe8] sm:$0xff]  ;;  %v547_v49 = vpack.c.bf16 %v529_v46, %v528_v45  ;;  %v532_v51 = vld [vmem:[%s3554_s18 + $0xf0] sm:$0xff] }
  0x1e   : > { %v548_v50 = vpack.c.bf16 %v531_v48, %v530_v47  ;;  %v533_v52 = vld [vmem:[%s3554_s18 + $0xf8] sm:$0xff]  ;;  %v1035_v54 = vld [vmem:[%s468_s25] sm:$0xff]  ;;  %v1036_v55 = vld [vmem:[%s468_s25 + $0x8] sm:$0xff] }
  0x1f   : > { %3015 = vmatmul.mubr.msk.bf16.gmra.mrb[4].mxu0 %vm551_vm2, %v537_v16  ;;  %v549_v53 = vpack.c.bf16 %v533_v52, %v532_v51  ;;  %v1037_v56 = vpack.c.bf16 %v1036_v55, %v1035_v54 }
  0x20   : > { %3018 = vmatprep.mubr.msk.bf16.mxu0 %vm551_vm2, %v538_v17 }
  0x27   : > { %3019 = vmatmul.mubr.msk.bf16.gmra.mrb[8].mxu0 %vm551_vm2, %v539_v25 }
  0x28   : > { %3022 = vmatprep.mubr.msk.bf16.mxu0 %vm551_vm2, %v540_v26 }
  0x2f   : > { %3023 = vmatmul.mubr.msk.bf16.gmra.mrb[12].mxu0 %vm551_vm2, %v541_v31 }
  0x30   : > { %3026 = vmatprep.mubr.msk.bf16.mxu0 %vm551_vm2, %v542_v32 }
  0x37   : > { %3027 = vmatmul.mubr.msk.bf16.gmra.mrb[16].mxu0 %vm551_vm2, %v543_v37 }
  0x38   : > { %3030 = vmatprep.mubr.msk.bf16.mxu0 %vm551_vm2, %v544_v38 }
  0x3f   : > { %3031 = vmatmul.mubr.msk.bf16.gmra.mrb[20].mxu0 %vm551_vm2, %v545_v43 }
  0x40   : > { %3034 = vmatprep.mubr.msk.bf16.mxu0 %vm551_vm2, %v546_v44 }
  0x47   : > { %3035 = vmatmul.mubr.msk.bf16.gmra.mrb[24].mxu0 %vm551_vm2, %v547_v49 }
  0x48   : > { %3038 = vmatprep.mubr.msk.bf16.mxu0 %vm551_vm2, %v548_v50 }
  0x4f   : > { %3039 = vmatmul.mubr.msk.bf16.gmra.mrb[28].mxu0 %vm551_vm2, %v549_v53 }
  0x50   : > { %3044 = vmatprep.mubr.msk.bf16.mxu0 %vm3462_vm1, %v3461_v2 }
  0x57   : > { %3045 = vmatmul.mubr.msk.bf16.vlgmr.msra.gmra.mrb[32].mxu0 %vm551_vm2, %v1037_v56 }
  0xea   : > { %v3012_v58 = vpop.f32.mrb[0].mxu0 }
  0xeb   : > { %v774_v60 = vmul.f32 %v3012_v58, %v3619_v57  ;;  %v638_v61 = vpop.f32.mrb[1].mxu0 }
  0xec   : > { %v772_v62 = vmul.f32 %v3619_v57, %v638_v61  ;;  %v3013_v63 = vpop.f32.mrb[2].mxu0 }
  0xed   : > { %v3629_v0 = vadd.f32 %v3624_v59, %v774_v60  ;;  %v775_v1 = vmul.f32 %v3013_v63, %v3619_v57  ;;  %v641_v2 = vpop.f32.mrb[3].mxu0 }
  0xee   : > { %v3633_v3 = vadd.f32 %v3624_v59, %v772_v62  ;;  %v773_v4 = vmul.f32 %v3619_v57, %v641_v2 }
  0xef   : > { %v845_v5 = vsub.f32 0.0, %v3629_v0  ;;  %v3638_v6 = vadd.f32 %v3624_v59, %v775_v1 }
  0xf0   : > { %v843_v7 = vsub.f32 0.0, %v3633_v3  ;;  %v3642_v8 = vadd.f32 %v3624_v59, %v773_v4 }
  0xf1   : > { %v879_v9 = vmul.f32 1.442695, %v845_v5  ;;  %v846_v10 = vsub.f32 0.0, %v3638_v6 }
  0xf2   : > { %v875_v11 = vmul.f32 1.442695, %v843_v7  ;;  %v844_v12 = vsub.f32 0.0, %v3642_v8  ;;  %v3016_v13 = vpop.f32.mrb[4].mxu0 }
  0xf3   : > { %3131 = vpow2.f32 %v879_v9  ;;  %v881_v14 = vmul.f32 1.442695, %v846_v10  ;;  %v778_v15 = vmul.f32 %v3016_v13, %v3619_v57  ;;  %v654_v16 = vpop.f32.mrb[5].mxu0 }
  0xf4   : > { %3133 = vpow2.f32 %v875_v11  ;;  %v877_v17 = vmul.f32 1.442695, %v844_v12  ;;  %v776_v18 = vmul.f32 %v3619_v57, %v654_v16  ;;  %v3017_v19 = vpop.f32.mrb[6].mxu0 }
  0xf5   : > { %3135 = vpow2.f32 %v881_v14  ;;  %v3649_v20 = vadd.f32 %v3624_v59, %v778_v15  ;;  %v779_v21 = vmul.f32 %v3017_v19, %v3619_v57  ;;  %v657_v22 = vpop.f32.mrb[7].mxu0 }
  0xf6   : > { %3137 = vpow2.f32 %v877_v17  ;;  %v3653_v23 = vadd.f32 %v3624_v59, %v776_v18  ;;  %v777_v24 = vmul.f32 %v3619_v57, %v657_v22 }
  0xf7   : > { %v849_v25 = vsub.f32 0.0, %v3649_v20  ;;  %v3658_v26 = vadd.f32 %v3624_v59, %v779_v21 }
  0xf8   : > { %v847_v27 = vsub.f32 0.0, %v3653_v23  ;;  %v3662_v28 = vadd.f32 %v3624_v59, %v777_v24 }
  0xf9   : > { %v887_v29 = vmul.f32 1.442695, %v849_v25  ;;  %v850_v30 = vsub.f32 0.0, %v3658_v26 }
  0xfa   : > { %v883_v31 = vmul.f32 1.442695, %v847_v27  ;;  %v848_v32 = vsub.f32 0.0, %v3662_v28  ;;  %v3020_v33 = vpop.f32.mrb[8].mxu0 }
  0xfb   : > { %3139 = vpow2.f32 %v887_v29  ;;  %v889_v34 = vmul.f32 1.442695, %v850_v30  ;;  %v782_v35 = vmul.f32 %v3020_v33, %v3619_v57  ;;  %v670_v36 = vpop.f32.mrb[9].mxu0 }
  0xfc   : > { %3141 = vpow2.f32 %v883_v31  ;;  %v885_v37 = vmul.f32 1.442695, %v848_v32  ;;  %v780_v38 = vmul.f32 %v3619_v57, %v670_v36  ;;  %v3021_v39 = vpop.f32.mrb[10].mxu0 }
  0xfd   : > { %v3132_v40 = vpop.eup %3131  ;;  %3143 = vpow2.f32 %v889_v34  ;;  %v3669_v41 = vadd.f32 %v3624_v59, %v782_v35  ;;  %v783_v42 = vmul.f32 %v3021_v39, %v3619_v57  ;;  %v673_v43 = vpop.f32.mrb[11].mxu0 }
  0xfe   : > { %v3134_v44 = vpop.eup %3133  ;;  %v941_v45 = vadd.f32 1.0, %v3132_v40  ;;  %3145 = vpow2.f32 %v885_v37  ;;  %v3673_v46 = vadd.f32 %v3624_v59, %v780_v38  ;;  %v781_v47 = vmul.f32 %v3619_v57, %v673_v43 }
  0xff   : > { %v3136_v48 = vpop.eup %3135  ;;  %v939_v49 = vadd.f32 1.0, %v3134_v44  ;;  %v853_v50 = vsub.f32 0.0, %v3669_v41  ;;  %v3678_v51 = vadd.f32 %v3624_v59, %v783_v42 }
 0x100   : > { %v3138_v52 = vpop.eup %3137  ;;  %3147 = vrcp.f32 %v941_v45  ;;  %v942_v53 = vadd.f32 1.0, %v3136_v48  ;;  %v851_v54 = vsub.f32 0.0, %v3673_v46  ;;  %v3682_v55 = vadd.f32 %v3624_v59, %v781_v47 }
 0x101   : > { %3149 = vrcp.f32 %v939_v49  ;;  %v940_v56 = vadd.f32 1.0, %v3138_v52  ;;  %v895_v58 = vmul.f32 1.442695, %v853_v50  ;;  %v854_v60 = vsub.f32 0.0, %v3678_v51 }
 0x102   : > { %3151 = vrcp.f32 %v942_v53  ;;  %v891_v61 = vmul.f32 1.442695, %v851_v54  ;;  %v852_v62 = vsub.f32 0.0, %v3682_v55  ;;  %v3024_v63 = vpop.f32.mrb[12].mxu0 }
 0x103   : > { %3153 = vrcp.f32 %v940_v56  ;;  %v897_v1 = vmul.f32 1.442695, %v854_v60  ;;  %v786_v2 = vmul.f32 %v3024_v63, %v3619_v57  ;;  %v686_v4 = vpop.f32.mrb[13].mxu0 }
 0x104   : > { %3155 = vpow2.f32 %v895_v58  ;;  %v893_v5 = vmul.f32 1.442695, %v852_v62  ;;  %v784_v7 = vmul.f32 %v3619_v57, %v686_v4  ;;  %v3025_v9 = vpop.f32.mrb[14].mxu0 }
 0x105   : > { %v3140_v10 = vpop.eup %3139  ;;  %3157 = vpow2.f32 %v891_v61  ;;  %v3689_v11 = vadd.f32 %v3624_v59, %v786_v2  ;;  %v787_v12 = vmul.f32 %v3025_v9, %v3619_v57  ;;  %v689_v13 = vpop.f32.mrb[15].mxu0 }
 0x106   : > { %v3142_v14 = vpop.eup %3141  ;;  %v945_v15 = vadd.f32 1.0, %v3140_v10  ;;  %3159 = vpow2.f32 %v897_v1  ;;  %v3693_v16 = vadd.f32 %v3624_v59, %v784_v7  ;;  %v785_v17 = vmul.f32 %v3619_v57, %v689_v13 }
 0x107   : > { %v3144_v18 = vpop.eup %3143  ;;  %v943_v19 = vadd.f32 1.0, %v3142_v14  ;;  %3161 = vpow2.f32 %v893_v5  ;;  %v857_v21 = vsub.f32 0.0, %v3689_v11  ;;  %v3698_v22 = vadd.f32 %v3624_v59, %v787_v12 }
 0x108   : > { %v3146_v24 = vpop.eup %3145  ;;  %3163 = vrcp.f32 %v945_v15  ;;  %v946_v25 = vadd.f32 1.0, %v3144_v18  ;;  %v855_v27 = vsub.f32 0.0, %v3693_v16  ;;  %v3702_v29 = vadd.f32 %v3624_v59, %v785_v17 }
 0x109   : > { %3165 = vrcp.f32 %v943_v19  ;;  %v944_v30 = vadd.f32 1.0, %v3146_v24  ;;  %v903_v31 = vmul.f32 1.442695, %v857_v21  ;;  %v858_v32 = vsub.f32 0.0, %v3698_v22 }
 0x10a   : > { %v3148_v33 = vpop.eup %3147  ;;  %3167 = vrcp.f32 %v946_v25  ;;  %v899_v34 = vmul.f32 1.442695, %v855_v27  ;;  %v856_v35 = vsub.f32 0.0, %v3702_v29  ;;  %v3706_v36 = vpop.f32.mrb[16].mxu0 }
 0x10b   : > { %v3150_v37 = vpop.eup %3149  ;;  %v1005_v38 = vmul.f32 %v3148_v33, %v3629_v0  ;;  %3169 = vrcp.f32 %v944_v30  ;;  %v905_v39 = vmul.f32 1.442695, %v858_v32  ;;  %v3709_v40 = vpop.f32.mrb[17].mxu0 }
 0x10c   : > { %v3152_v42 = vpop.eup %3151  ;;  %v1003_v43 = vmul.f32 %v3150_v37, %v3633_v3  ;;  %3171 = vpow2.f32 %v903_v31  ;;  %v901_v44 = vmul.f32 1.442695, %v856_v35  ;;  %v3712_v45 = vpop.f32.mrb[18].mxu0 }
 0x10d   : > { %v3154_v47 = vpop.eup %3153  ;;  %v1216_v48 = vrot.slane %v1005_v38, 7  ;;  %v1006_v49 = vmul.f32 %v3152_v42, %v3638_v6  ;;  %3173 = vpow2.f32 %v899_v34  ;;  %v3715_v50 = vpop.f32.mrb[19].mxu0 }
 0x10e   : > { %v3156_v0 = vpop.eup %3155  ;;  %v1213_v52 = vrot.slane %v1003_v43, 7  ;;  %v1004_v53 = vmul.f32 %v3154_v47, %v3642_v8  ;;  %3175 = vpow2.f32 %v905_v39 }
 0x10f   : > { %v3158_v54 = vpop.eup %3157  ;;  %v1217_v56 = vrot.slane %v1006_v49, 7  ;;  %v949_v3 = vadd.f32 1.0, %v3156_v0  ;;  %3177 = vpow2.f32 %v901_v44  ;;  %v1320_v60 = vsel %vm1209_vm3, 0.0, %v1216_v48 }
 0x110   : > { %v3160_v58 = vpop.eup %3159  ;;  %v1319_v61 = vsel %vm1209_vm3, 0.0, %v1213_v52  ;;  %v1214_v62 = vrot.slane %v1004_v53, 7  ;;  %v947_v6 = vadd.f32 1.0, %v3158_v54 }
 0x111   : > { %v3162_v63 = vpop.eup %3161  ;;  %v1218_v1 = vsel %vm1209_vm3, %v1216_v48, %v1217_v56  ;;  %v1338_v2 = vsel %vm1209_vm3, %v1217_v56, 0.0  ;;  %3179 = vrcp.f32 %v949_v3  ;;  %v950_v8 = vadd.f32 1.0, %v3160_v58 }
 0x112   : > { %v3164_v4 = vpop.eup %3163  ;;  %v3722_v5 = vpack.c.bf16 %v1218_v1, %v1320_v60  ;;  %v3724_v7 = vpack.c.bf16 %v1338_v2, %v1338_v2  ;;  %v1215_v9 = vsel %vm1209_vm3, %v1213_v52, %v1214_v62  ;;  %v1337_v10 = vsel %vm1209_vm3, %v1214_v62, 0.0  ;;  %v3728_v12 = vpop.f32.mrb[20].mxu0 }
 0x113   : > { %v3166_v13 = vpop.eup %3165  ;;  %v3730_v14 = vpack.c.bf16 %v1215_v9, %v1319_v61  ;;  %v3732_v15 = vpack.c.bf16 %v1337_v10, %v1337_v10  ;;  %v1009_v17 = vmul.f32 %v3164_v4, %v3649_v20  ;;  %3181 = vrcp.f32 %v947_v6  ;;  %v3735_v18 = vpop.f32.mrb[21].mxu0 }
 0x114   : > { %v3168_v19 = vpop.eup %3167  ;;  %v1007_v21 = vmul.f32 %v3166_v13, %v3653_v23  ;;  %3183 = vrcp.f32 %v950_v8  ;;  %v948_v24 = vadd.f32 1.0, %v3162_v63  ;;  %1858 = vrot.lane.b32.xlu0 %v3722_v5, %s3463_s30  ;;  %1764 = vrot.lane.b32.xlu1 %v3722_v5, %s3464_s13  ;;  %v1622_v25 = vrot.slane %v3722_v5, 1  ;;  %v3743_v27 = vpop.f32.mrb[22].mxu0 }
 0x115   : > { %v3170_v20 = vpop.eup %3169  ;;  %v1222_v30 = vrot.slane %v1009_v17, 7  ;;  %v3746_v31 = vmul.f32 %v3168_v19, %v3658_v26  ;;  %v1623_v23 = vrot.slane %v3724_v7, 1  ;;  %v3749_v32 = vpop.f32.mrb[23].mxu0  ;;  %v1619_v37 = vrot.slane %v3730_v14, 1 }
 0x116   : > { %v3172_v33 = vpop.eup %3171  ;;  %v1219_v34 = vrot.slane %v1007_v21, 7  ;;  %v3752_v35 = vmul.f32 %v3170_v20, %v3662_v28  ;;  %3185 = vrcp.f32 %v948_v24  ;;  %v1620_v26 = vrot.slane %v3732_v15, 1 }
 0x117   : > { %v3174_v38 = vpop.eup %3173  ;;  %v1223_v39 = vrot.slane %v3746_v31, 7  ;;  %v1624_v42 = vsel %vm1615_vm4, %v1622_v25, %v1623_v23  ;;  %v953_v43 = vadd.f32 1.0, %v3172_v33  ;;  %v1322_v49 = vsel %vm1209_vm3, 0.0, %v1222_v30 }
 0x118   : > { %v3176_v44 = vpop.eup %3175  ;;  %v1220_v47 = vrot.slane %v3752_v35, 7  ;;  %1828 = vrot.lane.b32.xlu1 %v1624_v42, %s3465_s14  ;;  %1762 = vrot.lane.b32.xlu0 %v3730_v14, %s3464_s13  ;;  %v951_v28 = vadd.f32 1.0, %v3174_v38  ;;  %v790_v52 = vmul.f32 %v3706_v36, %v3619_v57  ;;  %v1321_v53 = vsel %vm1209_vm3, 0.0, %v1219_v34 }
 0x119   : > { %v3178_v48 = vpop.eup %3177  ;;  %v1224_v0 = vsel %vm1209_vm3, %v1222_v30, %v1223_v39  ;;  %3187 = vrcp.f32 %v953_v43  ;;  %v1621_v61 = vsel %vm1615_vm4, %v1619_v37, %v1620_v26  ;;  %v1418_v62 = vshll.u32 %v3722_v5, 16 }
 0x11a   : > { %v3769_v54 = vpack.c.bf16 %v1224_v0, %v1322_v49  ;;  %v1221_v56 = vsel %vm1209_vm3, %v1219_v34, %v1220_v47  ;;  %v3774_v3 = vpop.f32.mrb[24].mxu0  ;;  %3189 = vrcp.f32 %v951_v28  ;;  %v1423_v63 = vshll.u32 %v3724_v7, 16 }
 0x11b   : > { %v3180_v58 = vpop.eup %3179  ;;  %v3776_v60 = vpack.c.bf16 %v1221_v56, %v1321_v53  ;;  %v3780_v36 = vpop.f32.mrb[25].mxu0  ;;  %v954_v1 = vadd.f32 1.0, %v3176_v44  ;;  %v952_v2 = vadd.f32 1.0, %v3178_v48  ;;  %v1416_v9 = vshrl.u32 %v3722_v5, 16 }
 0x11c   : > { %v1013_v6 = vmul.f32 %v3180_v58, %v3669_v41  ;;  %1922 = vrot.lane.b32.xlu0 %v1624_v42, %s3466_s16  ;;  %1732 = vrot.lane.b32.xlu1 %v1621_v61, %s3467_s17  ;;  %v3786_v8 = vpop.f32.mrb[26].mxu0  ;;  %v1420_v10 = vrot.slane %v1418_v62, 1  ;;  %v3790_v13 = vadd.f32 %v3624_v59, %v790_v52  ;;  %v788_v41 = vmul.f32 %v3619_v57, %v3709_v40 }
 0x11d   : > { %v3182_v4 = vpop.eup %3181  ;;  %v3794_v17 = vpop.f32.mrb[27].mxu0  ;;  %3191 = vrcp.f32 %v954_v1  ;;  %v1406_v24 = vshll.u32 %v3730_v14, 16  ;;  %v1425_v30 = vrot.slane %v1423_v63, 1  ;;  %v1404_v52 = vshrl.u32 %v3730_v14, 16 }
 0x11e   : > { %v3184_v19 = vpop.eup %3183  ;;  %v1228_v21 = vrot.slane %v1013_v6, 7  ;;  %v1011_v7 = vmul.f32 %v3182_v4, %v3673_v46  ;;  %v1421_v20 = vor.u32 %v1420_v10, %v1416_v9  ;;  %3193 = vrcp.f32 %v952_v2 }
 0x11f   : > { %v3799_v25 = vmul.f32 %v3184_v19, %v3678_v51  ;;  %v1408_v51 = vrot.slane %v1406_v24, 1  ;;  %v3810_v38 = vadd.f32 %v3624_v59, %v788_v41  ;;  %v861_v28 = vsub.f32 0.0, %v3790_v13 }
 0x120   : > { %v3186_v23 = vpop.eup %3185  ;;  %v1225_v33 = vrot.slane %v1011_v7, 7  ;;  %1734 = vrot.lane.b32.xlu0 %v1624_v42, %s3467_s17  ;;  %v1324_v40 = vsel %vm1209_vm3, 0.0, %v1228_v21  ;;  %v1426_v46 = vsel %vm1390_vm5, %v1421_v20, %v1425_v30  ;;  %v1411_v53 = vshll.u32 %v3732_v15, 16 }
 0x121   : > { %v1229_v34 = vrot.slane %v3799_v25, 7  ;;  %v3805_v37 = vmul.f32 %v3186_v23, %v3682_v55  ;;  %1796 = vrot.lane.b32.xlu1 %v1426_v46, %s3468_s19  ;;  %v1340_v63 = vsel %vm1209_vm3, %v1223_v39, 0.0  ;;  %v1409_v15 = vor.u32 %v1408_v51, %v1404_v52 }
 0x122   : > { %v3812_v26 = vpop.f32.mrb[28].mxu0  ;;  %v1323_v42 = vsel %vm1209_vm3, 0.0, %v1225_v33  ;;  %v911_v2 = vmul.f32 1.442695, %v861_v28  ;;  %v859_v4 = vsub.f32 0.0, %v3810_v38  ;;  %v1413_v31 = vrot.slane %v1411_v53, 1 }
 0x123   : > { %v3188_v43 = vpop.eup %3187  ;;  %v1230_v44 = vsel %vm1209_vm3, %v1228_v21, %v1229_v34  ;;  %v1226_v55 = vrot.slane %v3805_v37, 7  ;;  %v3820_v48 = vpop.f32.mrb[29].mxu0  ;;  %v1363_v39 = vpack.c.bf16 %v1340_v63, %v1340_v63  ;;  %v1442_v23 = vshll.u32 %v3769_v54, 16 }
 0x124   : > { %v3822_v49 = vpack.c.bf16 %v1230_v44, %v1324_v40  ;;  %v1017_v0 = vmul.f32 %v3188_v43, %v3689_v11  ;;  %1826 = vrot.lane.b32.xlu0 %v1621_v61, %s3465_s14  ;;  %v3828_v56 = vpop.f32.mrb[30].mxu0  ;;  %v3190_v58 = vpop.eup %3189  ;;  %3195 = vpow2.f32 %v911_v2  ;;  %v1414_v7 = vsel %vm1390_vm5, %v1409_v15, %v1413_v31 }
 0x125   : > { %v1227_v62 = vsel %vm1209_vm3, %v1225_v33, %v1226_v55  ;;  %v3833_v6 = vpop.f32.mrb[31].mxu0  ;;  %v1015_v61 = vmul.f32 %v3190_v58, %v3693_v16  ;;  %1702 = vrot.lane.b32.xlu1 %v1426_v46, %s3469_s20  ;;  %v1339_v16 = vsel %vm1209_vm3, %v1220_v47, 0.0  ;;  %v907_v24 = vmul.f32 1.442695, %v859_v4 }
 0x126   : > { %v3838_v11 = vpack.c.bf16 %v1227_v62, %v1323_v42  ;;  %v1234_v1 = vrot.slane %v1017_v0, 7  ;;  %v791_v35 = vmul.f32 %v3712_v45, %v3619_v57  ;;  %v789_v40 = vmul.f32 %v3619_v57, %v3715_v50 }
 0x127   : > { %v3192_v9 = vpop.eup %3191  ;;  %v1231_v10 = vrot.slane %v1015_v61, 7  ;;  %3197 = vpow2.f32 %v907_v24  ;;  %v3870_v51 = vpack.c.bf16 %v1339_v16, %v1339_v16  ;;  %v1628_v45 = vrot.slane %v3769_v54, 1 }
 0x128   : > { %1890 = vrot.lane.b32.xlu0 %v1426_v46, %s3470_s21  ;;  %v3194_v41 = vpop.eup %3193  ;;  %v3845_v19 = vmul.f32 %v3192_v9, %v3698_v22  ;;  %v1326_v30 = vsel %vm1209_vm3, 0.0, %v1234_v1  ;;  %v1629_v42 = vrot.slane %v1363_v39, 1  ;;  %v3886_v52 = vadd.f32 %v3624_v59, %v791_v35 }
 0x129   : > { %v3851_v21 = vmul.f32 %v3194_v41, %v3702_v29  ;;  %1768 = vrot.lane.b32.xlu1 %v3769_v54, %s3464_s13  ;;  %v1325_v29 = vsel %vm1209_vm3, 0.0, %v1231_v10  ;;  %v1444_v53 = vrot.slane %v1442_v23, 1  ;;  %v3890_v58 = vadd.f32 %v3624_v59, %v789_v40 }
 0x12a   : > { %v3856_v20 = vpop.f32.mrb[32].mxu0  ;;  %v1235_v22 = vrot.slane %v3845_v19, 7  ;;  %v3893_v62 = vsel %vm1615_vm4, %v1628_v45, %v1629_v42  ;;  %v1625_v63 = vrot.slane %v3776_v60, 1  ;;  %v1626_v61 = vrot.slane %v3870_v51, 1 }
 0x12b   : > { %v3046_v47 = vpop.f32.mrb[33].mxu0  ;;  %v1232_v33 = vrot.slane %v3851_v21, 7  ;;  %v862_v15 = vsub.f32 0.0, %v3886_v52  ;;  %v1447_v2 = vshll.u32 %v1363_v39, 16  ;;  %v860_v4 = vsub.f32 0.0, %v3890_v58 }
 0x12c   : > { %1700 = vrot.lane.b32.xlu0 %v1414_v7, %s3469_s20  ;;  %v3868_v46 = vpop.f32.mrb[34].mxu0  ;;  %v1236_v43 = vsel %vm1209_vm3, %v1234_v1, %v1235_v22  ;;  %v1440_v1 = vshrl.u32 %v3769_v54, 16  ;;  %v794_v9 = vmul.f32 %v3728_v12, %v3619_v57  ;;  %v1342_v31 = vsel %vm1209_vm3, %v1229_v34, 0.0 }
 0x12d   : > { %v3047_v44 = vpop.f32.mrb[35].mxu0  ;;  %v3876_v28 = vpack.c.bf16 %v1236_v43, %v1326_v30  ;;  %v1233_v0 = vsel %vm1209_vm3, %v1231_v10, %v1232_v33  ;;  %1860 = vrot.lane.b32.xlu1 %v3776_v60, %s3463_s30  ;;  %v1430_v41 = vshll.u32 %v3776_v60, 16  ;;  %v913_v16 = vmul.f32 1.442695, %v862_v15 }
 0x12e   : > { %v3883_v50 = vpack.c.bf16 %v1233_v0, %v1325_v29  ;;  %v3196_v10 = vpop.eup %3195  ;;  %v1445_v39 = vor.u32 %v1444_v53, %v1440_v1  ;;  %v909_v30 = vmul.f32 1.442695, %v860_v4  ;;  %v3913_v23 = vadd.f32 %v3624_v59, %v794_v9  ;;  %v3955_v4 = vpop.f32.mrb[0].mxu1 }
 0x12f   : > { %v957_v24 = vadd.f32 1.0, %v3196_v10  ;;  %v3916_v12 = vsel %vm1615_vm4, %v1625_v63, %v1626_v61  ;;  %3199 = vpow2.f32 %v913_v16  ;;  %v3921_v35 = vpack.c.bf16 %v1342_v31, %v1342_v31  ;;  %v3052_v31 = vpop.f32.mrb[1].mxu1 }
 0x130   : > { %1794 = vrot.lane.b32.xlu0 %v1414_v7, %s3468_s19  ;;  %v792_v7 = vmul.f32 %v3619_v57, %v3735_v18  ;;  %v1449_v18 = vrot.slane %v1447_v2, 1  ;;  %v865_v47 = vsub.f32 0.0, %v3913_v23  ;;  %v1428_v40 = vshrl.u32 %v3776_v60, 16 }
 0x131   : > { %1832 = vrot.lane.b32.xlu1 %v3893_v62, %s3465_s14  ;;  %v3198_v34 = vpop.eup %3197  ;;  %3201 = vrcp.f32 %v957_v24  ;;  %v1432_v42 = vrot.slane %v1430_v41, 1  ;;  %v795_v0 = vmul.f32 %v3743_v27, %v3619_v57  ;;  %v793_v63 = vmul.f32 %v3619_v57, %v3749_v32 }
 0x132   : > { %v3919_v25 = vadd.f32 %v3624_v59, %v792_v7  ;;  %v955_v29 = vadd.f32 1.0, %v3198_v34  ;;  %3203 = vpow2.f32 %v909_v30  ;;  %v3931_v45 = vsel %vm1390_vm5, %v1445_v39, %v1449_v18  ;;  %v3973_v39 = vpop.f32.mrb[2].mxu1 }
 0x133   : > { %v919_v44 = vmul.f32 1.442695, %v865_v47  ;;  %v798_v61 = vmul.f32 %v3774_v3, %v3619_v57  ;;  %v1435_v15 = vshll.u32 %v3870_v51, 16  ;;  %v3943_v1 = vadd.f32 %v3624_v59, %v795_v0 }
 0x134   : > { %1862 = vrot.lane.b32.xlu0 %v3769_v54, %s3463_s30  ;;  %v863_v43 = vsub.f32 0.0, %v3919_v25  ;;  %3205 = vrcp.f32 %v955_v29  ;;  %v796_v27 = vmul.f32 %v3619_v57, %v3780_v36  ;;  %v3948_v2 = vadd.f32 %v3624_v59, %v793_v63 }
 0x135   : > { %1736 = vrot.lane.b32.xlu1 %v3916_v12, %s3467_s17  ;;  %3207 = vpow2.f32 %v919_v44  ;;  %v3951_v32 = vadd.f32 %v3624_v59, %v798_v61  ;;  %v799_v3 = vmul.f32 %v3786_v8, %v3619_v57  ;;  %v1433_v51 = vor.u32 %v1432_v42, %v1428_v40 }
 0x136   : > { %v915_v53 = vmul.f32 1.442695, %v863_v43  ;;  %v866_v9 = vsub.f32 0.0, %v3943_v1  ;;  %v3961_v36 = vadd.f32 %v3624_v59, %v796_v27  ;;  %v797_v10 = vmul.f32 %v3619_v57, %v3794_v17 }
 0x137   : > { %v1341_v41 = vsel %vm1209_vm3, %v1226_v55, 0.0  ;;  %v864_v8 = vsub.f32 0.0, %v3948_v2  ;;  %v869_v16 = vsub.f32 0.0, %v3951_v32  ;;  %v3971_v7 = vadd.f32 %v3624_v59, %v799_v3  ;;  %v3053_v55 = vpop.f32.mrb[3].mxu1 }
 0x138   : > { %1766 = vrot.lane.b32.xlu0 %v3776_v60, %s3464_s13  ;;  %3209 = vpow2.f32 %v915_v53  ;;  %v1437_v24 = vrot.slane %v1435_v15, 1  ;;  %v921_v30 = vmul.f32 1.442695, %v866_v9  ;;  %v867_v17 = vsub.f32 0.0, %v3961_v36 }
 0x139   : > { %1800 = vrot.lane.b32.xlu1 %v3931_v45, %s3468_s19  ;;  %v3979_v37 = vadd.f32 %v3624_v59, %v797_v10  ;;  %v3200_v34 = vpop.eup %3199  ;;  %v917_v18 = vmul.f32 1.442695, %v864_v8  ;;  %v927_v47 = vmul.f32 1.442695, %v869_v16  ;;  %v870_v29 = vsub.f32 0.0, %v3971_v7 }
 0x13a   : > { %v3982_v43 = vpack.c.bf16 %v1341_v41, %v1341_v41  ;;  %v3987_v42 = vsel %vm1390_vm5, %v1433_v51, %v1437_v24  ;;  %v958_v44 = vadd.f32 1.0, %v3200_v34  ;;  %3211 = vpow2.f32 %v921_v30 }
 0x13b   : > { %v3202_v40 = vpop.eup %3201  ;;  %v1634_v53 = vrot.slane %v3822_v49, 1  ;;  %3213 = vpow2.f32 %v917_v18  ;;  %v923_v63 = vmul.f32 1.442695, %v867_v17  ;;  %v868_v61 = vsub.f32 0.0, %v3979_v37 }
 0x13c   : > { %1926 = vrot.lane.b32.xlu0 %v3893_v62, %s3466_s16  ;;  %v3204_v0 = vpop.eup %3203  ;;  %3215 = vrcp.f32 %v958_v44  ;;  %v1635_v27 = vrot.slane %v3921_v35, 1  ;;  %v1631_v51 = vrot.slane %v3838_v11, 1  ;;  %v802_v9 = vmul.f32 %v3812_v26, %v3619_v57 }
 0x13d   : > { %1706 = vrot.lane.b32.xlu1 %v3931_v45, %s3469_s20  ;;  %v956_v15 = vadd.f32 1.0, %v3204_v0  ;;  %3217 = vpow2.f32 %v927_v47  ;;  %v800_v10 = vmul.f32 %v3619_v57, %v3820_v48  ;;  %v4000_v41 = vmul.f32 %v3202_v40, %v3790_v13 }
 0x13e   : > { %v3206_v3 = vpop.eup %3205  ;;  %v1632_v8 = vrot.slane %v3982_v43, 1  ;;  %v803_v16 = vmul.f32 %v3828_v56, %v3619_v57  ;;  %v925_v26 = vmul.f32 1.442695, %v868_v61  ;;  %v4008_v17 = vadd.f32 %v3624_v59, %v802_v9 }
 0x13f   : > { %v3208_v31 = vpop.eup %3207  ;;  %3219 = vrcp.f32 %v956_v15  ;;  %v4011_v48 = vmul.f32 %v3206_v3, %v3810_v38  ;;  %v4016_v55 = vadd.f32 %v3624_v59, %v800_v10  ;;  %v801_v18 = vmul.f32 %v3619_v57, %v3833_v6 }
 0x140   : > { %1738 = vrot.lane.b32.xlu0 %v3893_v62, %s3467_s17  ;;  %v929_v62 = vmul.f32 1.442695, %v870_v29  ;;  %v961_v30 = vadd.f32 1.0, %v3208_v31  ;;  %3221 = vpow2.f32 %v923_v63  ;;  %v873_v56 = vsub.f32 0.0, %v4008_v17 }
 0x141   : > { %1892 = vrot.lane.b32.xlu1 %v3987_v42, %s3470_s21  ;;  %v4020_v34 = vadd.f32 %v3624_v59, %v803_v16  ;;  %v1464_v38 = vshrl.u32 %v3822_v49, 16  ;;  %v1466_v47 = vshll.u32 %v3822_v49, 16  ;;  %v871_v29 = vsub.f32 0.0, %v4016_v55 }
 0x142   : > { %v3210_v24 = vpop.eup %3209  ;;  %3223 = vpow2.f32 %v929_v62  ;;  %v935_v40 = vmul.f32 1.442695, %v873_v56  ;;  %v4031_v0 = vadd.f32 %v3624_v59, %v801_v18  ;;  %v1240_v6 = vrot.slane %v4000_v41, 7 }
 0x143   : > { %v959_v13 = vadd.f32 1.0, %v3210_v24  ;;  %3225 = vrcp.f32 %v961_v30  ;;  %v874_v44 = vsub.f32 0.0, %v4020_v34  ;;  %v931_v61 = vmul.f32 1.442695, %v871_v29 }
 0x144   : > { %1924 = vrot.lane.b32.xlu0 %v3916_v12, %s3466_s16  ;;  %v3212_v63 = vpop.eup %3211  ;;  %v1082_v15 = vmul.f32 %v3619_v57, %v3856_v20  ;;  %v1237_v3 = vrot.slane %v4011_v48, 7  ;;  %v1471_v41 = vshll.u32 %v3921_v35, 16  ;;  %v1468_v20 = vrot.slane %v1466_v47, 1 }
 0x145   : > { %1704 = vrot.lane.b32.xlu1 %v3987_v42, %s3469_s20  ;;  %3227 = vrcp.f32 %v959_v13  ;;  %v3214_v62 = vpop.eup %3213  ;;  %v962_v9 = vadd.f32 1.0, %v3212_v63  ;;  %v937_v10 = vmul.f32 1.442695, %v874_v44  ;;  %v1328_v48 = vsel %vm1209_vm3, 0.0, %v1240_v6 }
 0x146   : > { %3229 = vpow2.f32 %v925_v26  ;;  %v3216_v31 = vpop.eup %3215  ;;  %v960_v16 = vadd.f32 1.0, %v3214_v62  ;;  %v4050_v30 = vadd.f32 %v3624_v59, %v1082_v15 }
 0x147   : > { %3231 = vpow2.f32 %v935_v40  ;;  %v4047_v24 = vmul.f32 %v3216_v31, %v3886_v52  ;;  %v1327_v52 = vsel %vm1209_vm3, 0.0, %v1237_v3 }
 0x148   : > { %1830 = vrot.lane.b32.xlu0 %v3916_v12, %s3465_s14  ;;  %v4037_v12 = vsel %vm1615_vm4, %v1634_v53, %v1635_v27  ;;  %3233 = vpow2.f32 %v931_v61  ;;  %v872_v53 = vsub.f32 0.0, %v4031_v0  ;;  %v3218_v27 = vpop.eup %3217  ;;  %v1086_v44 = vsub.f32 0.0, %v4050_v30 }
 0x149   : > { %1772 = vrot.lane.b32.xlu1 %v3822_v49, %s3464_s13  ;;  %3235 = vrcp.f32 %v962_v9  ;;  %v3220_v26 = vpop.eup %3219  ;;  %v965_v35 = vadd.f32 1.0, %v3218_v27  ;;  %v1241_v56 = vrot.slane %v4047_v24, 7  ;;  %v1454_v27 = vshll.u32 %v3838_v11, 16 }
 0x14a   : > { %3237 = vrcp.f32 %v960_v16  ;;  %v3222_v13 = vpop.eup %3221  ;;  %v4060_v18 = vmul.f32 %v3220_v26, %v3890_v58  ;;  %v933_v40 = vmul.f32 1.442695, %v872_v53  ;;  %v1473_v16 = vrot.slane %v1471_v41, 1 }
 0x14b   : > { %3239 = vpow2.f32 %v937_v10  ;;  %v963_v29 = vadd.f32 1.0, %v3222_v13  ;;  %v1088_v26 = vmul.f32 1.442695, %v1086_v44  ;;  %v1456_v44 = vrot.slane %v1454_v27, 1 }
 0x14c   : > { %1894 = vrot.lane.b32.xlu0 %v3931_v45, %s3470_s21  ;;  %v1083_v45 = vmul.f32 %v3619_v57, %v3868_v46  ;;  %v3224_v47 = vpop.eup %3223  ;;  %3241 = vrcp.f32 %v965_v35  ;;  %v1242_v57 = vsel %vm1209_vm3, %v1240_v6, %v1241_v56  ;;  %v1238_v46 = vrot.slane %v4060_v18, 7 }
 0x14d   : > { %1864 = vrot.lane.b32.xlu1 %v3838_v11, %s3463_s30  ;;  %v3226_v63 = vpop.eup %3225  ;;  %v966_v61 = vadd.f32 1.0, %v3224_v47  ;;  %v4072_v62 = vpack.c.bf16 %v1242_v57, %v1328_v48  ;;  %3243 = vrcp.f32 %v963_v29 }
 0x14e   : > { %v4070_v58 = vadd.f32 %v3624_v59, %v1083_v45  ;;  %v1239_v6 = vsel %vm1209_vm3, %v1237_v3, %v1238_v46  ;;  %v4085_v59 = vsel %vm1615_vm4, %v1631_v51, %v1632_v8 }
 0x14f   : > { %v3228_v15 = vpop.eup %3227  ;;  %3245 = vrcp.f32 %v966_v61  ;;  %v4088_v31 = vpack.c.bf16 %v1239_v6, %v1327_v52  ;;  %v1459_v52 = vshll.u32 %v3982_v43, 16 }
 0x150   : > { %1798 = vrot.lane.b32.xlu0 %v3987_v42, %s3468_s19  ;;  %v1025_v42 = vmul.f32 %v3226_v63, %v3913_v23  ;;  %v3230_v9 = vpop.eup %3229  ;;  %v1023_v10 = vmul.f32 %v3228_v15, %v3919_v25  ;;  %v1469_v23 = vor.u32 %v1468_v20, %v1464_v38  ;;  %3247 = vpow2.f32 %v933_v40 }
 0x151   : > { %1836 = vrot.lane.b32.xlu1 %v4037_v12, %s3465_s14  ;;  %v964_v3 = vadd.f32 1.0, %v3230_v9  ;;  %v3232_v53 = vpop.eup %3231  ;;  %v1087_v51 = vsub.f32 0.0, %v4070_v58  ;;  %v1452_v20 = vshrl.u32 %v3838_v11, 16 }
 0x152   : > { %v3234_v8 = vpop.eup %3233  ;;  %v1246_v25 = vrot.slane %v1025_v42, 7  ;;  %v969_v48 = vadd.f32 1.0, %v3232_v53  ;;  %v1243_v45 = vrot.slane %v1023_v10, 7  ;;  %v4106_v40 = vsel %vm1390_vm5, %v1469_v23, %v1473_v16 }
 0x153   : > { %3249 = vrcp.f32 %v964_v3  ;;  %v3236_v35 = vpop.eup %3235  ;;  %v967_v13 = vadd.f32 1.0, %v3234_v8  ;;  %v1090_v38 = vmul.f32 1.442695, %v1087_v51  ;;  %v1457_v23 = vor.u32 %v1456_v44, %v1452_v20 }
 0x154   : > { %1866 = vrot.lane.b32.xlu0 %v3822_v49, %s3463_s30  ;;  %3251 = vpow2.f32 %v1088_v26  ;;  %v3238_v41 = vpop.eup %3237  ;;  %v4103_v47 = vmul.f32 %v3236_v35, %v3943_v1  ;;  %v1330_v61 = vsel %vm1209_vm3, 0.0, %v1246_v25  ;;  %v1329_v15 = vsel %vm1209_vm3, 0.0, %v1243_v45 }
 0x155   : > { %1740 = vrot.lane.b32.xlu1 %v4085_v59, %s3467_s17  ;;  %3253 = vrcp.f32 %v969_v48  ;;  %v3240_v29 = vpop.eup %3239  ;;  %v4109_v63 = vmul.f32 %v3238_v41, %v3948_v2  ;;  %v1461_v16 = vrot.slane %v1459_v52, 1 }
 0x156   : > { %3255 = vrcp.f32 %v967_v13  ;;  %v3242_v57 = vpop.eup %3241  ;;  %v1247_v43 = vrot.slane %v4103_v47, 7  ;;  %v970_v1 = vadd.f32 1.0, %v3240_v29 }
 0x157   : > { %3257 = vpow2.f32 %v1090_v38  ;;  %v1244_v42 = vrot.slane %v4109_v63, 7  ;;  %v1029_v9 = vmul.f32 %v3242_v57, %v3951_v32  ;;  %v3244_v6 = vpop.eup %3243 }
 0x158   : > { %1770 = vrot.lane.b32.xlu0 %v3838_v11, %s3464_s13  ;;  %v1248_v2 = vsel %vm1209_vm3, %v1246_v25, %v1247_v43  ;;  %3259 = vrcp.f32 %v970_v1  ;;  %v1027_v26 = vmul.f32 %v3244_v6, %v3961_v36 }
 0x159   : > { %1804 = vrot.lane.b32.xlu1 %v4106_v40, %s3468_s19  ;;  %v3246_v10 = vpop.eup %3245  ;;  %v4123_v3 = vpack.c.bf16 %v1248_v2, %v1330_v61  ;;  %v1245_v53 = vsel %vm1209_vm3, %v1243_v45, %v1244_v42  ;;  %v1252_v27 = vrot.slane %v1029_v9, 7  ;;  %v1462_v45 = vsel %vm1390_vm5, %v1457_v23, %v1461_v16 }
 0x15a   : > { %v4130_v32 = vpack.c.bf16 %v1245_v53, %v1329_v15  ;;  %v3248_v51 = vpop.eup %3247  ;;  %v4134_v8 = vmul.f32 %v3246_v10, %v3971_v7  ;;  %v1249_v48 = vrot.slane %v1027_v26, 7  ;;  %v1344_v2 = vsel %vm1209_vm3, %v1235_v22, 0.0 }
 0x15b   : > { %5087 = vst [vmem:[#allocation2_spill] sm:$0xff] %v4123_v3  ;;  %v968_v35 = vadd.f32 1.0, %v3248_v51  ;;  %v1332_v38 = vsel %vm1209_vm3, 0.0, %v1252_v27  ;;  %v1371_v16 = vpack.c.bf16 %v1344_v2, %v1344_v2  ;;  %v1343_v22 = vsel %vm1209_vm3, %v1232_v33, 0.0 }
 0x15c   : > { %1930 = vrot.lane.b32.xlu0 %v4037_v12, %s3466_s16  ;;  %v5083_v41 = vrot.slane %v4134_v8, 7  ;;  %v1490_v26 = vshll.u32 %v3876_v28, 16  ;;  %v1369_v51 = vpack.c.bf16 %v1343_v22, %v1343_v22 }
 0x15d   : > { %1710 = vrot.lane.b32.xlu1 %v4106_v40, %s3469_s20  ;;  %v3250_v25 = vpop.eup %3249  ;;  %3261 = vrcp.f32 %v968_v35  ;;  %v1641_v21 = vrot.slane %v1371_v16, 1  ;;  %v1637_v35 = vrot.slane %v3883_v50, 1 }
 0x15e   : > { %v3252_v13 = vpop.eup %3251  ;;  %v4142_v20 = vmul.f32 %v3250_v25, %v3979_v37  ;;  %v1254_v29 = vsel %vm1209_vm3, %v1252_v27, %v5083_v41  ;;  %v1640_v25 = vrot.slane %v3876_v28, 1 }
 0x15f   : > { %v3254_v36 = vpop.eup %3253  ;;  %v1092_v7 = vadd.f32 1.0, %v3252_v13  ;;  %v4153_v37 = vpack.c.bf16 %v1254_v29, %v1332_v38  ;;  %v1488_v38 = vshrl.u32 %v3876_v28, 16 }
 0x160   : > { %1742 = vrot.lane.b32.xlu0 %v4037_v12, %s3467_s17  ;;  %v3256_v52 = vpop.eup %3255  ;;  %v1331_v12 = vsel %vm1209_vm3, 0.0, %v1249_v48  ;;  %v5085_v44 = vrot.slane %v4142_v20, 7  ;;  %v1033_v57 = vmul.f32 %v3254_v36, %v4008_v17 }
 0x161   : > { %1896 = vrot.lane.b32.xlu1 %v1462_v45, %s3470_s21  ;;  %v3258_v61 = vpop.eup %3257  ;;  %3263 = vrcp.f32 %v1092_v7  ;;  %v1031_v10 = vmul.f32 %v3256_v52, %v4016_v55  ;;  %v1492_v7 = vrot.slane %v1490_v26, 1  ;;  %v1495_v52 = vshll.u32 %v1371_v16, 16 }
 0x162   : > { %v1251_v1 = vsel %vm1209_vm3, %v1249_v48, %v5085_v44  ;;  %v1258_v15 = vrot.slane %v1033_v57, 7  ;;  %v1093_v9 = vadd.f32 1.0, %v3258_v61  ;;  %v3260_v6 = vpop.eup %3259  ;;  %v1642_v61 = vsel %vm1615_vm4, %v1640_v25, %v1641_v21 }
 0x163   : > { %v4162_v17 = vpack.c.bf16 %v1251_v1, %v1331_v12  ;;  %v4166_v23 = vmul.f32 %v3260_v6, %v4020_v34  ;;  %v1255_v55 = vrot.slane %v1031_v10, 7  ;;  %v1638_v1 = vrot.slane %v1369_v51, 1 }
 0x164   : > { %1928 = vrot.lane.b32.xlu0 %v4085_v59, %s3466_s16  ;;  %3265 = vrcp.f32 %v1093_v9  ;;  %v1334_v53 = vsel %vm1209_vm3, 0.0, %v1258_v15  ;;  %v1493_v10 = vor.u32 %v1492_v7, %v1488_v38 }
 0x165   : > { %1708 = vrot.lane.b32.xlu1 %v1462_v45, %s3469_s20  ;;  %v1259_v19 = vrot.slane %v4166_v23, 7  ;;  %v1333_v13 = vsel %vm1209_vm3, 0.0, %v1255_v55  ;;  %v1497_v23 = vrot.slane %v1495_v52, 1 }
 0x167   : > { %v1260_v34 = vsel %vm1209_vm3, %v1258_v15, %v1259_v19  ;;  %v3262_v27 = vpop.eup %3261  ;;  %v1498_v21 = vsel %vm1390_vm5, %v1493_v10, %v1497_v23  ;;  %v1352_v7 = vsel %vm1209_vm3, %v1259_v19, 0.0  ;;  %v1346_v23 = vsel %vm1209_vm3, %v1241_v56, 0.0 }
 0x168   : > { %1834 = vrot.lane.b32.xlu0 %v4085_v59, %s3465_s14  ;;  %v4180_v59 = vpack.c.bf16 %v1260_v34, %v1334_v53  ;;  %v4185_v33 = vmul.f32 %v3262_v27, %v4031_v0  ;;  %v3403_v0 = vld [vmem:[%s5076_s4] ss:$0 sm:$0xff]  ;;  %v1639_v53 = vsel %vm1615_vm4, %v1637_v35, %v1638_v1  ;;  %v1476_v35 = vshrl.u32 %v3883_v50, 16 }
 0x169   : > { %1776 = vrot.lane.b32.xlu1 %v3876_v28, %s3464_s13  ;;  %v1151_v12 = vmul.f32 %v3403_v0, %v3955_v4  ;;  %v1152_v29 = vmul.f32 %v3403_v0, %v3973_v39  ;;  %v3404_v4 = vld [vmem:[%s5077_s5] ss:$0 sm:$0xff]  ;;  %v1375_v24 = vpack.c.bf16 %v1346_v23, %v1346_v23  ;;  %v1345_v56 = vsel %vm1209_vm3, %v1238_v46, 0.0 }
 0x16a   : > { %v1678_v19 = vrot.slane %v4180_v59, 1  ;;  %v1502_v23 = vshll.u32 %v4088_v31, 16 }
 0x16b   : > { %v3264_v48 = vpop.eup %3263  ;;  %v4211_v39 = vadd.f32 %v3404_v4, %v1151_v12  ;;  %v4213_v2 = vadd.f32 %v3404_v4, %v1152_v29  ;;  %v1387_v12 = vpack.c.bf16 %v1352_v7, %v1352_v7 }
 0x16c   : > { %1898 = vrot.lane.b32.xlu0 %v4106_v40, %s3470_s21  ;;  %v5082_v40 = vrot.slane %v4185_v33, 7  ;;  %v1096_v36 = vmul.f32 %v3264_v48, %v4050_v30 }
 0x16d   : > { %1868 = vrot.lane.b32.xlu1 %v3883_v50, %s3463_s30  ;;  %v1155_v22 = vsub.f32 0.0, %v4211_v39  ;;  %v1672_v1 = vshll.u32 %v1387_v12, 16  ;;  %v1679_v10 = vrot.slane %v1387_v12, 1 }
 0x16e   : > { %v3266_v57 = vpop.eup %3265  ;;  %v1257_v30 = vsel %vm1209_vm3, %v1255_v55, %v5082_v40  ;;  %v1102_v15 = vmul.f32 0.0, %v1096_v36  ;;  %v1156_v55 = vsub.f32 0.0, %v4213_v2  ;;  %v1483_v36 = vshll.u32 %v1369_v51, 16 }
 0x16f   : > { %v1097_v9 = vmul.f32 %v3266_v57, %v4070_v58  ;;  %v1478_v58 = vshll.u32 %v3883_v50, 16  ;;  %v1157_v26 = vmul.f32 1.442695, %v1155_v22  ;;  %v1665_v51 = vshrl.u32 %v4180_v59, 16 }
 0x170   : > { %1802 = vrot.lane.b32.xlu0 %v1462_v45, %s3468_s19  ;;  %v4205_v45 = vpack.c.bf16 %v1257_v30, %v1333_v13  ;;  %v1210_v6 = vrot.slane %v1102_v15, 7  ;;  %v1159_v25 = vmul.f32 1.442695, %v1156_v55  ;;  %v1485_v0 = vrot.slane %v1483_v36, 1 }
 0x171   : > { %1840 = vrot.lane.b32.xlu1 %v1642_v61, %s3465_s14  ;;  %v4217_v16 = vmul.f32 0.0, %v1097_v9  ;;  %v1480_v38 = vrot.slane %v1478_v58, 1  ;;  %3267 = vpow2.f32 %v1157_v26  ;;  %v1667_v57 = vshll.u32 %v4180_v59, 16 }
 0x172   : > { %v1318_v34 = vsel %vm1209_vm3, 0.0, %v1210_v6  ;;  %3269 = vpow2.f32 %v1159_v25  ;;  %v1674_v4 = vrot.slane %v1672_v1, 1  ;;  %v1647_v36 = vrot.slane %v1375_v24, 1 }
 0x173   : > { %v5084_v27 = vrot.slane %v4217_v16, 7  ;;  %v1481_v52 = vor.u32 %v1480_v38, %v1476_v35  ;;  %v1514_v35 = vshll.u32 %v4072_v62, 16  ;;  %v1646_v38 = vrot.slane %v4072_v62, 1 }
 0x174   : > { %1870 = vrot.lane.b32.xlu0 %v3876_v28, %s3463_s30 }
 0x175   : > { %1744 = vrot.lane.b32.xlu1 %v1639_v53, %s3467_s17  ;;  %v1212_v48 = vsel %vm1209_vm3, %v1210_v6, %v5084_v27  ;;  %v1486_v29 = vsel %vm1390_vm5, %v1481_v52, %v1485_v0  ;;  %v1669_v6 = vrot.slane %v1667_v57, 1  ;;  %v1512_v52 = vshrl.u32 %v4072_v62, 16 }
 0x176   : > { %v4233_v13 = vpack.c.bf16 %v1212_v48, %v1318_v34  ;;  %v4255_v34 = vsel %vm1615_vm4, %v1678_v19, %v1679_v10  ;;  %v1516_v0 = vrot.slane %v1514_v35, 1  ;;  %v1643_v57 = vrot.slane %v4088_v31, 1 }
 0x177   : > { %v1670_v55 = vor.u32 %v1669_v6, %v1665_v51  ;;  %v1648_v51 = vsel %vm1615_vm4, %v1646_v38, %v1647_v36  ;;  %v1500_v38 = vshrl.u32 %v4088_v31, 16  ;;  %v1526_v27 = vshll.u32 %v4130_v32, 16 }
 0x178   : > { %1774 = vrot.lane.b32.xlu0 %v3883_v50, %s3464_s13  ;;  %v1517_v6 = vor.u32 %v1516_v0, %v1512_v52  ;;  %v1504_v52 = vrot.slane %v1502_v23, 1 }
 0x179   : > { %1808 = vrot.lane.b32.xlu1 %v1498_v21, %s3468_s19  ;;  %v4259_v26 = vsel %vm1390_vm5, %v1670_v55, %v1674_v4 }
 0x17b   : > { %v3268_v30 = vpop.eup %3267 }
 0x17c   : > { %1934 = vrot.lane.b32.xlu0 %v1642_v61, %s3466_s16  ;;  %v3270_v15 = vpop.eup %3269  ;;  %v1161_v9 = vadd.f32 1.0, %v3268_v30 }
 0x17d   : > { %1714 = vrot.lane.b32.xlu1 %v1498_v21, %s3469_s20 }
 0x17e   : > { %3271 = vrcp.f32 %v1161_v9 }
 0x180   : > { %1746 = vrot.lane.b32.xlu0 %v1642_v61, %s3467_s17  ;;  %v1162_v61 = vadd.f32 1.0, %v3270_v15 }
 0x181   : > { %1900 = vrot.lane.b32.xlu1 %v1486_v29, %s3470_s21 }
 0x182   : > { %3273 = vrcp.f32 %v1162_v61 }
 0x184   : > { %1932 = vrot.lane.b32.xlu0 %v1639_v53, %s3466_s16 }
 0x185   : > { %1712 = vrot.lane.b32.xlu1 %v1486_v29, %s3469_s20 }
 0x186   : > { %v4250_v58 = vpop.permute.xlu0 %1858  ;;  %v4252_v22 = vpop.permute.xlu1 %1764 }
 0x187   : > { %5088 = vst [vmem:[#allocation3_spill] sm:$0xff] %v4250_v58  ;;  %v3129_v58 = vld [vmem:[%s5078_s6 + $0x8] sm:$0xff]  }
 0x188   : > { %1838 = vrot.lane.b32.xlu0 %v1639_v53, %s3465_s14  ;;  %v1373_v53 = vpack.c.bf16 %v1345_v56, %v1345_v56  ;;  %v3272_v7 = vpop.eup %3271 }
 0x189   : > { %1780 = vrot.lane.b32.xlu1 %v4072_v62, %s3464_s13  ;;  %v1165_v30 = vmul.f32 %v3272_v7, %v4211_v39 }
 0x18a   : > { %v4266_v25 = vpop.permute.xlu1 %1828  ;;  %v4268_v48 = vpop.permute.xlu0 %1762  ;;  %v1644_v1 = vrot.slane %v1373_v53, 1  ;;  %v1507_v0 = vshll.u32 %v1373_v53, 16  ;;  %v1505_v53 = vor.u32 %v1504_v52, %v1500_v38 }
 0x18b   : > { %5089 = vst [vmem:[#allocation4_spill] sm:$0xff] %v4266_v25  ;;  %v1171_v9 = vmul.f32 0.0, %v1165_v30 }
 0x18c   : > { %1902 = vrot.lane.b32.xlu0 %v1498_v21, %s3470_s21  ;;  %v1519_v21 = vshll.u32 %v1375_v24, 16  ;;  %v3274_v12 = vpop.eup %3273  ;;  %v1645_v61 = vsel %vm1615_vm4, %v1643_v57, %v1644_v1 }
 0x18d   : > { %1872 = vrot.lane.b32.xlu1 %v4088_v31, %s3463_s30  ;;  %v1166_v15 = vmul.f32 %v3274_v12, %v4213_v2  ;;  %v1261_v39 = vrot.slane %v1171_v9, 7 }
 0x18e   : > { %v4275_v18 = vpop.permute.xlu0 %1922  ;;  %v4277_v46 = vpop.permute.xlu1 %1732  ;;  %v1521_v4 = vrot.slane %v1519_v21, 1 }
 0x18f   : > { %5090 = vst [vmem:[#allocation5_spill] sm:$0xff] %v4275_v18  ;;  %v1172_v10 = vmul.f32 0.0, %v1166_v15  ;;  %v1335_v2 = vsel %vm1209_vm3, 0.0, %v1261_v39  ;;  %v1528_v18 = vrot.slane %v1526_v27, 1  ;;  %v5101_v27 = vrot.slane %v4217_v16, 7 }
 0x190   : > { %1806 = vrot.lane.b32.xlu0 %v1486_v29, %s3468_s19  ;;  %v1522_v35 = vsel %vm1390_vm5, %v1517_v6, %v1521_v4 }
 0x191   : > { %1844 = vrot.lane.b32.xlu1 %v1648_v51, %s3465_s14  ;;  %v1262_v24 = vrot.slane %v1172_v10, 7  ;;  %v1509_v10 = vrot.slane %v1507_v0, 1  ;;  %v1348_v0 = vsel %vm1209_vm3, %v1247_v43, 0.0  ;;  %v1652_v43 = vrot.slane %v4123_v3, 1 }
 0x192   : > { %v4285_v19 = vpop.permute.xlu0 %1734 }
 0x193   : > { %v4288_v29 = vpop.permute.xlu1 %1796  ;;  %v1353_v36 = vsel %vm1209_vm3, %v1262_v24, 0.0  ;;  %v1263_v7 = vsel %vm1209_vm3, %v1261_v39, %v1262_v24  ;;  %v1510_v40 = vsel %vm1390_vm5, %v1505_v53, %v1509_v10  ;;  %v1538_v10 = vshll.u32 %v4123_v3, 16 }
 0x194   : > { %1874 = vrot.lane.b32.xlu0 %v4072_v62, %s3463_s30  ;;  %v1389_v21 = vpack.c.bf16 %v1353_v36, %v1353_v36  ;;  %v4306_v12 = vpack.c.bf16 %v1263_v7, %v1335_v2 }
 0x195   : > { %1748 = vrot.lane.b32.xlu1 %v1645_v61, %s3467_s17 }
 0x196   : > { %v4295_v55 = vpop.permute.xlu0 %1826  ;;  %v1682_v1 = vshrl.u32 %v4306_v12, 16  ;;  %v1684_v30 = vshll.u32 %v4306_v12, 16  ;;  %v1689_v15 = vshll.u32 %v1389_v21, 16  ;;  %v1695_v9 = vrot.slane %v4306_v12, 1 }
 0x197   : > { %5091 = vst [vmem:[#allocation6_spill] sm:$0xff] %v4295_v55  ;;  %v4298_v56 = vpop.permute.xlu1 %1702  ;;  %v1696_v4 = vrot.slane %v1389_v21, 1 }
 0x198   : > { %1778 = vrot.lane.b32.xlu0 %v4088_v31, %s3464_s13  ;;  %v1686_v23 = vrot.slane %v1684_v30, 1  ;;  %v1691_v39 = vrot.slane %v1689_v15, 1  ;;  %v1347_v15 = vsel %vm1209_vm3, %v1244_v42, 0.0 }
 0x199   : > { %1812 = vrot.lane.b32.xlu1 %v1522_v35, %s3468_s19  ;;  %v4321_v2 = vsel %vm1615_vm4, %v1695_v9, %v1696_v4  ;;  %v1377_v53 = vpack.c.bf16 %v1347_v15, %v1347_v15 }
 0x19a   : > { %v4309_v57 = vpop.permute.xlu0 %1890  ;;  %v1687_v36 = vor.u32 %v1686_v23, %v1682_v1  ;;  %v1379_v1 = vpack.c.bf16 %v1348_v0, %v1348_v0 }
 0x19b   : > { %5092 = vst [vmem:[#allocation7_spill] sm:$0xff] %v4309_v57  ;;  %v4314_v6 = vpop.permute.xlu1 %1768  ;;  %v1650_v23 = vrot.slane %v1377_v53, 1  ;;  %v1392_v57 = vshrl.u32 %v4233_v13, 16 }
 0x19c   : > { %1938 = vrot.lane.b32.xlu0 %v1648_v51, %s3466_s16  ;;  %v4328_v21 = vsel %vm1390_vm5, %v1687_v36, %v1691_v39  ;;  %v1653_v4 = vrot.slane %v1379_v1, 1  ;;  %v1536_v39 = vshrl.u32 %v4123_v3, 16  ;;  %v1540_v36 = vrot.slane %v1538_v10, 1 }
 0x19d   : > { %1718 = vrot.lane.b32.xlu1 %v1522_v35, %s3469_s20  ;;  %v1543_v0 = vshll.u32 %v1379_v1, 16 }
 0x19e   : > { %v4318_v24 = vpop.permute.xlu0 %1700 }
 0x19f   : > { %v4323_v7 = vpop.permute.xlu1 %1860 }
 0x1a0   : > { %5093 = vst [vmem:[#allocation8_spill] sm:$0xff] %v4323_v7  ;;  %1750 = vrot.lane.b32.xlu0 %v1648_v51, %s3467_s17 }
 0x1a1   : > { %1904 = vrot.lane.b32.xlu1 %v1510_v40, %s3470_s21 }
 0x1a2   : > { %v4331_v38 = vpop.permute.xlu0 %1794 }
 0x1a3   : > { %5094 = vst [vmem:[#allocation9_spill] sm:$0xff] %v4331_v38  ;;  %v4333_v52 = vpop.permute.xlu1 %1832  ;;  %v3130_v38 = vld [vmem:[%s5078_s6 + $0x10] ss:$0 sps:$4 sm:$0x33]  }
 0x1a4   : > { %1936 = vrot.lane.b32.xlu0 %v1645_v61, %s3466_s16 }
 0x1a5   : > { %1716 = vrot.lane.b32.xlu1 %v1510_v40, %s3469_s20 }
 0x1a6   : > { %v4340_v51 = vpop.permute.xlu0 %1862 }
 0x1a7   : > { %5095 = vst [vmem:[#allocation10_spill] sm:$0xff] %v4340_v51  ;;  %v4342_v30 = vpop.permute.xlu1 %1736 }
 0x1a8   : > { %1842 = vrot.lane.b32.xlu0 %v1645_v61, %s3465_s14  ;;  %v4365_v61 = vsel %vm1615_vm4, %v1652_v43, %v1653_v4  ;;  %v1541_v43 = vor.u32 %v1540_v36, %v1536_v39  ;;  %v1545_v4 = vrot.slane %v1543_v0, 1  ;;  %v5099_v0 = vrot.slane %v4142_v20, 7 }
 0x1a9   : > { %1784 = vrot.lane.b32.xlu1 %v4123_v3, %s3464_s13  ;;  %v1550_v20 = vshll.u32 %v4162_v17, 16 }
 0x1aa   : > { %v4350_v9 = vpop.permute.xlu0 %1766  ;;  %v1546_v44 = vsel %vm1390_vm5, %v1541_v43, %v1545_v4 }
 0x1ab   : > { %v4352_v47 = vpop.permute.xlu1 %1800 }
 0x1ac   : > { %1906 = vrot.lane.b32.xlu0 %v1522_v35, %s3470_s21  ;;  %v1649_v35 = vrot.slane %v4130_v32, 1 }
 0x1ad   : > { %1876 = vrot.lane.b32.xlu1 %v4130_v32, %s3463_s30 }
 0x1ae   : > { %v4359_v63 = vpop.permute.xlu0 %1926 }
 0x1af   : > { %5096 = vst [vmem:[#allocation11_spill] sm:$0xff] %v4359_v63  ;;  %v4361_v42 = vpop.permute.xlu1 %1706  ;;  %v1524_v63 = vshrl.u32 %v4130_v32, 16 }
 0x1b0   : > { %1810 = vrot.lane.b32.xlu0 %v1510_v40, %s3468_s19  ;;  %v1651_v40 = vsel %vm1615_vm4, %v1649_v35, %v1650_v23 }
 0x1b1   : > { %1848 = vrot.lane.b32.xlu1 %v4365_v61, %s3465_s14  ;;  %v1529_v39 = vor.u32 %v1528_v18, %v1524_v63  ;;  %v3128_v18 = vld [vmem:[%s5078_s6] sm:$0xff]  }
 0x1b2   : > { %v4371_v15 = vpop.permute.xlu0 %1738  ;;  %3054 = vmatprep.subr.bf16.mxu1 %v3128_v18 }
 0x1b3   : > { %v4373_v41 = vpop.permute.xlu1 %1892  ;;  %3055 = vmatpush3.bf16.msra.mxu1 %v3128_v18 }
 0x1b4   : > { %5097 = vst [vmem:[#allocation12_spill] sm:$0xff] %v4373_v41  ;;  %1878 = vrot.lane.b32.xlu0 %v4123_v3, %s3463_s30  ;;  %v1531_v3 = vshll.u32 %v1377_v53, 16  ;;  %v1336_v53 = vsel %vm1209_vm3, %v5101_v27, 0.0  ;;  %3056 = vmatprep.subr.bf16.mxu1 %v3129_v58 }
 0x1b5   : > { %1752 = vrot.lane.b32.xlu1 %v1651_v40, %s3467_s17  ;;  %v1355_v16 = vpack.c.bf16 %v1336_v53, %v1336_v53 }
 0x1b6   : > { %v4380_v10 = vpop.permute.xlu0 %1924  ;;  %v1533_v36 = vrot.slane %v1531_v3, 1 }
 0x1b7   : > { %5098 = vst [vmem:[#allocation13_spill] sm:$0xff] %v4380_v10  ;;  %v1705_v1 = vpop.permute.xlu1 %1704  ;;  %v1349_v10 = vsel %vm1209_vm3, %v5099_v0, 0.0  ;;  %v1394_v0 = vshll.u32 %v4233_v13, 16  ;;  %v1399_v7 = vshll.u32 %v1355_v16, 16  ;;  %3057 = vmatpush3.bf16.msra.mxu1 %v3129_v58  ;;  %v1617_v25 = vrot.slane %v1355_v16, 1 }
 0x1b8   : > { %1782 = vrot.lane.b32.xlu0 %v4130_v32, %s3464_s13  ;;  %v4405_v41 = vpack.c.bf16 %v1349_v10, %v1349_v10  ;;  %v1534_v3 = vsel %vm1390_vm5, %v1529_v39, %v1533_v36  ;;  %v1548_v10 = vshrl.u32 %v4162_v17, 16  ;;  %v1552_v39 = vrot.slane %v1550_v20, 1  ;;  %3093 = vmatprep.subr.msk.bf16.mxu1 %vm600_vm0, %v3130_v38 }
 0x1b9   : > { %1816 = vrot.lane.b32.xlu1 %v1546_v44, %s3468_s19  ;;  %v1396_v53 = vrot.slane %v1394_v0, 1  ;;  %v1401_v51 = vrot.slane %v1399_v7, 1  ;;  %v5102_v16 = vrot.slane %v4134_v8, 7 }
 0x1ba   : > { %v4387_v35 = vpop.permute.xlu0 %1830  ;;  %v1555_v36 = vshll.u32 %v4405_v41, 16  ;;  %v1553_v20 = vor.u32 %v1552_v39, %v1548_v10 }
 0x1bb   : > { %v4389_v23 = vpop.permute.xlu1 %1772 }
 0x1bc   : > { %1942 = vrot.lane.b32.xlu0 %v4365_v61, %s3466_s16  ;;  %v1557_v55 = vrot.slane %v1555_v36, 1  ;;  %v1616_v36 = vrot.slane %v4233_v13, 1 }
 0x1bd   : > { %1722 = vrot.lane.b32.xlu1 %v1546_v44, %s3469_s20 }
 0x1be   : > { %v4397_v43 = vpop.permute.xlu0 %1894  ;;  %v1558_v39 = vsel %vm1390_vm5, %v1553_v20, %v1557_v55 }
 0x1bf   : > { %5100 = vst [vmem:[#allocation14_spill] sm:$0xff] %v4397_v43  ;;  %v4402_v4 = vpop.permute.xlu1 %1864 }
 0x1c0   : > { %1940 = vrot.lane.b32.xlu0 %v1651_v40, %s3466_s16 }
 0x1c1   : > { %1908 = vrot.lane.b32.xlu1 %v1534_v3, %s3470_s21 }
 0x1c2   : > { %v4413_v63 = vpop.permute.xlu0 %1798 }
 0x1c3   : > { %v4416_v27 = vpop.permute.xlu1 %1836 }
 0x1c4   : > { %1846 = vrot.lane.b32.xlu0 %v1651_v40, %s3465_s14  ;;  %v1961_v40 = vsel %vm551_vm2, %v3776_v60, %v1705_v1  ;;  %v1397_v1 = vor.u32 %v1396_v53, %v1392_v57  ;;  %v1350_v53 = vsel %vm1209_vm3, %v5102_v16, 0.0 }
 0x1c5   : > { %1720 = vrot.lane.b32.xlu1 %v1534_v3, %s3469_s20  ;;  %v1994_v60 = vsel %vm1986_vm6, %v1961_v40, %v4342_v30  ;;  %v1656_v30 = vrot.slane %v4405_v41, 1  ;;  %v1383_v8 = vpack.c.bf16 %v1350_v53, %v1350_v53 }
 0x1c6   : > { %v4422_v43 = vpop.permute.xlu0 %1866  ;;  %v2027_v58 = vsel %vm2019_vm7, %v1994_v60, %v4314_v6  ;;  %v1402_v7 = vsel %vm1390_vm5, %v1397_v1, %v1401_v51  ;;  %v1618_v6 = vsel %vm1615_vm4, %v1616_v36, %v1617_v25  ;;  %v1562_v60 = vshll.u32 %v4153_v37, 16 }
 0x1c7   : > { %v1741_v18 = vpop.permute.xlu1 %1740  ;;  %v2060_v55 = vsel %vm2052_vm8, %v2027_v58, %v4352_v47 }
 0x1c8   : > { %1910 = vrot.lane.b32.xlu0 %v1546_v44, %s3470_s21  ;;  %v2271_v44 = vsel %vm600_vm0, %v3130_v38, 0  ;;  %v1655_v38 = vrot.slane %v4162_v17, 1  ;;  %v2093_v25 = vsel %vm2085_vm9, %v2060_v55, %v4333_v52 }
 0x1c9   : > { %1880 = vrot.lane.b32.xlu1 %v4162_v17, %s3463_s30  ;;  %3059 = vmatpush3.bf16.msra.mxu1 %v2271_v44 }
 0x1ca   : > { %v4436_v0 = vpop.permute.xlu0 %1770  ;;  %v1657_v20 = vsel %vm1615_vm4, %v1655_v38, %v1656_v30  ;;  %v1567_v38 = vshll.u32 %v1383_v8, 16 }
 0x1cb   : > { %v1805_v10 = vpop.permute.xlu1 %1804 }
 0x1cc   : > { %1814 = vrot.lane.b32.xlu0 %v1534_v3, %s3468_s19 }
 0x1cd   : > { %1912 = vrot.lane.b32.xlu1 %v1558_v39, %s3470_s21 }
 0x1ce   : > { %v4448_v57 = vpop.permute.xlu0 %1930 }
 0x1cf   : > { %v1711_v3 = vpop.permute.xlu1 %1710 }
 0x1d0   : > { %1698 = vrot.lane.b32.xlu0 %v1402_v7, %s3469_s20  ;;  %v1967_v51 = vsel %vm551_vm2, %v3822_v49, %v1711_v3  ;;  %v2126_v49 = vsel %vm2118_vm10, %v2093_v25, %v4402_v4  ;;  %v1560_v4 = vshrl.u32 %v4153_v37, 16  ;;  %v1564_v7 = vrot.slane %v1562_v60, 1 }
 0x1d1   : > { %1730 = vrot.lane.b32.xlu1 %v1618_v6, %s3467_s17  ;;  %v1963_v25 = vsel %vm551_vm2, %v3769_v54, %v4361_v42 }
 0x1d2   : > { %v1743_v40 = vpop.permute.xlu0 %1742  ;;  %v1565_v53 = vor.u32 %v1564_v7, %v1560_v4 }
 0x1d3   : > { %v4464_v41 = vsel %vm1986_vm6, %v1967_v51, %v1743_v40  ;;  %v1897_v47 = vpop.permute.xlu1 %1896  ;;  %v1569_v51 = vrot.slane %v1567_v38, 1 }
 0x1d4   : > { %1944 = vrot.lane.b32.xlu0 %v1657_v20, %s3466_s16  ;;  %v2159_v1 = vsel %vm2151_vm11, %v2126_v49, %v1897_v47 }
 0x1d5   : > { %1724 = vrot.lane.b32.xlu1 %v1558_v39, %s3469_s20  ;;  %v1570_v60 = vsel %vm1390_vm5, %v1565_v53, %v1569_v51 }
 0x1d6   : > { %v1929_v44 = vpop.permute.xlu0 %1928 }
 0x1d7   : > { %v4476_v36 = vsel %vm2184_vm12, %v2159_v1, %v1929_v44  ;;  %v1709_v52 = vpop.permute.xlu1 %1708  ;;  %v1574_v1 = vshll.u32 %v4205_v45, 16 }
 0x1d8   : > { %1754 = vrot.lane.b32.xlu0 %v4365_v61, %s3467_s17  ;;  %v1965_v58 = vsel %vm551_vm2, %v3838_v11, %v1709_v52  ;;  %v5103_v11 = vrot.slane %v4185_v33, 7  ;;  %v1658_v33 = vrot.slane %v4153_v37, 1 }
 0x1d9   : > { %v1998_v30 = vsel %vm1986_vm6, %v1965_v58, %v1741_v18  ;;  %1756 = vrot.lane.b32.xlu1 %v1657_v20, %s3467_s17  ;;  %v1576_v4 = vrot.slane %v1574_v1, 1 }
 0x1da   : > { %v1835_v3 = vpop.permute.xlu0 %1834  ;;  %v2031_v55 = vsel %vm2019_vm7, %v1998_v30, %v4389_v23  ;;  %v1351_v16 = vsel %vm1209_vm3, %v5103_v11, 0.0 }
 0x1db   : > { %v4487_v6 = vpop.permute.xlu1 %1776  ;;  %v2064_v61 = vsel %vm2052_vm8, %v2031_v55, %v1805_v10  ;;  %v1385_v40 = vpack.c.bf16 %v1351_v16, %v1351_v16  ;;  %v1659_v10 = vrot.slane %v1383_v8, 1 }
 0x1dc   : > { %1786 = vrot.lane.b32.xlu0 %v4162_v17, %s3464_s13  ;;  %v2097_v18 = vsel %vm2085_vm9, %v2064_v61, %v4416_v27  ;;  %v1996_v27 = vsel %vm1986_vm6, %v1963_v25, %v4371_v15  ;;  %v1572_v15 = vshrl.u32 %v4205_v45, 16 }
 0x1dd   : > { %1788 = vrot.lane.b32.xlu1 %v4153_v37, %s3464_s13  ;;  %v2029_v44 = vsel %vm2019_vm7, %v1996_v27, %v4436_v0  ;;  %v1660_v58 = vsel %vm1615_vm4, %v1658_v33, %v1659_v10  ;;  %v1579_v7 = vshll.u32 %v1385_v40, 16  ;;  %v1662_v53 = vrot.slane %v1385_v40, 1 }
 0x1de   : > { %v1899_v23 = vpop.permute.xlu0 %1898 }
 0x1df   : > { %v1869_v47 = vpop.permute.xlu1 %1868  ;;  %v1581_v55 = vrot.slane %v1579_v7, 1 }
 0x1e0   : > { %1818 = vrot.lane.b32.xlu0 %v1558_v39, %s3468_s19  ;;  %v2130_v49 = vsel %vm2118_vm10, %v2097_v18, %v1869_v47  ;;  %v1661_v18 = vrot.slane %v4205_v45, 1 }
 0x1e1   : > { %1820 = vrot.lane.b32.xlu1 %v1570_v60, %s3468_s19 }
 0x1e2   : > { %v1803_v54 = vpop.permute.xlu0 %1802  ;;  %v1663_v47 = vsel %vm1615_vm4, %v1661_v18, %v1662_v53 }
 0x1e3   : > { %v2062_v42 = vsel %vm2052_vm8, %v2029_v44, %v1803_v54  ;;  %v1841_v8 = vpop.permute.xlu1 %1840 }
 0x1e4   : > { %v2095_v39 = vsel %vm2085_vm9, %v2062_v42, %v1835_v3  ;;  %1850 = vrot.lane.b32.xlu0 %v1657_v20, %s3465_s14  ;;  %v1577_v20 = vor.u32 %v1576_v4, %v1572_v15 }
 0x1e5   : > { %v2128_v52 = vsel %vm2118_vm10, %v2095_v39, %v4422_v43  ;;  %1852 = vrot.lane.b32.xlu1 %v1660_v58, %s3465_s14 }
 0x1e6   : > { %v1871_v0 = vpop.permute.xlu0 %1870  ;;  %v2161_v38 = vsel %vm2151_vm11, %v2128_v52, %v1899_v23  ;;  %v1582_v16 = vsel %vm1390_vm5, %v1577_v20, %v1581_v55 }
 0x1e7   : > { %v4523_v30 = vsel %vm2184_vm12, %v2161_v38, %v4448_v57  ;;  %v1745_v3 = vpop.permute.xlu1 %1744 }
 0x1e8   : > { %1882 = vrot.lane.b32.xlu0 %v4153_v37, %s3463_s30 }
 0x1e9   : > { %1884 = vrot.lane.b32.xlu1 %v4205_v45, %s3463_s30 }
 0x1ea   : > { %v1775_v43 = vpop.permute.xlu0 %1774 }
 0x1eb   : > { %v2033_v61 = vsel %vm2019_vm7, %v4464_v41, %v1775_v43  ;;  %v1809_v11 = vpop.permute.xlu1 %1808 }
 0x1ec   : > { %1914 = vrot.lane.b32.xlu0 %v1570_v60, %s3470_s21 }
 0x1ed   : > { %1916 = vrot.lane.b32.xlu1 %v1582_v16, %s3470_s21 }
 0x1ee   : > { %v1935_v57 = vpop.permute.xlu0 %1934 }
 0x1ef   : > { %v1715_v51 = vpop.permute.xlu1 %1714 }
 0x1f0   : > { %1946 = vrot.lane.b32.xlu0 %v1660_v58, %s3466_s16  ;;  %v1971_v23 = vsel %vm551_vm2, %v3876_v28, %v1715_v51 }
 0x1f1   : > { %1726 = vrot.lane.b32.xlu1 %v1570_v60, %s3469_s20 }
 0x1f2   : > { %v1747_v41 = vpop.permute.xlu0 %1746 }
 0x1f3   : > { %v2004_v25 = vsel %vm1986_vm6, %v1971_v23, %v1747_v41  ;;  %v1901_v33 = vpop.permute.xlu1 %1900 }
 0x1f4   : > { %1948 = vrot.lane.b32.xlu0 %v1663_v47, %s3466_s16  ;;  %v2163_v10 = vsel %vm2151_vm11, %v2130_v49, %v1901_v33 }
 0x1f5   : > { %1728 = vrot.lane.b32.xlu1 %v1582_v16, %s3469_s20  ;;  %s4855_s20 = scalar_lea.vmem %s5081_s9, %s3548_s15 }
 0x1f6   : > { %v1933_v40 = vpop.permute.xlu0 %1932 }
 0x1f7   : > { %v4545_v27 = vsel %vm2184_vm12, %v2163_v10, %v1933_v40  ;;  %v1713_v1 = vpop.permute.xlu1 %1712 }
 0x1f8   : > { %1758 = vrot.lane.b32.xlu0 %v1660_v58, %s3467_s17  ;;  %v1969_v28 = vsel %vm551_vm2, %v3883_v50, %v1713_v1 }
 0x1f9   : > { %v2002_v60 = vsel %vm1986_vm6, %v1969_v28, %v1745_v3  ;;  %1760 = vrot.lane.b32.xlu1 %v1663_v47, %s3467_s17 }
 0x1fa   : > { %v1839_v44 = vpop.permute.xlu0 %1838  ;;  %v2035_v49 = vsel %vm2019_vm7, %v2002_v60, %v4487_v6 }
 0x1fb   : > { %v1781_v54 = vpop.permute.xlu1 %1780  ;;  %v2068_v42 = vsel %vm2052_vm8, %v2035_v49, %v1809_v11 }
 0x1fc   : > { %1790 = vrot.lane.b32.xlu0 %v4205_v45, %s3464_s13  ;;  %v2101_v39 = vsel %vm2085_vm9, %v2068_v42, %v1841_v8 }
 0x1fd   : > { %1792 = vrot.lane.b32.xlu1 %v4180_v59, %s3464_s13 }
 0x1fe   : > { %v1903_v50 = vpop.permute.xlu0 %1902 }
 0x1ff   : > { %v1873_v15 = vpop.permute.xlu1 %1872 }
 0x200   : > { %1822 = vrot.lane.b32.xlu0 %v1582_v16, %s3468_s19  ;;  %v2134_v52 = vsel %vm2118_vm10, %v2101_v39, %v1873_v15 }
 0x201   : > { %1824 = vrot.lane.b32.xlu1 %v4259_v26, %s3468_s19 }
 0x202   : > { %v1807_v6 = vpop.permute.xlu0 %1806 }
 0x203   : > { %v2066_v58 = vsel %vm2052_vm8, %v2033_v61, %v1807_v6  ;;  %v1845_v7 = vpop.permute.xlu1 %1844 }
 0x204   : > { %v2099_v4 = vsel %vm2085_vm9, %v2066_v58, %v1839_v44  ;;  %1854 = vrot.lane.b32.xlu0 %v1663_v47, %s3465_s14 }
 0x205   : > { %v2132_v8 = vsel %vm2118_vm10, %v2099_v4, %v1871_v0  ;;  %1856 = vrot.lane.b32.xlu1 %v4255_v34, %s3465_s14 }
 0x206   : > { %v1875_v38 = vpop.permute.xlu0 %1874  ;;  %v2165_v3 = vsel %vm2151_vm11, %v2132_v8, %v1903_v50 }
 0x207   : > { %v4572_v20 = vsel %vm2184_vm12, %v2165_v3, %v1935_v57  ;;  %v1749_v55 = vpop.permute.xlu1 %1748 }
 0x208   : > { %1886 = vrot.lane.b32.xlu0 %v4180_v59, %s3463_s30 }
 0x209   : > { %1888 = vrot.lane.b32.xlu1 %v4306_v12, %s3463_s30 }
 0x20a   : > { %v1779_v43 = vpop.permute.xlu0 %1778 }
 0x20b   : > { %v2037_v61 = vsel %vm2019_vm7, %v2004_v25, %v1779_v43  ;;  %v1813_v0 = vpop.permute.xlu1 %1812  ;;  %v1957_v43 = vsel %vm551_vm2, %v3730_v14, %v4318_v24 }
 0x20c   : > { %1918 = vrot.lane.b32.xlu0 %v4259_v26, %s3470_s21 }
 0x20d   : > { %1920 = vrot.lane.b32.xlu1 %v4328_v21, %s3470_s21 }
 0x20e   : > { %v1939_v11 = vpop.permute.xlu0 %1938 }
 0x20f   : > { %v1719_v16 = vpop.permute.xlu1 %1718 }
 0x210   : > { %1950 = vrot.lane.b32.xlu0 %v4255_v34, %s3466_s16  ;;  %v1975_v59 = vsel %vm551_vm2, %v4072_v62, %v1719_v16 }
 0x211   : > { %1952 = vrot.lane.b32.xlu1 %v4321_v2, %s3466_s16 }
 0x212   : > { %v1751_v12 = vpop.permute.xlu0 %1750 }
 0x213   : > { %v2008_v57 = vsel %vm1986_vm6, %v1975_v59, %v1751_v12  ;;  %v1905_v18 = vpop.permute.xlu1 %1904  ;;  %v1990_v59 = vsel %vm1986_vm6, %v1957_v43, %v4277_v46 }
 0x214   : > { %v2167_v26 = vsel %vm2151_vm11, %v2134_v52, %v1905_v18 }
 0x216   : > { %v1937_v53 = vpop.permute.xlu0 %1936 }
 0x217   : > { %v4592_v21 = vsel %vm2184_vm12, %v2167_v26, %v1937_v53  ;;  %v1717_v51 = vpop.permute.xlu1 %1716  ;;  %v2023_v53 = vsel %vm2019_vm7, %v1990_v59, %v4252_v22 }
 0x218   : > { %v1973_v34 = vsel %vm551_vm2, %v4088_v31, %v1717_v51 }
 0x219   : > { %v2006_v23 = vsel %vm1986_vm6, %v1973_v34, %v1749_v55  ;;  %v2056_v34 = vsel %vm2052_vm8, %v2023_v53, %v4288_v29 }
 0x21a   : > { %v1843_v62 = vpop.permute.xlu0 %1842  ;;  %v2039_v41 = vsel %vm2019_vm7, %v2006_v23, %v1781_v54 }
 0x21b   : > { %v1785_v2 = vpop.permute.xlu1 %1784  ;;  %v2072_v25 = vsel %vm2052_vm8, %v2039_v41, %v1813_v0  ;;  %v1959_v0 = vsel %vm551_vm2, %v3722_v5, %v4298_v56 }
 0x21c   : > { %v2105_v47 = vsel %vm2085_vm9, %v2072_v25, %v1845_v7  ;;  %v1992_v14 = vsel %vm1986_vm6, %v1959_v0, %v4285_v19  ;;  %v5105_v25 = vld [vmem:[#allocation10_spill] sm:$0xff] }
 0x21d   : > { %v2025_v5 = vsel %vm2019_vm7, %v1992_v14, %v4350_v9 }
 0x21e   : > { %v1907_v33 = vpop.permute.xlu0 %1906  ;;  %v2058_v46 = vsel %vm2052_vm8, %v2025_v5, %v4413_v63  ;;  %v5104_v63 = vld [vmem:[#allocation4_spill] sm:$0xff] }
 0x21f   : > { %v1877_v10 = vpop.permute.xlu1 %1876  ;;  %v2091_v9 = vsel %vm2085_vm9, %v2058_v46, %v4387_v35 }
 0x220   : > { %v4601_v40 = vsel %vm2118_vm10, %v2105_v47, %v1877_v10  ;;  %v2124_v47 = vsel %vm2118_vm10, %v2091_v9, %v5105_v25  ;;  %v5107_v10 = vld [vmem:[#allocation6_spill] sm:$0xff] }
 0x222   : > { %v1811_v1 = vpop.permute.xlu0 %1810 }
 0x223   : > { %v2070_v28 = vsel %vm2052_vm8, %v2037_v61, %v1811_v1  ;;  %v1849_v60 = vpop.permute.xlu1 %1848  ;;  %v5108_v1 = vld [vmem:[#allocation3_spill] sm:$0xff] }
 0x224   : > { %v2103_v31 = vsel %vm2085_vm9, %v2070_v28, %v1843_v62 }
 0x225   : > { %v2136_v44 = vsel %vm2118_vm10, %v2103_v31, %v1875_v38  ;;  %v5109_v31 = vld [vmem:[#allocation8_spill] sm:$0xff] }
 0x226   : > { %v1879_v49 = vpop.permute.xlu0 %1878  ;;  %v2169_v54 = vsel %vm2151_vm11, %v2136_v44, %v1907_v33  ;;  %v5110_v44 = vld [vmem:[#allocation7_spill] sm:$0xff] }
 0x227   : > { %v4608_v42 = vsel %vm2184_vm12, %v2169_v54, %v1939_v11  ;;  %v1753_v39 = vpop.permute.xlu1 %1752  ;;  %v5111_v54 = vld [vmem:[#allocation14_spill] sm:$0xff] }
 0x22a   : > { %v1783_v50 = vpop.permute.xlu0 %1782 }
 0x22b   : > { %v1817_v15 = vpop.permute.xlu1 %1816  ;;  %v2041_v12 = vsel %vm2019_vm7, %v2008_v57, %v1783_v50  ;;  %v5112_v50 = vld [vmem:[#allocation12_spill] sm:$0xff] }
 0x22e   : > { %v4610_v52 = vpop.permute.xlu0 %1942 }
 0x22f   : > { %v4612_v6 = vpop.permute.xlu1 %1722 }
 0x232   : > { %v4614_v58 = vpop.permute.xlu0 %1940 }
 0x233   : > { %v4616_v4 = vpop.permute.xlu1 %1908 }
 0x236   : > { %v1847_v7 = vpop.permute.xlu0 %1846 }
 0x237   : > { %v1721_v8 = vpop.permute.xlu1 %1720 }
 0x238   : > { %v1977_v38 = vsel %vm551_vm2, %v4130_v32, %v1721_v8 }
 0x239   : > { %v2010_v3 = vsel %vm1986_vm6, %v1977_v38, %v1753_v39  ;;  %v2157_v39 = vsel %vm2151_vm11, %v2124_v47, %v5111_v54  ;;  %v5114_v38 = vld [vmem:[#allocation13_spill] sm:$0xff] }
 0x23a   : > { %v4621_v55 = vpop.permute.xlu0 %1910  ;;  %v2043_v61 = vsel %vm2019_vm7, %v2010_v3, %v1785_v2  ;;  %v2089_v2 = vsel %vm2085_vm9, %v2056_v34, %v5104_v63  ;;  %v2171_v34 = vsel %vm2151_vm11, %v4601_v40, %v4616_v4 }
 0x23b   : > { %v2076_v11 = vsel %vm2052_vm8, %v2043_v61, %v1817_v15  ;;  %v4631_v16 = vpop.permute.xlu1 %1880  ;;  %v5115_v61 = vld [vmem:[#allocation11_spill] sm:$0xff] }
 0x23c   : > { %v4634_v32 = vsel %vm2085_vm9, %v2076_v11, %v1849_v60  ;;  %v2190_v0 = vsel %vm2184_vm12, %v2157_v39, %v5115_v61 }
 0x23e   : > { %v1815_v18 = vpop.permute.xlu0 %1814 }
 0x23f   : > { %v2074_v24 = vsel %vm2052_vm8, %v2041_v12, %v1815_v18  ;;  %v4645_v26 = vpop.permute.xlu1 %1912 }
 0x240   : > { %v2107_v56 = vsel %vm2085_vm9, %v2074_v24, %v1847_v7  ;;  %v5113_v7 = vld [vmem:[#allocation5_spill] sm:$0xff] }
 0x241   : > { %v2140_v57 = vsel %vm2118_vm10, %v2107_v56, %v1879_v49 }
 0x242   : > { %v1699_v51 = vpop.permute.xlu0 %1698 }
 0x243   : > { %v1955_v19 = vsel %vm551_vm2, %v4233_v13, %v1699_v51  ;;  %v1731_v23 = vpop.permute.xlu1 %1730  ;;  %v5106_v13 = vld [vmem:[#allocation9_spill] sm:$0xff] }
 0x244   : > { %v1988_v62 = vsel %vm1986_vm6, %v1955_v19, %v1731_v23  ;;  %v2204_v23 = vsel %vm2184_vm12, %v2171_v34, %v4614_v58  ;;  %v2142_v58 = vsel %vm2118_vm10, %v4634_v32, %v4631_v16 }
 0x245   : > { %v2021_v22 = vsel %vm2019_vm7, %v1988_v62, %v4268_v48  ;;  %v2122_v48 = vsel %vm2118_vm10, %v2089_v2, %v5109_v31 }
 0x246   : > { %v1945_v41 = vpop.permute.xlu0 %1944  ;;  %v2054_v33 = vsel %vm2052_vm8, %v2021_v22, %v5106_v13  ;;  %v2155_v15 = vsel %vm2151_vm11, %v2122_v48, %v5112_v50 }
 0x247   : > { %v1725_v29 = vpop.permute.xlu1 %1724  ;;  %v2087_v35 = vsel %vm2085_vm9, %v2054_v33, %v5107_v10  ;;  %v2188_v3 = vsel %vm2184_vm12, %v2155_v15, %v5114_v38 }
 0x248   : > { %v2120_v28 = vsel %vm2118_vm10, %v2087_v35, %v5108_v1  ;;  %v1981_v33 = vsel %vm551_vm2, %v4162_v17, %v1725_v29 }
 0x249   : > { %v2153_v49 = vsel %vm2151_vm11, %v2120_v28, %v5110_v44 }
 0x24a   : > { %v1755_v60 = vpop.permute.xlu0 %1754  ;;  %v2186_v8 = vsel %vm2184_vm12, %v2153_v49, %v5113_v7 }
 0x24b   : > { %v1757_v43 = vpop.permute.xlu1 %1756  ;;  %3060 = vmatprep.mubr.msk.bf16.mxu1 %vm2237_vm13, %v2186_v8 }
 0x24c   : > { %3061 = vmatmul.mubr.msk.bf16.vlgmr.msra.gmra.mrb[4].mxu1 %vm2237_vm13, %v2188_v3  ;;  %v2014_v16 = vsel %vm1986_vm6, %v1981_v33, %v1757_v43 }
 0x24d   : > { %3064 = vmatprep.mubr.msk.bf16.mxu1 %vm2237_vm13, %v2190_v0 }
 0x24e   : > { %v1787_v11 = vpop.permute.xlu0 %1786 }
 0x24f   : > { %v1789_v59 = vpop.permute.xlu1 %1788 }
 0x252   : > { %v1819_v12 = vpop.permute.xlu0 %1818 }
 0x253   : > { %v1821_v18 = vpop.permute.xlu1 %1820 }
 0x254   : > { %3065 = vmatmul.mubr.msk.bf16.gmra.mrb[8].mxu1 %vm2237_vm13, %v4476_v36 }
 0x255   : > { %3068 = vmatprep.mubr.msk.bf16.mxu1 %vm2237_vm13, %v4523_v30 }
 0x256   : > { %v1851_v14 = vpop.permute.xlu0 %1850 }
 0x257   : > { %v1853_v24 = vpop.permute.xlu1 %1852 }
 0x25a   : > { %v1883_v5 = vpop.permute.xlu0 %1882 }
 0x25b   : > { %v1885_v56 = vpop.permute.xlu1 %1884 }
 0x25c   : > { %3069 = vmatmul.mubr.msk.bf16.gmra.mrb[12].mxu1 %vm2237_vm13, %v4545_v27 }
 0x25d   : > { %3072 = vmatprep.mubr.msk.bf16.mxu1 %vm2237_vm13, %v4572_v20  ;;  %v2173_v20 = vsel %vm2151_vm11, %v2140_v57, %v4621_v55 }
 0x25e   : > { %v1915_v53 = vpop.permute.xlu0 %1914 }
 0x25f   : > { %v1917_v46 = vpop.permute.xlu1 %1916 }
 0x262   : > { %v1947_v51 = vpop.permute.xlu0 %1946 }
 0x263   : > { %v1727_v19 = vpop.permute.xlu1 %1726 }
 0x264   : > { %3073 = vmatmul.mubr.msk.bf16.gmra.mrb[16].mxu1 %vm2237_vm13, %v4592_v21  ;;  %v2206_v21 = vsel %vm2184_vm12, %v2173_v20, %v4610_v52  ;;  %v1983_v29 = vsel %vm551_vm2, %v4153_v37, %v1727_v19 }
 0x265   : > { %3076 = vmatprep.mubr.msk.bf16.mxu1 %vm2237_vm13, %v4608_v42  ;;  %v5116_v42 = vld [vmem:[#allocation2_spill] sm:$0xff] }
 0x266   : > { %v1949_v36 = vpop.permute.xlu0 %1948  ;;  %v1979_v62 = vsel %vm551_vm2, %v5116_v42, %v4612_v6  ;;  %v2175_v6 = vsel %vm2151_vm11, %v2142_v58, %v4645_v26  ;;  %v2047_v26 = vsel %vm2019_vm7, %v2014_v16, %v1789_v59 }
 0x267   : > { %v1729_v30 = vpop.permute.xlu1 %1728  ;;  %v2012_v4 = vsel %vm1986_vm6, %v1979_v62, %v1755_v60  ;;  %v2208_v25 = vsel %vm2184_vm12, %v2175_v6, %v1945_v41  ;;  %v2080_v35 = vsel %vm2052_vm8, %v2047_v26, %v1821_v18 }
 0x268   : > { %v2045_v55 = vsel %vm2019_vm7, %v2012_v4, %v1787_v11  ;;  %v2113_v1 = vsel %vm2085_vm9, %v2080_v35, %v1853_v24  ;;  %v1985_v49 = vsel %vm551_vm2, %v4205_v45, %v1729_v30 }
 0x269   : > { %v2078_v22 = vsel %vm2052_vm8, %v2045_v55, %v1819_v12  ;;  %v2146_v28 = vsel %vm2118_vm10, %v2113_v1, %v1885_v56 }
 0x26a   : > { %v1759_v27 = vpop.permute.xlu0 %1758  ;;  %v2111_v52 = vsel %vm2085_vm9, %v2078_v22, %v1851_v14  ;;  %v2179_v17 = vsel %vm2151_vm11, %v2146_v28, %v1917_v46  ;;  %v4762_v14 = vld [vmem:[%s5079_s7] ss:$0 sm:$0xff] }
 0x26b   : > { %v1761_v9 = vpop.permute.xlu1 %1760  ;;  %v2144_v2 = vsel %vm2118_vm10, %v2111_v52, %v1883_v5  ;;  %v2212_v48 = vsel %vm2184_vm12, %v2179_v17, %v1949_v36  ;;  %v2016_v44 = vsel %vm1986_vm6, %v1983_v29, %v1759_v27  ;;  %v4767_v5 = vld [vmem:[%s5080_s8] ss:$0 sm:$0xff] }
 0x26c   : > { %3077 = vmatmul.mubr.msk.bf16.gmra.mrb[20].mxu1 %vm2237_vm13, %v2204_v23  ;;  %v2177_v47 = vsel %vm2151_vm11, %v2144_v2, %v1915_v53  ;;  %v2018_v50 = vsel %vm1986_vm6, %v1985_v49, %v1761_v9 }
 0x26d   : > { %3080 = vmatprep.mubr.msk.bf16.mxu1 %vm2237_vm13, %v2206_v21  ;;  %v2210_v10 = vsel %vm2184_vm12, %v2177_v47, %v1947_v51 }
 0x26e   : > { %v1791_v40 = vpop.permute.xlu0 %1790 }
 0x26f   : > { %v1793_v57 = vpop.permute.xlu1 %1792  ;;  %v2049_v54 = vsel %vm2019_vm7, %v2016_v44, %v1791_v40 }
 0x270   : > { %v2051_v7 = vsel %vm2019_vm7, %v2018_v50, %v1793_v57 }
 0x272   : > { %v1823_v63 = vpop.permute.xlu0 %1822 }
 0x273   : > { %v1825_v13 = vpop.permute.xlu1 %1824  ;;  %v2082_v15 = vsel %vm2052_vm8, %v2049_v54, %v1823_v63 }
 0x274   : > { %3081 = vmatmul.mubr.msk.bf16.gmra.mrb[24].mxu1 %vm2237_vm13, %v2208_v25  ;;  %v2084_v38 = vsel %vm2052_vm8, %v2051_v7, %v1825_v13 }
 0x275   : > { %3084 = vmatprep.mubr.msk.bf16.mxu1 %vm2237_vm13, %v2210_v10 }
 0x276   : > { %v1855_v32 = vpop.permute.xlu0 %1854 }
 0x277   : > { %v1857_v41 = vpop.permute.xlu1 %1856  ;;  %v2115_v37 = vsel %vm2085_vm9, %v2082_v15, %v1855_v32 }
 0x278   : > { %v2117_v43 = vsel %vm2085_vm9, %v2084_v38, %v1857_v41 }
 0x27a   : > { %v1887_v31 = vpop.permute.xlu0 %1886 }
 0x27b   : > { %v1889_v60 = vpop.permute.xlu1 %1888  ;;  %v2148_v3 = vsel %vm2118_vm10, %v2115_v37, %v1887_v31 }
 0x27c   : > { %3085 = vmatmul.mubr.msk.bf16.gmra.mrb[28].mxu1 %vm2237_vm13, %v2212_v48  ;;  %v2150_v0 = vsel %vm2118_vm10, %v2117_v43, %v1889_v60 }
 0x27e   : > { %v1919_v39 = vpop.permute.xlu0 %1918 }
 0x27f   : > { %v1921_v8 = vpop.permute.xlu1 %1920  ;;  %v2181_v45 = vsel %vm2151_vm11, %v2148_v3, %v1919_v39 }
 0x280   : > { %v2183_v59 = vsel %vm2151_vm11, %v2150_v0, %v1921_v8 }
 0x282   : > { %v1951_v61 = vpop.permute.xlu0 %1950 }
 0x283   : > { %v2214_v11 = vsel %vm2184_vm12, %v2181_v45, %v1951_v61  ;;  %v1953_v12 = vpop.permute.xlu1 %1952 }
 0x284   : > { %3088 = vmatprep.mubr.msk.bf16.mxu1 %vm2237_vm13, %v2214_v11  ;;  %v2216_v18 = vsel %vm2184_vm12, %v2183_v59, %v1953_v12 }
 0x285   : > { %3089 = vmatmul.mubr.msk.bf16.gmra.mrb[32].mxu1 %vm2237_vm13, %v2216_v18 }
 0x31f   : > { %v3062_v24 = vpop.f32.mrb[4].mxu1 }
 0x320   : > { %v2443_v56 = vmul.f32 %v3062_v24, %v4762_v14  ;;  %v2307_v53 = vpop.f32.mrb[5].mxu1 }
 0x321   : > { %v2441_v46 = vmul.f32 %v4762_v14, %v2307_v53  ;;  %v3063_v51 = vpop.f32.mrb[6].mxu1 }
 0x322   : > { %v4772_v19 = vadd.f32 %v4767_v5, %v2443_v56  ;;  %v2444_v36 = vmul.f32 %v3063_v51, %v4762_v14  ;;  %v2310_v30 = vpop.f32.mrb[7].mxu1 }
 0x323   : > { %v4776_v34 = vadd.f32 %v4767_v5, %v2441_v46  ;;  %v2442_v27 = vmul.f32 %v4762_v14, %v2310_v30 }
 0x324   : > { %v2514_v20 = vsub.f32 0.0, %v4772_v19  ;;  %v4781_v9 = vadd.f32 %v4767_v5, %v2444_v36 }
 0x325   : > { %v2512_v23 = vsub.f32 0.0, %v4776_v34  ;;  %v4785_v21 = vadd.f32 %v4767_v5, %v2442_v27 }
 0x326   : > { %v2548_v42 = vmul.f32 1.442695, %v2514_v20  ;;  %v2515_v62 = vsub.f32 0.0, %v4781_v9 }
 0x327   : > { %v2544_v40 = vmul.f32 1.442695, %v2512_v23  ;;  %v2513_v4 = vsub.f32 0.0, %v4785_v21  ;;  %v3066_v55 = vpop.f32.mrb[8].mxu1 }
 0x328   : > { %3275 = vpow2.f32 %v2548_v42  ;;  %v2550_v57 = vmul.f32 1.442695, %v2515_v62  ;;  %v2447_v22 = vmul.f32 %v3066_v55, %v4762_v14  ;;  %v2323_v58 = vpop.f32.mrb[9].mxu1 }
 0x329   : > { %3277 = vpow2.f32 %v2544_v40  ;;  %v2546_v52 = vmul.f32 1.442695, %v2513_v4  ;;  %v2445_v63 = vmul.f32 %v4762_v14, %v2323_v58  ;;  %v3067_v6 = vpop.f32.mrb[10].mxu1 }
 0x32a   : > { %3279 = vpow2.f32 %v2550_v57  ;;  %v4792_v2 = vadd.f32 %v4767_v5, %v2447_v22  ;;  %v2448_v25 = vmul.f32 %v3067_v6, %v4762_v14  ;;  %v2326_v47 = vpop.f32.mrb[11].mxu1 }
 0x32b   : > { %3281 = vpow2.f32 %v2546_v52  ;;  %v4796_v13 = vadd.f32 %v4767_v5, %v2445_v63  ;;  %v2446_v33 = vmul.f32 %v4762_v14, %v2326_v47 }
 0x32c   : > { %v2518_v10 = vsub.f32 0.0, %v4792_v2  ;;  %v4801_v16 = vadd.f32 %v4767_v5, %v2448_v25 }
 0x32d   : > { %v2516_v32 = vsub.f32 0.0, %v4796_v13  ;;  %v4805_v26 = vadd.f32 %v4767_v5, %v2446_v33 }
 0x32e   : > { %v2556_v35 = vmul.f32 1.442695, %v2518_v10  ;;  %v2519_v41 = vsub.f32 0.0, %v4801_v16 }
 0x32f   : > { %v2552_v1 = vmul.f32 1.442695, %v2516_v32  ;;  %v2517_v28 = vsub.f32 0.0, %v4805_v26  ;;  %v3070_v31 = vpop.f32.mrb[12].mxu1 }
 0x330   : > { %3283 = vpow2.f32 %v2556_v35  ;;  %v2558_v17 = vmul.f32 1.442695, %v2519_v41  ;;  %v2451_v29 = vmul.f32 %v3070_v31, %v4762_v14  ;;  %v2339_v48 = vpop.f32.mrb[13].mxu1 }
 0x331   : > { %3285 = vpow2.f32 %v2552_v1  ;;  %v2554_v60 = vmul.f32 1.442695, %v2517_v28  ;;  %v2449_v44 = vmul.f32 %v4762_v14, %v2339_v48  ;;  %v3071_v49 = vpop.f32.mrb[14].mxu1 }
 0x332   : > { %v3276_v54 = vpop.eup %3275  ;;  %3287 = vpow2.f32 %v2558_v17  ;;  %v4812_v39 = vadd.f32 %v4767_v5, %v2451_v29  ;;  %v2452_v50 = vmul.f32 %v3071_v49, %v4762_v14  ;;  %v2342_v15 = vpop.f32.mrb[15].mxu1 }
 0x333   : > { %v3278_v7 = vpop.eup %3277  ;;  %v2610_v37 = vadd.f32 1.0, %v3276_v54  ;;  %3289 = vpow2.f32 %v2554_v60  ;;  %v4816_v8 = vadd.f32 %v4767_v5, %v2449_v44  ;;  %v2450_v38 = vmul.f32 %v4762_v14, %v2342_v15 }
 0x334   : > { %v3280_v3 = vpop.eup %3279  ;;  %v2608_v43 = vadd.f32 1.0, %v3278_v7  ;;  %v2522_v45 = vsub.f32 0.0, %v4812_v39  ;;  %v4821_v61 = vadd.f32 %v4767_v5, %v2452_v50 }
 0x335   : > { %v3282_v0 = vpop.eup %3281  ;;  %3291 = vrcp.f32 %v2610_v37  ;;  %v2611_v11 = vadd.f32 1.0, %v3280_v3  ;;  %v2520_v59 = vsub.f32 0.0, %v4816_v8  ;;  %v4825_v12 = vadd.f32 %v4767_v5, %v2450_v38 }
 0x336   : > { %3293 = vrcp.f32 %v2608_v43  ;;  %v2609_v18 = vadd.f32 1.0, %v3282_v0  ;;  %v2564_v24 = vmul.f32 1.442695, %v2522_v45  ;;  %v2523_v56 = vsub.f32 0.0, %v4821_v61  ;;  %v3405_v43 = vld [vmem:[%s3554_s18 + $0x10] sm:$0xff] }
 0x337   : > { %3295 = vrcp.f32 %v2611_v11  ;;  %v2560_v53 = vmul.f32 1.442695, %v2520_v59  ;;  %v2521_v46 = vsub.f32 0.0, %v4825_v12  ;;  %v3074_v51 = vpop.f32.mrb[16].mxu1 }
 0x338   : > { %3297 = vrcp.f32 %v2609_v18  ;;  %v2566_v36 = vmul.f32 1.442695, %v2523_v56  ;;  %v2455_v30 = vmul.f32 %v3074_v51, %v4762_v14  ;;  %v2355_v27 = vpop.f32.mrb[17].mxu1  ;;  %v3406_v18 = vld [vmem:[%s3554_s18] sm:$0xff] }
 0x339   : > { %3299 = vpow2.f32 %v2564_v24  ;;  %v2562_v20 = vmul.f32 1.442695, %v2521_v46  ;;  %v2453_v23 = vmul.f32 %v4762_v14, %v2355_v27  ;;  %v3075_v42 = vpop.f32.mrb[18].mxu1 }
 0x33a   : > { %v3284_v62 = vpop.eup %3283  ;;  %3301 = vpow2.f32 %v2560_v53  ;;  %v4832_v40 = vadd.f32 %v4767_v5, %v2455_v30  ;;  %v2456_v4 = vmul.f32 %v3075_v42, %v4762_v14  ;;  %v2358_v55 = vpop.f32.mrb[19].mxu1 }
 0x33b   : > { %v3286_v57 = vpop.eup %3285  ;;  %v2614_v22 = vadd.f32 1.0, %v3284_v62  ;;  %3303 = vpow2.f32 %v2566_v36  ;;  %v4836_v58 = vadd.f32 %v4767_v5, %v2453_v23  ;;  %v2454_v52 = vmul.f32 %v4762_v14, %v2358_v55 }
 0x33c   : > { %v3288_v63 = vpop.eup %3287  ;;  %v2612_v6 = vadd.f32 1.0, %v3286_v57  ;;  %3305 = vpow2.f32 %v2562_v20  ;;  %v2526_v25 = vsub.f32 0.0, %v4832_v40  ;;  %v4841_v47 = vadd.f32 %v4767_v5, %v2456_v4  ;;  %v3408_v20 = vld [vmem:[%s3554_s18 + $0x8] sm:$0xff] }
 0x33d   : > { %v3290_v33 = vpop.eup %3289  ;;  %3307 = vrcp.f32 %v2614_v22  ;;  %v2615_v10 = vadd.f32 1.0, %v3288_v63  ;;  %v2524_v32 = vsub.f32 0.0, %v4836_v58  ;;  %v4845_v35 = vadd.f32 %v4767_v5, %v2454_v52 }
 0x33e   : > { %3309 = vrcp.f32 %v2612_v6  ;;  %v2613_v41 = vadd.f32 1.0, %v3290_v33  ;;  %v2572_v1 = vmul.f32 1.442695, %v2526_v25  ;;  %v2527_v28 = vsub.f32 0.0, %v4841_v47 }
 0x33f   : > { %v3292_v31 = vpop.eup %3291  ;;  %3311 = vrcp.f32 %v2615_v10  ;;  %v2568_v17 = vmul.f32 1.442695, %v2524_v32  ;;  %v2525_v29 = vsub.f32 0.0, %v4845_v35  ;;  %v3078_v48 = vpop.f32.mrb[20].mxu1 }
 0x340   : > { %v3294_v60 = vpop.eup %3293  ;;  %v2674_v44 = vmul.f32 %v3292_v31, %v4772_v19  ;;  %3313 = vrcp.f32 %v2613_v41  ;;  %v2574_v49 = vmul.f32 1.442695, %v2527_v28  ;;  %v2459_v54 = vmul.f32 %v3078_v48, %v4762_v14  ;;  %v2371_v50 = vpop.f32.mrb[21].mxu1 }
 0x341   : > { %v3296_v15 = vpop.eup %3295  ;;  %v2672_v7 = vmul.f32 %v3294_v60, %v4776_v34  ;;  %3315 = vpow2.f32 %v2572_v1  ;;  %v2570_v37 = vmul.f32 1.442695, %v2525_v29  ;;  %v2457_v38 = vmul.f32 %v4762_v14, %v2371_v50  ;;  %v3079_v19 = vpop.f32.mrb[22].mxu1 }
 0x342   : > { %v3298_v3 = vpop.eup %3297  ;;  %v2706_v45 = vadd.f32 %v3405_v43, %v2674_v44  ;;  %v2675_v0 = vmul.f32 %v3296_v15, %v4781_v9  ;;  %3317 = vpow2.f32 %v2568_v17  ;;  %v4862_v11 = vadd.f32 %v4767_v5, %v2459_v54  ;;  %v2374_v59 = vpop.f32.mrb[23].mxu1  ;;  %v3407_v9 = vld [vmem:[%s3554_s18 + $0x18] sm:$0xff]  ;;  %v3409_v44 = vld [vmem:[%s3554_s18 + $0x30] sm:$0xff] }
 0x343   : > { %v3300_v34 = vpop.eup %3299  ;;  %v2704_v24 = vadd.f32 %v3406_v18, %v2672_v7  ;;  %v2673_v56 = vmul.f32 %v3298_v3, %v4785_v21  ;;  %3319 = vpow2.f32 %v2574_v49  ;;  %v4867_v53 = vadd.f32 %v4767_v5, %v2457_v38  ;;  %v3410_v7 = vld [vmem:[%s3554_s18 + $0x20] sm:$0xff]  ;;  %v3411_v43 = vld [vmem:[%s3554_s18 + $0x38] sm:$0xff]  ;;  %v3412_v18 = vld [vmem:[%s3554_s18 + $0x28] sm:$0xff] }
 0x344   : > { %v3302_v46 = vpop.eup %3301  ;;  %2738 = vst.msk [vmem:[%s4855_s20 + $0x10] sm:$0xff] %vm551_vm2, %v2706_v45  ;;  %v2707_v51 = vadd.f32 %v3407_v9, %v2675_v0  ;;  %v2618_v36 = vadd.f32 1.0, %v3300_v34  ;;  %3321 = vpow2.f32 %v2570_v37  ;;  %v2530_v30 = vsub.f32 0.0, %v4862_v11 }
 0x345   : > { %v3304_v27 = vpop.eup %3303  ;;  %2736 = vst.msk [vmem:[%s4855_s20] sm:$0xff] %vm551_vm2, %v2704_v24  ;;  %v2705_v21 = vadd.f32 %v3408_v20, %v2673_v56  ;;  %v2616_v23 = vadd.f32 1.0, %v3302_v46  ;;  %v2528_v42 = vsub.f32 0.0, %v4867_v53  ;;  %v2460_v62 = vmul.f32 %v3079_v19, %v4762_v14 }
 0x346   : > { %v3306_v4 = vpop.eup %3305  ;;  %2739 = vst.msk [vmem:[%s4855_s20 + $0x18] sm:$0xff] %vm551_vm2, %v2707_v51  ;;  %3323 = vrcp.f32 %v2618_v36  ;;  %v2619_v55 = vadd.f32 1.0, %v3304_v27  ;;  %v2580_v57 = vmul.f32 1.442695, %v2530_v30  ;;  %v2458_v22 = vmul.f32 %v4762_v14, %v2374_v59 }
 0x347   : > { %v3308_v52 = vpop.eup %3307  ;;  %2737 = vst.msk [vmem:[%s4855_s20 + $0x8] sm:$0xff] %vm551_vm2, %v2705_v21  ;;  %3325 = vrcp.f32 %v2616_v23  ;;  %v2617_v63 = vadd.f32 1.0, %v3306_v4  ;;  %v2576_v6 = vmul.f32 1.442695, %v2528_v42  ;;  %v4884_v25 = vadd.f32 %v4767_v5, %v2460_v62  ;;  %v3082_v33 = vpop.f32.mrb[24].mxu1 }
 0x348   : > { %v3310_v10 = vpop.eup %3309  ;;  %v2678_v32 = vmul.f32 %v3308_v52, %v4792_v2  ;;  %3327 = vrcp.f32 %v2619_v55  ;;  %v4888_v41 = vadd.f32 %v4767_v5, %v2458_v22  ;;  %v2463_v1 = vmul.f32 %v3082_v33, %v4762_v14  ;;  %v2387_v28 = vpop.f32.mrb[25].mxu1 }
 0x349   : > { %v3312_v31 = vpop.eup %3311  ;;  %v2676_v17 = vmul.f32 %v3310_v10, %v4796_v13  ;;  %3329 = vrcp.f32 %v2617_v63  ;;  %v2531_v29 = vsub.f32 0.0, %v4884_v25  ;;  %v2461_v48 = vmul.f32 %v4762_v14, %v2387_v28  ;;  %v3083_v60 = vpop.f32.mrb[26].mxu1 }
 0x34a   : > { %v3314_v2 = vpop.eup %3313  ;;  %v2710_v49 = vadd.f32 %v3409_v44, %v2678_v32  ;;  %v2679_v54 = vmul.f32 %v3312_v31, %v4801_v16  ;;  %3331 = vpow2.f32 %v2580_v57  ;;  %v2529_v50 = vsub.f32 0.0, %v4888_v41  ;;  %v2390_v15 = vpop.f32.mrb[27].mxu1  ;;  %v3413_v31 = vld [vmem:[%s3554_s18 + $0x50] sm:$0xff] }
 0x34b   : > { %v3316_v13 = vpop.eup %3315  ;;  %v2708_v37 = vadd.f32 %v3410_v7, %v2676_v17  ;;  %v2677_v38 = vmul.f32 %v3314_v2, %v4805_v26  ;;  %3333 = vpow2.f32 %v2576_v6  ;;  %v2582_v19 = vmul.f32 1.442695, %v2531_v29 }
 0x34c   : > { %v3318_v3 = vpop.eup %3317  ;;  %2742 = vst.msk [vmem:[%s4855_s20 + $0x30] sm:$0xff] %vm551_vm2, %v2710_v49  ;;  %v2711_v45 = vadd.f32 %v3411_v43, %v2679_v54  ;;  %v2622_v16 = vadd.f32 1.0, %v3316_v13  ;;  %v2578_v0 = vmul.f32 1.442695, %v2529_v50  ;;  %v4903_v59 = vadd.f32 %v4767_v5, %v2463_v1  ;;  %v3415_v50 = vld [vmem:[%s3554_s18 + $0x58] sm:$0xff] }
 0x34d   : > { %v3320_v34 = vpop.eup %3319  ;;  %2740 = vst.msk [vmem:[%s4855_s20 + $0x20] sm:$0xff] %vm551_vm2, %v2708_v37  ;;  %v2709_v24 = vadd.f32 %v3412_v18, %v2677_v38  ;;  %v2620_v26 = vadd.f32 1.0, %v3318_v3  ;;  %3335 = vpow2.f32 %v2582_v19  ;;  %v4909_v56 = vadd.f32 %v4767_v5, %v2461_v48  ;;  %v3416_v37 = vld [vmem:[%s3554_s18 + $0x48] sm:$0xff] }
 0x34e   : > { %v3322_v46 = vpop.eup %3321  ;;  %2743 = vst.msk [vmem:[%s4855_s20 + $0x38] sm:$0xff] %vm551_vm2, %v2711_v45  ;;  %3337 = vrcp.f32 %v2622_v16  ;;  %v2623_v9 = vadd.f32 1.0, %v3320_v34  ;;  %v2534_v51 = vsub.f32 0.0, %v4903_v59  ;;  %v2464_v36 = vmul.f32 %v3083_v60, %v4762_v14  ;;  %v3414_v60 = vld [vmem:[%s3554_s18 + $0x40] sm:$0xff] }
 0x34f   : > { %2741 = vst.msk [vmem:[%s4855_s20 + $0x28] sm:$0xff] %vm551_vm2, %v2709_v24  ;;  %3339 = vrcp.f32 %v2620_v26  ;;  %v2621_v30 = vadd.f32 1.0, %v3322_v46  ;;  %v2532_v27 = vsub.f32 0.0, %v4909_v56  ;;  %v2462_v20 = vmul.f32 %v4762_v14, %v2390_v15  ;;  %v3086_v21 = vpop.f32.mrb[28].mxu1 }
 0x350   : > { %v3324_v23 = vpop.eup %3323  ;;  %3341 = vrcp.f32 %v2623_v9  ;;  %v2588_v42 = vmul.f32 1.442695, %v2534_v51  ;;  %v4920_v62 = vadd.f32 %v4767_v5, %v2464_v36  ;;  %v2467_v4 = vmul.f32 %v3086_v21, %v4762_v14  ;;  %v2403_v55 = vpop.f32.mrb[29].mxu1 }
 0x351   : > { %v3326_v57 = vpop.eup %3325  ;;  %v2682_v22 = vmul.f32 %v3324_v23, %v4812_v39  ;;  %3343 = vrcp.f32 %v2621_v30  ;;  %v2584_v52 = vmul.f32 1.442695, %v2532_v27  ;;  %v4925_v63 = vadd.f32 %v4767_v5, %v2462_v20  ;;  %v3087_v6 = vpop.f32.mrb[30].mxu1 }
 0x352   : > { %v3328_v33 = vpop.eup %3327  ;;  %v2680_v10 = vmul.f32 %v3326_v57, %v4816_v8  ;;  %3345 = vpow2.f32 %v2578_v0  ;;  %v2535_v32 = vsub.f32 0.0, %v4920_v62  ;;  %v4930_v1 = vadd.f32 %v4767_v5, %v2467_v4  ;;  %v2406_v28 = vpop.f32.mrb[31].mxu1 }
 0x353   : > { %v3330_v39 = vpop.eup %3329  ;;  %v2714_v17 = vadd.f32 %v3413_v31, %v2682_v22  ;;  %v2683_v29 = vmul.f32 %v3328_v33, %v4821_v61  ;;  %3347 = vpow2.f32 %v2588_v42  ;;  %v2533_v48 = vsub.f32 0.0, %v4925_v63  ;;  %v3417_v42 = vld [vmem:[%s3554_s18 + $0x70] sm:$0xff] }
 0x354   : > { %v3332_v8 = vpop.eup %3331  ;;  %v2712_v2 = vadd.f32 %v3414_v60, %v2680_v10  ;;  %v2681_v44 = vmul.f32 %v3330_v39, %v4825_v12  ;;  %3349 = vpow2.f32 %v2584_v52  ;;  %v2590_v49 = vmul.f32 1.442695, %v2535_v32  ;;  %v3418_v52 = vld [vmem:[%s3554_s18 + $0x60] sm:$0xff]  ;;  %v3419_v39 = vld [vmem:[%s3554_s18 + $0x78] sm:$0xff] }
 0x355   : > { %v3334_v54 = vpop.eup %3333  ;;  %2746 = vst.msk [vmem:[%s4855_s20 + $0x50] sm:$0xff] %vm551_vm2, %v2714_v17  ;;  %v2715_v15 = vadd.f32 %v3415_v50, %v2683_v29  ;;  %v2626_v13 = vadd.f32 1.0, %v3332_v8  ;;  %v2586_v61 = vmul.f32 1.442695, %v2533_v48  ;;  %v2538_v7 = vsub.f32 0.0, %v4930_v1  ;;  %v3420_v48 = vld [vmem:[%s3554_s18 + $0x68] sm:$0xff] }
 0x356   : > { %2744 = vst.msk [vmem:[%s4855_s20 + $0x40] sm:$0xff] %vm551_vm2, %v2712_v2  ;;  %v2713_v38 = vadd.f32 %v3416_v37, %v2681_v44  ;;  %v2624_v19 = vadd.f32 1.0, %v3334_v54  ;;  %3351 = vpow2.f32 %v2590_v49  ;;  %v2465_v12 = vmul.f32 %v4762_v14, %v2403_v55 }
 0x357   : > { %v3336_v3 = vpop.eup %3335  ;;  %2747 = vst.msk [vmem:[%s4855_s20 + $0x58] sm:$0xff] %vm551_vm2, %v2715_v15  ;;  %3353 = vrcp.f32 %v2626_v13  ;;  %v2596_v43 = vmul.f32 1.442695, %v2538_v7  ;;  %v2468_v45 = vmul.f32 %v3087_v6, %v4762_v14  ;;  %v2466_v16 = vmul.f32 %v4762_v14, %v2406_v28 }
 0x358   : > { %v3338_v0 = vpop.eup %3337  ;;  %2745 = vst.msk [vmem:[%s4855_s20 + $0x48] sm:$0xff] %vm551_vm2, %v2713_v38  ;;  %3355 = vrcp.f32 %v2624_v19  ;;  %v2627_v34 = vadd.f32 1.0, %v3336_v3  ;;  %v4952_v18 = vadd.f32 %v4767_v5, %v2465_v12  ;;  %v3090_v24 = vpop.f32.mrb[32].mxu1 }
 0x359   : > { %v3340_v26 = vpop.eup %3339  ;;  %v2686_v46 = vmul.f32 %v3338_v0, %v4832_v40  ;;  %3357 = vpow2.f32 %v2586_v61  ;;  %v4956_v9 = vadd.f32 %v4767_v5, %v2468_v45  ;;  %v4959_v51 = vadd.f32 %v4767_v5, %v2466_v16  ;;  %v2419_v36 = vpop.f32.mrb[33].mxu1 }
 0x35a   : > { %v3342_v30 = vpop.eup %3341  ;;  %v2684_v27 = vmul.f32 %v3340_v26, %v4836_v58  ;;  %3359 = vrcp.f32 %v2627_v34  ;;  %v2536_v20 = vsub.f32 0.0, %v4952_v18  ;;  %v2471_v21 = vmul.f32 %v3090_v24, %v4762_v14  ;;  %v3091_v23 = vpop.f32.mrb[34].mxu1  ;;  %v3421_v34 = vld [vmem:[%s3554_s18 + $0x90] sm:$0xff] }
 0x35b   : > { %v3344_v40 = vpop.eup %3343  ;;  %v2718_v4 = vadd.f32 %v3417_v42, %v2686_v46  ;;  %v2687_v55 = vmul.f32 %v3342_v30, %v4841_v47  ;;  %3361 = vpow2.f32 %v2596_v43  ;;  %v2539_v57 = vsub.f32 0.0, %v4956_v9  ;;  %v2422_v22 = vpop.f32.mrb[35].mxu1 }
 0x35c   : > { %v3346_v58 = vpop.eup %3345  ;;  %v2716_v6 = vadd.f32 %v3418_v52, %v2684_v27  ;;  %v2685_v33 = vmul.f32 %v3344_v40, %v4845_v35  ;;  %v2592_v10 = vmul.f32 1.442695, %v2536_v20  ;;  %v2537_v32 = vsub.f32 0.0, %v4959_v51 }
 0x35d   : > { %v3348_v28 = vpop.eup %3347  ;;  %2750 = vst.msk [vmem:[%s4855_s20 + $0x70] sm:$0xff] %vm551_vm2, %v2718_v4  ;;  %v2719_v47 = vadd.f32 %v3419_v39, %v2687_v55  ;;  %v2625_v31 = vadd.f32 1.0, %v3346_v58  ;;  %v4974_v17 = vadd.f32 %v4767_v5, %v2471_v21  ;;  %v2598_v60 = vmul.f32 1.442695, %v2539_v57  ;;  %v3425_v39 = vld [vmem:[%s3554_s18 + $0xb0] sm:$0xff] }
 0x35e   : > { %v3350_v29 = vpop.eup %3349  ;;  %2748 = vst.msk [vmem:[%s4855_s20 + $0x60] sm:$0xff] %vm551_vm2, %v2716_v6  ;;  %v2717_v8 = vadd.f32 %v3420_v48, %v2685_v33  ;;  %v2630_v35 = vadd.f32 1.0, %v3348_v28  ;;  %3363 = vpow2.f32 %v2592_v10  ;;  %v2469_v49 = vmul.f32 %v4762_v14, %v2419_v36  ;;  %v3422_v36 = vld [vmem:[%s3554_s18 + $0x80] sm:$0xff]  ;;  %v3424_v33 = vld [vmem:[%s3554_s18 + $0x88] sm:$0xff] }
 0x35f   : > { %2751 = vst.msk [vmem:[%s4855_s20 + $0x78] sm:$0xff] %vm551_vm2, %v2719_v47  ;;  %3365 = vrcp.f32 %v2625_v31  ;;  %v2628_v2 = vadd.f32 1.0, %v3350_v29  ;;  %v2542_v44 = vsub.f32 0.0, %v4974_v17  ;;  %v2594_v50 = vmul.f32 1.442695, %v2537_v32 }
 0x360   : > { %v3352_v54 = vpop.eup %3351  ;;  %2749 = vst.msk [vmem:[%s4855_s20 + $0x68] sm:$0xff] %vm551_vm2, %v2717_v8  ;;  %3367 = vrcp.f32 %v2630_v35  ;;  %v2472_v15 = vmul.f32 %v3091_v23, %v4762_v14  ;;  %v2470_v13 = vmul.f32 %v4762_v14, %v2422_v22  ;;  %v4988_v38 = vadd.f32 %v4767_v5, %v2469_v49  ;;  %v3423_v23 = vld [vmem:[%s3554_s18 + $0x98] sm:$0xff] }
 0x361   : > { %v3354_v61 = vpop.eup %3353  ;;  %3369 = vrcp.f32 %v2628_v2  ;;  %v2631_v7 = vadd.f32 1.0, %v3352_v54  ;;  %v2604_v37 = vmul.f32 1.442695, %v2542_v44 }
 0x362   : > { %v3356_v19 = vpop.eup %3355  ;;  %v2690_v12 = vmul.f32 %v3354_v61, %v4862_v11  ;;  %3371 = vpow2.f32 %v2598_v60  ;;  %v4992_v3 = vadd.f32 %v4767_v5, %v2472_v15  ;;  %v4995_v43 = vadd.f32 %v4767_v5, %v2470_v13  ;;  %v3427_v60 = vld [vmem:[%s3554_s18 + $0xb8] sm:$0xff]  ;;  %v3428_v13 = vld [vmem:[%s3554_s18 + $0xa8] sm:$0xff] }
 0x363   : > { %v3358_v14 = vpop.eup %3357  ;;  %v2688_v45 = vmul.f32 %v3356_v19, %v4867_v53  ;;  %3373 = vrcp.f32 %v2631_v7  ;;  %v2540_v16 = vsub.f32 0.0, %v4988_v38 }
 0x364   : > { %v3360_v0 = vpop.eup %3359  ;;  %v2722_v24 = vadd.f32 %v3421_v34, %v2690_v12  ;;  %v2629_v11 = vadd.f32 1.0, %v3358_v14  ;;  %3375 = vpow2.f32 %v2594_v50  ;;  %v2543_v26 = vsub.f32 0.0, %v4992_v3 }
 0x365   : > { %v3362_v46 = vpop.eup %3361  ;;  %v2720_v5 = vadd.f32 %v3422_v36, %v2688_v45  ;;  %v2691_v30 = vmul.f32 %v3360_v0, %v4884_v25  ;;  %3377 = vpow2.f32 %v2604_v37  ;;  %v2600_v53 = vmul.f32 1.442695, %v2540_v16 }
 0x366   : > { %2754 = vst.msk [vmem:[%s4855_s20 + $0x90] sm:$0xff] %vm551_vm2, %v2722_v24  ;;  %3379 = vrcp.f32 %v2629_v11  ;;  %v2634_v27 = vadd.f32 1.0, %v3362_v46  ;;  %v2606_v20 = vmul.f32 1.442695, %v2543_v26  ;;  %v2541_v21 = vsub.f32 0.0, %v4995_v43 }
 0x367   : > { %2752 = vst.msk [vmem:[%s4855_s20 + $0x80] sm:$0xff] %vm551_vm2, %v2720_v5  ;;  %v2723_v40 = vadd.f32 %v3423_v23, %v2691_v30  ;;  %3381 = vpow2.f32 %v2600_v53  ;;  %v3432_v53 = vld [vmem:[%s3554_s18 + $0xc8] sm:$0xff] }
 0x368   : > { %v3364_v42 = vpop.eup %3363  ;;  %3383 = vrcp.f32 %v2634_v27  ;;  %v2602_v4 = vmul.f32 1.442695, %v2541_v21 }
 0x369   : > { %v3366_v25 = vpop.eup %3365  ;;  %2755 = vst.msk [vmem:[%s4855_s20 + $0x98] sm:$0xff] %vm551_vm2, %v2723_v40  ;;  %v2632_v55 = vadd.f32 1.0, %v3364_v42  ;;  %3385 = vpow2.f32 %v2606_v20  ;;  %v3433_v20 = vld [vmem:[%s3554_s18 + $0xf0] sm:$0xff] }
 0x36a   : > { %v3368_v57 = vpop.eup %3367  ;;  %v2689_v22 = vmul.f32 %v3366_v25, %v4888_v41  ;;  %3387 = vpow2.f32 %v2602_v4  ;;  %v3426_v41 = vld [vmem:[%s3554_s18 + $0xa0] sm:$0xff]  ;;  %v3435_v25 = vld [vmem:[%s3554_s18 + $0xf8] sm:$0xff] }
 0x36b   : > { %v3370_v58 = vpop.eup %3369  ;;  %v2694_v52 = vmul.f32 %v3368_v57, %v4903_v59  ;;  %3389 = vrcp.f32 %v2632_v55  ;;  %v3436_v57 = vld [vmem:[%s3554_s18 + $0xe8] sm:$0xff] }
 0x36c   : > { %v3372_v6 = vpop.eup %3371  ;;  %v2721_v10 = vadd.f32 %v3424_v33, %v2689_v22  ;;  %v2692_v32 = vmul.f32 %v3370_v58, %v4909_v56 }
 0x36d   : > { %v3374_v28 = vpop.eup %3373  ;;  %v2726_v47 = vadd.f32 %v3425_v39, %v2694_v52  ;;  %v2635_v31 = vadd.f32 1.0, %v3372_v6 }
 0x36e   : > { %v3376_v29 = vpop.eup %3375  ;;  %2753 = vst.msk [vmem:[%s4855_s20 + $0x88] sm:$0xff] %vm551_vm2, %v2721_v10  ;;  %v2724_v48 = vadd.f32 %v3426_v41, %v2692_v32  ;;  %v2695_v59 = vmul.f32 %v3374_v28, %v4920_v62 }
 0x36f   : > { %v3378_v8 = vpop.eup %3377  ;;  %2758 = vst.msk [vmem:[%s4855_s20 + $0xb0] sm:$0xff] %vm551_vm2, %v2726_v47  ;;  %3391 = vrcp.f32 %v2635_v31  ;;  %v2633_v35 = vadd.f32 1.0, %v3376_v29 }
 0x370   : > { %v3380_v56 = vpop.eup %3379  ;;  %2756 = vst.msk [vmem:[%s4855_s20 + $0xa0] sm:$0xff] %vm551_vm2, %v2724_v48  ;;  %v2727_v2 = vadd.f32 %v3427_v60, %v2695_v59  ;;  %v2638_v44 = vadd.f32 1.0, %v3378_v8 }
 0x371   : > { %v3382_v49 = vpop.eup %3381  ;;  %v2693_v54 = vmul.f32 %v3380_v56, %v4925_v63  ;;  %3393 = vrcp.f32 %v2633_v35  ;;  %v3429_v63 = vld [vmem:[%s3554_s18 + $0xd0] sm:$0xff] }
 0x372   : > { %v3384_v50 = vpop.eup %3383  ;;  %2759 = vst.msk [vmem:[%s4855_s20 + $0xb8] sm:$0xff] %vm551_vm2, %v2727_v2  ;;  %3395 = vrcp.f32 %v2638_v44  ;;  %v2636_v62 = vadd.f32 1.0, %v3382_v49 }
 0x373   : > { %v3386_v15 = vpop.eup %3385  ;;  %v2725_v61 = vadd.f32 %v3428_v13, %v2693_v54  ;;  %v2698_v7 = vmul.f32 %v3384_v50, %v4930_v1  ;;  %v3430_v1 = vld [vmem:[%s3554_s18 + $0xc0] sm:$0xff] }
 0x374   : > { %v3388_v37 = vpop.eup %3387  ;;  %3397 = vrcp.f32 %v2636_v62  ;;  %v2639_v19 = vadd.f32 1.0, %v3386_v15 }
 0x375   : > { %v3390_v12 = vpop.eup %3389  ;;  %2757 = vst.msk [vmem:[%s4855_s20 + $0xa8] sm:$0xff] %vm551_vm2, %v2725_v61  ;;  %v2730_v14 = vadd.f32 %v3429_v63, %v2698_v7  ;;  %v2637_v45 = vadd.f32 1.0, %v3388_v37 }
 0x376   : > { %v2696_v16 = vmul.f32 %v3390_v12, %v4952_v18  ;;  %3399 = vrcp.f32 %v2639_v19  ;;  %v3431_v18 = vld [vmem:[%s3554_s18 + $0xd8] sm:$0xff] }
 0x377   : > { %2762 = vst.msk [vmem:[%s4855_s20 + $0xd0] sm:$0xff] %vm551_vm2, %v2730_v14  ;;  %3401 = vrcp.f32 %v2637_v45 }
 0x378   : > { %v2728_v0 = vadd.f32 %v3430_v1, %v2696_v16 }
 0x379   : > { %v3392_v34 = vpop.eup %3391 }
 0x37a   : > { %2760 = vst.msk [vmem:[%s4855_s20 + $0xc0] sm:$0xff] %vm551_vm2, %v2728_v0  ;;  %v2699_v24 = vmul.f32 %v3392_v34, %v4956_v9 }
 0x37b   : > { %v3394_v11 = vpop.eup %3393 }
 0x37c   : > { %v3396_v26 = vpop.eup %3395  ;;  %v2731_v46 = vadd.f32 %v3431_v18, %v2699_v24  ;;  %v2697_v36 = vmul.f32 %v3394_v11, %v4959_v51 }
 0x37d   : > { %v2702_v5 = vmul.f32 %v3396_v26, %v4974_v17  ;;  %v3434_v17 = vld [vmem:[%s3554_s18 + $0xe0] sm:$0xff] }
 0x37e   : > { %v3398_v30 = vpop.eup %3397  ;;  %2763 = vst.msk [vmem:[%s4855_s20 + $0xd8] sm:$0xff] %vm551_vm2, %v2731_v46  ;;  %v2729_v27 = vadd.f32 %v3432_v53, %v2697_v36 }
 0x37f   : > { %v2734_v9 = vadd.f32 %v3433_v20, %v2702_v5  ;;  %v2700_v21 = vmul.f32 %v3398_v30, %v4988_v38 }
 0x380   : > { %v3400_v23 = vpop.eup %3399  ;;  %2761 = vst.msk [vmem:[%s4855_s20 + $0xc8] sm:$0xff] %vm551_vm2, %v2729_v27 }
 0x381   : > { %v3402_v51 = vpop.eup %3401  ;;  %2766 = vst.msk [vmem:[%s4855_s20 + $0xf0] sm:$0xff] %vm551_vm2, %v2734_v9  ;;  %v2732_v40 = vadd.f32 %v3434_v17, %v2700_v21  ;;  %v2703_v42 = vmul.f32 %v3400_v23, %v4992_v3 }
 0x382   : > { %v2701_v4 = vmul.f32 %v3402_v51, %v4995_v43 }
 0x383   : > { %2764 = vst.msk [vmem:[%s4855_s20 + $0xe0] sm:$0xff] %vm551_vm2, %v2732_v40  ;;  %v2735_v55 = vadd.f32 %v3435_v25, %v2703_v42 }
 0x384   : > { %v2733_v22 = vadd.f32 %v3436_v57, %v2701_v4 }
 0x385   : > { %2767 = vst.msk [vmem:[%s4855_s20 + $0xf8] sm:$0xff] %vm551_vm2, %v2735_v55 }
 0x386   : > { %2765 = vst.msk [vmem:[%s4855_s20 + $0xe8] sm:$0xff] %vm551_vm2, %v2733_v22 }
 0x387 PF: > { %s19_s11 = sadd.s32 1, %s3459_s11   ;;  %s5117_s30 = smov %s3455_s10 }
 0x388   : > { %p16_p5 = scmp.ge.s32.totalorder %s19_s11, 4   ;;  %s5118_s10 = smov %s5120_s12 }
 0x38a   :  { %18 = sbr.rel (!%p16_p5) target bundleno = 2 (0x2), region = 92 }

</bundles_post_ra>
